<compile_context>
chip_gen: v5e
topology: v5e:2x2
jax: 0.10.0
libtpu: 0.0.40
codegen_flags: <defaults>
</compile_context>

<pallas_src>
import functools

import jax
import jax.numpy as jnp
from jax.experimental import pallas as pl
from jax.experimental.pallas import tpu as pltpu

VMEM = pltpu.MemorySpace.VMEM


def _vspec():
    # whole-array-in-VMEM spec (everything fits; no tiling grid needed at these shapes)
    return pl.BlockSpec(memory_space=VMEM)


# --------------------------- fused forward kernel ----------------------------

def fused_transformer_kernel(
    x_ref, pos_ref, bias_ref, emb_w_ref, emb_b_ref,
    ln1_g_ref, ln1_b_ref, w_qkv_ref, b_qkv_ref, w_o_ref, b_o_ref,
    ln2_g_ref, ln2_b_ref, w1_ref, b1_ref, w2_ref, b2_ref,
    fc_w_ref, fc_b_ref,
    out_ref,
    *, num_layers, num_heads, batch, seq):
    f32 = jnp.float32
    H = emb_w_ref.shape[1]
    dH = H // num_heads
    scale = 1.0 / float(dH) ** 0.5

    def layer_norm(x, g, b):
        mean = jnp.mean(x, axis=-1, keepdims=True)
        var = jnp.mean(jnp.square(x - mean), axis=-1, keepdims=True)
        return (x - mean) * jax.lax.rsqrt(var + 1e-5) * g + b

    def matmul(a, w):
        return jnp.dot(a, w, preferred_element_type=f32)

    # embedding + positional encoding (pos is [S, H]; tile over batch via sublane concat)
    pos = jnp.concatenate([pos_ref[...]] * batch, axis=0)           # [B*S, H]
    bias = bias_ref[...]                                            # [B*S, B*S] additive mask
    x = matmul(x_ref[...], emb_w_ref[...]) + emb_b_ref[...] + pos   # [B*S, H]

    # encoder layers (pre-LN, relu FFN), statically unrolled; weights indexed per-layer
    for l in range(num_layers):
        # --- self-attention block: x = x + out_proj(MHA(LN1(x))) ---
        h = layer_norm(x, ln1_g_ref[l], ln1_b_ref[l])
        qkv = matmul(h, w_qkv_ref[l]) + b_qkv_ref[l]                # [B*S, 3H]  q|k|v
        w_o = w_o_ref[l]                                            # [H, H]
        attn = None
        for h_i in range(num_heads):
            c0 = h_i * dH
            q = qkv[:, c0:c0 + dH]                                  # [B*S, dH]
            k = qkv[:, H + c0:H + c0 + dH]                          # [B*S, dH]
            v = qkv[:, 2 * H + c0:2 * H + c0 + dH]                  # [B*S, dH]
            # scores over all rows; cross-batch entries disabled by additive bias
            s = jax.lax.dot_general(
                q, k, (((1,), (1,)), ((), ())),
                preferred_element_type=f32) * scale + bias          # [B*S, B*S]
            m = jnp.max(s, axis=-1, keepdims=True)
            p = jnp.exp(s - m)
            p = p * pl.reciprocal(
                jnp.sum(p, axis=-1, keepdims=True), approx=True)
            o_h = matmul(p, v)                                      # [B*S, dH]
            term = matmul(o_h, w_o[c0:c0 + dH, :])                  # [B*S, H]
            attn = term if attn is None else attn + term
        x = x + attn + b_o_ref[l]

        # --- feed-forward block: x = x + W2·relu(W1·LN2(x)) ---
        h = layer_norm(x, ln2_g_ref[l], ln2_b_ref[l])
        ff = jnp.maximum(matmul(h, w1_ref[l]) + b1_ref[l], 0.0)
        x = x + matmul(ff, w2_ref[l]) + b2_ref[l]

    # final fc on the last token of each sequence: fc(output[:, -1, :])
    last = jnp.concatenate(
        [x[b_i * seq + seq - 1: b_i * seq + seq, :] for b_i in range(batch)], axis=0)
    out_ref[...] = (matmul(last, fc_w_ref[...]) + fc_b_ref[...]).astype(out_ref.dtype)


# ------------------------------ wrapper (glue) --------------------------------

def transformer_forward(params, x, *, num_heads):
    # x: [B, S, input_dim] float32
    B, S, I = x.shape
    H = params["emb_w"].shape[1]
    L = params["w_qkv"].shape[0]
    O = params["fc_w"].shape[1]

    # tiny host-side constants: positional slice [S, H] and block-diagonal batch mask
    pos = params["pos"][0, :S, :]                                   # [S, H]
    row = jnp.arange(B * S, dtype=jnp.int32) // S
    attn_bias = jnp.where(row[:, None] == row[None, :], 0.0, -1e30).astype(jnp.float32)

    kernel = functools.partial(
        fused_transformer_kernel,
        num_layers=L, num_heads=num_heads, batch=B, seq=S)

    return pl.pallas_call(
        kernel,
        out_shape=jax.ShapeDtypeStruct((B, O), jnp.float32),
        in_specs=[_vspec()] * 19,
        out_specs=_vspec(),
    )(
        x.reshape(B * S, I), pos, attn_bias,
        params["emb_w"], params["emb_b"],
        params["ln1_g"], params["ln1_b"],
        params["w_qkv"], params["b_qkv"],
        params["w_o"], params["b_o"],
        params["ln2_g"], params["ln2_b"],
        params["w1"], params["b1"],
        params["w2"], params["b2"],
        params["fc_w"], params["fc_b"],
    )


# ------------------------------ init (params) ---------------------------------

def init_params(key, input_dim, hidden_dim, output_dim, num_layers, ffn_dim=2048,
                max_len=1000):
    def dense(k, fan_in, fan_out):
        kw, kb = jax.random.split(k)
        lim = 1.0 / (fan_in ** 0.5)
        w = jax.random.uniform(kw, (fan_in, fan_out), jnp.float32, -lim, lim)
        b = jax.random.uniform(kb, (1, fan_out), jnp.float32, -lim, lim)
        return w, b

    keys = jax.random.split(key, 3 + num_layers)
    p = {}
    p["emb_w"], p["emb_b"] = dense(keys[0], input_dim, hidden_dim)
    p["pos"] = jax.random.normal(keys[1], (1, max_len, hidden_dim), jnp.float32)
    p["fc_w"], p["fc_b"] = dense(keys[2], hidden_dim, output_dim)

    stacks = {n: [] for n in ("w_qkv", "b_qkv", "w_o", "b_o", "w1", "b1", "w2", "b2")}
    for l in range(num_layers):
        lk = jax.random.split(keys[3 + l], 4)
        w_qkv, b_qkv = dense(lk[0], hidden_dim, 3 * hidden_dim)   # in_proj (q|k|v)
        w_o, b_o = dense(lk[1], hidden_dim, hidden_dim)           # out_proj
        w1, b1 = dense(lk[2], hidden_dim, ffn_dim)                # linear1
        w2, b2 = dense(lk[3], ffn_dim, hidden_dim)                # linear2
        for n, v in (("w_qkv", w_qkv), ("b_qkv", b_qkv), ("w_o", w_o), ("b_o", b_o),
                     ("w1", w1), ("b1", b1), ("w2", w2), ("b2", b2)):
            stacks[n].append(v)
    for n, vs in stacks.items():
        p[n] = jnp.stack(vs)            # weights [L, in, out], biases [L, 1, out]

    p["ln1_g"] = jnp.ones((num_layers, 1, hidden_dim), jnp.float32)
    p["ln1_b"] = jnp.zeros((num_layers, 1, hidden_dim), jnp.float32)
    p["ln2_g"] = jnp.ones((num_layers, 1, hidden_dim), jnp.float32)
    p["ln2_b"] = jnp.zeros((num_layers, 1, hidden_dim), jnp.float32)
    return p


# ---------------------------------- main ---------------------------------------

if __name__ == "__main__":
    INPUT_DIM, HIDDEN_DIM, OUTPUT_DIM = 16, 32, 4
    NUM_LAYERS, NUM_HEADS = 3, 4
    B, S = 2, 8

    key = jax.random.PRNGKey(0)
    pkey, xkey = jax.random.split(key)
    params = init_params(pkey, INPUT_DIM, HIDDEN_DIM, OUTPUT_DIM, NUM_LAYERS)
    x = jax.random.normal(xkey, (B, S, INPUT_DIM), jnp.float32)

    fwd = jax.jit(functools.partial(transformer_forward, num_heads=NUM_HEADS))
    out = fwd(params, x)
    jax.block_until_ready(out)
    assert out.shape == (B, OUTPUT_DIM) and out.dtype == jnp.float32
    print("KERNEL_OK")
</pallas_src>

<mosaic_0001>
module attributes {stable_mosaic.version = 11 : i64} {
  func.func @fused_transformer_kernel(%arg0: memref<16x16xf32, #tpu.memory_space<vmem>>, %arg1: memref<8x32xf32, #tpu.memory_space<vmem>>, %arg2: memref<16x16xf32, #tpu.memory_space<vmem>>, %arg3: memref<16x32xf32, #tpu.memory_space<vmem>>, %arg4: memref<1x32xf32, #tpu.memory_space<vmem>>, %arg5: memref<3x1x32xf32, #tpu.memory_space<vmem>>, %arg6: memref<3x1x32xf32, #tpu.memory_space<vmem>>, %arg7: memref<3x32x96xf32, #tpu.memory_space<vmem>>, %arg8: memref<3x1x96xf32, #tpu.memory_space<vmem>>, %arg9: memref<3x32x32xf32, #tpu.memory_space<vmem>>, %arg10: memref<3x1x32xf32, #tpu.memory_space<vmem>>, %arg11: memref<3x1x32xf32, #tpu.memory_space<vmem>>, %arg12: memref<3x1x32xf32, #tpu.memory_space<vmem>>, %arg13: memref<3x32x2048xf32, #tpu.memory_space<vmem>>, %arg14: memref<3x1x2048xf32, #tpu.memory_space<vmem>>, %arg15: memref<3x2048x32xf32, #tpu.memory_space<vmem>>, %arg16: memref<3x1x32xf32, #tpu.memory_space<vmem>>, %arg17: memref<32x4xf32, #tpu.memory_space<vmem>>, %arg18: memref<1x4xf32, #tpu.memory_space<vmem>>, %arg19: memref<2x4xf32, #tpu.memory_space<vmem>>) attributes {dimension_semantics = [], scalar_prefetch = 0 : i64, scratch_operands = 0 : i64, tpu.core_type = #tpu.core_type<tc>} {
    %c0 = arith.constant 0 : index
    %c0_0 = arith.constant 0 : index
    %0 = vector.load %arg1[%c0, %c0_0] : memref<8x32xf32, #tpu.memory_space<vmem>>, vector<8x32xf32>
    %1 = tpu.concatenate %0, %0 in 0 : vector<8x32xf32>, vector<8x32xf32> -> vector<16x32xf32>
    %c0_1 = arith.constant 0 : index
    %c0_2 = arith.constant 0 : index
    %2 = vector.load %arg2[%c0_1, %c0_2] : memref<16x16xf32, #tpu.memory_space<vmem>>, vector<16x16xf32>
    %c0_3 = arith.constant 0 : index
    %c0_4 = arith.constant 0 : index
    %3 = vector.load %arg0[%c0_3, %c0_4] : memref<16x16xf32, #tpu.memory_space<vmem>>, vector<16x16xf32>
    %c0_5 = arith.constant 0 : index
    %c0_6 = arith.constant 0 : index
    %4 = vector.load %arg3[%c0_5, %c0_6] : memref<16x32xf32, #tpu.memory_space<vmem>>, vector<16x32xf32>
    %cst = arith.constant dense<0.000000e+00> : vector<16x32xf32>
    %5 = tpu.matmul %3, %4, %cst {dimension_numbers = #tpu.dot_dimension_numbers<[1], [0], [0], [1], [0, 0, 1, 1], [], []>} : vector<16x16xf32>, vector<16x32xf32>, vector<16x32xf32> -> vector<16x32xf32>
    %c0_7 = arith.constant 0 : index
    %c0_8 = arith.constant 0 : index
    %6 = vector.load %arg4[%c0_7, %c0_8] : memref<1x32xf32, #tpu.memory_space<vmem>>, vector<1x32xf32>
    %7 = vector.broadcast %6 : vector<1x32xf32> to vector<16x32xf32>
    %8 = arith.addf %5, %7 : vector<16x32xf32>
    %9 = arith.addf %8, %1 : vector<16x32xf32>
    %c0_9 = arith.constant 0 : index
    %c0_10 = arith.constant 0 : index
    %c0_11 = arith.constant 0 : index
    %10 = vector.load %arg5[%c0_9, %c0_10, %c0_11] : memref<3x1x32xf32, #tpu.memory_space<vmem>>, vector<1x1x32xf32>
    %11 = vector.shape_cast %10 : vector<1x1x32xf32> to vector<1x32xf32>
    %c0_12 = arith.constant 0 : index
    %c0_13 = arith.constant 0 : index
    %c0_14 = arith.constant 0 : index
    %12 = vector.load %arg6[%c0_12, %c0_13, %c0_14] : memref<3x1x32xf32, #tpu.memory_space<vmem>>, vector<1x1x32xf32>
    %13 = vector.shape_cast %12 : vector<1x1x32xf32> to vector<1x32xf32>
    %cst_15 = arith.constant dense<0.000000e+00> : vector<16xf32>
    %14 = vector.multi_reduction <add>, %9, %cst_15 [1] : vector<16x32xf32> to vector<16xf32>
    %15 = vector.shape_cast %14 : vector<16xf32> to vector<16x1xf32>
    %cst_16 = arith.constant 3.200000e+01 : f32
    %16 = vector.broadcast %cst_16 : f32 to vector<16x1xf32>
    %17 = arith.divf %15, %16 : vector<16x1xf32>
    %18 = vector.broadcast %17 : vector<16x1xf32> to vector<16x32xf32>
    %19 = arith.subf %9, %18 : vector<16x32xf32>
    %20 = arith.mulf %19, %19 : vector<16x32xf32>
    %cst_17 = arith.constant dense<0.000000e+00> : vector<16xf32>
    %21 = vector.multi_reduction <add>, %20, %cst_17 [1] : vector<16x32xf32> to vector<16xf32>
    %22 = vector.shape_cast %21 : vector<16xf32> to vector<16x1xf32>
    %cst_18 = arith.constant 3.200000e+01 : f32
    %23 = vector.broadcast %cst_18 : f32 to vector<16x1xf32>
    %24 = arith.divf %22, %23 : vector<16x1xf32>
    %25 = vector.broadcast %17 : vector<16x1xf32> to vector<16x32xf32>
    %26 = arith.subf %9, %25 : vector<16x32xf32>
    %cst_19 = arith.constant 9.99999974E-6 : f32
    %27 = vector.broadcast %cst_19 : f32 to vector<16x1xf32>
    %28 = arith.addf %24, %27 : vector<16x1xf32>
    %29 = math.rsqrt %28 : vector<16x1xf32>
    %30 = vector.broadcast %29 : vector<16x1xf32> to vector<16x32xf32>
    %31 = arith.mulf %26, %30 : vector<16x32xf32>
    %32 = vector.broadcast %11 : vector<1x32xf32> to vector<16x32xf32>
    %33 = arith.mulf %31, %32 : vector<16x32xf32>
    %34 = vector.broadcast %13 : vector<1x32xf32> to vector<16x32xf32>
    %35 = arith.addf %33, %34 : vector<16x32xf32>
    %c0_20 = arith.constant 0 : index
    %c0_21 = arith.constant 0 : index
    %c0_22 = arith.constant 0 : index
    %36 = vector.load %arg7[%c0_20, %c0_21, %c0_22] : memref<3x32x96xf32, #tpu.memory_space<vmem>>, vector<1x32x96xf32>
    %37 = vector.shape_cast %36 : vector<1x32x96xf32> to vector<32x96xf32>
    %cst_23 = arith.constant dense<0.000000e+00> : vector<16x96xf32>
    %38 = tpu.matmul %35, %37, %cst_23 {dimension_numbers = #tpu.dot_dimension_numbers<[1], [0], [0], [1], [0, 0, 1, 1], [], []>} : vector<16x32xf32>, vector<32x96xf32>, vector<16x96xf32> -> vector<16x96xf32>
    %c0_24 = arith.constant 0 : index
    %c0_25 = arith.constant 0 : index
    %c0_26 = arith.constant 0 : index
    %39 = vector.load %arg8[%c0_24, %c0_25, %c0_26] : memref<3x1x96xf32, #tpu.memory_space<vmem>>, vector<1x1x96xf32>
    %40 = vector.shape_cast %39 : vector<1x1x96xf32> to vector<1x96xf32>
    %41 = vector.broadcast %40 : vector<1x96xf32> to vector<16x96xf32>
    %42 = arith.addf %38, %41 : vector<16x96xf32>
    %c0_27 = arith.constant 0 : index
    %c0_28 = arith.constant 0 : index
    %c0_29 = arith.constant 0 : index
    %43 = vector.load %arg9[%c0_27, %c0_28, %c0_29] : memref<3x32x32xf32, #tpu.memory_space<vmem>>, vector<1x32x32xf32>
    %44 = vector.shape_cast %43 : vector<1x32x32xf32> to vector<32x32xf32>
    %45 = vector.extract_strided_slice %42 {offsets = [0, 0], sizes = [16, 8], strides = [1, 1]} : vector<16x96xf32> to vector<16x8xf32>
    %46 = vector.extract_strided_slice %42 {offsets = [0, 32], sizes = [16, 8], strides = [1, 1]} : vector<16x96xf32> to vector<16x8xf32>
    %47 = vector.extract_strided_slice %42 {offsets = [0, 64], sizes = [16, 8], strides = [1, 1]} : vector<16x96xf32> to vector<16x8xf32>
    %cst_30 = arith.constant dense<0.000000e+00> : vector<16x16xf32>
    %48 = tpu.matmul %45, %46, %cst_30 {dimension_numbers = #tpu.dot_dimension_numbers<[1], [1], [0], [0], [0, 0, 1, 0], [], []>} : vector<16x8xf32>, vector<16x8xf32>, vector<16x16xf32> -> vector<16x16xf32>
    %cst_31 = arith.constant 0.353553385 : f32
    %49 = vector.broadcast %cst_31 : f32 to vector<16x16xf32>
    %50 = arith.mulf %48, %49 : vector<16x16xf32>
    %51 = arith.addf %50, %2 : vector<16x16xf32>
    %cst_32 = arith.constant dense<0xFF800000> : vector<16xf32>
    %52 = vector.multi_reduction <maximumf>, %51, %cst_32 [1] : vector<16x16xf32> to vector<16xf32>
    %53 = vector.shape_cast %52 : vector<16xf32> to vector<16x1xf32>
    %54 = vector.broadcast %53 : vector<16x1xf32> to vector<16x16xf32>
    %55 = arith.subf %51, %54 : vector<16x16xf32>
    %56 = math.exp %55 : vector<16x16xf32>
    %cst_33 = arith.constant dense<0.000000e+00> : vector<16xf32>
    %57 = vector.multi_reduction <add>, %56, %cst_33 [1] : vector<16x16xf32> to vector<16xf32>
    %58 = vector.shape_cast %57 : vector<16xf32> to vector<16x1xf32>
    %59 = tpu.reciprocal %58 {approx = true} : vector<16x1xf32> -> vector<16x1xf32>
    %60 = vector.broadcast %59 : vector<16x1xf32> to vector<16x16xf32>
    %61 = arith.mulf %56, %60 : vector<16x16xf32>
    %cst_34 = arith.constant dense<0.000000e+00> : vector<16x8xf32>
    %62 = tpu.matmul %61, %47, %cst_34 {dimension_numbers = #tpu.dot_dimension_numbers<[1], [0], [0], [1], [0, 0, 1, 1], [], []>} : vector<16x16xf32>, vector<16x8xf32>, vector<16x8xf32> -> vector<16x8xf32>
    %63 = vector.extract_strided_slice %44 {offsets = [0, 0], sizes = [8, 32], strides = [1, 1]} : vector<32x32xf32> to vector<8x32xf32>
    %cst_35 = arith.constant dense<0.000000e+00> : vector<16x32xf32>
    %64 = tpu.matmul %62, %63, %cst_35 {dimension_numbers = #tpu.dot_dimension_numbers<[1], [0], [0], [1], [0, 0, 1, 1], [], []>} : vector<16x8xf32>, vector<8x32xf32>, vector<16x32xf32> -> vector<16x32xf32>
    %65 = vector.extract_strided_slice %42 {offsets = [0, 8], sizes = [16, 8], strides = [1, 1]} : vector<16x96xf32> to vector<16x8xf32>
    %66 = vector.extract_strided_slice %42 {offsets = [0, 40], sizes = [16, 8], strides = [1, 1]} : vector<16x96xf32> to vector<16x8xf32>
    %67 = vector.extract_strided_slice %42 {offsets = [0, 72], sizes = [16, 8], strides = [1, 1]} : vector<16x96xf32> to vector<16x8xf32>
    %cst_36 = arith.constant dense<0.000000e+00> : vector<16x16xf32>
    %68 = tpu.matmul %65, %66, %cst_36 {dimension_numbers = #tpu.dot_dimension_numbers<[1], [1], [0], [0], [0, 0, 1, 0], [], []>} : vector<16x8xf32>, vector<16x8xf32>, vector<16x16xf32> -> vector<16x16xf32>
    %cst_37 = arith.constant 0.353553385 : f32
    %69 = vector.broadcast %cst_37 : f32 to vector<16x16xf32>
    %70 = arith.mulf %68, %69 : vector<16x16xf32>
    %71 = arith.addf %70, %2 : vector<16x16xf32>
    %cst_38 = arith.constant dense<0xFF800000> : vector<16xf32>
    %72 = vector.multi_reduction <maximumf>, %71, %cst_38 [1] : vector<16x16xf32> to vector<16xf32>
    %73 = vector.shape_cast %72 : vector<16xf32> to vector<16x1xf32>
    %74 = vector.broadcast %73 : vector<16x1xf32> to vector<16x16xf32>
    %75 = arith.subf %71, %74 : vector<16x16xf32>
    %76 = math.exp %75 : vector<16x16xf32>
    %cst_39 = arith.constant dense<0.000000e+00> : vector<16xf32>
    %77 = vector.multi_reduction <add>, %76, %cst_39 [1] : vector<16x16xf32> to vector<16xf32>
    %78 = vector.shape_cast %77 : vector<16xf32> to vector<16x1xf32>
    %79 = tpu.reciprocal %78 {approx = true} : vector<16x1xf32> -> vector<16x1xf32>
    %80 = vector.broadcast %79 : vector<16x1xf32> to vector<16x16xf32>
    %81 = arith.mulf %76, %80 : vector<16x16xf32>
    %cst_40 = arith.constant dense<0.000000e+00> : vector<16x8xf32>
    %82 = tpu.matmul %81, %67, %cst_40 {dimension_numbers = #tpu.dot_dimension_numbers<[1], [0], [0], [1], [0, 0, 1, 1], [], []>} : vector<16x16xf32>, vector<16x8xf32>, vector<16x8xf32> -> vector<16x8xf32>
    %83 = vector.extract_strided_slice %44 {offsets = [8, 0], sizes = [8, 32], strides = [1, 1]} : vector<32x32xf32> to vector<8x32xf32>
    %cst_41 = arith.constant dense<0.000000e+00> : vector<16x32xf32>
    %84 = tpu.matmul %82, %83, %cst_41 {dimension_numbers = #tpu.dot_dimension_numbers<[1], [0], [0], [1], [0, 0, 1, 1], [], []>} : vector<16x8xf32>, vector<8x32xf32>, vector<16x32xf32> -> vector<16x32xf32>
    %85 = arith.addf %64, %84 : vector<16x32xf32>
    %86 = vector.extract_strided_slice %42 {offsets = [0, 16], sizes = [16, 8], strides = [1, 1]} : vector<16x96xf32> to vector<16x8xf32>
    %87 = vector.extract_strided_slice %42 {offsets = [0, 48], sizes = [16, 8], strides = [1, 1]} : vector<16x96xf32> to vector<16x8xf32>
    %88 = vector.extract_strided_slice %42 {offsets = [0, 80], sizes = [16, 8], strides = [1, 1]} : vector<16x96xf32> to vector<16x8xf32>
    %cst_42 = arith.constant dense<0.000000e+00> : vector<16x16xf32>
    %89 = tpu.matmul %86, %87, %cst_42 {dimension_numbers = #tpu.dot_dimension_numbers<[1], [1], [0], [0], [0, 0, 1, 0], [], []>} : vector<16x8xf32>, vector<16x8xf32>, vector<16x16xf32> -> vector<16x16xf32>
    %cst_43 = arith.constant 0.353553385 : f32
    %90 = vector.broadcast %cst_43 : f32 to vector<16x16xf32>
    %91 = arith.mulf %89, %90 : vector<16x16xf32>
    %92 = arith.addf %91, %2 : vector<16x16xf32>
    %cst_44 = arith.constant dense<0xFF800000> : vector<16xf32>
    %93 = vector.multi_reduction <maximumf>, %92, %cst_44 [1] : vector<16x16xf32> to vector<16xf32>
    %94 = vector.shape_cast %93 : vector<16xf32> to vector<16x1xf32>
    %95 = vector.broadcast %94 : vector<16x1xf32> to vector<16x16xf32>
    %96 = arith.subf %92, %95 : vector<16x16xf32>
    %97 = math.exp %96 : vector<16x16xf32>
    %cst_45 = arith.constant dense<0.000000e+00> : vector<16xf32>
    %98 = vector.multi_reduction <add>, %97, %cst_45 [1] : vector<16x16xf32> to vector<16xf32>
    %99 = vector.shape_cast %98 : vector<16xf32> to vector<16x1xf32>
    %100 = tpu.reciprocal %99 {approx = true} : vector<16x1xf32> -> vector<16x1xf32>
    %101 = vector.broadcast %100 : vector<16x1xf32> to vector<16x16xf32>
    %102 = arith.mulf %97, %101 : vector<16x16xf32>
    %cst_46 = arith.constant dense<0.000000e+00> : vector<16x8xf32>
    %103 = tpu.matmul %102, %88, %cst_46 {dimension_numbers = #tpu.dot_dimension_numbers<[1], [0], [0], [1], [0, 0, 1, 1], [], []>} : vector<16x16xf32>, vector<16x8xf32>, vector<16x8xf32> -> vector<16x8xf32>
    %104 = vector.extract_strided_slice %44 {offsets = [16, 0], sizes = [8, 32], strides = [1, 1]} : vector<32x32xf32> to vector<8x32xf32>
    %cst_47 = arith.constant dense<0.000000e+00> : vector<16x32xf32>
    %105 = tpu.matmul %103, %104, %cst_47 {dimension_numbers = #tpu.dot_dimension_numbers<[1], [0], [0], [1], [0, 0, 1, 1], [], []>} : vector<16x8xf32>, vector<8x32xf32>, vector<16x32xf32> -> vector<16x32xf32>
    %106 = arith.addf %85, %105 : vector<16x32xf32>
    %107 = vector.extract_strided_slice %42 {offsets = [0, 24], sizes = [16, 8], strides = [1, 1]} : vector<16x96xf32> to vector<16x8xf32>
    %108 = vector.extract_strided_slice %42 {offsets = [0, 56], sizes = [16, 8], strides = [1, 1]} : vector<16x96xf32> to vector<16x8xf32>
    %109 = vector.extract_strided_slice %42 {offsets = [0, 88], sizes = [16, 8], strides = [1, 1]} : vector<16x96xf32> to vector<16x8xf32>
    %cst_48 = arith.constant dense<0.000000e+00> : vector<16x16xf32>
    %110 = tpu.matmul %107, %108, %cst_48 {dimension_numbers = #tpu.dot_dimension_numbers<[1], [1], [0], [0], [0, 0, 1, 0], [], []>} : vector<16x8xf32>, vector<16x8xf32>, vector<16x16xf32> -> vector<16x16xf32>
    %cst_49 = arith.constant 0.353553385 : f32
    %111 = vector.broadcast %cst_49 : f32 to vector<16x16xf32>
    %112 = arith.mulf %110, %111 : vector<16x16xf32>
    %113 = arith.addf %112, %2 : vector<16x16xf32>
    %cst_50 = arith.constant dense<0xFF800000> : vector<16xf32>
    %114 = vector.multi_reduction <maximumf>, %113, %cst_50 [1] : vector<16x16xf32> to vector<16xf32>
    %115 = vector.shape_cast %114 : vector<16xf32> to vector<16x1xf32>
    %116 = vector.broadcast %115 : vector<16x1xf32> to vector<16x16xf32>
    %117 = arith.subf %113, %116 : vector<16x16xf32>
    %118 = math.exp %117 : vector<16x16xf32>
    %cst_51 = arith.constant dense<0.000000e+00> : vector<16xf32>
    %119 = vector.multi_reduction <add>, %118, %cst_51 [1] : vector<16x16xf32> to vector<16xf32>
    %120 = vector.shape_cast %119 : vector<16xf32> to vector<16x1xf32>
    %121 = tpu.reciprocal %120 {approx = true} : vector<16x1xf32> -> vector<16x1xf32>
    %122 = vector.broadcast %121 : vector<16x1xf32> to vector<16x16xf32>
    %123 = arith.mulf %118, %122 : vector<16x16xf32>
    %cst_52 = arith.constant dense<0.000000e+00> : vector<16x8xf32>
    %124 = tpu.matmul %123, %109, %cst_52 {dimension_numbers = #tpu.dot_dimension_numbers<[1], [0], [0], [1], [0, 0, 1, 1], [], []>} : vector<16x16xf32>, vector<16x8xf32>, vector<16x8xf32> -> vector<16x8xf32>
    %125 = vector.extract_strided_slice %44 {offsets = [24, 0], sizes = [8, 32], strides = [1, 1]} : vector<32x32xf32> to vector<8x32xf32>
    %cst_53 = arith.constant dense<0.000000e+00> : vector<16x32xf32>
    %126 = tpu.matmul %124, %125, %cst_53 {dimension_numbers = #tpu.dot_dimension_numbers<[1], [0], [0], [1], [0, 0, 1, 1], [], []>} : vector<16x8xf32>, vector<8x32xf32>, vector<16x32xf32> -> vector<16x32xf32>
    %127 = arith.addf %106, %126 : vector<16x32xf32>
    %128 = arith.addf %9, %127 : vector<16x32xf32>
    %c0_54 = arith.constant 0 : index
    %c0_55 = arith.constant 0 : index
    %c0_56 = arith.constant 0 : index
    %129 = vector.load %arg10[%c0_54, %c0_55, %c0_56] : memref<3x1x32xf32, #tpu.memory_space<vmem>>, vector<1x1x32xf32>
    %130 = vector.shape_cast %129 : vector<1x1x32xf32> to vector<1x32xf32>
    %131 = vector.broadcast %130 : vector<1x32xf32> to vector<16x32xf32>
    %132 = arith.addf %128, %131 : vector<16x32xf32>
    %c0_57 = arith.constant 0 : index
    %c0_58 = arith.constant 0 : index
    %c0_59 = arith.constant 0 : index
    %133 = vector.load %arg11[%c0_57, %c0_58, %c0_59] : memref<3x1x32xf32, #tpu.memory_space<vmem>>, vector<1x1x32xf32>
    %134 = vector.shape_cast %133 : vector<1x1x32xf32> to vector<1x32xf32>
    %c0_60 = arith.constant 0 : index
    %c0_61 = arith.constant 0 : index
    %c0_62 = arith.constant 0 : index
    %135 = vector.load %arg12[%c0_60, %c0_61, %c0_62] : memref<3x1x32xf32, #tpu.memory_space<vmem>>, vector<1x1x32xf32>
    %136 = vector.shape_cast %135 : vector<1x1x32xf32> to vector<1x32xf32>
    %cst_63 = arith.constant dense<0.000000e+00> : vector<16xf32>
    %137 = vector.multi_reduction <add>, %132, %cst_63 [1] : vector<16x32xf32> to vector<16xf32>
    %138 = vector.shape_cast %137 : vector<16xf32> to vector<16x1xf32>
    %cst_64 = arith.constant 3.200000e+01 : f32
    %139 = vector.broadcast %cst_64 : f32 to vector<16x1xf32>
    %140 = arith.divf %138, %139 : vector<16x1xf32>
    %141 = vector.broadcast %140 : vector<16x1xf32> to vector<16x32xf32>
    %142 = arith.subf %132, %141 : vector<16x32xf32>
    %143 = arith.mulf %142, %142 : vector<16x32xf32>
    %cst_65 = arith.constant dense<0.000000e+00> : vector<16xf32>
    %144 = vector.multi_reduction <add>, %143, %cst_65 [1] : vector<16x32xf32> to vector<16xf32>
    %145 = vector.shape_cast %144 : vector<16xf32> to vector<16x1xf32>
    %cst_66 = arith.constant 3.200000e+01 : f32
    %146 = vector.broadcast %cst_66 : f32 to vector<16x1xf32>
    %147 = arith.divf %145, %146 : vector<16x1xf32>
    %148 = vector.broadcast %140 : vector<16x1xf32> to vector<16x32xf32>
    %149 = arith.subf %132, %148 : vector<16x32xf32>
    %cst_67 = arith.constant 9.99999974E-6 : f32
    %150 = vector.broadcast %cst_67 : f32 to vector<16x1xf32>
    %151 = arith.addf %147, %150 : vector<16x1xf32>
    %152 = math.rsqrt %151 : vector<16x1xf32>
    %153 = vector.broadcast %152 : vector<16x1xf32> to vector<16x32xf32>
    %154 = arith.mulf %149, %153 : vector<16x32xf32>
    %155 = vector.broadcast %134 : vector<1x32xf32> to vector<16x32xf32>
    %156 = arith.mulf %154, %155 : vector<16x32xf32>
    %157 = vector.broadcast %136 : vector<1x32xf32> to vector<16x32xf32>
    %158 = arith.addf %156, %157 : vector<16x32xf32>
    %c0_68 = arith.constant 0 : index
    %c0_69 = arith.constant 0 : index
    %c0_70 = arith.constant 0 : index
    %159 = vector.load %arg13[%c0_68, %c0_69, %c0_70] : memref<3x32x2048xf32, #tpu.memory_space<vmem>>, vector<1x32x2048xf32>
    %160 = vector.shape_cast %159 : vector<1x32x2048xf32> to vector<32x2048xf32>
    %cst_71 = arith.constant dense<0.000000e+00> : vector<16x2048xf32>
    %161 = tpu.matmul %158, %160, %cst_71 {dimension_numbers = #tpu.dot_dimension_numbers<[1], [0], [0], [1], [0, 0, 1, 1], [], []>} : vector<16x32xf32>, vector<32x2048xf32>, vector<16x2048xf32> -> vector<16x2048xf32>
    %c0_72 = arith.constant 0 : index
    %c0_73 = arith.constant 0 : index
    %c0_74 = arith.constant 0 : index
    %162 = vector.load %arg14[%c0_72, %c0_73, %c0_74] : memref<3x1x2048xf32, #tpu.memory_space<vmem>>, vector<1x1x2048xf32>
    %163 = vector.shape_cast %162 : vector<1x1x2048xf32> to vector<1x2048xf32>
    %164 = vector.broadcast %163 : vector<1x2048xf32> to vector<16x2048xf32>
    %165 = arith.addf %161, %164 : vector<16x2048xf32>
    %cst_75 = arith.constant 0.000000e+00 : f32
    %166 = vector.broadcast %cst_75 : f32 to vector<16x2048xf32>
    %167 = arith.maximumf %165, %166 : vector<16x2048xf32>
    %c0_76 = arith.constant 0 : index
    %c0_77 = arith.constant 0 : index
    %c0_78 = arith.constant 0 : index
    %168 = vector.load %arg15[%c0_76, %c0_77, %c0_78] : memref<3x2048x32xf32, #tpu.memory_space<vmem>>, vector<1x2048x32xf32>
    %169 = vector.shape_cast %168 : vector<1x2048x32xf32> to vector<2048x32xf32>
    %cst_79 = arith.constant dense<0.000000e+00> : vector<16x32xf32>
    %170 = tpu.matmul %167, %169, %cst_79 {dimension_numbers = #tpu.dot_dimension_numbers<[1], [0], [0], [1], [0, 0, 1, 1], [], []>} : vector<16x2048xf32>, vector<2048x32xf32>, vector<16x32xf32> -> vector<16x32xf32>
    %171 = arith.addf %132, %170 : vector<16x32xf32>
    %c0_80 = arith.constant 0 : index
    %c0_81 = arith.constant 0 : index
    %c0_82 = arith.constant 0 : index
    %172 = vector.load %arg16[%c0_80, %c0_81, %c0_82] : memref<3x1x32xf32, #tpu.memory_space<vmem>>, vector<1x1x32xf32>
    %173 = vector.shape_cast %172 : vector<1x1x32xf32> to vector<1x32xf32>
    %174 = vector.broadcast %173 : vector<1x32xf32> to vector<16x32xf32>
    %175 = arith.addf %171, %174 : vector<16x32xf32>
    %c1 = arith.constant 1 : index
    %c0_83 = arith.constant 0 : index
    %c0_84 = arith.constant 0 : index
    %176 = vector.load %arg5[%c1, %c0_83, %c0_84] : memref<3x1x32xf32, #tpu.memory_space<vmem>>, vector<1x1x32xf32>
    %177 = vector.shape_cast %176 : vector<1x1x32xf32> to vector<1x32xf32>
    %c1_85 = arith.constant 1 : index
    %c0_86 = arith.constant 0 : index
    %c0_87 = arith.constant 0 : index
    %178 = vector.load %arg6[%c1_85, %c0_86, %c0_87] : memref<3x1x32xf32, #tpu.memory_space<vmem>>, vector<1x1x32xf32>
    %179 = vector.shape_cast %178 : vector<1x1x32xf32> to vector<1x32xf32>
    %cst_88 = arith.constant dense<0.000000e+00> : vector<16xf32>
    %180 = vector.multi_reduction <add>, %175, %cst_88 [1] : vector<16x32xf32> to vector<16xf32>
    %181 = vector.shape_cast %180 : vector<16xf32> to vector<16x1xf32>
    %cst_89 = arith.constant 3.200000e+01 : f32
    %182 = vector.broadcast %cst_89 : f32 to vector<16x1xf32>
    %183 = arith.divf %181, %182 : vector<16x1xf32>
    %184 = vector.broadcast %183 : vector<16x1xf32> to vector<16x32xf32>
    %185 = arith.subf %175, %184 : vector<16x32xf32>
    %186 = arith.mulf %185, %185 : vector<16x32xf32>
    %cst_90 = arith.constant dense<0.000000e+00> : vector<16xf32>
    %187 = vector.multi_reduction <add>, %186, %cst_90 [1] : vector<16x32xf32> to vector<16xf32>
    %188 = vector.shape_cast %187 : vector<16xf32> to vector<16x1xf32>
    %cst_91 = arith.constant 3.200000e+01 : f32
    %189 = vector.broadcast %cst_91 : f32 to vector<16x1xf32>
    %190 = arith.divf %188, %189 : vector<16x1xf32>
    %191 = vector.broadcast %183 : vector<16x1xf32> to vector<16x32xf32>
    %192 = arith.subf %175, %191 : vector<16x32xf32>
    %cst_92 = arith.constant 9.99999974E-6 : f32
    %193 = vector.broadcast %cst_92 : f32 to vector<16x1xf32>
    %194 = arith.addf %190, %193 : vector<16x1xf32>
    %195 = math.rsqrt %194 : vector<16x1xf32>
    %196 = vector.broadcast %195 : vector<16x1xf32> to vector<16x32xf32>
    %197 = arith.mulf %192, %196 : vector<16x32xf32>
    %198 = vector.broadcast %177 : vector<1x32xf32> to vector<16x32xf32>
    %199 = arith.mulf %197, %198 : vector<16x32xf32>
    %200 = vector.broadcast %179 : vector<1x32xf32> to vector<16x32xf32>
    %201 = arith.addf %199, %200 : vector<16x32xf32>
    %c1_93 = arith.constant 1 : index
    %c0_94 = arith.constant 0 : index
    %c0_95 = arith.constant 0 : index
    %202 = vector.load %arg7[%c1_93, %c0_94, %c0_95] : memref<3x32x96xf32, #tpu.memory_space<vmem>>, vector<1x32x96xf32>
    %203 = vector.shape_cast %202 : vector<1x32x96xf32> to vector<32x96xf32>
    %cst_96 = arith.constant dense<0.000000e+00> : vector<16x96xf32>
    %204 = tpu.matmul %201, %203, %cst_96 {dimension_numbers = #tpu.dot_dimension_numbers<[1], [0], [0], [1], [0, 0, 1, 1], [], []>} : vector<16x32xf32>, vector<32x96xf32>, vector<16x96xf32> -> vector<16x96xf32>
    %c1_97 = arith.constant 1 : index
    %c0_98 = arith.constant 0 : index
    %c0_99 = arith.constant 0 : index
    %205 = vector.load %arg8[%c1_97, %c0_98, %c0_99] : memref<3x1x96xf32, #tpu.memory_space<vmem>>, vector<1x1x96xf32>
    %206 = vector.shape_cast %205 : vector<1x1x96xf32> to vector<1x96xf32>
    %207 = vector.broadcast %206 : vector<1x96xf32> to vector<16x96xf32>
    %208 = arith.addf %204, %207 : vector<16x96xf32>
    %c1_100 = arith.constant 1 : index
    %c0_101 = arith.constant 0 : index
    %c0_102 = arith.constant 0 : index
    %209 = vector.load %arg9[%c1_100, %c0_101, %c0_102] : memref<3x32x32xf32, #tpu.memory_space<vmem>>, vector<1x32x32xf32>
    %210 = vector.shape_cast %209 : vector<1x32x32xf32> to vector<32x32xf32>
    %211 = vector.extract_strided_slice %208 {offsets = [0, 0], sizes = [16, 8], strides = [1, 1]} : vector<16x96xf32> to vector<16x8xf32>
    %212 = vector.extract_strided_slice %208 {offsets = [0, 32], sizes = [16, 8], strides = [1, 1]} : vector<16x96xf32> to vector<16x8xf32>
    %213 = vector.extract_strided_slice %208 {offsets = [0, 64], sizes = [16, 8], strides = [1, 1]} : vector<16x96xf32> to vector<16x8xf32>
    %cst_103 = arith.constant dense<0.000000e+00> : vector<16x16xf32>
    %214 = tpu.matmul %211, %212, %cst_103 {dimension_numbers = #tpu.dot_dimension_numbers<[1], [1], [0], [0], [0, 0, 1, 0], [], []>} : vector<16x8xf32>, vector<16x8xf32>, vector<16x16xf32> -> vector<16x16xf32>
    %cst_104 = arith.constant 0.353553385 : f32
    %215 = vector.broadcast %cst_104 : f32 to vector<16x16xf32>
    %216 = arith.mulf %214, %215 : vector<16x16xf32>
    %217 = arith.addf %216, %2 : vector<16x16xf32>
    %cst_105 = arith.constant dense<0xFF800000> : vector<16xf32>
    %218 = vector.multi_reduction <maximumf>, %217, %cst_105 [1] : vector<16x16xf32> to vector<16xf32>
    %219 = vector.shape_cast %218 : vector<16xf32> to vector<16x1xf32>
    %220 = vector.broadcast %219 : vector<16x1xf32> to vector<16x16xf32>
    %221 = arith.subf %217, %220 : vector<16x16xf32>
    %222 = math.exp %221 : vector<16x16xf32>
    %cst_106 = arith.constant dense<0.000000e+00> : vector<16xf32>
    %223 = vector.multi_reduction <add>, %222, %cst_106 [1] : vector<16x16xf32> to vector<16xf32>
    %224 = vector.shape_cast %223 : vector<16xf32> to vector<16x1xf32>
    %225 = tpu.reciprocal %224 {approx = true} : vector<16x1xf32> -> vector<16x1xf32>
    %226 = vector.broadcast %225 : vector<16x1xf32> to vector<16x16xf32>
    %227 = arith.mulf %222, %226 : vector<16x16xf32>
    %cst_107 = arith.constant dense<0.000000e+00> : vector<16x8xf32>
    %228 = tpu.matmul %227, %213, %cst_107 {dimension_numbers = #tpu.dot_dimension_numbers<[1], [0], [0], [1], [0, 0, 1, 1], [], []>} : vector<16x16xf32>, vector<16x8xf32>, vector<16x8xf32> -> vector<16x8xf32>
    %229 = vector.extract_strided_slice %210 {offsets = [0, 0], sizes = [8, 32], strides = [1, 1]} : vector<32x32xf32> to vector<8x32xf32>
    %cst_108 = arith.constant dense<0.000000e+00> : vector<16x32xf32>
    %230 = tpu.matmul %228, %229, %cst_108 {dimension_numbers = #tpu.dot_dimension_numbers<[1], [0], [0], [1], [0, 0, 1, 1], [], []>} : vector<16x8xf32>, vector<8x32xf32>, vector<16x32xf32> -> vector<16x32xf32>
    %231 = vector.extract_strided_slice %208 {offsets = [0, 8], sizes = [16, 8], strides = [1, 1]} : vector<16x96xf32> to vector<16x8xf32>
    %232 = vector.extract_strided_slice %208 {offsets = [0, 40], sizes = [16, 8], strides = [1, 1]} : vector<16x96xf32> to vector<16x8xf32>
    %233 = vector.extract_strided_slice %208 {offsets = [0, 72], sizes = [16, 8], strides = [1, 1]} : vector<16x96xf32> to vector<16x8xf32>
    %cst_109 = arith.constant dense<0.000000e+00> : vector<16x16xf32>
    %234 = tpu.matmul %231, %232, %cst_109 {dimension_numbers = #tpu.dot_dimension_numbers<[1], [1], [0], [0], [0, 0, 1, 0], [], []>} : vector<16x8xf32>, vector<16x8xf32>, vector<16x16xf32> -> vector<16x16xf32>
    %cst_110 = arith.constant 0.353553385 : f32
    %235 = vector.broadcast %cst_110 : f32 to vector<16x16xf32>
    %236 = arith.mulf %234, %235 : vector<16x16xf32>
    %237 = arith.addf %236, %2 : vector<16x16xf32>
    %cst_111 = arith.constant dense<0xFF800000> : vector<16xf32>
    %238 = vector.multi_reduction <maximumf>, %237, %cst_111 [1] : vector<16x16xf32> to vector<16xf32>
    %239 = vector.shape_cast %238 : vector<16xf32> to vector<16x1xf32>
    %240 = vector.broadcast %239 : vector<16x1xf32> to vector<16x16xf32>
    %241 = arith.subf %237, %240 : vector<16x16xf32>
    %242 = math.exp %241 : vector<16x16xf32>
    %cst_112 = arith.constant dense<0.000000e+00> : vector<16xf32>
    %243 = vector.multi_reduction <add>, %242, %cst_112 [1] : vector<16x16xf32> to vector<16xf32>
    %244 = vector.shape_cast %243 : vector<16xf32> to vector<16x1xf32>
    %245 = tpu.reciprocal %244 {approx = true} : vector<16x1xf32> -> vector<16x1xf32>
    %246 = vector.broadcast %245 : vector<16x1xf32> to vector<16x16xf32>
    %247 = arith.mulf %242, %246 : vector<16x16xf32>
    %cst_113 = arith.constant dense<0.000000e+00> : vector<16x8xf32>
    %248 = tpu.matmul %247, %233, %cst_113 {dimension_numbers = #tpu.dot_dimension_numbers<[1], [0], [0], [1], [0, 0, 1, 1], [], []>} : vector<16x16xf32>, vector<16x8xf32>, vector<16x8xf32> -> vector<16x8xf32>
    %249 = vector.extract_strided_slice %210 {offsets = [8, 0], sizes = [8, 32], strides = [1, 1]} : vector<32x32xf32> to vector<8x32xf32>
    %cst_114 = arith.constant dense<0.000000e+00> : vector<16x32xf32>
    %250 = tpu.matmul %248, %249, %cst_114 {dimension_numbers = #tpu.dot_dimension_numbers<[1], [0], [0], [1], [0, 0, 1, 1], [], []>} : vector<16x8xf32>, vector<8x32xf32>, vector<16x32xf32> -> vector<16x32xf32>
    %251 = arith.addf %230, %250 : vector<16x32xf32>
    %252 = vector.extract_strided_slice %208 {offsets = [0, 16], sizes = [16, 8], strides = [1, 1]} : vector<16x96xf32> to vector<16x8xf32>
    %253 = vector.extract_strided_slice %208 {offsets = [0, 48], sizes = [16, 8], strides = [1, 1]} : vector<16x96xf32> to vector<16x8xf32>
    %254 = vector.extract_strided_slice %208 {offsets = [0, 80], sizes = [16, 8], strides = [1, 1]} : vector<16x96xf32> to vector<16x8xf32>
    %cst_115 = arith.constant dense<0.000000e+00> : vector<16x16xf32>
    %255 = tpu.matmul %252, %253, %cst_115 {dimension_numbers = #tpu.dot_dimension_numbers<[1], [1], [0], [0], [0, 0, 1, 0], [], []>} : vector<16x8xf32>, vector<16x8xf32>, vector<16x16xf32> -> vector<16x16xf32>
    %cst_116 = arith.constant 0.353553385 : f32
    %256 = vector.broadcast %cst_116 : f32 to vector<16x16xf32>
    %257 = arith.mulf %255, %256 : vector<16x16xf32>
    %258 = arith.addf %257, %2 : vector<16x16xf32>
    %cst_117 = arith.constant dense<0xFF800000> : vector<16xf32>
    %259 = vector.multi_reduction <maximumf>, %258, %cst_117 [1] : vector<16x16xf32> to vector<16xf32>
    %260 = vector.shape_cast %259 : vector<16xf32> to vector<16x1xf32>
    %261 = vector.broadcast %260 : vector<16x1xf32> to vector<16x16xf32>
    %262 = arith.subf %258, %261 : vector<16x16xf32>
    %263 = math.exp %262 : vector<16x16xf32>
    %cst_118 = arith.constant dense<0.000000e+00> : vector<16xf32>
    %264 = vector.multi_reduction <add>, %263, %cst_118 [1] : vector<16x16xf32> to vector<16xf32>
    %265 = vector.shape_cast %264 : vector<16xf32> to vector<16x1xf32>
    %266 = tpu.reciprocal %265 {approx = true} : vector<16x1xf32> -> vector<16x1xf32>
    %267 = vector.broadcast %266 : vector<16x1xf32> to vector<16x16xf32>
    %268 = arith.mulf %263, %267 : vector<16x16xf32>
    %cst_119 = arith.constant dense<0.000000e+00> : vector<16x8xf32>
    %269 = tpu.matmul %268, %254, %cst_119 {dimension_numbers = #tpu.dot_dimension_numbers<[1], [0], [0], [1], [0, 0, 1, 1], [], []>} : vector<16x16xf32>, vector<16x8xf32>, vector<16x8xf32> -> vector<16x8xf32>
    %270 = vector.extract_strided_slice %210 {offsets = [16, 0], sizes = [8, 32], strides = [1, 1]} : vector<32x32xf32> to vector<8x32xf32>
    %cst_120 = arith.constant dense<0.000000e+00> : vector<16x32xf32>
    %271 = tpu.matmul %269, %270, %cst_120 {dimension_numbers = #tpu.dot_dimension_numbers<[1], [0], [0], [1], [0, 0, 1, 1], [], []>} : vector<16x8xf32>, vector<8x32xf32>, vector<16x32xf32> -> vector<16x32xf32>
    %272 = arith.addf %251, %271 : vector<16x32xf32>
    %273 = vector.extract_strided_slice %208 {offsets = [0, 24], sizes = [16, 8], strides = [1, 1]} : vector<16x96xf32> to vector<16x8xf32>
    %274 = vector.extract_strided_slice %208 {offsets = [0, 56], sizes = [16, 8], strides = [1, 1]} : vector<16x96xf32> to vector<16x8xf32>
    %275 = vector.extract_strided_slice %208 {offsets = [0, 88], sizes = [16, 8], strides = [1, 1]} : vector<16x96xf32> to vector<16x8xf32>
    %cst_121 = arith.constant dense<0.000000e+00> : vector<16x16xf32>
    %276 = tpu.matmul %273, %274, %cst_121 {dimension_numbers = #tpu.dot_dimension_numbers<[1], [1], [0], [0], [0, 0, 1, 0], [], []>} : vector<16x8xf32>, vector<16x8xf32>, vector<16x16xf32> -> vector<16x16xf32>
    %cst_122 = arith.constant 0.353553385 : f32
    %277 = vector.broadcast %cst_122 : f32 to vector<16x16xf32>
    %278 = arith.mulf %276, %277 : vector<16x16xf32>
    %279 = arith.addf %278, %2 : vector<16x16xf32>
    %cst_123 = arith.constant dense<0xFF800000> : vector<16xf32>
    %280 = vector.multi_reduction <maximumf>, %279, %cst_123 [1] : vector<16x16xf32> to vector<16xf32>
    %281 = vector.shape_cast %280 : vector<16xf32> to vector<16x1xf32>
    %282 = vector.broadcast %281 : vector<16x1xf32> to vector<16x16xf32>
    %283 = arith.subf %279, %282 : vector<16x16xf32>
    %284 = math.exp %283 : vector<16x16xf32>
    %cst_124 = arith.constant dense<0.000000e+00> : vector<16xf32>
    %285 = vector.multi_reduction <add>, %284, %cst_124 [1] : vector<16x16xf32> to vector<16xf32>
    %286 = vector.shape_cast %285 : vector<16xf32> to vector<16x1xf32>
    %287 = tpu.reciprocal %286 {approx = true} : vector<16x1xf32> -> vector<16x1xf32>
    %288 = vector.broadcast %287 : vector<16x1xf32> to vector<16x16xf32>
    %289 = arith.mulf %284, %288 : vector<16x16xf32>
    %cst_125 = arith.constant dense<0.000000e+00> : vector<16x8xf32>
    %290 = tpu.matmul %289, %275, %cst_125 {dimension_numbers = #tpu.dot_dimension_numbers<[1], [0], [0], [1], [0, 0, 1, 1], [], []>} : vector<16x16xf32>, vector<16x8xf32>, vector<16x8xf32> -> vector<16x8xf32>
    %291 = vector.extract_strided_slice %210 {offsets = [24, 0], sizes = [8, 32], strides = [1, 1]} : vector<32x32xf32> to vector<8x32xf32>
    %cst_126 = arith.constant dense<0.000000e+00> : vector<16x32xf32>
    %292 = tpu.matmul %290, %291, %cst_126 {dimension_numbers = #tpu.dot_dimension_numbers<[1], [0], [0], [1], [0, 0, 1, 1], [], []>} : vector<16x8xf32>, vector<8x32xf32>, vector<16x32xf32> -> vector<16x32xf32>
    %293 = arith.addf %272, %292 : vector<16x32xf32>
    %294 = arith.addf %175, %293 : vector<16x32xf32>
    %c1_127 = arith.constant 1 : index
    %c0_128 = arith.constant 0 : index
    %c0_129 = arith.constant 0 : index
    %295 = vector.load %arg10[%c1_127, %c0_128, %c0_129] : memref<3x1x32xf32, #tpu.memory_space<vmem>>, vector<1x1x32xf32>
    %296 = vector.shape_cast %295 : vector<1x1x32xf32> to vector<1x32xf32>
    %297 = vector.broadcast %296 : vector<1x32xf32> to vector<16x32xf32>
    %298 = arith.addf %294, %297 : vector<16x32xf32>
    %c1_130 = arith.constant 1 : index
    %c0_131 = arith.constant 0 : index
    %c0_132 = arith.constant 0 : index
    %299 = vector.load %arg11[%c1_130, %c0_131, %c0_132] : memref<3x1x32xf32, #tpu.memory_space<vmem>>, vector<1x1x32xf32>
    %300 = vector.shape_cast %299 : vector<1x1x32xf32> to vector<1x32xf32>
    %c1_133 = arith.constant 1 : index
    %c0_134 = arith.constant 0 : index
    %c0_135 = arith.constant 0 : index
    %301 = vector.load %arg12[%c1_133, %c0_134, %c0_135] : memref<3x1x32xf32, #tpu.memory_space<vmem>>, vector<1x1x32xf32>
    %302 = vector.shape_cast %301 : vector<1x1x32xf32> to vector<1x32xf32>
    %cst_136 = arith.constant dense<0.000000e+00> : vector<16xf32>
    %303 = vector.multi_reduction <add>, %298, %cst_136 [1] : vector<16x32xf32> to vector<16xf32>
    %304 = vector.shape_cast %303 : vector<16xf32> to vector<16x1xf32>
    %cst_137 = arith.constant 3.200000e+01 : f32
    %305 = vector.broadcast %cst_137 : f32 to vector<16x1xf32>
    %306 = arith.divf %304, %305 : vector<16x1xf32>
    %307 = vector.broadcast %306 : vector<16x1xf32> to vector<16x32xf32>
    %308 = arith.subf %298, %307 : vector<16x32xf32>
    %309 = arith.mulf %308, %308 : vector<16x32xf32>
    %cst_138 = arith.constant dense<0.000000e+00> : vector<16xf32>
    %310 = vector.multi_reduction <add>, %309, %cst_138 [1] : vector<16x32xf32> to vector<16xf32>
    %311 = vector.shape_cast %310 : vector<16xf32> to vector<16x1xf32>
    %cst_139 = arith.constant 3.200000e+01 : f32
    %312 = vector.broadcast %cst_139 : f32 to vector<16x1xf32>
    %313 = arith.divf %311, %312 : vector<16x1xf32>
    %314 = vector.broadcast %306 : vector<16x1xf32> to vector<16x32xf32>
    %315 = arith.subf %298, %314 : vector<16x32xf32>
    %cst_140 = arith.constant 9.99999974E-6 : f32
    %316 = vector.broadcast %cst_140 : f32 to vector<16x1xf32>
    %317 = arith.addf %313, %316 : vector<16x1xf32>
    %318 = math.rsqrt %317 : vector<16x1xf32>
    %319 = vector.broadcast %318 : vector<16x1xf32> to vector<16x32xf32>
    %320 = arith.mulf %315, %319 : vector<16x32xf32>
    %321 = vector.broadcast %300 : vector<1x32xf32> to vector<16x32xf32>
    %322 = arith.mulf %320, %321 : vector<16x32xf32>
    %323 = vector.broadcast %302 : vector<1x32xf32> to vector<16x32xf32>
    %324 = arith.addf %322, %323 : vector<16x32xf32>
    %c1_141 = arith.constant 1 : index
    %c0_142 = arith.constant 0 : index
    %c0_143 = arith.constant 0 : index
    %325 = vector.load %arg13[%c1_141, %c0_142, %c0_143] : memref<3x32x2048xf32, #tpu.memory_space<vmem>>, vector<1x32x2048xf32>
    %326 = vector.shape_cast %325 : vector<1x32x2048xf32> to vector<32x2048xf32>
    %cst_144 = arith.constant dense<0.000000e+00> : vector<16x2048xf32>
    %327 = tpu.matmul %324, %326, %cst_144 {dimension_numbers = #tpu.dot_dimension_numbers<[1], [0], [0], [1], [0, 0, 1, 1], [], []>} : vector<16x32xf32>, vector<32x2048xf32>, vector<16x2048xf32> -> vector<16x2048xf32>
    %c1_145 = arith.constant 1 : index
    %c0_146 = arith.constant 0 : index
    %c0_147 = arith.constant 0 : index
    %328 = vector.load %arg14[%c1_145, %c0_146, %c0_147] : memref<3x1x2048xf32, #tpu.memory_space<vmem>>, vector<1x1x2048xf32>
    %329 = vector.shape_cast %328 : vector<1x1x2048xf32> to vector<1x2048xf32>
    %330 = vector.broadcast %329 : vector<1x2048xf32> to vector<16x2048xf32>
    %331 = arith.addf %327, %330 : vector<16x2048xf32>
    %cst_148 = arith.constant 0.000000e+00 : f32
    %332 = vector.broadcast %cst_148 : f32 to vector<16x2048xf32>
    %333 = arith.maximumf %331, %332 : vector<16x2048xf32>
    %c1_149 = arith.constant 1 : index
    %c0_150 = arith.constant 0 : index
    %c0_151 = arith.constant 0 : index
    %334 = vector.load %arg15[%c1_149, %c0_150, %c0_151] : memref<3x2048x32xf32, #tpu.memory_space<vmem>>, vector<1x2048x32xf32>
    %335 = vector.shape_cast %334 : vector<1x2048x32xf32> to vector<2048x32xf32>
    %cst_152 = arith.constant dense<0.000000e+00> : vector<16x32xf32>
    %336 = tpu.matmul %333, %335, %cst_152 {dimension_numbers = #tpu.dot_dimension_numbers<[1], [0], [0], [1], [0, 0, 1, 1], [], []>} : vector<16x2048xf32>, vector<2048x32xf32>, vector<16x32xf32> -> vector<16x32xf32>
    %337 = arith.addf %298, %336 : vector<16x32xf32>
    %c1_153 = arith.constant 1 : index
    %c0_154 = arith.constant 0 : index
    %c0_155 = arith.constant 0 : index
    %338 = vector.load %arg16[%c1_153, %c0_154, %c0_155] : memref<3x1x32xf32, #tpu.memory_space<vmem>>, vector<1x1x32xf32>
    %339 = vector.shape_cast %338 : vector<1x1x32xf32> to vector<1x32xf32>
    %340 = vector.broadcast %339 : vector<1x32xf32> to vector<16x32xf32>
    %341 = arith.addf %337, %340 : vector<16x32xf32>
    %c2 = arith.constant 2 : index
    %c0_156 = arith.constant 0 : index
    %c0_157 = arith.constant 0 : index
    %342 = vector.load %arg5[%c2, %c0_156, %c0_157] : memref<3x1x32xf32, #tpu.memory_space<vmem>>, vector<1x1x32xf32>
    %343 = vector.shape_cast %342 : vector<1x1x32xf32> to vector<1x32xf32>
    %c2_158 = arith.constant 2 : index
    %c0_159 = arith.constant 0 : index
    %c0_160 = arith.constant 0 : index
    %344 = vector.load %arg6[%c2_158, %c0_159, %c0_160] : memref<3x1x32xf32, #tpu.memory_space<vmem>>, vector<1x1x32xf32>
    %345 = vector.shape_cast %344 : vector<1x1x32xf32> to vector<1x32xf32>
    %cst_161 = arith.constant dense<0.000000e+00> : vector<16xf32>
    %346 = vector.multi_reduction <add>, %341, %cst_161 [1] : vector<16x32xf32> to vector<16xf32>
    %347 = vector.shape_cast %346 : vector<16xf32> to vector<16x1xf32>
    %cst_162 = arith.constant 3.200000e+01 : f32
    %348 = vector.broadcast %cst_162 : f32 to vector<16x1xf32>
    %349 = arith.divf %347, %348 : vector<16x1xf32>
    %350 = vector.broadcast %349 : vector<16x1xf32> to vector<16x32xf32>
    %351 = arith.subf %341, %350 : vector<16x32xf32>
    %352 = arith.mulf %351, %351 : vector<16x32xf32>
    %cst_163 = arith.constant dense<0.000000e+00> : vector<16xf32>
    %353 = vector.multi_reduction <add>, %352, %cst_163 [1] : vector<16x32xf32> to vector<16xf32>
    %354 = vector.shape_cast %353 : vector<16xf32> to vector<16x1xf32>
    %cst_164 = arith.constant 3.200000e+01 : f32
    %355 = vector.broadcast %cst_164 : f32 to vector<16x1xf32>
    %356 = arith.divf %354, %355 : vector<16x1xf32>
    %357 = vector.broadcast %349 : vector<16x1xf32> to vector<16x32xf32>
    %358 = arith.subf %341, %357 : vector<16x32xf32>
    %cst_165 = arith.constant 9.99999974E-6 : f32
    %359 = vector.broadcast %cst_165 : f32 to vector<16x1xf32>
    %360 = arith.addf %356, %359 : vector<16x1xf32>
    %361 = math.rsqrt %360 : vector<16x1xf32>
    %362 = vector.broadcast %361 : vector<16x1xf32> to vector<16x32xf32>
    %363 = arith.mulf %358, %362 : vector<16x32xf32>
    %364 = vector.broadcast %343 : vector<1x32xf32> to vector<16x32xf32>
    %365 = arith.mulf %363, %364 : vector<16x32xf32>
    %366 = vector.broadcast %345 : vector<1x32xf32> to vector<16x32xf32>
    %367 = arith.addf %365, %366 : vector<16x32xf32>
    %c2_166 = arith.constant 2 : index
    %c0_167 = arith.constant 0 : index
    %c0_168 = arith.constant 0 : index
    %368 = vector.load %arg7[%c2_166, %c0_167, %c0_168] : memref<3x32x96xf32, #tpu.memory_space<vmem>>, vector<1x32x96xf32>
    %369 = vector.shape_cast %368 : vector<1x32x96xf32> to vector<32x96xf32>
    %cst_169 = arith.constant dense<0.000000e+00> : vector<16x96xf32>
    %370 = tpu.matmul %367, %369, %cst_169 {dimension_numbers = #tpu.dot_dimension_numbers<[1], [0], [0], [1], [0, 0, 1, 1], [], []>} : vector<16x32xf32>, vector<32x96xf32>, vector<16x96xf32> -> vector<16x96xf32>
    %c2_170 = arith.constant 2 : index
    %c0_171 = arith.constant 0 : index
    %c0_172 = arith.constant 0 : index
    %371 = vector.load %arg8[%c2_170, %c0_171, %c0_172] : memref<3x1x96xf32, #tpu.memory_space<vmem>>, vector<1x1x96xf32>
    %372 = vector.shape_cast %371 : vector<1x1x96xf32> to vector<1x96xf32>
    %373 = vector.broadcast %372 : vector<1x96xf32> to vector<16x96xf32>
    %374 = arith.addf %370, %373 : vector<16x96xf32>
    %c2_173 = arith.constant 2 : index
    %c0_174 = arith.constant 0 : index
    %c0_175 = arith.constant 0 : index
    %375 = vector.load %arg9[%c2_173, %c0_174, %c0_175] : memref<3x32x32xf32, #tpu.memory_space<vmem>>, vector<1x32x32xf32>
    %376 = vector.shape_cast %375 : vector<1x32x32xf32> to vector<32x32xf32>
    %377 = vector.extract_strided_slice %374 {offsets = [0, 0], sizes = [16, 8], strides = [1, 1]} : vector<16x96xf32> to vector<16x8xf32>
    %378 = vector.extract_strided_slice %374 {offsets = [0, 32], sizes = [16, 8], strides = [1, 1]} : vector<16x96xf32> to vector<16x8xf32>
    %379 = vector.extract_strided_slice %374 {offsets = [0, 64], sizes = [16, 8], strides = [1, 1]} : vector<16x96xf32> to vector<16x8xf32>
    %cst_176 = arith.constant dense<0.000000e+00> : vector<16x16xf32>
    %380 = tpu.matmul %377, %378, %cst_176 {dimension_numbers = #tpu.dot_dimension_numbers<[1], [1], [0], [0], [0, 0, 1, 0], [], []>} : vector<16x8xf32>, vector<16x8xf32>, vector<16x16xf32> -> vector<16x16xf32>
    %cst_177 = arith.constant 0.353553385 : f32
    %381 = vector.broadcast %cst_177 : f32 to vector<16x16xf32>
    %382 = arith.mulf %380, %381 : vector<16x16xf32>
    %383 = arith.addf %382, %2 : vector<16x16xf32>
    %cst_178 = arith.constant dense<0xFF800000> : vector<16xf32>
    %384 = vector.multi_reduction <maximumf>, %383, %cst_178 [1] : vector<16x16xf32> to vector<16xf32>
    %385 = vector.shape_cast %384 : vector<16xf32> to vector<16x1xf32>
    %386 = vector.broadcast %385 : vector<16x1xf32> to vector<16x16xf32>
    %387 = arith.subf %383, %386 : vector<16x16xf32>
    %388 = math.exp %387 : vector<16x16xf32>
    %cst_179 = arith.constant dense<0.000000e+00> : vector<16xf32>
    %389 = vector.multi_reduction <add>, %388, %cst_179 [1] : vector<16x16xf32> to vector<16xf32>
    %390 = vector.shape_cast %389 : vector<16xf32> to vector<16x1xf32>
    %391 = tpu.reciprocal %390 {approx = true} : vector<16x1xf32> -> vector<16x1xf32>
    %392 = vector.broadcast %391 : vector<16x1xf32> to vector<16x16xf32>
    %393 = arith.mulf %388, %392 : vector<16x16xf32>
    %cst_180 = arith.constant dense<0.000000e+00> : vector<16x8xf32>
    %394 = tpu.matmul %393, %379, %cst_180 {dimension_numbers = #tpu.dot_dimension_numbers<[1], [0], [0], [1], [0, 0, 1, 1], [], []>} : vector<16x16xf32>, vector<16x8xf32>, vector<16x8xf32> -> vector<16x8xf32>
    %395 = vector.extract_strided_slice %376 {offsets = [0, 0], sizes = [8, 32], strides = [1, 1]} : vector<32x32xf32> to vector<8x32xf32>
    %cst_181 = arith.constant dense<0.000000e+00> : vector<16x32xf32>
    %396 = tpu.matmul %394, %395, %cst_181 {dimension_numbers = #tpu.dot_dimension_numbers<[1], [0], [0], [1], [0, 0, 1, 1], [], []>} : vector<16x8xf32>, vector<8x32xf32>, vector<16x32xf32> -> vector<16x32xf32>
    %397 = vector.extract_strided_slice %374 {offsets = [0, 8], sizes = [16, 8], strides = [1, 1]} : vector<16x96xf32> to vector<16x8xf32>
    %398 = vector.extract_strided_slice %374 {offsets = [0, 40], sizes = [16, 8], strides = [1, 1]} : vector<16x96xf32> to vector<16x8xf32>
    %399 = vector.extract_strided_slice %374 {offsets = [0, 72], sizes = [16, 8], strides = [1, 1]} : vector<16x96xf32> to vector<16x8xf32>
    %cst_182 = arith.constant dense<0.000000e+00> : vector<16x16xf32>
    %400 = tpu.matmul %397, %398, %cst_182 {dimension_numbers = #tpu.dot_dimension_numbers<[1], [1], [0], [0], [0, 0, 1, 0], [], []>} : vector<16x8xf32>, vector<16x8xf32>, vector<16x16xf32> -> vector<16x16xf32>
    %cst_183 = arith.constant 0.353553385 : f32
    %401 = vector.broadcast %cst_183 : f32 to vector<16x16xf32>
    %402 = arith.mulf %400, %401 : vector<16x16xf32>
    %403 = arith.addf %402, %2 : vector<16x16xf32>
    %cst_184 = arith.constant dense<0xFF800000> : vector<16xf32>
    %404 = vector.multi_reduction <maximumf>, %403, %cst_184 [1] : vector<16x16xf32> to vector<16xf32>
    %405 = vector.shape_cast %404 : vector<16xf32> to vector<16x1xf32>
    %406 = vector.broadcast %405 : vector<16x1xf32> to vector<16x16xf32>
    %407 = arith.subf %403, %406 : vector<16x16xf32>
    %408 = math.exp %407 : vector<16x16xf32>
    %cst_185 = arith.constant dense<0.000000e+00> : vector<16xf32>
    %409 = vector.multi_reduction <add>, %408, %cst_185 [1] : vector<16x16xf32> to vector<16xf32>
    %410 = vector.shape_cast %409 : vector<16xf32> to vector<16x1xf32>
    %411 = tpu.reciprocal %410 {approx = true} : vector<16x1xf32> -> vector<16x1xf32>
    %412 = vector.broadcast %411 : vector<16x1xf32> to vector<16x16xf32>
    %413 = arith.mulf %408, %412 : vector<16x16xf32>
    %cst_186 = arith.constant dense<0.000000e+00> : vector<16x8xf32>
    %414 = tpu.matmul %413, %399, %cst_186 {dimension_numbers = #tpu.dot_dimension_numbers<[1], [0], [0], [1], [0, 0, 1, 1], [], []>} : vector<16x16xf32>, vector<16x8xf32>, vector<16x8xf32> -> vector<16x8xf32>
    %415 = vector.extract_strided_slice %376 {offsets = [8, 0], sizes = [8, 32], strides = [1, 1]} : vector<32x32xf32> to vector<8x32xf32>
    %cst_187 = arith.constant dense<0.000000e+00> : vector<16x32xf32>
    %416 = tpu.matmul %414, %415, %cst_187 {dimension_numbers = #tpu.dot_dimension_numbers<[1], [0], [0], [1], [0, 0, 1, 1], [], []>} : vector<16x8xf32>, vector<8x32xf32>, vector<16x32xf32> -> vector<16x32xf32>
    %417 = arith.addf %396, %416 : vector<16x32xf32>
    %418 = vector.extract_strided_slice %374 {offsets = [0, 16], sizes = [16, 8], strides = [1, 1]} : vector<16x96xf32> to vector<16x8xf32>
    %419 = vector.extract_strided_slice %374 {offsets = [0, 48], sizes = [16, 8], strides = [1, 1]} : vector<16x96xf32> to vector<16x8xf32>
    %420 = vector.extract_strided_slice %374 {offsets = [0, 80], sizes = [16, 8], strides = [1, 1]} : vector<16x96xf32> to vector<16x8xf32>
    %cst_188 = arith.constant dense<0.000000e+00> : vector<16x16xf32>
    %421 = tpu.matmul %418, %419, %cst_188 {dimension_numbers = #tpu.dot_dimension_numbers<[1], [1], [0], [0], [0, 0, 1, 0], [], []>} : vector<16x8xf32>, vector<16x8xf32>, vector<16x16xf32> -> vector<16x16xf32>
    %cst_189 = arith.constant 0.353553385 : f32
    %422 = vector.broadcast %cst_189 : f32 to vector<16x16xf32>
    %423 = arith.mulf %421, %422 : vector<16x16xf32>
    %424 = arith.addf %423, %2 : vector<16x16xf32>
    %cst_190 = arith.constant dense<0xFF800000> : vector<16xf32>
    %425 = vector.multi_reduction <maximumf>, %424, %cst_190 [1] : vector<16x16xf32> to vector<16xf32>
    %426 = vector.shape_cast %425 : vector<16xf32> to vector<16x1xf32>
    %427 = vector.broadcast %426 : vector<16x1xf32> to vector<16x16xf32>
    %428 = arith.subf %424, %427 : vector<16x16xf32>
    %429 = math.exp %428 : vector<16x16xf32>
    %cst_191 = arith.constant dense<0.000000e+00> : vector<16xf32>
    %430 = vector.multi_reduction <add>, %429, %cst_191 [1] : vector<16x16xf32> to vector<16xf32>
    %431 = vector.shape_cast %430 : vector<16xf32> to vector<16x1xf32>
    %432 = tpu.reciprocal %431 {approx = true} : vector<16x1xf32> -> vector<16x1xf32>
    %433 = vector.broadcast %432 : vector<16x1xf32> to vector<16x16xf32>
    %434 = arith.mulf %429, %433 : vector<16x16xf32>
    %cst_192 = arith.constant dense<0.000000e+00> : vector<16x8xf32>
    %435 = tpu.matmul %434, %420, %cst_192 {dimension_numbers = #tpu.dot_dimension_numbers<[1], [0], [0], [1], [0, 0, 1, 1], [], []>} : vector<16x16xf32>, vector<16x8xf32>, vector<16x8xf32> -> vector<16x8xf32>
    %436 = vector.extract_strided_slice %376 {offsets = [16, 0], sizes = [8, 32], strides = [1, 1]} : vector<32x32xf32> to vector<8x32xf32>
    %cst_193 = arith.constant dense<0.000000e+00> : vector<16x32xf32>
    %437 = tpu.matmul %435, %436, %cst_193 {dimension_numbers = #tpu.dot_dimension_numbers<[1], [0], [0], [1], [0, 0, 1, 1], [], []>} : vector<16x8xf32>, vector<8x32xf32>, vector<16x32xf32> -> vector<16x32xf32>
    %438 = arith.addf %417, %437 : vector<16x32xf32>
    %439 = vector.extract_strided_slice %374 {offsets = [0, 24], sizes = [16, 8], strides = [1, 1]} : vector<16x96xf32> to vector<16x8xf32>
    %440 = vector.extract_strided_slice %374 {offsets = [0, 56], sizes = [16, 8], strides = [1, 1]} : vector<16x96xf32> to vector<16x8xf32>
    %441 = vector.extract_strided_slice %374 {offsets = [0, 88], sizes = [16, 8], strides = [1, 1]} : vector<16x96xf32> to vector<16x8xf32>
    %cst_194 = arith.constant dense<0.000000e+00> : vector<16x16xf32>
    %442 = tpu.matmul %439, %440, %cst_194 {dimension_numbers = #tpu.dot_dimension_numbers<[1], [1], [0], [0], [0, 0, 1, 0], [], []>} : vector<16x8xf32>, vector<16x8xf32>, vector<16x16xf32> -> vector<16x16xf32>
    %cst_195 = arith.constant 0.353553385 : f32
    %443 = vector.broadcast %cst_195 : f32 to vector<16x16xf32>
    %444 = arith.mulf %442, %443 : vector<16x16xf32>
    %445 = arith.addf %444, %2 : vector<16x16xf32>
    %cst_196 = arith.constant dense<0xFF800000> : vector<16xf32>
    %446 = vector.multi_reduction <maximumf>, %445, %cst_196 [1] : vector<16x16xf32> to vector<16xf32>
    %447 = vector.shape_cast %446 : vector<16xf32> to vector<16x1xf32>
    %448 = vector.broadcast %447 : vector<16x1xf32> to vector<16x16xf32>
    %449 = arith.subf %445, %448 : vector<16x16xf32>
    %450 = math.exp %449 : vector<16x16xf32>
    %cst_197 = arith.constant dense<0.000000e+00> : vector<16xf32>
    %451 = vector.multi_reduction <add>, %450, %cst_197 [1] : vector<16x16xf32> to vector<16xf32>
    %452 = vector.shape_cast %451 : vector<16xf32> to vector<16x1xf32>
    %453 = tpu.reciprocal %452 {approx = true} : vector<16x1xf32> -> vector<16x1xf32>
    %454 = vector.broadcast %453 : vector<16x1xf32> to vector<16x16xf32>
    %455 = arith.mulf %450, %454 : vector<16x16xf32>
    %cst_198 = arith.constant dense<0.000000e+00> : vector<16x8xf32>
    %456 = tpu.matmul %455, %441, %cst_198 {dimension_numbers = #tpu.dot_dimension_numbers<[1], [0], [0], [1], [0, 0, 1, 1], [], []>} : vector<16x16xf32>, vector<16x8xf32>, vector<16x8xf32> -> vector<16x8xf32>
    %457 = vector.extract_strided_slice %376 {offsets = [24, 0], sizes = [8, 32], strides = [1, 1]} : vector<32x32xf32> to vector<8x32xf32>
    %cst_199 = arith.constant dense<0.000000e+00> : vector<16x32xf32>
    %458 = tpu.matmul %456, %457, %cst_199 {dimension_numbers = #tpu.dot_dimension_numbers<[1], [0], [0], [1], [0, 0, 1, 1], [], []>} : vector<16x8xf32>, vector<8x32xf32>, vector<16x32xf32> -> vector<16x32xf32>
    %459 = arith.addf %438, %458 : vector<16x32xf32>
    %460 = arith.addf %341, %459 : vector<16x32xf32>
    %c2_200 = arith.constant 2 : index
    %c0_201 = arith.constant 0 : index
    %c0_202 = arith.constant 0 : index
    %461 = vector.load %arg10[%c2_200, %c0_201, %c0_202] : memref<3x1x32xf32, #tpu.memory_space<vmem>>, vector<1x1x32xf32>
    %462 = vector.shape_cast %461 : vector<1x1x32xf32> to vector<1x32xf32>
    %463 = vector.broadcast %462 : vector<1x32xf32> to vector<16x32xf32>
    %464 = arith.addf %460, %463 : vector<16x32xf32>
    %c2_203 = arith.constant 2 : index
    %c0_204 = arith.constant 0 : index
    %c0_205 = arith.constant 0 : index
    %465 = vector.load %arg11[%c2_203, %c0_204, %c0_205] : memref<3x1x32xf32, #tpu.memory_space<vmem>>, vector<1x1x32xf32>
    %466 = vector.shape_cast %465 : vector<1x1x32xf32> to vector<1x32xf32>
    %c2_206 = arith.constant 2 : index
    %c0_207 = arith.constant 0 : index
    %c0_208 = arith.constant 0 : index
    %467 = vector.load %arg12[%c2_206, %c0_207, %c0_208] : memref<3x1x32xf32, #tpu.memory_space<vmem>>, vector<1x1x32xf32>
    %468 = vector.shape_cast %467 : vector<1x1x32xf32> to vector<1x32xf32>
    %cst_209 = arith.constant dense<0.000000e+00> : vector<16xf32>
    %469 = vector.multi_reduction <add>, %464, %cst_209 [1] : vector<16x32xf32> to vector<16xf32>
    %470 = vector.shape_cast %469 : vector<16xf32> to vector<16x1xf32>
    %cst_210 = arith.constant 3.200000e+01 : f32
    %471 = vector.broadcast %cst_210 : f32 to vector<16x1xf32>
    %472 = arith.divf %470, %471 : vector<16x1xf32>
    %473 = vector.broadcast %472 : vector<16x1xf32> to vector<16x32xf32>
    %474 = arith.subf %464, %473 : vector<16x32xf32>
    %475 = arith.mulf %474, %474 : vector<16x32xf32>
    %cst_211 = arith.constant dense<0.000000e+00> : vector<16xf32>
    %476 = vector.multi_reduction <add>, %475, %cst_211 [1] : vector<16x32xf32> to vector<16xf32>
    %477 = vector.shape_cast %476 : vector<16xf32> to vector<16x1xf32>
    %cst_212 = arith.constant 3.200000e+01 : f32
    %478 = vector.broadcast %cst_212 : f32 to vector<16x1xf32>
    %479 = arith.divf %477, %478 : vector<16x1xf32>
    %480 = vector.broadcast %472 : vector<16x1xf32> to vector<16x32xf32>
    %481 = arith.subf %464, %480 : vector<16x32xf32>
    %cst_213 = arith.constant 9.99999974E-6 : f32
    %482 = vector.broadcast %cst_213 : f32 to vector<16x1xf32>
    %483 = arith.addf %479, %482 : vector<16x1xf32>
    %484 = math.rsqrt %483 : vector<16x1xf32>
    %485 = vector.broadcast %484 : vector<16x1xf32> to vector<16x32xf32>
    %486 = arith.mulf %481, %485 : vector<16x32xf32>
    %487 = vector.broadcast %466 : vector<1x32xf32> to vector<16x32xf32>
    %488 = arith.mulf %486, %487 : vector<16x32xf32>
    %489 = vector.broadcast %468 : vector<1x32xf32> to vector<16x32xf32>
    %490 = arith.addf %488, %489 : vector<16x32xf32>
    %c2_214 = arith.constant 2 : index
    %c0_215 = arith.constant 0 : index
    %c0_216 = arith.constant 0 : index
    %491 = vector.load %arg13[%c2_214, %c0_215, %c0_216] : memref<3x32x2048xf32, #tpu.memory_space<vmem>>, vector<1x32x2048xf32>
    %492 = vector.shape_cast %491 : vector<1x32x2048xf32> to vector<32x2048xf32>
    %cst_217 = arith.constant dense<0.000000e+00> : vector<16x2048xf32>
    %493 = tpu.matmul %490, %492, %cst_217 {dimension_numbers = #tpu.dot_dimension_numbers<[1], [0], [0], [1], [0, 0, 1, 1], [], []>} : vector<16x32xf32>, vector<32x2048xf32>, vector<16x2048xf32> -> vector<16x2048xf32>
    %c2_218 = arith.constant 2 : index
    %c0_219 = arith.constant 0 : index
    %c0_220 = arith.constant 0 : index
    %494 = vector.load %arg14[%c2_218, %c0_219, %c0_220] : memref<3x1x2048xf32, #tpu.memory_space<vmem>>, vector<1x1x2048xf32>
    %495 = vector.shape_cast %494 : vector<1x1x2048xf32> to vector<1x2048xf32>
    %496 = vector.broadcast %495 : vector<1x2048xf32> to vector<16x2048xf32>
    %497 = arith.addf %493, %496 : vector<16x2048xf32>
    %cst_221 = arith.constant 0.000000e+00 : f32
    %498 = vector.broadcast %cst_221 : f32 to vector<16x2048xf32>
    %499 = arith.maximumf %497, %498 : vector<16x2048xf32>
    %c2_222 = arith.constant 2 : index
    %c0_223 = arith.constant 0 : index
    %c0_224 = arith.constant 0 : index
    %500 = vector.load %arg15[%c2_222, %c0_223, %c0_224] : memref<3x2048x32xf32, #tpu.memory_space<vmem>>, vector<1x2048x32xf32>
    %501 = vector.shape_cast %500 : vector<1x2048x32xf32> to vector<2048x32xf32>
    %cst_225 = arith.constant dense<0.000000e+00> : vector<16x32xf32>
    %502 = tpu.matmul %499, %501, %cst_225 {dimension_numbers = #tpu.dot_dimension_numbers<[1], [0], [0], [1], [0, 0, 1, 1], [], []>} : vector<16x2048xf32>, vector<2048x32xf32>, vector<16x32xf32> -> vector<16x32xf32>
    %503 = arith.addf %464, %502 : vector<16x32xf32>
    %c2_226 = arith.constant 2 : index
    %c0_227 = arith.constant 0 : index
    %c0_228 = arith.constant 0 : index
    %504 = vector.load %arg16[%c2_226, %c0_227, %c0_228] : memref<3x1x32xf32, #tpu.memory_space<vmem>>, vector<1x1x32xf32>
    %505 = vector.shape_cast %504 : vector<1x1x32xf32> to vector<1x32xf32>
    %506 = vector.broadcast %505 : vector<1x32xf32> to vector<16x32xf32>
    %507 = arith.addf %503, %506 : vector<16x32xf32>
    %508 = vector.extract_strided_slice %507 {offsets = [7, 0], sizes = [1, 32], strides = [1, 1]} : vector<16x32xf32> to vector<1x32xf32>
    %509 = vector.extract_strided_slice %507 {offsets = [15, 0], sizes = [1, 32], strides = [1, 1]} : vector<16x32xf32> to vector<1x32xf32>
    %510 = tpu.concatenate %508, %509 in 0 : vector<1x32xf32>, vector<1x32xf32> -> vector<2x32xf32>
    %c0_229 = arith.constant 0 : index
    %c0_230 = arith.constant 0 : index
    %511 = vector.load %arg17[%c0_229, %c0_230] : memref<32x4xf32, #tpu.memory_space<vmem>>, vector<32x4xf32>
    %cst_231 = arith.constant dense<0.000000e+00> : vector<2x4xf32>
    %512 = tpu.matmul %510, %511, %cst_231 {dimension_numbers = #tpu.dot_dimension_numbers<[1], [0], [0], [1], [0, 0, 1, 1], [], []>} : vector<2x32xf32>, vector<32x4xf32>, vector<2x4xf32> -> vector<2x4xf32>
    %c0_232 = arith.constant 0 : index
    %c0_233 = arith.constant 0 : index
    %513 = vector.load %arg18[%c0_232, %c0_233] : memref<1x4xf32, #tpu.memory_space<vmem>>, vector<1x4xf32>
    %514 = vector.broadcast %513 : vector<1x4xf32> to vector<2x4xf32>
    %515 = arith.addf %512, %514 : vector<2x4xf32>
    %c0_234 = arith.constant 0 : index
    %c0_235 = arith.constant 0 : index
    %516 = vector.load %arg19[%c0_234, %c0_235] : memref<2x4xf32, #tpu.memory_space<vmem>>, vector<2x4xf32>
    tpu.vector_store %arg19[%c0_234, %c0_235], %515 {strides = array<i32>} : memref<2x4xf32, #tpu.memory_space<vmem>>, vector<2x4xf32>,
    return
  }
}

</mosaic_0001>

<bundles_post_ra>
// kernel: transformer_forward.1
= control target key start
LH: loop header
LB: loop body
LE: loop exit
PB: predicated region body
PF: predicated region fallthrough
CT: control target
= control target key end

     0   :  { %s10749_s0 = inlined_call_operand.vmem [shape: f32[16,16], index: 0, kind: input, shape index: {}]   ;;  %s10750_s1 = inlined_call_operand.vmem [shape: f32[8,32], index: 1, kind: input, shape index: {}]   ;;  %s10751_s2 = inlined_call_operand.vmem [shape: f32[16,16], index: 2, kind: input, shape index: {}]   ;;  %s10752_s3 = inlined_call_operand.vmem [shape: f32[16,32], index: 3, kind: input, shape index: {}]   ;;  %s10753_s4 = inlined_call_operand.vmem [shape: f32[1,32], index: 4, kind: input, shape index: {}]   ;;  %s10754_s5 = inlined_call_operand.vmem [shape: f32[3,1,32], index: 5, kind: input, shape index: {}]   ;;  %s10755_s6 = inlined_call_operand.vmem [shape: f32[3,1,32], index: 6, kind: input, shape index: {}]   ;;  %s10756_s7 = inlined_call_operand.vmem [shape: f32[3,32,96], index: 7, kind: input, shape index: {}]   ;;  %s10757_s8 = inlined_call_operand.vmem [shape: f32[3,1,96], index: 8, kind: input, shape index: {}]   ;;  %s10758_s9 = inlined_call_operand.vmem [shape: f32[3,32,32], index: 9, kind: input, shape index: {}]   ;;  %s10759_s10 = inlined_call_operand.vmem [shape: f32[3,1,32], index: 10, kind: input, shape index: {}]   ;;  %s10760_s11 = inlined_call_operand.vmem [shape: f32[3,1,32], index: 11, kind: input, shape index: {}]   ;;  %s10761_s12 = inlined_call_operand.vmem [shape: f32[3,1,32], index: 12, kind: input, shape index: {}]   ;;  %s10762_s13 = inlined_call_operand.vmem [shape: f32[3,32,2048], index: 13, kind: input, shape index: {}]   ;;  %s10763_s14 = inlined_call_operand.vmem [shape: f32[3,1,2048], index: 14, kind: input, shape index: {}]   ;;  %s10764_s15 = inlined_call_operand.vmem [shape: f32[3,2048,32], index: 15, kind: input, shape index: {}]   ;;  %s10765_s16 = inlined_call_operand.vmem [shape: f32[3,1,32], index: 16, kind: input, shape index: {}]   ;;  %s10766_s17 = inlined_call_operand.vmem [shape: f32[32,4], index: 17, kind: input, shape index: {}]   ;;  %s10767_s18 = inlined_call_operand.vmem [shape: f32[1,4], index: 18, kind: input, shape index: {}]   ;;  %s10768_s19 = inlined_call_operand.hbm [shape: f32[2,4], index: 19, kind: output, shape index: {}]  }
   0x1   :  { %10793 = sst [smem:[#allocation5_spill]] %s10749_s0 }
   0x2   :  { %10794 = sst [smem:[#allocation6_spill]] %s10750_s1 }
   0x3   :  { %10795 = sst [smem:[#allocation7_spill]] %s10751_s2 }
   0x4   :  { %10796 = sst [smem:[#allocation8_spill]] %s10752_s3 }
   0x5   :  { %10797 = sst [smem:[#allocation9_spill]] %s10768_s19 }
   0x6   :  { %s10798_s20 = sld [smem:[#allocation8_spill]]  ;;  %vm74_vm0 = vcmask 130048  }
   0x7   :  { %s10799_s23 = sld [smem:[#allocation5_spill]] }
   0xc   :  { %v69_v0 = vld [vmem:[%s10798_s20 + $0x8] sm:$0xff]  ;;  %v68_v1 = vld [vmem:[%s10798_s20] sm:$0xff] }
   0xd   :  { %95 = vmatpush.msra.mxu0 %v69_v0  ;;  %v66_v2 = vld [vmem:[%s10799_s23] sm:$0xff]  ;;  %v67_v3 = vld [vmem:[%s10799_s23 + $0x8] sm:$0xff] }
   0xf   :  { %96 = vmatpush.msra.mxu0 %v68_v1 }
  0x10   :  { %5647 = vmatmul.msk.f32.vlgmr.msra.gmra.mxu0 %vm74_vm0, %v66_v2 }
  0x11   :  { %24 = vsyncpa [#allocation3], 0  ;;  %v6595_v4 = vld [vmem:[%s10753_s4] ss:$0 sm:$0xff]  ;;  %s10800_s29 = sld [smem:[#allocation6_spill]]  ;;  %vm108_vm1 = vcmask 261120  }
  0x12   :  { %v6770_v14 = vmov 32.0   ;;  %v173_v31 = vld [vmem:[%s10756_s7 + $0x18] sm:$0xff]  ;;  %v172_v32 = vld [vmem:[%s10756_s7 + $0x10] sm:$0xff]  ;;  %v171_v33 = vld [vmem:[%s10756_s7 + $0x8] sm:$0xff]  ;;  %s10791_s28 = smov 96   ;;  %vm217_vm9 = vcmask 64512  }
  0x13   :  { %6618 = vrcp.f32 %v6770_v14  ;;  %196 = vmatpush.msra.mxu1 %v173_v31  ;;  %v170_v34 = vld [vmem:[%s10756_s7] sm:$0xff]  ;;  %s10801_s0 = sld [smem:[#allocation7_spill]]  ;;  %s10790_s21 = smov 64  }
  0x14   :  { %v6596_v49 = vld [vmem:[%s10754_s5] ss:$0 sm:$0xff]  ;;  %s10788_s1 = smov 88   ;;  %s10786_s22 = smov 120  }
  0x15   :  { %197 = vmatpush.msra.mxu1 %v172_v32  ;;  %v6597_v53 = vld [vmem:[%s10755_s6] ss:$0 sm:$0xff]  ;;  %s10784_s2 = smov 80   ;;  %s10778_s23 = smov 104  }
  0x16   :  { %v6598_v0 = vld [vmem:[%s10757_s8] ss:$0 sm:$0xff]  ;;  %s10782_s24 = smov 112   ;;  %s10780_s25 = smov 72  }
  0x17   :  { %v63_v5 = vld [vmem:[%s10800_s29] sm:$0xff]  ;;  %198 = vmatpush.msra.mxu1 %v171_v33  ;;  %s10776_s27 = smov 56   ;;  %s10772_s29 = smov 40  }
  0x18   :  { %5648 = vmatmul.msk.f32.gmra.mxu0 %vm74_vm0, %v67_v3  ;;  %s10774_s4 = smov 48   ;;  %s10804_s30 = smov 104  }
  0x19   :  { %v6619_v15 = vpop.eup %6618  ;;  %199 = vmatpush.msra.mxu1 %v170_v34  ;;  %v6960_v14 = vld [vmem:[%s10801_s0 + $0x8] sm:$0xff]  ;;  %s10805_s26 = smov 56   ;;  %s10809_s20 = smov 64  }
  0x1a   :  { %v116_v16 = vmul.f32 32.0, %v6619_v15  ;;  %vm120_vm2 = vweird.f32 %v6619_v15  ;;  %s10810_s3 = smov 88  }
  0x1c   :  { %v117_v17 = vsub.f32 1.0, %v116_v16 }
  0x1e   :  { %v118_v18 = vmul.f32 %v6619_v15, %v117_v17 }
  0x20   :  { %v119_v19 = vadd.f32 %v6619_v15, %v118_v18 }
  0x22   :  { %v6911_v20 = vsel %vm120_vm2, %v6619_v15, %v119_v19 }
  0x8d   :  { %v98_v6 = vpop.f32.mrf.mxu0 }
  0x8e   :  { %v99_v7 = vadd.f32 %v6595_v4, %v98_v6 }
  0x90   :  { %v6903_v8 = vadd.f32 %v99_v7, %v63_v5  ;;  %v6953_v7 = vld [vmem:[%s10801_s0] sm:$0xff] }
  0x92   :  { %v109_v9 = vsel %vm108_vm1, %v6903_v8, 0.0 }
  0x93   :  { %110 = vadd.xlane.f32.xlu0 %v109_v9 }
  0x95   :  { %v101_v10 = vpop.f32.mrf.mxu0 }
  0x96   :  { %v102_v11 = vadd.f32 %v6595_v4, %v101_v10 }
  0x98   :  { %v6907_v12 = vadd.f32 %v102_v11, %v63_v5 }
  0x9a   :  { %v112_v13 = vsel %vm108_vm1, %v6907_v12, 0.0 }
  0x9b   :  { %113 = vadd.xlane.f32.xlu0 %v112_v13 }
 0x106   :  { %v111_v21 = vpop.xlane.xlu0 %110 }
 0x107   :  { %v122_v22 = vmul.f32 %v6911_v20, %v111_v21 }
 0x109   :  { %v124_v23 = vsub.f32 %v6903_v8, %v122_v22 }
 0x10b   :  { %v126_v24 = vmul.f32 %v124_v23, %v124_v23 }
 0x10d   :  { %v128_v25 = vsel %vm108_vm1, %v126_v24, 0.0 }
 0x10e   :  { %129 = vadd.xlane.f32.xlu1 %v128_v25  ;;  %v114_v26 = vpop.xlane.xlu0 %113 }
 0x10f   :  { %v123_v27 = vmul.f32 %v6911_v20, %v114_v26 }
 0x111   :  { %v125_v28 = vsub.f32 %v6907_v12, %v123_v27 }
 0x113   :  { %v127_v29 = vmul.f32 %v125_v28, %v125_v28 }
 0x115   :  { %v131_v30 = vsel %vm108_vm1, %v127_v29, 0.0 }
 0x116   :  { %132 = vadd.xlane.f32.xlu1 %v131_v30 }
 0x181   :  { %v130_v35 = vpop.xlane.xlu1 %129 }
 0x182   :  { %v134_v36 = vmul.f32 %v130_v35, %v6911_v20  ;;  %v207_v35 = vld [vmem:[%s10758_s9] sm:$0xff] }
 0x184   :  { %v136_v37 = vadd.f32 1e-05, %v134_v36 }
 0x186   :  { %6620 = vrsqrt.f32 %v136_v37  ;;  %vm144_vm4 = vweird.f32 %v136_v37 }
 0x189   :  { %v133_v38 = vpop.xlane.xlu1 %132 }
 0x18a   :  { %v135_v39 = vmul.f32 %v133_v38, %v6911_v20 }
 0x18c   :  { %v6621_v40 = vpop.eup %6620  ;;  %v137_v41 = vadd.f32 1e-05, %v135_v39 }
 0x18d   :  { %v139_v42 = vmul.f32 %v6621_v40, %v136_v37  ;;  %vm145_vm3 = vweird.f32 %v6621_v40 }
 0x18e   :  { %6622 = vrsqrt.f32 %v137_v41  ;;  %vm146_vm5 = vmor %vm144_vm4, %vm145_vm3  ;;  %vm154_vm7 = vweird.f32 %v137_v41 }
 0x18f   :  { %v140_v43 = vmul.f32 %v6621_v40, %v139_v42 }
 0x191   :  { %v141_v44 = vmul.f32 0.5, %v140_v43 }
 0x193   :  { %v142_v45 = vsub.f32 1.5, %v141_v44 }
 0x194   :  { %v6623_v46 = vpop.eup %6622 }
 0x195   :  { %v143_v47 = vmul.f32 %v6621_v40, %v142_v45  ;;  %v149_v48 = vmul.f32 %v6623_v46, %v137_v41  ;;  %vm155_vm6 = vweird.f32 %v6623_v46 }
 0x196   :  { %vm156_vm8 = vmor %vm154_vm7, %vm155_vm6 }
 0x197   :  { %v150_v50 = vmul.f32 %v6623_v46, %v149_v48  ;;  %v147_v51 = vsel %vm146_vm5, %v6621_v40, %v143_v47 }
 0x198   :  { %v158_v52 = vmul.f32 %v147_v51, %v124_v23 }
 0x199   :  { %v151_v54 = vmul.f32 0.5, %v150_v50 }
 0x19a   :  { %v163_v55 = vmul.f32 %v6596_v49, %v158_v52 }
 0x19b   :  { %v152_v56 = vsub.f32 1.5, %v151_v54 }
 0x19c   :  { %v168_v57 = vadd.f32 %v6597_v53, %v163_v55 }
 0x19d   :  { %v153_v58 = vmul.f32 %v6623_v46, %v152_v56 }
 0x19e   :  { %5649 = vmatmul.msk.f32.vlgmr.msra.gmra.mxu1 %vm108_vm1, %v168_v57 }
 0x19f   :  { %v157_v59 = vsel %vm156_vm8, %v6623_v46, %v153_v58 }
 0x1a0   :  { %v159_v60 = vmul.f32 %v157_v59, %v125_v28 }
 0x1a2   :  { %v164_v61 = vmul.f32 %v6596_v49, %v159_v60 }
 0x1a4   :  { %v169_v62 = vadd.f32 %v6597_v53, %v164_v61 }
 0x1a6   :  { %5650 = vmatmul.msk.f32.gmra.mxu1 %vm108_vm1, %v169_v62 }
 0x21b   :  { %v201_v63 = vpop.f32.mrf.mxu1 }
 0x21c   :  { %v202_v3 = vadd.f32 %v6598_v0, %v201_v63 }
 0x223   :  { %v204_v1 = vpop.f32.mrf.mxu1 }
 0x224   :  { %v205_v2 = vadd.f32 %v6598_v0, %v204_v1 }
 0x226   :  { %215 = vrot.lane.b32.xlu2 %v205_v2, %s10791_s28  ;;  %v6964_v18 = vpack.i.bf16 %v202_v3, %v205_v2 }
 0x22e   :  { %213 = vrot.lane.b32.xlu2 %v202_v3, %s10791_s28 }
 0x280   :  { %v216_v4 = vpop.permute.xlu2 %215 }
 0x281   :  { %5651 = vmatpush.xpose.msk.msra.mxu2 %vm217_vm9, %v216_v4 }
 0x288   :  { %v214_v5 = vpop.permute.xlu2 %213 }
 0x289   :  { %5652 = vmatpush.xpose.msk.msra.mxu2 %vm217_vm9, %v214_v5 }
 0x28c   :  { %5653 = vmatmul.msk.f32.vlgmr.msra.gmra.mxu2 %vm217_vm9, %v202_v3 }
 0x28d   :  { %460 = vmatpush.msrb.mxu2 %v207_v35 }
 0x294   :  { %5654 = vmatmul.msk.f32.gmra.mxu2 %vm217_vm9, %v205_v2 }
 0x30f   :  { %v243_v6 = vpop.f32.mrf.mxu2 }
 0x310   :  { %v249_v9 = vmul.f32 0.35355338, %v243_v6 }
 0x312   :  { %v251_v10 = vadd.f32 %v249_v9, %v6953_v7 }
 0x314   :  { %v253_v11 = vsel %vm74_vm0, %v251_v10, -inf }
 0x315   :  { %254 = vmax.xlane.f32.xlu0 %v253_v11 }
 0x317   :  { %v246_v13 = vpop.f32.mrf.mxu2 }
 0x318   :  { %v250_v15 = vmul.f32 0.35355338, %v246_v13 }
 0x31a   :  { %v252_v16 = vadd.f32 %v250_v15, %v6960_v14 }
 0x31c   :  { %v256_v17 = vsel %vm74_vm0, %v252_v16, -inf }
 0x31d   :  { %257 = vmax.xlane.f32.xlu1 %v256_v17 }
 0x329   :  { %6536 = vrot.lane.b32.xlu0 %v6964_v18, %s10790_s21 }
 0x331   :  { %314 = vrot.lane.b32.xlu0 %v202_v3, %s10788_s1 }
 0x339   :  { %310 = vrot.lane.b32.xlu0 %v202_v3, %s10786_s22 }
 0x341   :  { %474 = vrot.lane.b32.xlu0 %v205_v2, %s10784_s2 }
 0x349   :  { %599 = vrot.lane.b32.xlu0 %v202_v3, %s10778_s23 }
 0x351   :  { %468 = vrot.lane.b32.xlu0 %v202_v3, %s10782_s24 }
 0x388   :  { %v255_v19 = vpop.xlane.xlu0 %254 }
 0x389   :  { %v259_v21 = vsub.f32 %v251_v10, %v255_v19 }
 0x38b   :  { %v261_v22 = vmul.f32 1.442695, %v259_v21 }
 0x38d   :  { %6624 = vpow2.f32 %v261_v22 }
 0x390   :  { %v258_v23 = vpop.xlane.xlu1 %257 }
 0x391   :  { %v260_v24 = vsub.f32 %v252_v16, %v258_v23 }
 0x393   :  { %v6625_v25 = vpop.eup %6624  ;;  %v263_v26 = vmul.f32 1.442695, %v260_v24 }
 0x394   :  { %v265_v27 = vsel %vm74_vm0, %v6625_v25, 0.0 }
 0x395   :  { %6626 = vpow2.f32 %v263_v26  ;;  %266 = vadd.xlane.f32.xlu2 %v265_v27 }
 0x39b   :  { %v6627_v28 = vpop.eup %6626  ;;  %v6537_v29 = vpop.permute.xlu0 %6536 }
 0x39c   :  { %v268_v30 = vsel %vm74_vm0, %v6627_v28, 0.0  ;;  %v6538_v31 = vunpack.i.l.bf16 %v6537_v29  ;;  %v6539_v32 = vunpack.i.h.bf16 %v6537_v29 }
 0x39d   :  { %269 = vadd.xlane.f32.xlu1 %v268_v30 }
 0x39e   :  { %301 = vmatpush.msra.mxu3 %v6538_v31 }
 0x3a0   :  { %302 = vmatpush.msra.mxu3 %v6539_v32 }
 0x3a3   :  { %v315_v40 = vpop.permute.xlu0 %314 }
 0x3ab   :  { %v311_v41 = vpop.permute.xlu0 %310 }
 0x3ad   :  { %312 = vrot.lane.b32.xlu2 %v205_v2, %s10786_s22 }
 0x3b3   :  { %v475_v43 = vpop.permute.xlu0 %474 }
 0x3b5   :  { %470 = vrot.lane.b32.xlu2 %v205_v2, %s10782_s24  ;;  %s10802_s24 = smov 112  }
 0x3b6   :  { %316 = vrot.lane.b32.xlu1 %v205_v2, %s10788_s1 }
 0x3bb   :  { %v600_v47 = vpop.permute.xlu0 %599 }
 0x3be   :  { %605 = vrot.lane.b32.xlu1 %v205_v2, %s10780_s25 }
 0x3c3   :  { %v469_v49 = vpop.permute.xlu0 %468 }
 0x3c6   :  { %603 = vrot.lane.b32.xlu1 %v202_v3, %s10780_s25  ;;  %s10803_s25 = smov 72  }
 0x3ce   :  { %472 = vrot.lane.b32.xlu1 %v202_v3, %s10784_s2 }
 0x3d6   :  { %601 = vrot.lane.b32.xlu1 %v205_v2, %s10778_s23 }
 0x408   :  { %v267_v33 = vpop.xlane.xlu2 %266 }
 0x409   :  { %6628 = vrcp.f32 %v267_v33 }
 0x40f   :  { %v6629_v34 = vpop.eup %6628 }
 0x410   :  { %v270_v36 = vpop.xlane.xlu1 %269  ;;  %v273_v37 = vmul.f32 %v6629_v34, %v6625_v25  ;;  %v313_v45 = vpop.permute.xlu2 %312 }
 0x411   :  { %6630 = vrcp.f32 %v270_v36 }
 0x412   :  { %5655 = vmatmul.msk.f32.vlgmr.msra.gmra.mxu3 %vm74_vm0, %v273_v37 }
 0x417   :  { %v6631_v38 = vpop.eup %6630 }
 0x418   :  { %v274_v39 = vmul.f32 %v6631_v38, %v6627_v28  ;;  %v471_v50 = vpop.permute.xlu2 %470 }
 0x41a   :  { %5656 = vmatmul.msk.f32.gmra.mxu3 %vm74_vm0, %v274_v39 }
 0x428   :  { %v317_v42 = vpop.permute.xlu1 %316 }
 0x429   :  { %5657 = vmatpush.xpose.msk.msrb.mxu0 %vm217_vm9, %v317_v42 }
 0x42d   :  { %5658 = vmatpush.xpose.msk.msrb.mxu0 %vm217_vm9, %v315_v40 }
 0x430   :  { %5659 = vmatmul.msk.f32.vlgmr.msrb.gmra.mxu0 %vm217_vm9, %v311_v41  ;;  %v606_v44 = vpop.permute.xlu1 %605 }
 0x431   :  { %5667 = vmatpush.xpose.msk.msra.mxu0 %vm217_vm9, %v475_v43  ;;  %5675 = vmatpush.xpose.msk.msra.mxu2 %vm217_vm9, %v606_v44 }
 0x438   :  { %5660 = vmatmul.msk.f32.gmra.mxu0 %vm217_vm9, %v313_v45  ;;  %v604_v46 = vpop.permute.xlu1 %603 }
 0x439   :  { %5676 = vmatpush.xpose.msk.msra.mxu2 %vm217_vm9, %v604_v46 }
 0x440   :  { %v473_v48 = vpop.permute.xlu1 %472 }
 0x441   :  { %5668 = vmatpush.xpose.msk.msra.mxu0 %vm217_vm9, %v473_v48 }
 0x444   :  { %5669 = vmatmul.msk.f32.vlgmr.msra.gmra.mxu0 %vm217_vm9, %v469_v49 }
 0x448   :  { %v602_v53 = vpop.permute.xlu1 %601 }
 0x44c   :  { %5670 = vmatmul.msk.f32.gmra.mxu0 %vm217_vm9, %v471_v50 }
 0x495   :  { %v304_v51 = vpop.f32.mrf.mxu3 }
 0x496   :  { %5665 = vmatmul.msk.f32.vlgmr.msrb.gmra.mxu2 %vm217_vm9, %v304_v51 }
 0x49d   :  { %v307_v52 = vpop.f32.mrf.mxu3 }
 0x49e   :  { %5666 = vmatmul.msk.f32.gmra.mxu2 %vm217_vm9, %v307_v52 }
 0x4a6   :  { %5677 = vmatmul.msk.f32.vlgmr.msra.gmra.mxu2 %vm217_vm9, %v600_v47 }
 0x4ad   :  { %v343_v54 = vpop.f32.mrf.mxu0 }
 0x4ae   :  { %v349_v55 = vmul.f32 0.35355338, %v343_v54  ;;  %5678 = vmatmul.msk.f32.gmra.mxu2 %vm217_vm9, %v602_v53 }
 0x4b0   :  { %v351_v56 = vadd.f32 %v349_v55, %v6953_v7 }
 0x4b2   :  { %v353_v57 = vsel %vm74_vm0, %v351_v56, -inf }
 0x4b3   :  { %354 = vmax.xlane.f32.xlu0 %v353_v57 }
 0x4b5   :  { %v346_v58 = vpop.f32.mrf.mxu0 }
 0x4b6   :  { %v350_v59 = vmul.f32 0.35355338, %v346_v58 }
 0x4b8   :  { %v352_v60 = vadd.f32 %v350_v59, %v6960_v14 }
 0x4ba   :  { %v356_v61 = vsel %vm74_vm0, %v352_v60, -inf }
 0x4bb   :  { %357 = vmax.xlane.f32.xlu1 %v356_v61 }
 0x4c1   :  { %v501_v62 = vpop.f32.mrf.mxu0 }
 0x4c2   :  { %v507_v63 = vmul.f32 0.35355338, %v501_v62 }
 0x4c4   :  { %v509_v0 = vadd.f32 %v507_v63, %v6953_v7 }
 0x4c6   :  { %v511_v1 = vsel %vm74_vm0, %v509_v0, -inf }
 0x4c7   :  { %512 = vmax.xlane.f32.xlu2 %v511_v1 }
 0x4c9   :  { %v504_v2 = vpop.f32.mrf.mxu0 }
 0x4ca   :  { %v508_v3 = vmul.f32 0.35355338, %v504_v2 }
 0x4cc   :  { %v510_v4 = vadd.f32 %v508_v3, %v6960_v14 }
 0x4ce   :  { %v514_v5 = vsel %vm74_vm0, %v510_v4, -inf }
 0x4cf   :  { %515 = vmax.xlane.f32.xlu2 %v514_v5 }
 0x4e7   :  { %6541 = vrot.lane.b32.xlu2 %v6964_v18, %s10776_s27 }
 0x4ef   :  { %6551 = vrot.lane.b32.xlu2 %v6964_v18, %s10772_s29  ;;  %s10806_s29 = smov 48  }
 0x519   :  { %v7013_v6 = vpop.f32.mrf.mxu2 }
 0x521   :  { %v7015_v9 = vpop.f32.mrf.mxu2 }
 0x526   :  { %v355_v10 = vpop.xlane.xlu0 %354 }
 0x527   :  { %v359_v11 = vsub.f32 %v351_v56, %v355_v10  ;;  %v208_v10 = vld [vmem:[%s10758_s9 + $0x8] sm:$0xff] }
 0x528   :  { %431 = vmatpush.msrb.mxu1 %v208_v10  ;;  %v846_v10 = vld [vmem:[%s10762_s13 + $0x1a0] sm:$0xff] }
 0x529   :  { %v361_v13 = vmul.f32 1.442695, %v359_v11  ;;  %v632_v15 = vpop.f32.mrf.mxu2 }
 0x52a   :  { %v638_v16 = vmul.f32 0.35355338, %v632_v15 }
 0x52b   :  { %6632 = vpow2.f32 %v361_v13 }
 0x52c   :  { %v640_v17 = vadd.f32 %v638_v16, %v6953_v7 }
 0x52e   :  { %v358_v19 = vpop.xlane.xlu1 %357  ;;  %v642_v21 = vsel %vm74_vm0, %v640_v17, -inf }
 0x52f   :  { %v360_v22 = vsub.f32 %v352_v60, %v358_v19  ;;  %643 = vmax.xlane.f32.xlu0 %v642_v21  ;;  %v209_v21 = vld [vmem:[%s10758_s9 + $0x10] sm:$0xff] }
 0x530   :  { %589 = vmatpush.msra.mxu1 %v209_v21  ;;  %v832_v21 = vld [vmem:[%s10762_s13 + $0x130] sm:$0xff] }
 0x531   :  { %v363_v23 = vmul.f32 1.442695, %v360_v22  ;;  %v635_v24 = vpop.f32.mrf.mxu2  ;;  %v6633_v26 = vpop.eup %6632 }
 0x532   :  { %v639_v25 = vmul.f32 0.35355338, %v635_v24  ;;  %v365_v28 = vsel %vm74_vm0, %v6633_v26, 0.0 }
 0x533   :  { %6634 = vpow2.f32 %v363_v23 }
 0x534   :  { %v641_v27 = vadd.f32 %v639_v25, %v6960_v14 }
 0x536   :  { %v645_v29 = vsel %vm74_vm0, %v641_v27, -inf }
 0x537   :  { %366 = vadd.xlane.f32.xlu0 %v365_v28  ;;  %646 = vmax.xlane.f32.xlu1 %v645_v29 }
 0x539   :  { %v6635_v30 = vpop.eup %6634 }
 0x53a   :  { %v513_v7 = vpop.xlane.xlu2 %512  ;;  %v368_v33 = vsel %vm74_vm0, %v6635_v30, 0.0 }
 0x53b   :  { %v517_v31 = vsub.f32 %v509_v0, %v513_v7 }
 0x53d   :  { %v519_v32 = vmul.f32 1.442695, %v517_v31 }
 0x53f   :  { %6636 = vpow2.f32 %v519_v32  ;;  %369 = vadd.xlane.f32.xlu1 %v368_v33 }
 0x542   :  { %v516_v34 = vpop.xlane.xlu2 %515 }
 0x543   :  { %v518_v35 = vsub.f32 %v510_v4, %v516_v34 }
 0x545   :  { %v6637_v36 = vpop.eup %6636  ;;  %v521_v37 = vmul.f32 1.442695, %v518_v35  ;;  %v6599_v35 = vld [vmem:[%s10759_s10] ss:$0 sm:$0xff] }
 0x546   :  { %v523_v14 = vsel %vm74_vm0, %v6637_v36, 0.0 }
 0x547   :  { %6638 = vpow2.f32 %v521_v37  ;;  %524 = vadd.xlane.f32.xlu0 %v523_v14 }
 0x54a   :  { %v6542_v38 = vpop.permute.xlu2 %6541 }
 0x54b   :  { %v6543_v39 = vunpack.i.l.bf16 %v6542_v38  ;;  %v6544_v41 = vunpack.i.h.bf16 %v6542_v38 }
 0x54d   :  { %v6639_v40 = vpop.eup %6638  ;;  %401 = vmatpush.msrb.mxu3 %v6543_v39 }
 0x54e   :  { %v526_v42 = vsel %vm74_vm0, %v6639_v40, 0.0 }
 0x54f   :  { %402 = vmatpush.msrb.mxu3 %v6544_v41  ;;  %527 = vadd.xlane.f32.xlu1 %v526_v42 }
 0x552   :  { %v6552_v43 = vpop.permute.xlu2 %6551 }
 0x553   :  { %v6553_v44 = vunpack.i.l.bf16 %v6552_v43  ;;  %v6554_v45 = vunpack.i.h.bf16 %v6552_v43 }
 0x555   :  { %690 = vmatpush.msrb.mxu0 %v6553_v44 }
 0x557   :  { %691 = vmatpush.msrb.mxu0 %v6554_v45 }
 0x55b   :  { %6546 = vrot.lane.b32.xlu0 %v6964_v18, %s10774_s4  ;;  %s10807_s4 = smov 40  }
 0x5a2   :  { %v644_v46 = vpop.xlane.xlu0 %643 }
 0x5a3   :  { %v648_v47 = vsub.f32 %v640_v17, %v644_v46 }
 0x5a5   :  { %v650_v48 = vmul.f32 1.442695, %v648_v47 }
 0x5a7   :  { %6640 = vpow2.f32 %v650_v48 }
 0x5aa   :  { %v367_v49 = vpop.xlane.xlu0 %366  ;;  %v647_v50 = vpop.xlane.xlu1 %646 }
 0x5ab   :  { %6642 = vrcp.f32 %v367_v49  ;;  %v649_v51 = vsub.f32 %v641_v27, %v647_v50 }
 0x5ad   :  { %v6641_v52 = vpop.eup %6640  ;;  %v652_v53 = vmul.f32 1.442695, %v649_v51 }
 0x5ae   :  { %v654_v54 = vsel %vm74_vm0, %v6641_v52, 0.0 }
 0x5af   :  { %6644 = vpow2.f32 %v652_v53  ;;  %655 = vadd.xlane.f32.xlu1 %v654_v54  ;;  %v843_v53 = vld [vmem:[%s10762_s13 + $0x188] sm:$0xff]  ;;  %v844_v54 = vld [vmem:[%s10762_s13 + $0x190] sm:$0xff] }
 0x5b0   :  { %935 = vmatpush.msrb.mxu2 %v843_v53  ;;  %958 = vmatpush.msra.mxu0 %v844_v54  ;;  %v834_v53 = vld [vmem:[%s10762_s13 + $0x140] sm:$0xff]  ;;  %v835_v54 = vld [vmem:[%s10762_s13 + $0x148] sm:$0xff] }
 0x5b1   :  { %v6643_v55 = vpop.eup %6642 }
 0x5b2   :  { %v370_v56 = vpop.xlane.xlu1 %369  ;;  %v373_v57 = vmul.f32 %v6643_v55, %v6633_v26  ;;  %v210_v26 = vld [vmem:[%s10758_s9 + $0x18] sm:$0xff] }
 0x5b3   :  { %6646 = vrcp.f32 %v370_v56  ;;  %v845_v55 = vld [vmem:[%s10762_s13 + $0x198] sm:$0xff]  ;;  %v826_v56 = vld [vmem:[%s10762_s13 + $0x100] sm:$0xff] }
 0x5b4   :  { %5661 = vmatmul.msk.f32.vlgmr.msrb.gmra.mxu3 %vm74_vm0, %v373_v57  ;;  %v827_v57 = vld [vmem:[%s10762_s13 + $0x108] sm:$0xff] }
 0x5b5   :  { %v6645_v18 = vpop.eup %6644  ;;  %936 = vmatpush.msrb.mxu2 %v827_v57  ;;  %v837_v57 = vld [vmem:[%s10762_s13 + $0x158] sm:$0xff] }
 0x5b6   :  { %v657_v58 = vsel %vm74_vm0, %v6645_v18, 0.0 }
 0x5b7   :  { %658 = vadd.xlane.f32.xlu1 %v657_v58  ;;  %v829_v58 = vld [vmem:[%s10762_s13 + $0x118] sm:$0xff] }
 0x5b9   :  { %v6647_v59 = vpop.eup %6646 }
 0x5ba   :  { %v374_v60 = vmul.f32 %v6647_v59, %v6635_v30  ;;  %v525_v61 = vpop.xlane.xlu0 %524  ;;  %v810_v59 = vld [vmem:[%s10762_s13 + $0x80] sm:$0xff] }
 0x5bb   :  { %6648 = vrcp.f32 %v525_v61  ;;  %v812_v61 = vld [vmem:[%s10762_s13 + $0x90] sm:$0xff] }
 0x5bc   :  { %5662 = vmatmul.msk.f32.gmra.mxu3 %vm74_vm0, %v374_v60  ;;  %v811_v60 = vld [vmem:[%s10762_s13 + $0x88] sm:$0xff] }
 0x5bd   :  { %937 = vmatpush.msrb.mxu2 %v811_v60  ;;  %v821_v60 = vld [vmem:[%s10762_s13 + $0xd8] sm:$0xff] }
 0x5c1   :  { %v6649_v0 = vpop.eup %6648 }
 0x5c2   :  { %v528_v62 = vpop.xlane.xlu1 %527  ;;  %v531_v3 = vmul.f32 %v6649_v0, %v6637_v36  ;;  %v795_v0 = vld [vmem:[%s10762_s13 + $0x8] sm:$0xff] }
 0x5c3   :  { %6650 = vrcp.f32 %v528_v62  ;;  %v813_v62 = vld [vmem:[%s10762_s13 + $0x98] sm:$0xff]  ;;  %938 = vmatpush.msrb.mxu2 %v795_v0  ;;  %v804_v0 = vld [vmem:[%s10762_s13 + $0x50] sm:$0xff] }
 0x5c9   :  { %v6651_v4 = vpop.eup %6650 }
 0x5ca   :  { %v532_v5 = vmul.f32 %v6651_v4, %v6639_v40 }
 0x5cd   :  { %v6547_v63 = vpop.permute.xlu0 %6546 }
 0x5ce   :  { %v6548_v1 = vunpack.i.l.bf16 %v6547_v63  ;;  %v6549_v2 = vunpack.i.h.bf16 %v6547_v63  ;;  %v794_v63 = vld [vmem:[%s10762_s13] sm:$0xff] }
 0x5d0   :  { %559 = vmatpush.msra.mxu3 %v6548_v1  ;;  %v796_v1 = vld [vmem:[%s10762_s13 + $0x10] sm:$0xff] }
 0x5d2   :  { %560 = vmatpush.msra.mxu3 %v6549_v2  ;;  %v797_v2 = vld [vmem:[%s10762_s13 + $0x18] sm:$0xff] }
 0x5d3   :  { %5671 = vmatmul.msk.f32.vlgmr.msra.gmra.mxu3 %vm74_vm0, %v531_v3 }
 0x5d4   :  { %720 = vmatpush.msrb.mxu3 %v210_v26  ;;  %v816_v26 = vld [vmem:[%s10762_s13 + $0xb0] sm:$0xff] }
 0x5d6   :  { %981 = vmatpush.msra.mxu3 %v845_v55 }
 0x5d8   :  { %982 = vmatpush.msra.mxu3 %v829_v58 }
 0x5da   :  { %983 = vmatpush.msra.mxu3 %v813_v62  ;;  %v802_v62 = vld [vmem:[%s10762_s13 + $0x40] sm:$0xff] }
 0x5db   :  { %5672 = vmatmul.msk.f32.gmra.mxu3 %vm74_vm0, %v532_v5 }
 0x5dc   :  { %984 = vmatpush.msra.mxu3 %v797_v2  ;;  %v854_v2 = vld [vmem:[%s10762_s13 + $0x1e0] sm:$0xff] }
 0x622   :  { %v656_v11 = vpop.xlane.xlu1 %655 }
 0x623   :  { %6652 = vrcp.f32 %v656_v11  ;;  %v847_v11 = vld [vmem:[%s10762_s13 + $0x1a8] sm:$0xff] }
 0x624   :  { %1027 = vmatpush.msra.mxu2 %v847_v11  ;;  %v839_v11 = vld [vmem:[%s10762_s13 + $0x168] sm:$0xff] }
 0x629   :  { %v6653_v13 = vpop.eup %6652 }
 0x62a   :  { %v662_v15 = vmul.f32 %v6653_v13, %v6641_v52  ;;  %v659_v16 = vpop.xlane.xlu1 %658  ;;  %v842_v52 = vld [vmem:[%s10762_s13 + $0x180] sm:$0xff]  ;;  %v848_v13 = vld [vmem:[%s10762_s13 + $0x1b0] sm:$0xff] }
 0x62b   :  { %6654 = vrcp.f32 %v659_v16  ;;  %v830_v16 = vld [vmem:[%s10762_s13 + $0x120] sm:$0xff] }
 0x62c   :  { %5679 = vmatmul.msk.f32.vlgmr.msrb.gmra.mxu0 %vm74_vm0, %v662_v15  ;;  %v849_v15 = vld [vmem:[%s10762_s13 + $0x1b8] sm:$0xff] }
 0x631   :  { %v6655_v17 = vpop.eup %6654 }
 0x632   :  { %v663_v19 = vmul.f32 %v6655_v17, %v6645_v18  ;;  %v828_v18 = vld [vmem:[%s10762_s13 + $0x110] sm:$0xff]  ;;  %v831_v17 = vld [vmem:[%s10762_s13 + $0x128] sm:$0xff] }
 0x633   :  { %959 = vmatpush.msra.mxu0 %v828_v18  ;;  %1028 = vmatpush.msra.mxu2 %v831_v17  ;;  %v818_v18 = vld [vmem:[%s10762_s13 + $0xc0] sm:$0xff]  ;;  %v823_v17 = vld [vmem:[%s10762_s13 + $0xe8] sm:$0xff] }
 0x634   :  { %5680 = vmatmul.msk.f32.gmra.mxu0 %vm74_vm0, %v663_v19 }
 0x635   :  { %960 = vmatpush.msra.mxu0 %v812_v61 }
 0x637   :  { %v404_v22 = vpop.f32.mrf.mxu3  ;;  %961 = vmatpush.msra.mxu0 %v796_v1  ;;  %v805_v1 = vld [vmem:[%s10762_s13 + $0x58] sm:$0xff] }
 0x638   :  { %5663 = vmatmul.msk.f32.vlgmr.msrb.gmra.mxu1 %vm217_vm9, %v404_v22  ;;  %v833_v22 = vld [vmem:[%s10762_s13 + $0x138] sm:$0xff] }
 0x639   :  { %912 = vmatpush.msrb.mxu1 %v842_v52  ;;  %1050 = vmatpush.msrb.mxu0 %v848_v13  ;;  %v840_v13 = vld [vmem:[%s10762_s13 + $0x170] sm:$0xff] }
 0x63b   :  { %913 = vmatpush.msrb.mxu1 %v826_v56  ;;  %1051 = vmatpush.msrb.mxu0 %v832_v21  ;;  %v836_v56 = vld [vmem:[%s10762_s13 + $0x150] sm:$0xff]  ;;  %v825_v21 = vld [vmem:[%s10762_s13 + $0xf8] sm:$0xff] }
 0x63d   :  { %914 = vmatpush.msrb.mxu1 %v810_v59  ;;  %1052 = vmatpush.msrb.mxu0 %v816_v26  ;;  %v820_v59 = vld [vmem:[%s10762_s13 + $0xd0] sm:$0xff]  ;;  %v1315_v26 = vld [vmem:[%s10764_s15 + $0x78] sm:$0xff] }
 0x63f   :  { %v407_v23 = vpop.f32.mrf.mxu3  ;;  %915 = vmatpush.msrb.mxu1 %v794_v63  ;;  %v803_v63 = vld [vmem:[%s10762_s13 + $0x48] sm:$0xff] }
 0x640   :  { %5664 = vmatmul.msk.f32.gmra.mxu1 %vm217_vm9, %v407_v23  ;;  %v814_v23 = vld [vmem:[%s10762_s13 + $0xa0] sm:$0xff] }
 0x656   :  { %v562_v24 = vpop.f32.mrf.mxu3 }
 0x657   :  { %5673 = vmatmul.msk.f32.vlgmr.msra.gmra.mxu1 %vm217_vm9, %v562_v24 }
 0x658   :  { %1004 = vmatpush.msra.mxu1 %v846_v10  ;;  %v838_v10 = vld [vmem:[%s10762_s13 + $0x160] sm:$0xff] }
 0x65a   :  { %1005 = vmatpush.msra.mxu1 %v830_v16  ;;  %v822_v16 = vld [vmem:[%s10762_s13 + $0xe0] sm:$0xff] }
 0x65c   :  { %1006 = vmatpush.msra.mxu1 %v814_v23  ;;  %v807_v23 = vld [vmem:[%s10762_s13 + $0x68] sm:$0xff] }
 0x65e   :  { %v565_v25 = vpop.f32.mrf.mxu3 }
 0x65f   :  { %5674 = vmatmul.msk.f32.gmra.mxu1 %vm217_vm9, %v565_v25  ;;  %v815_v25 = vld [vmem:[%s10762_s13 + $0xa8] sm:$0xff] }
 0x660   :  { %1029 = vmatpush.msra.mxu2 %v815_v25  ;;  %v809_v25 = vld [vmem:[%s10762_s13 + $0x78] sm:$0xff] }
 0x6a9   :  { %v693_v27 = vpop.f32.mrf.mxu0 }
 0x6aa   :  { %5681 = vmatmul.msk.f32.vlgmr.msrb.gmra.mxu3 %vm217_vm9, %v693_v27  ;;  %v817_v27 = vld [vmem:[%s10762_s13 + $0xb8] sm:$0xff] }
 0x6ab   :  { %1073 = vmatpush.msrb.mxu3 %v849_v15  ;;  %v841_v15 = vld [vmem:[%s10762_s13 + $0x178] sm:$0xff] }
 0x6ad   :  { %1074 = vmatpush.msrb.mxu3 %v833_v22  ;;  %v806_v22 = vld [vmem:[%s10762_s13 + $0x60] sm:$0xff] }
 0x6af   :  { %1075 = vmatpush.msrb.mxu3 %v817_v27  ;;  %v1347_v27 = vld [vmem:[%s10764_s15 + $0x178] sm:$0xff] }
 0x6b1   :  { %v696_v28 = vpop.f32.mrf.mxu0 }
 0x6b2   :  { %5682 = vmatmul.msk.f32.gmra.mxu3 %vm217_vm9, %v696_v28  ;;  %v798_v28 = vld [vmem:[%s10762_s13 + $0x20] sm:$0xff] }
 0x6b3   :  { %1007 = vmatpush.msra.mxu1 %v798_v28  ;;  %v1331_v28 = vld [vmem:[%s10764_s15 + $0xf8] sm:$0xff] }
 0x6b5   :  { %v433_v29 = vpop.f32.mrf.mxu1 }
 0x6b6   :  { %v463_v31 = vadd.f32 %v7013_v6, %v433_v29  ;;  %v799_v29 = vld [vmem:[%s10762_s13 + $0x28] sm:$0xff] }
 0x6b7   :  { %1030 = vmatpush.msra.mxu2 %v799_v29  ;;  %v1363_v29 = vld [vmem:[%s10764_s15 + $0x1f8] sm:$0xff] }
 0x6bd   :  { %v436_v7 = vpop.f32.mrf.mxu1 }
 0x6be   :  { %v466_v14 = vadd.f32 %v7015_v9, %v436_v7 }
 0x6d4   :  { %v591_v30 = vpop.f32.mrf.mxu1 }
 0x6d5   :  { %v597_v32 = vadd.f32 %v591_v30, %v463_v31  ;;  %v800_v31 = vld [vmem:[%s10762_s13 + $0x30] sm:$0xff] }
 0x6d6   :  { %1053 = vmatpush.msrb.mxu0 %v800_v31  ;;  %v1330_v31 = vld [vmem:[%s10764_s15 + $0xf0] sm:$0xff] }
 0x6dc   :  { %v594_v37 = vpop.f32.mrf.mxu1 }
 0x6dd   :  { %v598_v39 = vadd.f32 %v594_v37, %v466_v14 }
 0x72d   :  { %v722_v33 = vpop.f32.mrf.mxu3 }
 0x72e   :  { %v728_v34 = vadd.f32 %v722_v33, %v597_v32  ;;  %v801_v32 = vld [vmem:[%s10762_s13 + $0x38] sm:$0xff] }
 0x72f   :  { %1076 = vmatpush.msrb.mxu3 %v801_v32  ;;  %v1362_v32 = vld [vmem:[%s10764_s15 + $0x1f0] sm:$0xff] }
 0x730   :  { %v730_v36 = vadd.f32 %v728_v34, %v6903_v8 }
 0x732   :  { %v7056_v38 = vadd.f32 %v6599_v35, %v730_v36 }
 0x734   :  { %v740_v40 = vsel %vm108_vm1, %v7056_v38, 0.0 }
 0x735   :  { %741 = vadd.xlane.f32.xlu0 %v740_v40  ;;  %v725_v6 = vpop.f32.mrf.mxu3  ;;  %v6600_v40 = vld [vmem:[%s10760_s11] ss:$0 sm:$0xff] }
 0x736   :  { %v729_v41 = vadd.f32 %v725_v6, %v598_v39 }
 0x738   :  { %v731_v42 = vadd.f32 %v729_v41, %v6907_v12 }
 0x73a   :  { %v7061_v43 = vadd.f32 %v6599_v35, %v731_v42  ;;  %v6601_v42 = vld [vmem:[%s10761_s12] ss:$0 sm:$0xff] }
 0x73c   :  { %v743_v44 = vsel %vm108_vm1, %v7061_v43, 0.0 }
 0x73d   :  { %744 = vadd.xlane.f32.xlu2 %v743_v44 }
 0x7a8   :  { %v742_v8 = vpop.xlane.xlu0 %741 }
 0x7a9   :  { %v746_v9 = vmul.f32 %v742_v8, %v6911_v20 }
 0x7ab   :  { %v7067_v45 = vsub.f32 %v7056_v38, %v746_v9 }
 0x7ad   :  { %v750_v46 = vmul.f32 %v7067_v45, %v7067_v45 }
 0x7af   :  { %v752_v47 = vsel %vm108_vm1, %v750_v46, 0.0 }
 0x7b0   :  { %753 = vadd.xlane.f32.xlu1 %v752_v47  ;;  %v745_v48 = vpop.xlane.xlu2 %744 }
 0x7b1   :  { %v747_v12 = vmul.f32 %v745_v48, %v6911_v20 }
 0x7b3   :  { %v7074_v49 = vsub.f32 %v7061_v43, %v747_v12  ;;  %v850_v12 = vld [vmem:[%s10762_s13 + $0x1c0] sm:$0xff] }
 0x7b5   :  { %v751_v50 = vmul.f32 %v7074_v49, %v7074_v49 }
 0x7b7   :  { %v755_v51 = vsel %vm108_vm1, %v751_v50, 0.0  ;;  %v851_v50 = vld [vmem:[%s10762_s13 + $0x1c8] sm:$0xff] }
 0x7b8   :  { %756 = vadd.xlane.f32.xlu1 %v755_v51  ;;  %v853_v51 = vld [vmem:[%s10762_s13 + $0x1d8] sm:$0xff] }
 0x823   :  { %v754_v3 = vpop.xlane.xlu1 %753 }
 0x824   :  { %v758_v4 = vmul.f32 %v754_v3, %v6911_v20  ;;  %v855_v3 = vld [vmem:[%s10762_s13 + $0x1e8] sm:$0xff] }
 0x826   :  { %v760_v5 = vadd.f32 1e-05, %v758_v4  ;;  %v856_v4 = vld [vmem:[%s10762_s13 + $0x1f0] sm:$0xff] }
 0x828   :  { %6656 = vrsqrt.f32 %v760_v5  ;;  %vm768_vm11 = vweird.f32 %v760_v5 }
 0x82b   :  { %v757_v19 = vpop.xlane.xlu1 %756 }
 0x82c   :  { %v759_v24 = vmul.f32 %v757_v19, %v6911_v20  ;;  %v824_v19 = vld [vmem:[%s10762_s13 + $0xf0] sm:$0xff] }
 0x82e   :  { %v6657_v7 = vpop.eup %6656  ;;  %v761_v30 = vadd.f32 1e-05, %v759_v24  ;;  %v808_v24 = vld [vmem:[%s10762_s13 + $0x70] sm:$0xff] }
 0x82f   :  { %v763_v33 = vmul.f32 %v6657_v7, %v760_v5  ;;  %vm769_vm10 = vweird.f32 %v6657_v7  ;;  %v857_v5 = vld [vmem:[%s10762_s13 + $0x1f8] sm:$0xff] }
 0x830   :  { %6658 = vrsqrt.f32 %v761_v30  ;;  %vm770_vm12 = vmor %vm768_vm11, %vm769_vm10  ;;  %vm778_vm14 = vweird.f32 %v761_v30 }
 0x831   :  { %v764_v34 = vmul.f32 %v6657_v7, %v763_v33  ;;  %v1313_v33 = vld [vmem:[%s10764_s15 + $0x68] sm:$0xff] }
 0x833   :  { %v765_v35 = vmul.f32 0.5, %v764_v34  ;;  %v1345_v34 = vld [vmem:[%s10764_s15 + $0x168] sm:$0xff] }
 0x835   :  { %v766_v36 = vsub.f32 1.5, %v765_v35  ;;  %v1329_v35 = vld [vmem:[%s10764_s15 + $0xe8] sm:$0xff] }
 0x836   :  { %v6659_v37 = vpop.eup %6658 }
 0x837   :  { %v767_v14 = vmul.f32 %v6657_v7, %v766_v36  ;;  %v773_v39 = vmul.f32 %v6659_v37, %v761_v30  ;;  %vm779_vm13 = vweird.f32 %v6659_v37  ;;  %v1346_v30 = vld [vmem:[%s10764_s15 + $0x170] sm:$0xff]  ;;  %v1361_v36 = vld [vmem:[%s10764_s15 + $0x1e8] sm:$0xff] }
 0x838   :  { %vm780_vm15 = vmor %vm778_vm14, %vm779_vm13 }
 0x839   :  { %v771_v6 = vsel %vm770_vm12, %v6657_v7, %v767_v14  ;;  %v774_v41 = vmul.f32 %v6659_v37, %v773_v39  ;;  %v1314_v7 = vld [vmem:[%s10764_s15 + $0x70] sm:$0xff]  ;;  %v1344_v14 = vld [vmem:[%s10764_s15 + $0x160] sm:$0xff] }
 0x83a   :  { %v782_v44 = vmul.f32 %v771_v6, %v7067_v45  ;;  %v852_v45 = vld [vmem:[%s10762_s13 + $0x1d0] sm:$0xff]  ;;  %v1328_v39 = vld [vmem:[%s10764_s15 + $0xe0] sm:$0xff]  ;;  %v1311_v6 = vld [vmem:[%s10764_s15 + $0x58] sm:$0xff] }
 0x83b   :  { %v775_v8 = vmul.f32 0.5, %v774_v41  ;;  %v1343_v41 = vld [vmem:[%s10764_s15 + $0x158] sm:$0xff] }
 0x83c   :  { %v787_v9 = vmul.f32 %v6600_v40, %v782_v44  ;;  %v1359_v44 = vld [vmem:[%s10764_s15 + $0x1d8] sm:$0xff] }
 0x83d   :  { %v776_v46 = vsub.f32 1.5, %v775_v8  ;;  %v1310_v8 = vld [vmem:[%s10764_s15 + $0x50] sm:$0xff] }
 0x83e   :  { %v7184_v47 = vadd.f32 %v6601_v42, %v787_v9  ;;  %v1342_v9 = vld [vmem:[%s10764_s15 + $0x150] sm:$0xff] }
 0x83f   :  { %v777_v48 = vmul.f32 %v6659_v37, %v776_v46  ;;  %v1326_v46 = vld [vmem:[%s10764_s15 + $0xd0] sm:$0xff] }
 0x840   :  { %5683 = vmatmul.msk.f32.vlgmr.msrb.gmra.mxu1 %vm108_vm1, %v7184_v47  ;;  %5685 = vmatmul.msk.f32.vlgmr.msrb.gmra.mxu2 %vm108_vm1, %v7184_v47 }
 0x841   :  { %v781_v52 = vsel %vm780_vm15, %v6659_v37, %v777_v48  ;;  %5687 = vmatmul.msk.f32.vlgmr.msra.gmra.mxu0 %vm108_vm1, %v7184_v47  ;;  %5689 = vmatmul.msk.f32.vlgmr.msra.gmra.mxu3 %vm108_vm1, %v7184_v47  ;;  %v1312_v37 = vld [vmem:[%s10764_s15 + $0x60] sm:$0xff]  ;;  %v1358_v48 = vld [vmem:[%s10764_s15 + $0x1d0] sm:$0xff] }
 0x842   :  { %v783_v55 = vmul.f32 %v781_v52, %v7074_v49  ;;  %1096 = vmatpush.msrb.mxu1 %v850_v12  ;;  %1119 = vmatpush.msrb.mxu2 %v851_v50  ;;  %v819_v49 = vld [vmem:[%s10762_s13 + $0xc8] sm:$0xff]  ;;  %v1308_v52 = vld [vmem:[%s10764_s15 + $0x40] sm:$0xff] }
 0x843   :  { %1142 = vmatpush.msra.mxu0 %v852_v45  ;;  %1165 = vmatpush.msra.mxu3 %v853_v51  ;;  %v1309_v12 = vld [vmem:[%s10764_s15 + $0x48] sm:$0xff] }
 0x844   :  { %v788_v58 = vmul.f32 %v6600_v40, %v783_v55  ;;  %1097 = vmatpush.msrb.mxu1 %v834_v53  ;;  %1120 = vmatpush.msrb.mxu2 %v835_v54  ;;  %v1360_v40 = vld [vmem:[%s10764_s15 + $0x1e0] sm:$0xff]  ;;  %v1341_v50 = vld [vmem:[%s10764_s15 + $0x148] sm:$0xff] }
 0x845   :  { %1143 = vmatpush.msra.mxu0 %v836_v56  ;;  %1166 = vmatpush.msra.mxu3 %v837_v57  ;;  %v1325_v45 = vld [vmem:[%s10764_s15 + $0xc8] sm:$0xff]  ;;  %v1340_v53 = vld [vmem:[%s10764_s15 + $0x140] sm:$0xff]  ;;  %v1339_v56 = vld [vmem:[%s10764_s15 + $0x138] sm:$0xff] }
 0x846   :  { %v7231_v61 = vadd.f32 %v6601_v42, %v788_v58  ;;  %1098 = vmatpush.msrb.mxu1 %v818_v18  ;;  %1121 = vmatpush.msrb.mxu2 %v819_v49  ;;  %v1327_v42 = vld [vmem:[%s10764_s15 + $0xd8] sm:$0xff]  ;;  %v1357_v51 = vld [vmem:[%s10764_s15 + $0x1c8] sm:$0xff]  ;;  %v1324_v54 = vld [vmem:[%s10764_s15 + $0xc0] sm:$0xff] }
 0x847   :  { %1144 = vmatpush.msra.mxu0 %v820_v59  ;;  %1167 = vmatpush.msra.mxu3 %v821_v60  ;;  %v1356_v55 = vld [vmem:[%s10764_s15 + $0x1c0] sm:$0xff]  ;;  %v1323_v57 = vld [vmem:[%s10764_s15 + $0xb8] sm:$0xff]  ;;  %v1306_v49 = vld [vmem:[%s10764_s15 + $0x30] sm:$0xff] }
 0x848   :  { %5684 = vmatmul.msk.f32.gmra.mxu1 %vm108_vm1, %v7231_v61  ;;  %5686 = vmatmul.msk.f32.gmra.mxu2 %vm108_vm1, %v7231_v61  ;;  %v1355_v18 = vld [vmem:[%s10764_s15 + $0x1b8] sm:$0xff]  ;;  %v1338_v58 = vld [vmem:[%s10764_s15 + $0x130] sm:$0xff] }
 0x849   :  { %5688 = vmatmul.msk.f32.gmra.mxu0 %vm108_vm1, %v7231_v61  ;;  %5690 = vmatmul.msk.f32.gmra.mxu3 %vm108_vm1, %v7231_v61  ;;  %v1322_v59 = vld [vmem:[%s10764_s15 + $0xb0] sm:$0xff] }
 0x84a   :  { %1099 = vmatpush.msrb.mxu1 %v802_v62  ;;  %1122 = vmatpush.msrb.mxu2 %v803_v63  ;;  %v1354_v60 = vld [vmem:[%s10764_s15 + $0x1b0] sm:$0xff]  ;;  %v1305_v62 = vld [vmem:[%s10764_s15 + $0x28] sm:$0xff] }
 0x84b   :  { %1145 = vmatpush.msra.mxu0 %v804_v0  ;;  %1168 = vmatpush.msra.mxu3 %v805_v1  ;;  %v1337_v63 = vld [vmem:[%s10764_s15 + $0x128] sm:$0xff] }
 0x84c   :  { %v1321_v0 = vld [vmem:[%s10764_s15 + $0xa8] sm:$0xff] }
 0x84d   :  { %v1353_v1 = vld [vmem:[%s10764_s15 + $0x1a8] sm:$0xff] }
 0x850   :  { %5691 = vmatmul.msk.f32.vlgmr.msra.gmra.mxu1 %vm108_vm1, %v7184_v47  ;;  %5693 = vmatmul.msk.f32.vlgmr.msra.gmra.mxu2 %vm108_vm1, %v7184_v47 }
 0x851   :  { %5695 = vmatmul.msk.f32.vlgmr.msrb.gmra.mxu0 %vm108_vm1, %v7184_v47  ;;  %5697 = vmatmul.msk.f32.vlgmr.msrb.gmra.mxu3 %vm108_vm1, %v7184_v47 }
 0x852   :  { %1188 = vmatpush.msra.mxu1 %v854_v2  ;;  %1211 = vmatpush.msra.mxu2 %v855_v3  ;;  %v1336_v2 = vld [vmem:[%s10764_s15 + $0x120] sm:$0xff] }
 0x853   :  { %1234 = vmatpush.msrb.mxu0 %v856_v4  ;;  %1257 = vmatpush.msrb.mxu3 %v857_v5  ;;  %v1320_v3 = vld [vmem:[%s10764_s15 + $0xa0] sm:$0xff]  ;;  %v1303_v5 = vld [vmem:[%s10764_s15 + $0x18] sm:$0xff] }
 0x854   :  { %1189 = vmatpush.msra.mxu1 %v838_v10  ;;  %1212 = vmatpush.msra.mxu2 %v839_v11  ;;  %v1352_v4 = vld [vmem:[%s10764_s15 + $0x1a0] sm:$0xff]  ;;  %v1335_v10 = vld [vmem:[%s10764_s15 + $0x118] sm:$0xff] }
 0x855   :  { %1235 = vmatpush.msrb.mxu0 %v840_v13  ;;  %1258 = vmatpush.msrb.mxu3 %v841_v15  ;;  %v1319_v11 = vld [vmem:[%s10764_s15 + $0x98] sm:$0xff]  ;;  %v1302_v15 = vld [vmem:[%s10764_s15 + $0x10] sm:$0xff] }
 0x856   :  { %1190 = vmatpush.msra.mxu1 %v822_v16  ;;  %1213 = vmatpush.msra.mxu2 %v823_v17  ;;  %v1351_v13 = vld [vmem:[%s10764_s15 + $0x198] sm:$0xff]  ;;  %v1334_v16 = vld [vmem:[%s10764_s15 + $0x110] sm:$0xff] }
 0x857   :  { %1236 = vmatpush.msrb.mxu0 %v824_v19  ;;  %1259 = vmatpush.msrb.mxu3 %v825_v21  ;;  %v1318_v17 = vld [vmem:[%s10764_s15 + $0x90] sm:$0xff]  ;;  %v1301_v21 = vld [vmem:[%s10764_s15 + $0x8] sm:$0xff] }
 0x858   :  { %5692 = vmatmul.msk.f32.gmra.mxu1 %vm108_vm1, %v7231_v61  ;;  %5694 = vmatmul.msk.f32.gmra.mxu2 %vm108_vm1, %v7231_v61  ;;  %v1350_v19 = vld [vmem:[%s10764_s15 + $0x190] sm:$0xff] }
 0x859   :  { %5696 = vmatmul.msk.f32.gmra.mxu0 %vm108_vm1, %v7231_v61  ;;  %5698 = vmatmul.msk.f32.gmra.mxu3 %vm108_vm1, %v7231_v61 }
 0x85a   :  { %1191 = vmatpush.msra.mxu1 %v806_v22  ;;  %1214 = vmatpush.msra.mxu2 %v807_v23  ;;  %v1333_v22 = vld [vmem:[%s10764_s15 + $0x108] sm:$0xff] }
 0x85b   :  { %1237 = vmatpush.msrb.mxu0 %v808_v24  ;;  %1260 = vmatpush.msrb.mxu3 %v809_v25  ;;  %v1317_v23 = vld [vmem:[%s10764_s15 + $0x88] sm:$0xff]  ;;  %v1300_v25 = vld [vmem:[%s10764_s15] sm:$0xff] }
 0x85c   :  { %v1349_v24 = vld [vmem:[%s10764_s15 + $0x188] sm:$0xff] }
 0x860   :  { %5699 = vmatmul.msk.f32.vlgmr.msrb.gmra.mxu1 %vm108_vm1, %v7184_v47  ;;  %5701 = vmatmul.msk.f32.vlgmr.msrb.gmra.mxu2 %vm108_vm1, %v7184_v47 }
 0x861   :  { %5703 = vmatmul.msk.f32.vlgmr.msra.gmra.mxu0 %vm108_vm1, %v7184_v47  ;;  %5705 = vmatmul.msk.f32.vlgmr.msra.gmra.mxu3 %vm108_vm1, %v7184_v47 }
 0x862   :  { %1556 = vmatpush.msrb.mxu1 %v1315_v26  ;;  %1602 = vmatpush.msra.mxu0 %v1347_v27  ;;  %v1332_v26 = vld [vmem:[%s10764_s15 + $0x100] sm:$0xff]  ;;  %v1379_v27 = vld [vmem:[%s10764_s15 + $0x278] sm:$0xff] }
 0x863   :  { %1579 = vmatpush.msrb.mxu2 %v1331_v28  ;;  %1625 = vmatpush.msra.mxu3 %v1363_v29  ;;  %v1411_v28 = vld [vmem:[%s10764_s15 + $0x378] sm:$0xff]  ;;  %v1316_v29 = vld [vmem:[%s10764_s15 + $0x80] sm:$0xff] }
 0x864   :  { %1557 = vmatpush.msrb.mxu1 %v1314_v7  ;;  %1603 = vmatpush.msra.mxu0 %v1346_v30  ;;  %v1348_v7 = vld [vmem:[%s10764_s15 + $0x180] sm:$0xff]  ;;  %v1378_v30 = vld [vmem:[%s10764_s15 + $0x270] sm:$0xff] }
 0x865   :  { %1580 = vmatpush.msrb.mxu2 %v1330_v31  ;;  %1626 = vmatpush.msra.mxu3 %v1362_v32  ;;  %v1410_v31 = vld [vmem:[%s10764_s15 + $0x370] sm:$0xff]  ;;  %v1395_v32 = vld [vmem:[%s10764_s15 + $0x2f8] sm:$0xff] }
 0x866   :  { %1558 = vmatpush.msrb.mxu1 %v1313_v33  ;;  %1604 = vmatpush.msra.mxu0 %v1345_v34  ;;  %v1427_v33 = vld [vmem:[%s10764_s15 + $0x3f8] sm:$0xff]  ;;  %v1377_v34 = vld [vmem:[%s10764_s15 + $0x268] sm:$0xff] }
 0x867   :  { %1581 = vmatpush.msrb.mxu2 %v1329_v35  ;;  %1627 = vmatpush.msra.mxu3 %v1361_v36  ;;  %v1409_v35 = vld [vmem:[%s10764_s15 + $0x368] sm:$0xff]  ;;  %v1394_v36 = vld [vmem:[%s10764_s15 + $0x2f0] sm:$0xff] }
 0x868   :  { %5700 = vmatmul.msk.f32.gmra.mxu1 %vm108_vm1, %v7231_v61  ;;  %5702 = vmatmul.msk.f32.gmra.mxu2 %vm108_vm1, %v7231_v61 }
 0x869   :  { %5704 = vmatmul.msk.f32.gmra.mxu0 %vm108_vm1, %v7231_v61  ;;  %5706 = vmatmul.msk.f32.gmra.mxu3 %vm108_vm1, %v7231_v61 }
 0x86a   :  { %1559 = vmatpush.msrb.mxu1 %v1312_v37  ;;  %1605 = vmatpush.msra.mxu0 %v1344_v14  ;;  %v1426_v37 = vld [vmem:[%s10764_s15 + $0x3f0] sm:$0xff]  ;;  %v1376_v14 = vld [vmem:[%s10764_s15 + $0x260] sm:$0xff] }
 0x86b   :  { %1582 = vmatpush.msrb.mxu2 %v1328_v39  ;;  %1628 = vmatpush.msra.mxu3 %v1360_v40  ;;  %v1408_v39 = vld [vmem:[%s10764_s15 + $0x360] sm:$0xff]  ;;  %v1393_v40 = vld [vmem:[%s10764_s15 + $0x2e8] sm:$0xff] }
 0x86c   :  { %1560 = vmatpush.msrb.mxu1 %v1311_v6  ;;  %1606 = vmatpush.msra.mxu0 %v1343_v41  ;;  %v1425_v6 = vld [vmem:[%s10764_s15 + $0x3e8] sm:$0xff]  ;;  %v1375_v41 = vld [vmem:[%s10764_s15 + $0x258] sm:$0xff] }
 0x86d   :  { %1583 = vmatpush.msrb.mxu2 %v1327_v42  ;;  %1629 = vmatpush.msra.mxu3 %v1359_v44  ;;  %v1407_v42 = vld [vmem:[%s10764_s15 + $0x358] sm:$0xff]  ;;  %v1392_v44 = vld [vmem:[%s10764_s15 + $0x2e0] sm:$0xff] }
 0x86e   :  { %1561 = vmatpush.msrb.mxu1 %v1310_v8  ;;  %1607 = vmatpush.msra.mxu0 %v1342_v9  ;;  %v1424_v8 = vld [vmem:[%s10764_s15 + $0x3e0] sm:$0xff]  ;;  %v1374_v9 = vld [vmem:[%s10764_s15 + $0x250] sm:$0xff] }
 0x86f   :  { %1584 = vmatpush.msrb.mxu2 %v1326_v46  ;;  %1630 = vmatpush.msra.mxu3 %v1358_v48  ;;  %v1406_v46 = vld [vmem:[%s10764_s15 + $0x350] sm:$0xff]  ;;  %v1391_v48 = vld [vmem:[%s10764_s15 + $0x2d8] sm:$0xff] }
 0x870   :  { %5707 = vmatmul.msk.f32.vlgmr.msra.gmra.mxu1 %vm108_vm1, %v7184_v47  ;;  %5709 = vmatmul.msk.f32.vlgmr.msra.gmra.mxu2 %vm108_vm1, %v7184_v47 }
 0x871   :  { %5711 = vmatmul.msk.f32.vlgmr.msrb.gmra.mxu0 %vm108_vm1, %v7184_v47  ;;  %5713 = vmatmul.msk.f32.vlgmr.msrb.gmra.mxu3 %vm108_vm1, %v7184_v47  ;;  %v1307_v47 = vld [vmem:[%s10764_s15 + $0x38] sm:$0xff] }
 0x872   :  { %1562 = vmatpush.msrb.mxu1 %v1309_v12  ;;  %1608 = vmatpush.msra.mxu0 %v1341_v50  ;;  %v1423_v12 = vld [vmem:[%s10764_s15 + $0x3d8] sm:$0xff]  ;;  %v1373_v50 = vld [vmem:[%s10764_s15 + $0x248] sm:$0xff] }
 0x873   :  { %1585 = vmatpush.msrb.mxu2 %v1325_v45  ;;  %1631 = vmatpush.msra.mxu3 %v1357_v51  ;;  %v1405_v45 = vld [vmem:[%s10764_s15 + $0x348] sm:$0xff]  ;;  %v1390_v51 = vld [vmem:[%s10764_s15 + $0x2d0] sm:$0xff] }
 0x874   :  { %1563 = vmatpush.msrb.mxu1 %v1308_v52  ;;  %1609 = vmatpush.msra.mxu0 %v1340_v53  ;;  %v1422_v52 = vld [vmem:[%s10764_s15 + $0x3d0] sm:$0xff]  ;;  %v1372_v53 = vld [vmem:[%s10764_s15 + $0x240] sm:$0xff] }
 0x875   :  { %1586 = vmatpush.msrb.mxu2 %v1324_v54  ;;  %1632 = vmatpush.msra.mxu3 %v1356_v55  ;;  %v1404_v54 = vld [vmem:[%s10764_s15 + $0x340] sm:$0xff]  ;;  %v1389_v55 = vld [vmem:[%s10764_s15 + $0x2c8] sm:$0xff] }
 0x876   :  { %1564 = vmatpush.msrb.mxu1 %v1307_v47  ;;  %1610 = vmatpush.msra.mxu0 %v1339_v56  ;;  %v1421_v47 = vld [vmem:[%s10764_s15 + $0x3c8] sm:$0xff]  ;;  %v1371_v56 = vld [vmem:[%s10764_s15 + $0x238] sm:$0xff] }
 0x877   :  { %1587 = vmatpush.msrb.mxu2 %v1323_v57  ;;  %1633 = vmatpush.msra.mxu3 %v1355_v18  ;;  %v1403_v57 = vld [vmem:[%s10764_s15 + $0x338] sm:$0xff]  ;;  %v1388_v18 = vld [vmem:[%s10764_s15 + $0x2c0] sm:$0xff] }
 0x878   :  { %5708 = vmatmul.msk.f32.gmra.mxu1 %vm108_vm1, %v7231_v61  ;;  %5710 = vmatmul.msk.f32.gmra.mxu2 %vm108_vm1, %v7231_v61 }
 0x879   :  { %5712 = vmatmul.msk.f32.gmra.mxu0 %vm108_vm1, %v7231_v61  ;;  %5714 = vmatmul.msk.f32.gmra.mxu3 %vm108_vm1, %v7231_v61  ;;  %v1304_v61 = vld [vmem:[%s10764_s15 + $0x20] sm:$0xff] }
 0x87a   :  { %1565 = vmatpush.msrb.mxu1 %v1306_v49  ;;  %1611 = vmatpush.msra.mxu0 %v1338_v58  ;;  %v1420_v49 = vld [vmem:[%s10764_s15 + $0x3c0] sm:$0xff]  ;;  %v1370_v58 = vld [vmem:[%s10764_s15 + $0x230] sm:$0xff] }
 0x87b   :  { %1588 = vmatpush.msrb.mxu2 %v1322_v59  ;;  %1634 = vmatpush.msra.mxu3 %v1354_v60  ;;  %v1402_v59 = vld [vmem:[%s10764_s15 + $0x330] sm:$0xff]  ;;  %v1387_v60 = vld [vmem:[%s10764_s15 + $0x2b8] sm:$0xff] }
 0x87c   :  { %1566 = vmatpush.msrb.mxu1 %v1305_v62  ;;  %1612 = vmatpush.msra.mxu0 %v1337_v63  ;;  %v1419_v62 = vld [vmem:[%s10764_s15 + $0x3b8] sm:$0xff]  ;;  %v1369_v63 = vld [vmem:[%s10764_s15 + $0x228] sm:$0xff] }
 0x87d   :  { %1589 = vmatpush.msrb.mxu2 %v1321_v0  ;;  %1635 = vmatpush.msra.mxu3 %v1353_v1  ;;  %v1401_v0 = vld [vmem:[%s10764_s15 + $0x328] sm:$0xff]  ;;  %v1386_v1 = vld [vmem:[%s10764_s15 + $0x2b0] sm:$0xff] }
 0x87e   :  { %1567 = vmatpush.msrb.mxu1 %v1304_v61  ;;  %1613 = vmatpush.msra.mxu0 %v1336_v2  ;;  %v1418_v61 = vld [vmem:[%s10764_s15 + $0x3b0] sm:$0xff]  ;;  %v1368_v2 = vld [vmem:[%s10764_s15 + $0x220] sm:$0xff] }
 0x87f   :  { %1590 = vmatpush.msrb.mxu2 %v1320_v3  ;;  %1636 = vmatpush.msra.mxu3 %v1352_v4  ;;  %v1400_v3 = vld [vmem:[%s10764_s15 + $0x320] sm:$0xff]  ;;  %v1367_v4 = vld [vmem:[%s10764_s15 + $0x218] sm:$0xff] }
 0x880   :  { %1568 = vmatpush.msrb.mxu1 %v1303_v5  ;;  %1614 = vmatpush.msra.mxu0 %v1335_v10  ;;  %v1399_v5 = vld [vmem:[%s10764_s15 + $0x318] sm:$0xff]  ;;  %v1385_v10 = vld [vmem:[%s10764_s15 + $0x2a8] sm:$0xff] }
 0x881   :  { %1591 = vmatpush.msrb.mxu2 %v1319_v11  ;;  %1637 = vmatpush.msra.mxu3 %v1351_v13  ;;  %v1366_v11 = vld [vmem:[%s10764_s15 + $0x210] sm:$0xff] }
 0x882   :  { %1569 = vmatpush.msrb.mxu1 %v1302_v15  ;;  %1615 = vmatpush.msra.mxu0 %v1334_v16  ;;  %v1398_v13 = vld [vmem:[%s10764_s15 + $0x310] sm:$0xff]  ;;  %v1417_v15 = vld [vmem:[%s10764_s15 + $0x3a8] sm:$0xff]  ;;  %v1384_v16 = vld [vmem:[%s10764_s15 + $0x2a0] sm:$0xff] }
 0x883   :  { %1592 = vmatpush.msrb.mxu2 %v1318_v17  ;;  %1638 = vmatpush.msra.mxu3 %v1350_v19  ;;  %v1365_v17 = vld [vmem:[%s10764_s15 + $0x208] sm:$0xff] }
 0x884   :  { %1570 = vmatpush.msrb.mxu1 %v1301_v21  ;;  %1616 = vmatpush.msra.mxu0 %v1333_v22  ;;  %v1397_v19 = vld [vmem:[%s10764_s15 + $0x308] sm:$0xff]  ;;  %v1416_v21 = vld [vmem:[%s10764_s15 + $0x3a0] sm:$0xff]  ;;  %v1383_v22 = vld [vmem:[%s10764_s15 + $0x298] sm:$0xff] }
 0x885   :  { %1593 = vmatpush.msrb.mxu2 %v1317_v23  ;;  %1639 = vmatpush.msra.mxu3 %v1349_v24  ;;  %v1364_v23 = vld [vmem:[%s10764_s15 + $0x200] sm:$0xff] }
 0x886   :  { %1571 = vmatpush.msrb.mxu1 %v1300_v25  ;;  %1617 = vmatpush.msra.mxu0 %v1332_v26  ;;  %v1396_v24 = vld [vmem:[%s10764_s15 + $0x300] sm:$0xff]  ;;  %v1415_v25 = vld [vmem:[%s10764_s15 + $0x398] sm:$0xff]  ;;  %v1382_v26 = vld [vmem:[%s10764_s15 + $0x290] sm:$0xff] }
 0x887   :  { %1594 = vmatpush.msrb.mxu2 %v1316_v29  ;;  %1640 = vmatpush.msra.mxu3 %v1348_v7  ;;  %v1413_v29 = vld [vmem:[%s10764_s15 + $0x388] sm:$0xff]  ;;  %v1380_v7 = vld [vmem:[%s10764_s15 + $0x280] sm:$0xff] }
 0x888   :  { %1648 = vmatpush.msra.mxu1 %v1379_v27  ;;  %1694 = vmatpush.msrb.mxu0 %v1411_v28  ;;  %v1414_v27 = vld [vmem:[%s10764_s15 + $0x390] sm:$0xff]  ;;  %v1381_v28 = vld [vmem:[%s10764_s15 + $0x288] sm:$0xff] }
 0x889   :  { %1671 = vmatpush.msra.mxu2 %v1395_v32  ;;  %1717 = vmatpush.msrb.mxu3 %v1427_v33 }
 0x88a   :  { %1649 = vmatpush.msra.mxu1 %v1378_v30  ;;  %1695 = vmatpush.msrb.mxu0 %v1410_v31  ;;  %v1412_v30 = vld [vmem:[%s10764_s15 + $0x380] sm:$0xff] }
 0x88b   :  { %1672 = vmatpush.msra.mxu2 %v1394_v36  ;;  %1718 = vmatpush.msrb.mxu3 %v1426_v37  ;;  %v7736_v31 = vld [vmem:[%s10763_s14] sm:$0xff] }
 0x88c   :  { %1650 = vmatpush.msra.mxu1 %v1377_v34  ;;  %1696 = vmatpush.msrb.mxu0 %v1409_v35  ;;  %v862_v32 = vperm.slane %v7736_v31, 0  ;;  %v864_v33 = vperm.slane %v7736_v31, 2 }
 0x88d   :  { %1673 = vmatpush.msra.mxu2 %v1393_v40  ;;  %1719 = vmatpush.msrb.mxu3 %v1425_v6  ;;  %v863_v40 = vperm.slane %v7736_v31, 1 }
 0x88e   :  { %1651 = vmatpush.msra.mxu1 %v1376_v14  ;;  %1697 = vmatpush.msrb.mxu0 %v1408_v39  ;;  %v1443_v39 = vld [vmem:[%s10764_s15 + $0x478] sm:$0xff] }
 0x88f   :  { %1674 = vmatpush.msra.mxu2 %v1392_v44  ;;  %1720 = vmatpush.msrb.mxu3 %v1424_v8  ;;  %v1442_v44 = vld [vmem:[%s10764_s15 + $0x470] sm:$0xff] }
 0x890   :  { %1652 = vmatpush.msra.mxu1 %v1375_v41  ;;  %1698 = vmatpush.msrb.mxu0 %v1407_v42  ;;  %v1475_v41 = vld [vmem:[%s10764_s15 + $0x578] sm:$0xff]  ;;  %v865_v42 = vperm.slane %v7736_v31, 3 }
 0x891   :  { %1675 = vmatpush.msra.mxu2 %v1391_v48  ;;  %1721 = vmatpush.msrb.mxu3 %v1423_v12  ;;  %v1441_v12 = vld [vmem:[%s10764_s15 + $0x468] sm:$0xff] }
 0x892   :  { %1653 = vmatpush.msra.mxu1 %v1374_v9  ;;  %1699 = vmatpush.msrb.mxu0 %v1406_v46  ;;  %v1474_v9 = vld [vmem:[%s10764_s15 + $0x570] sm:$0xff] }
 0x893   :  { %1676 = vmatpush.msra.mxu2 %v1390_v51  ;;  %1722 = vmatpush.msrb.mxu3 %v1422_v52  ;;  %v1473_v51 = vld [vmem:[%s10764_s15 + $0x568] sm:$0xff] }
 0x894   :  { %1654 = vmatpush.msra.mxu1 %v1373_v50  ;;  %1700 = vmatpush.msrb.mxu0 %v1405_v45 }
 0x895   :  { %1677 = vmatpush.msra.mxu2 %v1389_v55  ;;  %1723 = vmatpush.msrb.mxu3 %v1421_v47  ;;  %v1440_v55 = vld [vmem:[%s10764_s15 + $0x460] sm:$0xff] }
 0x896   :  { %1655 = vmatpush.msra.mxu1 %v1372_v53  ;;  %1701 = vmatpush.msrb.mxu0 %v1404_v54 }
 0x897   :  { %1678 = vmatpush.msra.mxu2 %v1388_v18  ;;  %1724 = vmatpush.msrb.mxu3 %v1420_v49  ;;  %v1472_v18 = vld [vmem:[%s10764_s15 + $0x560] sm:$0xff]  ;;  %v1491_v49 = vld [vmem:[%s10764_s15 + $0x5f8] sm:$0xff] }
 0x898   :  { %1656 = vmatpush.msra.mxu1 %v1371_v56  ;;  %1702 = vmatpush.msrb.mxu0 %v1403_v57  ;;  %v1459_v57 = vld [vmem:[%s10764_s15 + $0x4f8] sm:$0xff] }
 0x899   :  { %1679 = vmatpush.msra.mxu2 %v1387_v60  ;;  %1725 = vmatpush.msrb.mxu3 %v1419_v62  ;;  %v1439_v60 = vld [vmem:[%s10764_s15 + $0x458] sm:$0xff]  ;;  %v1458_v62 = vld [vmem:[%s10764_s15 + $0x4f0] sm:$0xff] }
 0x89a   :  { %1657 = vmatpush.msra.mxu1 %v1370_v58  ;;  %1703 = vmatpush.msrb.mxu0 %v1402_v59 }
 0x89b   :  { %1680 = vmatpush.msra.mxu2 %v1386_v1  ;;  %1726 = vmatpush.msrb.mxu3 %v1418_v61  ;;  %v1490_v1 = vld [vmem:[%s10764_s15 + $0x5f0] sm:$0xff] }
 0x89c   :  { %1658 = vmatpush.msra.mxu1 %v1369_v63  ;;  %1704 = vmatpush.msrb.mxu0 %v1401_v0  ;;  %v1471_v63 = vld [vmem:[%s10764_s15 + $0x558] sm:$0xff]  ;;  %v866_v0 = vperm.slane %v7736_v31, 4 }
 0x89d   :  { %1681 = vmatpush.msra.mxu2 %v1385_v10  ;;  %1727 = vmatpush.msrb.mxu3 %v1417_v15  ;;  %v1457_v10 = vld [vmem:[%s10764_s15 + $0x4e8] sm:$0xff] }
 0x89e   :  { %1659 = vmatpush.msra.mxu1 %v1368_v2  ;;  %1705 = vmatpush.msrb.mxu0 %v1400_v3  ;;  %v1438_v2 = vld [vmem:[%s10764_s15 + $0x450] sm:$0xff]  ;;  %v868_v3 = vperm.slane %v7736_v31, 6  ;;  %v1489_v15 = vld [vmem:[%s10764_s15 + $0x5e8] sm:$0xff] }
 0x89f   :  { %1682 = vmatpush.msra.mxu2 %v1384_v16  ;;  %1728 = vmatpush.msrb.mxu3 %v1416_v21 }
 0x8a0   :  { %1660 = vmatpush.msra.mxu1 %v1367_v4  ;;  %1706 = vmatpush.msrb.mxu0 %v1399_v5 }
 0x8a1   :  { %1683 = vmatpush.msra.mxu2 %v1383_v22  ;;  %1729 = vmatpush.msrb.mxu3 %v1415_v25  ;;  %v1456_v22 = vld [vmem:[%s10764_s15 + $0x4e0] sm:$0xff] }
 0x8a2   :  { %1661 = vmatpush.msra.mxu1 %v1366_v11  ;;  %1707 = vmatpush.msrb.mxu0 %v1398_v13  ;;  %v1470_v11 = vld [vmem:[%s10764_s15 + $0x550] sm:$0xff] }
 0x8a3   :  { %1684 = vmatpush.msra.mxu2 %v1382_v26  ;;  %1730 = vmatpush.msrb.mxu3 %v1414_v27  ;;  %v1488_v26 = vld [vmem:[%s10764_s15 + $0x5e0] sm:$0xff] }
 0x8a4   :  { %1662 = vmatpush.msra.mxu1 %v1365_v17  ;;  %1708 = vmatpush.msrb.mxu0 %v1397_v19  ;;  %v1437_v17 = vld [vmem:[%s10764_s15 + $0x448] sm:$0xff] }
 0x8a5   :  { %1685 = vmatpush.msra.mxu2 %v1381_v28  ;;  %1731 = vmatpush.msrb.mxu3 %v1413_v29  ;;  %v1436_v28 = vld [vmem:[%s10764_s15 + $0x440] sm:$0xff]  ;;  %v867_v29 = vperm.slane %v7736_v31, 5 }
 0x8a6   :  { %1663 = vmatpush.msra.mxu1 %v1364_v23  ;;  %1709 = vmatpush.msrb.mxu0 %v1396_v24  ;;  %v1469_v23 = vld [vmem:[%s10764_s15 + $0x548] sm:$0xff] }
 0x8a7   :  { %1686 = vmatpush.msra.mxu2 %v1380_v7  ;;  %1732 = vmatpush.msrb.mxu3 %v1412_v30  ;;  %v1455_v30 = vld [vmem:[%s10764_s15 + $0x4d8] sm:$0xff] }
 0x8bd   :  { %v917_v34 = vpop.f32.mrf.mxu1 }
 0x8be   :  { %v918_v35 = vadd.f32 %v917_v34, %v862_v32  ;;  %v963_v36 = vpop.f32.mrf.mxu0 }
 0x8bf   :  { %v964_v37 = vadd.f32 %v963_v36, %v864_v33  ;;  %v1435_v36 = vld [vmem:[%s10764_s15 + $0x438] sm:$0xff] }
 0x8c0   :  { %v1268_v14 = vmax.f32 %v918_v35, 0.0  ;;  %v1487_v35 = vld [vmem:[%s10764_s15 + $0x5d8] sm:$0xff] }
 0x8c1   :  { %v1270_v6 = vmax.f32 %v964_v37, 0.0 }
 0x8c2   :  { %1572 = vmatmul.f32.vlgmr.msrb.gmra.mxu1 %v1268_v14  ;;  %v1454_v14 = vld [vmem:[%s10764_s15 + $0x4d0] sm:$0xff] }
 0x8c3   :  { %1618 = vmatmul.f32.vlgmr.msra.gmra.mxu0 %v1270_v6  ;;  %1740 = vmatpush.msrb.mxu1 %v1443_v39  ;;  %v940_v8 = vpop.f32.mrf.mxu2  ;;  %v1467_v39 = vld [vmem:[%s10764_s15 + $0x538] sm:$0xff] }
 0x8c4   :  { %1786 = vmatpush.msra.mxu0 %v1475_v41  ;;  %v941_v46 = vadd.f32 %v940_v8, %v863_v40  ;;  %v986_v48 = vpop.f32.mrf.mxu3  ;;  %v1486_v41 = vld [vmem:[%s10764_s15 + $0x5d0] sm:$0xff] }
 0x8c5   :  { %v987_v50 = vadd.f32 %v986_v48, %v865_v42  ;;  %1741 = vmatpush.msrb.mxu1 %v1442_v44  ;;  %v920_v45 = vpop.f32.mrf.mxu1  ;;  %v1434_v44 = vld [vmem:[%s10764_s15 + $0x430] sm:$0xff] }
 0x8c6   :  { %v1269_v52 = vmax.f32 %v941_v46, 0.0  ;;  %1787 = vmatpush.msra.mxu0 %v1474_v9  ;;  %v921_v53 = vadd.f32 %v920_v45, %v862_v32  ;;  %v966_v54 = vpop.f32.mrf.mxu0  ;;  %v1468_v32 = vld [vmem:[%s10764_s15 + $0x540] sm:$0xff]  ;;  %v1453_v9 = vld [vmem:[%s10764_s15 + $0x4c8] sm:$0xff]  ;;  %v1466_v46 = vld [vmem:[%s10764_s15 + $0x530] sm:$0xff] }
 0x8c7   :  { %v1271_v47 = vmax.f32 %v987_v50, 0.0  ;;  %v967_v56 = vadd.f32 %v966_v54, %v864_v33  ;;  %1742 = vmatpush.msrb.mxu1 %v1441_v12  ;;  %v869_v33 = vperm.slane %v7736_v31, 7  ;;  %v1485_v12 = vld [vmem:[%s10764_s15 + $0x5c8] sm:$0xff] }
 0x8c8   :  { %1788 = vmatpush.msra.mxu0 %v1473_v51  ;;  %1595 = vmatmul.f32.vlgmr.msrb.gmra.mxu2 %v1269_v52  ;;  %v1284_v58 = vmax.f32 %v921_v53, 0.0  ;;  %v1433_v45 = vld [vmem:[%s10764_s15 + $0x428] sm:$0xff]  ;;  %v1452_v53 = vld [vmem:[%s10764_s15 + $0x4c0] sm:$0xff] }
 0x8c9   :  { %1641 = vmatmul.f32.vlgmr.msra.gmra.mxu3 %v1271_v47  ;;  %1743 = vmatpush.msrb.mxu1 %v1440_v55  ;;  %v1286_v59 = vmax.f32 %v967_v56, 0.0  ;;  %v1465_v54 = vld [vmem:[%s10764_s15 + $0x528] sm:$0xff]  ;;  %v1484_v47 = vld [vmem:[%s10764_s15 + $0x5c0] sm:$0xff] }
 0x8ca   :  { %1763 = vmatpush.msrb.mxu2 %v1459_v57  ;;  %1789 = vmatpush.msra.mxu0 %v1472_v18  ;;  %v1432_v56 = vld [vmem:[%s10764_s15 + $0x420] sm:$0xff]  ;;  %v1451_v57 = vld [vmem:[%s10764_s15 + $0x4b8] sm:$0xff]  ;;  %v1481_v31 = vld [vmem:[%s10764_s15 + $0x5a8] sm:$0xff] }
 0x8cb   :  { %1809 = vmatpush.msra.mxu3 %v1491_v49  ;;  %1575 = vmatmul.f32.gmra.mxu1 %v1284_v58  ;;  %v943_v61 = vpop.f32.mrf.mxu2  ;;  %v1464_v18 = vld [vmem:[%s10764_s15 + $0x520] sm:$0xff] }
 0x8cc   :  { %1621 = vmatmul.f32.gmra.mxu0 %v1286_v59  ;;  %1744 = vmatpush.msrb.mxu1 %v1439_v60  ;;  %v944_v4 = vadd.f32 %v943_v61, %v863_v40  ;;  %v989_v5 = vpop.f32.mrf.mxu3  ;;  %v7884_v59 = vld [vmem:[%s10763_s14 + $0x8] sm:$0xff]  ;;  %v1483_v60 = vld [vmem:[%s10764_s15 + $0x5b8] sm:$0xff] }
 0x8cd   :  { %1764 = vmatpush.msrb.mxu2 %v1458_v62  ;;  %1790 = vmatpush.msra.mxu0 %v1471_v63  ;;  %v990_v13 = vadd.f32 %v989_v5, %v865_v42  ;;  %v1009_v16 = vpop.f32.mrf.mxu1  ;;  %v1463_v61 = vld [vmem:[%s10764_s15 + $0x518] sm:$0xff] }
 0x8ce   :  { %1810 = vmatpush.msra.mxu3 %v1490_v1  ;;  %1745 = vmatpush.msrb.mxu1 %v1438_v2  ;;  %v1010_v19 = vadd.f32 %v1009_v16, %v866_v0  ;;  %v1055_v21 = vpop.f32.mrf.mxu0  ;;  %v1285_v24 = vmax.f32 %v944_v4, 0.0  ;;  %v1450_v1 = vld [vmem:[%s10764_s15 + $0x4b0] sm:$0xff] }
 0x8cf   :  { %1765 = vmatpush.msrb.mxu2 %v1457_v10  ;;  %1791 = vmatpush.msra.mxu0 %v1470_v11  ;;  %v1056_v25 = vadd.f32 %v1055_v21, %v868_v3  ;;  %v1287_v27 = vmax.f32 %v990_v13, 0.0  ;;  %v1482_v4 = vld [vmem:[%s10764_s15 + $0x5b0] sm:$0xff]  ;;  %v872_v13 = vperm.slane %v7884_v59, 2 }
 0x8d0   :  { %1811 = vmatpush.msra.mxu3 %v1489_v15  ;;  %1746 = vmatpush.msrb.mxu1 %v1437_v17  ;;  %v1272_v7 = vmax.f32 %v1010_v19, 0.0  ;;  %v1430_v10 = vld [vmem:[%s10764_s15 + $0x410] sm:$0xff]  ;;  %v1449_v15 = vld [vmem:[%s10764_s15 + $0x4a8] sm:$0xff] }
 0x8d1   :  { %1766 = vmatpush.msrb.mxu2 %v1456_v22  ;;  %1792 = vmatpush.msra.mxu0 %v1469_v23  ;;  %v1274_v34 = vmax.f32 %v1056_v25, 0.0  ;;  %v1462_v16 = vld [vmem:[%s10764_s15 + $0x510] sm:$0xff]  ;;  %v1429_v19 = vld [vmem:[%s10764_s15 + $0x408] sm:$0xff]  ;;  %v1448_v22 = vld [vmem:[%s10764_s15 + $0x4a0] sm:$0xff] }
 0x8d2   :  { %1812 = vmatpush.msra.mxu3 %v1488_v26  ;;  %1598 = vmatmul.f32.gmra.mxu2 %v1285_v24  ;;  %v1461_v23 = vld [vmem:[%s10764_s15 + $0x508] sm:$0xff]  ;;  %v1480_v26 = vld [vmem:[%s10764_s15 + $0x5a0] sm:$0xff] }
 0x8d3   :  { %1644 = vmatmul.f32.gmra.mxu3 %v1287_v27  ;;  %1747 = vmatpush.msrb.mxu1 %v1436_v28  ;;  %v1032_v37 = vpop.f32.mrf.mxu2  ;;  %v1428_v28 = vld [vmem:[%s10764_s15 + $0x400] sm:$0xff] }
 0x8d4   :  { %1767 = vmatpush.msrb.mxu2 %v1455_v30  ;;  %1793 = vmatpush.msra.mxu0 %v1468_v32  ;;  %v1033_v40 = vadd.f32 %v1032_v37, %v867_v29  ;;  %v1078_v6 = vpop.f32.mrf.mxu3  ;;  %v1479_v32 = vld [vmem:[%s10764_s15 + $0x598] sm:$0xff] }
 0x8d5   :  { %1813 = vmatpush.msra.mxu3 %v1487_v35  ;;  %1664 = vmatmul.f32.vlgmr.msra.gmra.mxu1 %v1272_v7  ;;  %v1079_v42 = vadd.f32 %v1078_v6, %v869_v33  ;;  %v1012_v8 = vpop.f32.mrf.mxu1  ;;  %v1460_v7 = vld [vmem:[%s10764_s15 + $0x500] sm:$0xff]  ;;  %v1478_v6 = vld [vmem:[%s10764_s15 + $0x590] sm:$0xff] }
 0x8d6   :  { %1710 = vmatmul.f32.vlgmr.msrb.gmra.mxu0 %v1274_v34  ;;  %1748 = vmatpush.msrb.mxu1 %v1435_v36  ;;  %v1058_v48 = vpop.f32.mrf.mxu0  ;;  %v1013_v50 = vadd.f32 %v1012_v8, %v866_v0  ;;  %v1273_v51 = vmax.f32 %v1033_v40, 0.0  ;;  %v1431_v0 = vld [vmem:[%s10764_s15 + $0x418] sm:$0xff]  ;;  %v871_v34 = vperm.slane %v7884_v59, 1  ;;  %v1445_v8 = vld [vmem:[%s10764_s15 + $0x488] sm:$0xff] }
 0x8d7   :  { %1768 = vmatpush.msrb.mxu2 %v1454_v14  ;;  %1794 = vmatpush.msra.mxu0 %v1467_v39  ;;  %v1059_v52 = vadd.f32 %v1058_v48, %v868_v3  ;;  %v1275_v55 = vmax.f32 %v1079_v42, 0.0  ;;  %v870_v3 = vperm.slane %v7884_v59, 0  ;;  %v1539_v36 = vld [vmem:[%s10764_s15 + $0x778] sm:$0xff]  ;;  %v873_v14 = vperm.slane %v7884_v59, 3  ;;  %v1446_v39 = vld [vmem:[%s10764_s15 + $0x490] sm:$0xff]  ;;  %v1477_v48 = vld [vmem:[%s10764_s15 + $0x588] sm:$0xff] }
 0x8d8   :  { %1814 = vmatpush.msra.mxu3 %v1486_v41  ;;  %1749 = vmatpush.msrb.mxu1 %v1434_v44  ;;  %v1288_v49 = vmax.f32 %v1013_v50, 0.0  ;;  %v1506_v41 = vld [vmem:[%s10764_s15 + $0x670] sm:$0xff]  ;;  %v1505_v50 = vld [vmem:[%s10764_s15 + $0x668] sm:$0xff] }
 0x8d9   :  { %1769 = vmatpush.msrb.mxu2 %v1453_v9  ;;  %1795 = vmatpush.msra.mxu0 %v1466_v46  ;;  %v1290_v62 = vmax.f32 %v1059_v52, 0.0  ;;  %v1538_v44 = vld [vmem:[%s10764_s15 + $0x770] sm:$0xff] }
 0x8da   :  { %1815 = vmatpush.msra.mxu3 %v1485_v12  ;;  %1750 = vmatpush.msrb.mxu1 %v1433_v45  ;;  %v1537_v45 = vld [vmem:[%s10764_s15 + $0x768] sm:$0xff] }
 0x8db   :  { %1770 = vmatpush.msrb.mxu2 %v1452_v53  ;;  %1796 = vmatpush.msra.mxu0 %v1465_v54  ;;  %v1035_v58 = vpop.f32.mrf.mxu2  ;;  %v1476_v53 = vld [vmem:[%s10764_s15 + $0x580] sm:$0xff] }
 0x8dc   :  { %1816 = vmatpush.msra.mxu3 %v1484_v47  ;;  %1687 = vmatmul.f32.vlgmr.msra.gmra.mxu2 %v1273_v51  ;;  %v1081_v63 = vpop.f32.mrf.mxu3  ;;  %v1036_v2 = vadd.f32 %v1035_v58, %v867_v29  ;;  %v1447_v29 = vld [vmem:[%s10764_s15 + $0x498] sm:$0xff]  ;;  %v1444_v51 = vld [vmem:[%s10764_s15 + $0x480] sm:$0xff] }
 0x8dd   :  { %1733 = vmatmul.f32.vlgmr.msrb.gmra.mxu3 %v1275_v55  ;;  %1751 = vmatpush.msrb.mxu1 %v1432_v56  ;;  %v1082_v5 = vadd.f32 %v1081_v63, %v869_v33  ;;  %v1101_v11 = vpop.f32.mrf.mxu1  ;;  %v1507_v33 = vld [vmem:[%s10764_s15 + $0x678] sm:$0xff]  ;;  %v1504_v54 = vld [vmem:[%s10764_s15 + $0x660] sm:$0xff] }
 0x8de   :  { %1771 = vmatpush.msrb.mxu2 %v1451_v57  ;;  %1797 = vmatpush.msra.mxu0 %v1464_v18  ;;  %v1147_v17 = vpop.f32.mrf.mxu0  ;;  %v1102_v21 = vadd.f32 %v1101_v11, %v870_v3  ;;  %v1289_v24 = vmax.f32 %v1036_v2, 0.0  ;;  %v1523_v56 = vld [vmem:[%s10764_s15 + $0x6f8] sm:$0xff]  ;;  %v1536_v57 = vld [vmem:[%s10764_s15 + $0x760] sm:$0xff] }
 0x8df   :  { %1817 = vmatpush.msra.mxu3 %v1483_v60  ;;  %1667 = vmatmul.f32.gmra.mxu1 %v1288_v49  ;;  %v1148_v25 = vadd.f32 %v1147_v17, %v872_v13  ;;  %v1291_v27 = vmax.f32 %v1082_v5, 0.0  ;;  %v1555_v49 = vld [vmem:[%s10764_s15 + $0x7f8] sm:$0xff]  ;;  %v1522_v60 = vld [vmem:[%s10764_s15 + $0x6f0] sm:$0xff]  ;;  %v1521_v5 = vld [vmem:[%s10764_s15 + $0x6e8] sm:$0xff] }
 0x8e0   :  { %1713 = vmatmul.f32.gmra.mxu0 %v1290_v62  ;;  %1752 = vmatpush.msrb.mxu1 %v1431_v0  ;;  %v1276_v30 = vmax.f32 %v1102_v21, 0.0  ;;  %v1503_v58 = vld [vmem:[%s10764_s15 + $0x658] sm:$0xff]  ;;  %v1533_v17 = vld [vmem:[%s10764_s15 + $0x748] sm:$0xff] }
 0x8e1   :  { %1772 = vmatpush.msrb.mxu2 %v1450_v1  ;;  %1798 = vmatpush.msra.mxu0 %v1463_v61  ;;  %v1278_v35 = vmax.f32 %v1148_v25, 0.0  ;;  %v1535_v62 = vld [vmem:[%s10764_s15 + $0x758] sm:$0xff]  ;;  %v1554_v1 = vld [vmem:[%s10764_s15 + $0x7f0] sm:$0xff] }
 0x8e2   :  { %1818 = vmatpush.msra.mxu3 %v1482_v4  ;;  %1753 = vmatpush.msrb.mxu1 %v1430_v10  ;;  %v1534_v10 = vld [vmem:[%s10764_s15 + $0x750] sm:$0xff]  ;;  %v1519_v21 = vld [vmem:[%s10764_s15 + $0x6d8] sm:$0xff] }
 0x8e3   :  { %1773 = vmatpush.msrb.mxu2 %v1449_v15  ;;  %1799 = vmatpush.msra.mxu0 %v1462_v16  ;;  %v1124_v37 = vpop.f32.mrf.mxu2  ;;  %v1501_v15 = vld [vmem:[%s10764_s15 + $0x648] sm:$0xff]  ;;  %v1520_v16 = vld [vmem:[%s10764_s15 + $0x6e0] sm:$0xff] }
 0x8e4   :  { %1819 = vmatpush.msra.mxu3 %v1481_v31  ;;  %1754 = vmatpush.msrb.mxu1 %v1429_v19  ;;  %v1170_v40 = vpop.f32.mrf.mxu3  ;;  %v1125_v42 = vadd.f32 %v1124_v37, %v871_v34  ;;  %v1552_v31 = vld [vmem:[%s10764_s15 + $0x7e0] sm:$0xff] }
 0x8e5   :  { %1774 = vmatpush.msrb.mxu2 %v1448_v22  ;;  %1800 = vmatpush.msra.mxu0 %v1461_v23  ;;  %v1104_v9 = vpop.f32.mrf.mxu1  ;;  %v1171_v46 = vadd.f32 %v1170_v40, %v873_v14  ;;  %v1500_v19 = vld [vmem:[%s10764_s15 + $0x640] sm:$0xff] }
 0x8e6   :  { %1820 = vmatpush.msra.mxu3 %v1480_v26  ;;  %1690 = vmatmul.f32.gmra.mxu2 %v1289_v24  ;;  %v1150_v12 = vpop.f32.mrf.mxu0  ;;  %v1105_v52 = vadd.f32 %v1104_v9, %v870_v3  ;;  %v1277_v55 = vmax.f32 %v1125_v42, 0.0  ;;  %v1502_v3 = vld [vmem:[%s10764_s15 + $0x650] sm:$0xff]  ;;  %v1532_v22 = vld [vmem:[%s10764_s15 + $0x740] sm:$0xff]  ;;  %v1551_v24 = vld [vmem:[%s10764_s15 + $0x7d8] sm:$0xff] }
 0x8e7   :  { %1736 = vmatmul.f32.gmra.mxu3 %v1291_v27  ;;  %1755 = vmatpush.msrb.mxu1 %v1428_v28  ;;  %v1151_v47 = vadd.f32 %v1150_v12, %v872_v13  ;;  %v1279_v18 = vmax.f32 %v1171_v46, 0.0  ;;  %v1553_v13 = vld [vmem:[%s10764_s15 + $0x7e8] sm:$0xff]  ;;  %v1499_v26 = vld [vmem:[%s10764_s15 + $0x638] sm:$0xff]  ;;  %v1518_v27 = vld [vmem:[%s10764_s15 + $0x6d0] sm:$0xff] }
 0x8e8   :  { %1775 = vmatpush.msrb.mxu2 %v1447_v29  ;;  %1801 = vmatpush.msra.mxu0 %v1460_v7  ;;  %v1292_v63 = vmax.f32 %v1105_v52, 0.0  ;;  %v1531_v28 = vld [vmem:[%s10764_s15 + $0x738] sm:$0xff]  ;;  %v1550_v29 = vld [vmem:[%s10764_s15 + $0x7d0] sm:$0xff]  ;;  %v1548_v37 = vld [vmem:[%s10764_s15 + $0x7c0] sm:$0xff] }
 0x8e9   :  { %1821 = vmatpush.msra.mxu3 %v1479_v32  ;;  %1832 = vmatpush.msra.mxu1 %v1507_v33  ;;  %v1294_v61 = vmax.f32 %v1151_v47, 0.0  ;;  %v1498_v7 = vld [vmem:[%s10764_s15 + $0x630] sm:$0xff]  ;;  %v1549_v33 = vld [vmem:[%s10764_s15 + $0x7c8] sm:$0xff]  ;;  %v1528_v40 = vld [vmem:[%s10764_s15 + $0x720] sm:$0xff] }
 0x8ea   :  { %1878 = vmatpush.msrb.mxu0 %v1539_v36  ;;  %1756 = vmatmul.f32.vlgmr.msrb.gmra.mxu1 %v1276_v30  ;;  %v1517_v30 = vld [vmem:[%s10764_s15 + $0x6c8] sm:$0xff]  ;;  %v1530_v32 = vld [vmem:[%s10764_s15 + $0x730] sm:$0xff]  ;;  %v1495_v42 = vld [vmem:[%s10764_s15 + $0x618] sm:$0xff] }
 0x8eb   :  { %1776 = vmatpush.msrb.mxu2 %v1446_v39  ;;  %1802 = vmatmul.f32.vlgmr.msra.gmra.mxu0 %v1278_v35  ;;  %v1127_v0 = vpop.f32.mrf.mxu2  ;;  %v1516_v35 = vld [vmem:[%s10764_s15 + $0x6c0] sm:$0xff]  ;;  %v1529_v36 = vld [vmem:[%s10764_s15 + $0x728] sm:$0xff]  ;;  %v1515_v39 = vld [vmem:[%s10764_s15 + $0x6b8] sm:$0xff] }
 0x8ec   :  { %1822 = vmatpush.msra.mxu3 %v1478_v6  ;;  %1833 = vmatpush.msra.mxu1 %v1506_v41  ;;  %v1173_v2 = vpop.f32.mrf.mxu3  ;;  %v1128_v4 = vadd.f32 %v1127_v0, %v871_v34  ;;  %v1497_v34 = vld [vmem:[%s10764_s15 + $0x628] sm:$0xff]  ;;  %v1547_v41 = vld [vmem:[%s10764_s15 + $0x7b8] sm:$0xff]  ;;  %v1514_v9 = vld [vmem:[%s10764_s15 + $0x6b0] sm:$0xff]  ;;  %v877_v0 = vperm.slane %v7884_v59, 7 }
 0x8ed   :  { %1879 = vmatpush.msrb.mxu0 %v1538_v44  ;;  %1777 = vmatpush.msrb.mxu2 %v1445_v8  ;;  %v1174_v11 = vadd.f32 %v1173_v2, %v873_v14  ;;  %v1496_v14 = vld [vmem:[%s10764_s15 + $0x620] sm:$0xff]  ;;  %v1193_v6 = vpop.f32.mrf.mxu1  ;;  %v874_v44 = vperm.slane %v7884_v59, 4  ;;  %v1527_v46 = vld [vmem:[%s10764_s15 + $0x718] sm:$0xff]  ;;  %v1546_v12 = vld [vmem:[%s10764_s15 + $0x7b0] sm:$0xff] }
 0x8ee   :  { %1823 = vmatpush.msra.mxu3 %v1477_v48  ;;  %1834 = vmatpush.msra.mxu1 %v1505_v50  ;;  %v1293_v23 = vmax.f32 %v1128_v4, 0.0  ;;  %v1239_v8 = vpop.f32.mrf.mxu0  ;;  %v876_v48 = vperm.slane %v7884_v59, 6  ;;  %v1494_v50 = vld [vmem:[%s10764_s15 + $0x610] sm:$0xff]  ;;  %v1545_v52 = vld [vmem:[%s10764_s15 + $0x7a8] sm:$0xff] }
 0x8ef   :  { %1880 = vmatpush.msrb.mxu0 %v1537_v45  ;;  %1778 = vmatpush.msrb.mxu2 %v1444_v51  ;;  %v1295_v25 = vmax.f32 %v1174_v11, 0.0  ;;  %v1513_v45 = vld [vmem:[%s10764_s15 + $0x6a8] sm:$0xff]  ;;  %v1526_v51 = vld [vmem:[%s10764_s15 + $0x710] sm:$0xff] }
 0x8f0   :  { %1824 = vmatpush.msra.mxu3 %v1476_v53  ;;  %1835 = vmatpush.msra.mxu1 %v1504_v54  ;;  %v1493_v53 = vld [vmem:[%s10764_s15 + $0x608] sm:$0xff]  ;;  %v1194_v54 = vadd.f32 %v1193_v6, %v874_v44  ;;  %v1510_v2 = vld [vmem:[%s10764_s15 + $0x690] sm:$0xff] }
 0x8f1   :  { %1855 = vmatpush.msra.mxu2 %v1523_v56  ;;  %1881 = vmatpush.msrb.mxu0 %v1536_v57  ;;  %v1525_v47 = vld [vmem:[%s10764_s15 + $0x708] sm:$0xff]  ;;  %v1240_v56 = vadd.f32 %v1239_v8, %v876_v48 }
 0x8f2   :  { %1901 = vmatpush.msrb.mxu3 %v1555_v49  ;;  %1779 = vmatmul.f32.vlgmr.msrb.gmra.mxu2 %v1277_v55  ;;  %v1512_v55 = vld [vmem:[%s10764_s15 + $0x6a0] sm:$0xff]  ;;  %v1509_v11 = vld [vmem:[%s10764_s15 + $0x688] sm:$0xff] }
 0x8f3   :  { %1825 = vmatmul.f32.vlgmr.msra.gmra.mxu3 %v1279_v18  ;;  %1836 = vmatpush.msra.mxu1 %v1503_v58  ;;  %v1216_v57 = vpop.f32.mrf.mxu2  ;;  %v1544_v18 = vld [vmem:[%s10764_s15 + $0x7a0] sm:$0xff]  ;;  %v875_v58 = vperm.slane %v7884_v59, 5  ;;  %v1542_v59 = vld [vmem:[%s10764_s15 + $0x790] sm:$0xff] }
 0x8f4   :  { %1856 = vmatpush.msra.mxu2 %v1522_v60  ;;  %1882 = vmatpush.msrb.mxu0 %v1535_v62  ;;  %v1492_v49 = vld [vmem:[%s10764_s15 + $0x600] sm:$0xff]  ;;  %v1262_v60 = vpop.f32.mrf.mxu3  ;;  %v1511_v62 = vld [vmem:[%s10764_s15 + $0x698] sm:$0xff] }
 0x8f5   :  { %1902 = vmatpush.msrb.mxu3 %v1554_v1  ;;  %1759 = vmatmul.f32.gmra.mxu1 %v1292_v63  ;;  %v1524_v63 = vld [vmem:[%s10764_s15 + $0x700] sm:$0xff]  ;;  %v1543_v1 = vld [vmem:[%s10764_s15 + $0x798] sm:$0xff]  ;;  %v1196_v4 = vpop.f32.mrf.mxu1 }
 0x8f6   :  { %1805 = vmatmul.f32.gmra.mxu0 %v1294_v61  ;;  %1837 = vmatpush.msra.mxu1 %v1502_v3  ;;  %v1280_v61 = vmax.f32 %v1194_v54, 0.0  ;;  %v1282_v3 = vmax.f32 %v1240_v56, 0.0 }
 0x8f7   :  { %1857 = vmatpush.msra.mxu2 %v1521_v5  ;;  %1883 = vmatpush.msrb.mxu0 %v1534_v10  ;;  %v1217_v5 = vadd.f32 %v1216_v57, %v875_v58  ;;  %v1242_v10 = vpop.f32.mrf.mxu0 }
 0x8f8   :  { %1903 = vmatpush.msrb.mxu3 %v1553_v13  ;;  %1838 = vmatpush.msra.mxu1 %v1501_v15  ;;  %v1263_v13 = vadd.f32 %v1262_v60, %v877_v0  ;;  %v1541_v15 = vld [vmem:[%s10764_s15 + $0x788] sm:$0xff] }
 0x8f9   :  { %1858 = vmatpush.msra.mxu2 %v1520_v16  ;;  %1884 = vmatpush.msrb.mxu0 %v1533_v17  ;;  %v1197_v16 = vadd.f32 %v1196_v4, %v874_v44  ;;  %v1508_v17 = vld [vmem:[%s10764_s15 + $0x680] sm:$0xff] }
 0x8fa   :  { %1904 = vmatpush.msrb.mxu3 %v1552_v31  ;;  %1839 = vmatpush.msra.mxu1 %v1500_v19  ;;  %v1243_v31 = vadd.f32 %v1242_v10, %v876_v48  ;;  %v1540_v19 = vld [vmem:[%s10764_s15 + $0x780] sm:$0xff] }
 0x8fb   :  { %1859 = vmatpush.msra.mxu2 %v1519_v21  ;;  %1885 = vmatpush.msrb.mxu0 %v1532_v22  ;;  %v1281_v21 = vmax.f32 %v1217_v5, 0.0  ;;  %v1283_v22 = vmax.f32 %v1263_v13, 0.0 }
 0x8fc   :  { %1905 = vmatpush.msrb.mxu3 %v1551_v24  ;;  %1782 = vmatmul.f32.gmra.mxu2 %v1293_v23  ;;  %v1219_v23 = vpop.f32.mrf.mxu2  ;;  %v1265_v24 = vpop.f32.mrf.mxu3 }
 0x8fd   :  { %1828 = vmatmul.f32.gmra.mxu3 %v1295_v25  ;;  %1840 = vmatpush.msra.mxu1 %v1499_v26  ;;  %v1296_v25 = vmax.f32 %v1197_v16, 0.0  ;;  %v1298_v26 = vmax.f32 %v1243_v31, 0.0 }
 0x8fe   :  { %1860 = vmatpush.msra.mxu2 %v1518_v27  ;;  %1886 = vmatpush.msrb.mxu0 %v1531_v28  ;;  %v1220_v27 = vadd.f32 %v1219_v23, %v875_v58  ;;  %v1266_v28 = vadd.f32 %v1265_v24, %v877_v0 }
 0x8ff   :  { %1906 = vmatpush.msrb.mxu3 %v1550_v29  ;;  %1841 = vmatpush.msra.mxu1 %v1498_v7 }
 0x900   :  { %1861 = vmatpush.msra.mxu2 %v1517_v30  ;;  %1887 = vmatpush.msrb.mxu0 %v1530_v32  ;;  %v1297_v29 = vmax.f32 %v1220_v27, 0.0  ;;  %v1299_v7 = vmax.f32 %v1266_v28, 0.0 }
 0x901   :  { %1907 = vmatpush.msrb.mxu3 %v1549_v33  ;;  %1842 = vmatpush.msra.mxu1 %v1497_v34 }
 0x902   :  { %1862 = vmatpush.msra.mxu2 %v1516_v35  ;;  %1888 = vmatpush.msrb.mxu0 %v1529_v36 }
 0x903   :  { %1908 = vmatpush.msrb.mxu3 %v1548_v37  ;;  %1843 = vmatpush.msra.mxu1 %v1496_v14 }
 0x904   :  { %1863 = vmatpush.msra.mxu2 %v1515_v39  ;;  %1889 = vmatpush.msrb.mxu0 %v1528_v40 }
 0x905   :  { %1909 = vmatpush.msrb.mxu3 %v1547_v41  ;;  %1844 = vmatpush.msra.mxu1 %v1495_v42 }
 0x906   :  { %1864 = vmatpush.msra.mxu2 %v1514_v9  ;;  %1890 = vmatpush.msrb.mxu0 %v1527_v46 }
 0x907   :  { %1910 = vmatpush.msrb.mxu3 %v1546_v12  ;;  %1845 = vmatpush.msra.mxu1 %v1494_v50 }
 0x908   :  { %1865 = vmatpush.msra.mxu2 %v1513_v45  ;;  %1891 = vmatpush.msrb.mxu0 %v1526_v51 }
 0x909   :  { %1911 = vmatpush.msrb.mxu3 %v1545_v52  ;;  %1846 = vmatpush.msra.mxu1 %v1493_v53 }
 0x90a   :  { %1866 = vmatpush.msra.mxu2 %v1512_v55  ;;  %1892 = vmatpush.msrb.mxu0 %v1525_v47 }
 0x90b   :  { %1912 = vmatpush.msrb.mxu3 %v1544_v18  ;;  %1847 = vmatpush.msra.mxu1 %v1492_v49 }
 0x90c   :  { %1867 = vmatpush.msra.mxu2 %v1511_v62  ;;  %1893 = vmatpush.msrb.mxu0 %v1524_v63 }
 0x90d   :  { %1913 = vmatpush.msrb.mxu3 %v1543_v1  ;;  %1848 = vmatmul.f32.vlgmr.msra.gmra.mxu1 %v1280_v61 }
 0x90e   :  { %1894 = vmatmul.f32.vlgmr.msrb.gmra.mxu0 %v1282_v3  ;;  %1868 = vmatpush.msra.mxu2 %v1510_v2 }
 0x90f   :  { %1914 = vmatpush.msrb.mxu3 %v1542_v59 }
 0x910   :  { %1869 = vmatpush.msra.mxu2 %v1509_v11 }
 0x911   :  { %1915 = vmatpush.msrb.mxu3 %v1541_v15 }
 0x912   :  { %1870 = vmatpush.msra.mxu2 %v1508_v17 }
 0x913   :  { %1916 = vmatpush.msrb.mxu3 %v1540_v19  ;;  %1871 = vmatmul.f32.vlgmr.msra.gmra.mxu2 %v1281_v21 }
 0x914   :  { %1917 = vmatmul.f32.vlgmr.msrb.gmra.mxu3 %v1283_v22 }
 0x915   :  { %1851 = vmatmul.f32.gmra.mxu1 %v1296_v25  ;;  %v6602_v25 = vld [vmem:[%s10765_s16] ss:$0 sm:$0xff] }
 0x916   :  { %1897 = vmatmul.f32.gmra.mxu0 %v1298_v26 }
 0x91b   :  { %1874 = vmatmul.f32.gmra.mxu2 %v1297_v29 }
 0x91c   :  { %1920 = vmatmul.f32.gmra.mxu3 %v1299_v7 }
 0x93f   :  { %v1573_v30 = vpop.f32.mrf.mxu1 }
 0x940   :  { %v1619_v32 = vpop.f32.mrf.mxu0 }
 0x948   :  { %v1576_v35 = vpop.f32.mrf.mxu1 }
 0x949   :  { %v1622_v36 = vpop.f32.mrf.mxu0 }
 0x94b   :  { %v1596_v33 = vpop.f32.mrf.mxu2 }
 0x94c   :  { %v1642_v34 = vpop.f32.mrf.mxu3  ;;  %v1597_v40 = vadd.f32 %v1596_v33, %v1573_v30 }
 0x94e   :  { %v1620_v44 = vadd.f32 %v1619_v32, %v1597_v40 }
 0x950   :  { %v1643_v9 = vadd.f32 %v1642_v34, %v1620_v44 }
 0x952   :  { %v1665_v39 = vpop.f32.mrf.mxu1 }
 0x953   :  { %v1711_v6 = vpop.f32.mrf.mxu0  ;;  %v1666_v50 = vadd.f32 %v1665_v39, %v1643_v9 }
 0x955   :  { %v1599_v37 = vpop.f32.mrf.mxu2 }
 0x956   :  { %v1645_v14 = vpop.f32.mrf.mxu3  ;;  %v1600_v46 = vadd.f32 %v1599_v37, %v1576_v35 }
 0x958   :  { %v1623_v45 = vadd.f32 %v1622_v36, %v1600_v46  ;;  %v5720_v46 = vld [vmem:[%s10756_s7 + $0x38] sm:$0xff] }
 0x959   :  { %2018 = vmatpush.msrb.mxu1 %v5720_v46 }
 0x95a   :  { %v1646_v54 = vadd.f32 %v1645_v14, %v1623_v45 }
 0x95c   :  { %v1668_v8 = vpop.f32.mrf.mxu1 }
 0x95d   :  { %v1714_v48 = vpop.f32.mrf.mxu0  ;;  %v1669_v47 = vadd.f32 %v1668_v8, %v1646_v54 }
 0x95f   :  { %v1688_v41 = vpop.f32.mrf.mxu2 }
 0x960   :  { %v1734_v42 = vpop.f32.mrf.mxu3  ;;  %v1689_v52 = vadd.f32 %v1688_v41, %v1666_v50  ;;  %v5717_v50 = vld [vmem:[%s10756_s7 + $0x20] sm:$0xff] }
 0x962   :  { %v1712_v55 = vadd.f32 %v1711_v6, %v1689_v52 }
 0x964   :  { %v1735_v18 = vadd.f32 %v1734_v42, %v1712_v55 }
 0x967   :  { %v1757_v53 = vpop.f32.mrf.mxu1 }
 0x968   :  { %v1803_v56 = vpop.f32.mrf.mxu0  ;;  %v1758_v62 = vadd.f32 %v1757_v53, %v1735_v18 }
 0x969   :  { %v1691_v12 = vpop.f32.mrf.mxu2 }
 0x96a   :  { %v1737_v51 = vpop.f32.mrf.mxu3  ;;  %v1692_v49 = vadd.f32 %v1691_v12, %v1669_v47  ;;  %v5718_v12 = vld [vmem:[%s10756_s7 + $0x28] sm:$0xff] }
 0x96c   :  { %v1715_v63 = vadd.f32 %v1714_v48, %v1692_v49  ;;  %v5719_v48 = vld [vmem:[%s10756_s7 + $0x30] sm:$0xff] }
 0x96d   :  { %2019 = vmatpush.msrb.mxu1 %v5719_v48 }
 0x96e   :  { %v1738_v1 = vadd.f32 %v1737_v51, %v1715_v63  ;;  %v6603_v63 = vld [vmem:[%s10754_s5 + $0x1] ss:$0 sm:$0xff] }
 0x96f   :  { %2020 = vmatpush.msrb.mxu1 %v5718_v12 }
 0x971   :  { %2021 = vmatpush.msrb.mxu1 %v5717_v50 }
 0x972   :  { %v1760_v60 = vpop.f32.mrf.mxu1 }
 0x973   :  { %v1806_v61 = vpop.f32.mrf.mxu0  ;;  %v1761_v5 = vadd.f32 %v1760_v60, %v1738_v1 }
 0x975   :  { %v1780_v57 = vpop.f32.mrf.mxu2 }
 0x976   :  { %v1826_v58 = vpop.f32.mrf.mxu3  ;;  %v1781_v0 = vadd.f32 %v1780_v57, %v1758_v62 }
 0x978   :  { %v1804_v3 = vadd.f32 %v1803_v56, %v1781_v0 }
 0x97a   :  { %v1827_v10 = vadd.f32 %v1826_v58, %v1804_v3 }
 0x97f   :  { %v1783_v2 = vpop.f32.mrf.mxu2 }
 0x980   :  { %v1829_v4 = vpop.f32.mrf.mxu3  ;;  %v1784_v11 = vadd.f32 %v1783_v2, %v1761_v5  ;;  %v6604_v2 = vld [vmem:[%s10755_s6 + $0x1] ss:$0 sm:$0xff] }
 0x982   :  { %v1807_v17 = vadd.f32 %v1806_v61, %v1784_v11 }
 0x984   :  { %v1830_v23 = vadd.f32 %v1829_v4, %v1807_v17  ;;  %v6605_v17 = vld [vmem:[%s10757_s8 + $0x1] ss:$0 sm:$0xff] }
 0x98a   :  { %v1849_v59 = vpop.f32.mrf.mxu1 }
 0x98b   :  { %v1850_v13 = vadd.f32 %v1849_v59, %v1827_v10  ;;  %v1895_v15 = vpop.f32.mrf.mxu0 }
 0x992   :  { %v1852_v22 = vpop.f32.mrf.mxu1 }
 0x993   :  { %v1853_v26 = vadd.f32 %v1852_v22, %v1830_v23  ;;  %v1898_v30 = vpop.f32.mrf.mxu0 }
 0x996   :  { %v1872_v16 = vpop.f32.mrf.mxu2 }
 0x997   :  { %v1873_v31 = vadd.f32 %v1872_v16, %v1850_v13  ;;  %v1918_v19 = vpop.f32.mrf.mxu3 }
 0x999   :  { %v1896_v21 = vadd.f32 %v1895_v15, %v1873_v31 }
 0x99b   :  { %v1919_v24 = vadd.f32 %v1918_v19, %v1896_v21 }
 0x99d   :  { %v1924_v27 = vadd.f32 %v1919_v24, %v7056_v38 }
 0x99e   :  { %v1875_v28 = vpop.f32.mrf.mxu2 }
 0x99f   :  { %v1876_v29 = vadd.f32 %v1875_v28, %v1853_v26  ;;  %v8179_v7 = vadd.f32 %v6602_v25, %v1924_v27  ;;  %v1921_v34 = vpop.f32.mrf.mxu3  ;;  %v8228_v27 = vld [vmem:[%s10801_s0] sm:$0xff] }
 0x9a1   :  { %v1899_v32 = vadd.f32 %v1898_v30, %v1876_v29  ;;  %v1936_v33 = vsel %vm108_vm1, %v8179_v7, 0.0 }
 0x9a2   :  { %1937 = vadd.xlane.f32.xlu1 %v1936_v33  ;;  %v8235_v33 = vld [vmem:[%s10801_s0 + $0x8] sm:$0xff] }
 0x9a3   :  { %v1922_v35 = vadd.f32 %v1921_v34, %v1899_v32 }
 0x9a5   :  { %v1925_v36 = vadd.f32 %v1922_v35, %v7061_v43 }
 0x9a7   :  { %v8184_v37 = vadd.f32 %v6602_v25, %v1925_v36 }
 0x9a9   :  { %v1939_v14 = vsel %vm108_vm1, %v8184_v37, 0.0 }
 0x9aa   :  { %1940 = vadd.xlane.f32.xlu1 %v1939_v14 }
 0xa15   :  { %v1938_v38 = vpop.xlane.xlu1 %1937 }
 0xa16   :  { %v1942_v39 = vmul.f32 %v1938_v38, %v6911_v20 }
 0xa18   :  { %v1944_v40 = vsub.f32 %v8179_v7, %v1942_v39 }
 0xa1a   :  { %v1946_v6 = vmul.f32 %v1944_v40, %v1944_v40 }
 0xa1c   :  { %v1948_v41 = vsel %vm108_vm1, %v1946_v6, 0.0 }
 0xa1d   :  { %1949 = vadd.xlane.f32.xlu1 %v1948_v41  ;;  %v1941_v42 = vpop.xlane.xlu1 %1940 }
 0xa1e   :  { %v1943_v44 = vmul.f32 %v1941_v42, %v6911_v20 }
 0xa20   :  { %v1945_v43 = vsub.f32 %v8184_v37, %v1943_v44 }
 0xa22   :  { %v1947_v8 = vmul.f32 %v1945_v43, %v1945_v43 }
 0xa24   :  { %v1951_v9 = vsel %vm108_vm1, %v1947_v8, 0.0 }
 0xa25   :  { %1952 = vadd.xlane.f32.xlu1 %v1951_v9 }
 0xa90   :  { %v1950_v45 = vpop.xlane.xlu1 %1949 }
 0xa91   :  { %v1954_v51 = vmul.f32 %v1950_v45, %v6911_v20  ;;  %v5724_v45 = vld [vmem:[%s10758_s9 + $0x20] sm:$0xff] }
 0xa93   :  { %v1956_v52 = vadd.f32 1e-05, %v1954_v51 }
 0xa95   :  { %6660 = vrsqrt.f32 %v1956_v52  ;;  %vm1964_vm3 = vweird.f32 %v1956_v52 }
 0xa98   :  { %v1953_v53 = vpop.xlane.xlu1 %1952 }
 0xa99   :  { %v1955_v54 = vmul.f32 %v1953_v53, %v6911_v20 }
 0xa9b   :  { %v6661_v55 = vpop.eup %6660  ;;  %v1957_v47 = vadd.f32 1e-05, %v1955_v54 }
 0xa9c   :  { %v1959_v56 = vmul.f32 %v6661_v55, %v1956_v52  ;;  %vm1965_vm2 = vweird.f32 %v6661_v55 }
 0xa9d   :  { %6662 = vrsqrt.f32 %v1957_v47  ;;  %vm1966_vm4 = vmor %vm1964_vm3, %vm1965_vm2  ;;  %vm1974_vm6 = vweird.f32 %v1957_v47 }
 0xa9e   :  { %v1960_v57 = vmul.f32 %v6661_v55, %v1959_v56 }
 0xaa0   :  { %v1961_v18 = vmul.f32 0.5, %v1960_v57 }
 0xaa2   :  { %v1962_v49 = vsub.f32 1.5, %v1961_v18 }
 0xaa3   :  { %v6663_v58 = vpop.eup %6662 }
 0xaa4   :  { %v1963_v60 = vmul.f32 %v6661_v55, %v1962_v49  ;;  %v1969_v62 = vmul.f32 %v6663_v58, %v1957_v47  ;;  %vm1975_vm5 = vweird.f32 %v6663_v58 }
 0xaa5   :  { %vm1976_vm7 = vmor %vm1974_vm6, %vm1975_vm5 }
 0xaa6   :  { %v1967_v0 = vsel %vm1966_vm4, %v6661_v55, %v1963_v60  ;;  %v1970_v1 = vmul.f32 %v6663_v58, %v1969_v62 }
 0xaa7   :  { %v1978_v61 = vmul.f32 %v1967_v0, %v1944_v40 }
 0xaa8   :  { %v1971_v3 = vmul.f32 0.5, %v1970_v1 }
 0xaa9   :  { %v1983_v4 = vmul.f32 %v6603_v63, %v1978_v61 }
 0xaaa   :  { %v1972_v59 = vsub.f32 1.5, %v1971_v3 }
 0xaab   :  { %v1988_v5 = vadd.f32 %v6604_v2, %v1983_v4 }
 0xaac   :  { %v1973_v10 = vmul.f32 %v6663_v58, %v1972_v59 }
 0xaad   :  { %5722 = vmatmul.msk.f32.vlgmr.msrb.gmra.mxu1 %vm108_vm1, %v1988_v5 }
 0xaae   :  { %v1977_v11 = vsel %vm1976_vm7, %v6663_v58, %v1973_v10 }
 0xaaf   :  { %v1979_v13 = vmul.f32 %v1977_v11, %v1945_v43 }
 0xab1   :  { %v1984_v15 = vmul.f32 %v6603_v63, %v1979_v13 }
 0xab3   :  { %v1989_v16 = vadd.f32 %v6604_v2, %v1984_v15 }
 0xab5   :  { %5723 = vmatmul.msk.f32.gmra.mxu1 %vm108_vm1, %v1989_v16 }
 0xb2a   :  { %v2023_v31 = vpop.f32.mrf.mxu1 }
 0xb2b   :  { %v2024_v19 = vadd.f32 %v6605_v17, %v2023_v31 }
 0xb2d   :  { %2036 = vrot.lane.b32.xlu0 %v2024_v19, %s10791_s28 }
 0xb32   :  { %v2026_v21 = vpop.f32.mrf.mxu1 }
 0xb33   :  { %v2027_v22 = vadd.f32 %v6605_v17, %v2026_v21 }
 0xb35   :  { %2038 = vrot.lane.b32.xlu2 %v2027_v22, %s10791_s28  ;;  %v8239_v36 = vpack.i.bf16 %v2024_v19, %v2027_v22 }
 0xb8f   :  { %v2039_v23 = vpop.permute.xlu2 %2038 }
 0xb90   :  { %5728 = vmatpush.xpose.msk.msrb.mxu2 %vm217_vm9, %v2039_v23 }
 0xb9f   :  { %v2037_v24 = vpop.permute.xlu0 %2036 }
 0xba0   :  { %5729 = vmatpush.xpose.msk.msrb.mxu2 %vm217_vm9, %v2037_v24 }
 0xba3   :  { %5730 = vmatmul.msk.f32.vlgmr.msrb.gmra.mxu2 %vm217_vm9, %v2024_v19 }
 0xbab   :  { %5731 = vmatmul.msk.f32.gmra.mxu2 %vm217_vm9, %v2027_v22 }
 0xc26   :  { %v2065_v25 = vpop.f32.mrf.mxu2 }
 0xc27   :  { %v2071_v26 = vmul.f32 0.35355338, %v2065_v25 }
 0xc29   :  { %v2073_v28 = vadd.f32 %v8228_v27, %v2071_v26 }
 0xc2b   :  { %v2075_v29 = vsel %vm74_vm0, %v2073_v28, -inf }
 0xc2c   :  { %2076 = vmax.xlane.f32.xlu1 %v2075_v29 }
 0xc2e   :  { %v2068_v30 = vpop.f32.mrf.mxu2 }
 0xc2f   :  { %v2072_v32 = vmul.f32 0.35355338, %v2068_v30 }
 0xc31   :  { %v2074_v34 = vadd.f32 %v8235_v33, %v2072_v32 }
 0xc33   :  { %v2078_v35 = vsel %vm74_vm0, %v2074_v34, -inf }
 0xc34   :  { %2079 = vmax.xlane.f32.xlu1 %v2078_v35 }
 0xc4d   :  { %6556 = vrot.lane.b32.xlu1 %v8239_v36, %s10790_s21  ;;  %s10813_s21 = sld [smem:[#allocation9_spill]] }
 0xc55   :  { %2138 = vrot.lane.b32.xlu1 %v2027_v22, %s10788_s1 }
 0xc5d   :  { %2136 = vrot.lane.b32.xlu1 %v2024_v19, %s10788_s1  ;;  %s5638_s1 = sshll.u32 %s10813_s21, 4  ;;  %s5639_s1 = int_to_ptr.hbm [resolvable:$true] %s5638_s1 }
 0xc65   :  { %2134 = vrot.lane.b32.xlu1 %v2027_v22, %s10786_s22 }
 0xc6d   :  { %2294 = vrot.lane.b32.xlu1 %v2024_v19, %s10784_s2 }
 0xc75   :  { %2290 = vrot.lane.b32.xlu1 %v2024_v19, %s10802_s24 }
 0xc7d   :  { %2425 = vrot.lane.b32.xlu1 %v2024_v19, %s10803_s25 }
 0xc85   :  { %2423 = vrot.lane.b32.xlu1 %v2027_v22, %s10804_s30 }
 0xc9f   :  { %v2077_v14 = vpop.xlane.xlu1 %2076 }
 0xca0   :  { %v2081_v38 = vsub.f32 %v2073_v28, %v2077_v14 }
 0xca2   :  { %v2083_v39 = vmul.f32 1.442695, %v2081_v38 }
 0xca4   :  { %6664 = vpow2.f32 %v2083_v39 }
 0xca7   :  { %v2080_v40 = vpop.xlane.xlu1 %2079 }
 0xca8   :  { %v2082_v6 = vsub.f32 %v2074_v34, %v2080_v40 }
 0xcaa   :  { %v6665_v41 = vpop.eup %6664  ;;  %v2085_v42 = vmul.f32 1.442695, %v2082_v6 }
 0xcab   :  { %v2087_v44 = vsel %vm74_vm0, %v6665_v41, 0.0 }
 0xcac   :  { %6666 = vpow2.f32 %v2085_v42  ;;  %2088 = vadd.xlane.f32.xlu0 %v2087_v44 }
 0xcb2   :  { %v6667_v43 = vpop.eup %6666 }
 0xcb3   :  { %v2090_v8 = vsel %vm74_vm0, %v6667_v43, 0.0 }
 0xcb4   :  { %2091 = vadd.xlane.f32.xlu2 %v2090_v8 }
 0xcbf   :  { %v6557_v9 = vpop.permute.xlu1 %6556 }
 0xcc0   :  { %v6558_v46 = vunpack.i.l.bf16 %v6557_v9  ;;  %2132 = vrot.lane.b32.xlu0 %v2024_v19, %s10786_s22  ;;  %v6559_v48 = vunpack.i.h.bf16 %v6557_v9  ;;  %s10811_s22 = smov 120  }
 0xcc2   :  { %2123 = vmatpush.msra.mxu0 %v6558_v46 }
 0xcc4   :  { %2124 = vmatpush.msra.mxu0 %v6559_v48 }
 0xcc6   :  { %2282 = vmatpush.msrb.mxu0 %v5724_v45 }
 0xcc7   :  { %v2139_v12 = vpop.permute.xlu1 %2138 }
 0xcc8   :  { %2427 = vrot.lane.b32.xlu0 %v2027_v22, %s10803_s25  ;;  %5734 = vmatpush.xpose.msk.msra.mxu3 %vm217_vm9, %v2139_v12 }
 0xccc   :  { %2296 = vrot.lane.b32.xlu2 %v2027_v22, %s10784_s2 }
 0xccf   :  { %v2137_v50 = vpop.permute.xlu1 %2136 }
 0xcd0   :  { %2421 = vrot.lane.b32.xlu0 %v2024_v19, %s10804_s30  ;;  %5735 = vmatpush.xpose.msk.msra.mxu3 %vm217_vm9, %v2137_v50 }
 0xcd4   :  { %2292 = vrot.lane.b32.xlu2 %v2027_v22, %s10802_s24 }
 0xcd7   :  { %v2135_v52 = vpop.permute.xlu1 %2134 }
 0xcdf   :  { %v2295_v47 = vpop.permute.xlu1 %2294 }
 0xce7   :  { %v2291_v58 = vpop.permute.xlu1 %2290 }
 0xcef   :  { %v2426_v62 = vpop.permute.xlu1 %2425 }
 0xcf7   :  { %v2424_v5 = vpop.permute.xlu1 %2423 }
 0xd1f   :  { %v2089_v51 = vpop.xlane.xlu0 %2088 }
 0xd20   :  { %6668 = vrcp.f32 %v2089_v51 }
 0xd26   :  { %v6669_v53 = vpop.eup %6668 }
 0xd27   :  { %v2095_v54 = vmul.f32 %v6669_v53, %v6665_v41  ;;  %v2092_v55 = vpop.xlane.xlu2 %2091 }
 0xd28   :  { %6670 = vrcp.f32 %v2092_v55 }
 0xd29   :  { %5732 = vmatmul.msk.f32.vlgmr.msra.gmra.mxu0 %vm74_vm0, %v2095_v54 }
 0xd2e   :  { %v6671_v56 = vpop.eup %6670 }
 0xd2f   :  { %v2297_v57 = vpop.permute.xlu2 %2296  ;;  %v2096_v18 = vmul.f32 %v6671_v56, %v6667_v43 }
 0xd30   :  { %5744 = vmatpush.xpose.msk.msrb.mxu3 %vm217_vm9, %v2297_v57 }
 0xd31   :  { %5733 = vmatmul.msk.f32.gmra.mxu0 %vm74_vm0, %v2096_v18 }
 0xd32   :  { %v2133_v49 = vpop.permute.xlu0 %2132 }
 0xd33   :  { %5736 = vmatmul.msk.f32.vlgmr.msra.gmra.mxu3 %vm217_vm9, %v2133_v49 }
 0xd34   :  { %5745 = vmatpush.xpose.msk.msrb.mxu3 %vm217_vm9, %v2295_v47 }
 0xd37   :  { %v2293_v63 = vpop.permute.xlu2 %2292 }
 0xd3a   :  { %v2428_v60 = vpop.permute.xlu0 %2427 }
 0xd3b   :  { %5737 = vmatmul.msk.f32.gmra.mxu3 %vm217_vm9, %v2135_v52  ;;  %5752 = vmatpush.xpose.msk.msra.mxu0 %vm217_vm9, %v2428_v60 }
 0xd3f   :  { %5753 = vmatpush.xpose.msk.msra.mxu0 %vm217_vm9, %v2426_v62 }
 0xd42   :  { %v2422_v61 = vpop.permute.xlu0 %2421 }
 0xd43   :  { %5746 = vmatmul.msk.f32.vlgmr.msrb.gmra.mxu3 %vm217_vm9, %v2291_v58 }
 0xd4b   :  { %5747 = vmatmul.msk.f32.gmra.mxu3 %vm217_vm9, %v2293_v63 }
 0xda6   :  { %v2126_v0 = vpop.f32.mrf.mxu0 }
 0xda7   :  { %5742 = vmatmul.msk.f32.vlgmr.msrb.gmra.mxu0 %vm217_vm9, %v2126_v0 }
 0xdae   :  { %v2129_v1 = vpop.f32.mrf.mxu0 }
 0xdaf   :  { %5743 = vmatmul.msk.f32.gmra.mxu0 %vm217_vm9, %v2129_v1 }
 0xdb6   :  { %v2165_v2 = vpop.f32.mrf.mxu3 }
 0xdb7   :  { %v2171_v3 = vmul.f32 0.35355338, %v2165_v2  ;;  %5754 = vmatmul.msk.f32.vlgmr.msra.gmra.mxu0 %vm217_vm9, %v2422_v61 }
 0xdb9   :  { %v2173_v4 = vadd.f32 %v8228_v27, %v2171_v3 }
 0xdbb   :  { %v2175_v59 = vsel %vm74_vm0, %v2173_v4, -inf }
 0xdbc   :  { %2176 = vmax.xlane.f32.xlu2 %v2175_v59 }
 0xdbe   :  { %v2168_v10 = vpop.f32.mrf.mxu3 }
 0xdbf   :  { %v2172_v11 = vmul.f32 0.35355338, %v2168_v10  ;;  %5755 = vmatmul.msk.f32.gmra.mxu0 %vm217_vm9, %v2424_v5 }
 0xdc1   :  { %v2174_v13 = vadd.f32 %v8235_v33, %v2172_v11 }
 0xdc3   :  { %v2178_v15 = vsel %vm74_vm0, %v2174_v13, -inf }
 0xdc4   :  { %2179 = vmax.xlane.f32.xlu0 %v2178_v15 }
 0xdc6   :  { %v2323_v16 = vpop.f32.mrf.mxu3 }
 0xdc7   :  { %v2329_v17 = vmul.f32 0.35355338, %v2323_v16 }
 0xdc9   :  { %v2331_v31 = vadd.f32 %v8228_v27, %v2329_v17 }
 0xdcb   :  { %v2333_v19 = vsel %vm74_vm0, %v2331_v31, -inf }
 0xdcc   :  { %2334 = vmax.xlane.f32.xlu1 %v2333_v19 }
 0xdce   :  { %v2326_v21 = vpop.f32.mrf.mxu3 }
 0xdcf   :  { %v2330_v22 = vmul.f32 0.35355338, %v2326_v21 }
 0xdd1   :  { %v2332_v23 = vadd.f32 %v8235_v33, %v2330_v22 }
 0xdd3   :  { %v2336_v24 = vsel %vm74_vm0, %v2332_v23, -inf }
 0xdd4   :  { %2337 = vmax.xlane.f32.xlu0 %v2336_v24 }
 0xde8   :  { %6561 = vrot.lane.b32.xlu0 %v8239_v36, %s10805_s26 }
 0xe24   :  { %v8286_v25 = vpop.f32.mrf.mxu0 }
 0xe2c   :  { %v8288_v26 = vpop.f32.mrf.mxu0 }
 0xe2f   :  { %v2177_v28 = vpop.xlane.xlu2 %2176 }
 0xe30   :  { %v2181_v29 = vsub.f32 %v2173_v4, %v2177_v28 }
 0xe32   :  { %v2183_v30 = vmul.f32 1.442695, %v2181_v29 }
 0xe34   :  { %6672 = vpow2.f32 %v2183_v30  ;;  %v2454_v32 = vpop.f32.mrf.mxu0 }
 0xe35   :  { %v2460_v34 = vmul.f32 0.35355338, %v2454_v32 }
 0xe37   :  { %v2180_v35 = vpop.xlane.xlu0 %2179  ;;  %v2462_v14 = vadd.f32 %v8228_v27, %v2460_v34 }
 0xe38   :  { %v2182_v38 = vsub.f32 %v2174_v13, %v2180_v35 }
 0xe39   :  { %v2464_v39 = vsel %vm74_vm0, %v2462_v14, -inf }
 0xe3a   :  { %v6673_v40 = vpop.eup %6672  ;;  %2465 = vmax.xlane.f32.xlu2 %v2464_v39  ;;  %v2185_v41 = vmul.f32 1.442695, %v2182_v38 }
 0xe3b   :  { %v2187_v6 = vsel %vm74_vm0, %v6673_v40, 0.0 }
 0xe3c   :  { %2188 = vadd.xlane.f32.xlu1 %v2187_v6  ;;  %v2457_v42 = vpop.f32.mrf.mxu0  ;;  %6674 = vpow2.f32 %v2185_v41 }
 0xe3d   :  { %v2461_v44 = vmul.f32 0.35355338, %v2457_v42  ;;  %v5727_v42 = vld [vmem:[%s10758_s9 + $0x38] sm:$0xff] }
 0xe3f   :  { %v2335_v43 = vpop.xlane.xlu1 %2334  ;;  %v2463_v8 = vadd.f32 %v8235_v33, %v2461_v44 }
 0xe40   :  { %v2339_v9 = vsub.f32 %v2331_v31, %v2335_v43 }
 0xe41   :  { %v2467_v46 = vsel %vm74_vm0, %v2463_v8, -inf }
 0xe42   :  { %v2341_v48 = vmul.f32 1.442695, %v2339_v9  ;;  %2468 = vmax.xlane.f32.xlu2 %v2467_v46  ;;  %v6675_v27 = vpop.eup %6674 }
 0xe43   :  { %v2190_v45 = vsel %vm74_vm0, %v6675_v27, 0.0 }
 0xe44   :  { %6676 = vpow2.f32 %v2341_v48 }
 0xe47   :  { %v2338_v12 = vpop.xlane.xlu0 %2337 }
 0xe48   :  { %v2340_v50 = vsub.f32 %v2332_v23, %v2338_v12  ;;  %v5725_v23 = vld [vmem:[%s10758_s9 + $0x28] sm:$0xff] }
 0xe49   :  { %2253 = vmatpush.msra.mxu2 %v5725_v23 }
 0xe4a   :  { %v6677_v51 = vpop.eup %6676  ;;  %v2343_v52 = vmul.f32 1.442695, %v2340_v50  ;;  %2191 = vadd.xlane.f32.xlu2 %v2190_v45  ;;  %v6606_v45 = vld [vmem:[%s10759_s10 + $0x1] ss:$0 sm:$0xff] }
 0xe4b   :  { %v2345_v53 = vsel %vm74_vm0, %v6677_v51, 0.0 }
 0xe4c   :  { %6678 = vpow2.f32 %v2343_v52  ;;  %2346 = vadd.xlane.f32.xlu1 %v2345_v53 }
 0xe52   :  { %v6679_v33 = vpop.eup %6678 }
 0xe53   :  { %v2348_v54 = vsel %vm74_vm0, %v6679_v33, 0.0 }
 0xe54   :  { %2349 = vadd.xlane.f32.xlu0 %v2348_v54 }
 0xe5a   :  { %v6562_v55 = vpop.permute.xlu0 %6561 }
 0xe5b   :  { %v6563_v47 = vunpack.i.l.bf16 %v6562_v55  ;;  %v6564_v56 = vunpack.i.h.bf16 %v6562_v55 }
 0xe5d   :  { %2223 = vmatpush.msra.mxu1 %v6563_v47 }
 0xe5f   :  { %2224 = vmatpush.msra.mxu1 %v6564_v56 }
 0xe65   :  { %6566 = vrot.lane.b32.xlu1 %v8239_v36, %s10806_s29 }
 0xead   :  { %v2466_v57 = vpop.xlane.xlu2 %2465 }
 0xeae   :  { %v2470_v18 = vsub.f32 %v2462_v14, %v2466_v57  ;;  %v5726_v14 = vld [vmem:[%s10758_s9 + $0x30] sm:$0xff] }
 0xeaf   :  { %v2189_v49 = vpop.xlane.xlu1 %2188  ;;  %2411 = vmatpush.msrb.mxu2 %v5726_v14 }
 0xeb0   :  { %v2472_v58 = vmul.f32 1.442695, %v2470_v18  ;;  %6680 = vrcp.f32 %v2189_v49 }
 0xeb2   :  { %6682 = vpow2.f32 %v2472_v58 }
 0xeb5   :  { %v2469_v60 = vpop.xlane.xlu2 %2468 }
 0xeb6   :  { %v6681_v62 = vpop.eup %6680  ;;  %v2471_v63 = vsub.f32 %v2463_v8, %v2469_v60 }
 0xeb7   :  { %v2195_v0 = vmul.f32 %v6681_v62, %v6673_v40 }
 0xeb8   :  { %v6683_v1 = vpop.eup %6682  ;;  %v2474_v61 = vmul.f32 1.442695, %v2471_v63 }
 0xeb9   :  { %5738 = vmatmul.msk.f32.vlgmr.msra.gmra.mxu1 %vm74_vm0, %v2195_v0  ;;  %v2476_v2 = vsel %vm74_vm0, %v6683_v1, 0.0 }
 0xeba   :  { %6684 = vpow2.f32 %v2474_v61  ;;  %2477 = vadd.xlane.f32.xlu2 %v2476_v2  ;;  %v5811_v61 = vld [vmem:[%s10762_s13 + $0x380] sm:$0xff]  ;;  %v5812_v2 = vld [vmem:[%s10762_s13 + $0x388] sm:$0xff] }
 0xebb   :  { %2762 = vmatpush.msrb.mxu0 %v5812_v2  ;;  %v5803_v2 = vld [vmem:[%s10762_s13 + $0x340] sm:$0xff] }
 0xebd   :  { %v2192_v3 = vpop.xlane.xlu2 %2191 }
 0xebe   :  { %6686 = vrcp.f32 %v2192_v3  ;;  %v5813_v3 = vld [vmem:[%s10762_s13 + $0x390] sm:$0xff] }
 0xebf   :  { %v2347_v11 = vpop.xlane.xlu1 %2346 }
 0xec0   :  { %v6685_v4 = vpop.eup %6684  ;;  %6688 = vrcp.f32 %v2347_v11  ;;  %v5798_v11 = vld [vmem:[%s10762_s13 + $0x318] sm:$0xff] }
 0xec1   :  { %v2479_v59 = vsel %vm74_vm0, %v6685_v4, 0.0 }
 0xec2   :  { %2480 = vadd.xlane.f32.xlu1 %v2479_v59  ;;  %v5795_v59 = vld [vmem:[%s10762_s13 + $0x300] sm:$0xff] }
 0xec4   :  { %v6687_v5 = vpop.eup %6686 }
 0xec5   :  { %v2196_v10 = vmul.f32 %v6687_v5, %v6675_v27  ;;  %v5796_v5 = vld [vmem:[%s10762_s13 + $0x308] sm:$0xff] }
 0xec6   :  { %v6689_v16 = vpop.eup %6688  ;;  %2763 = vmatpush.msrb.mxu0 %v5796_v5  ;;  %v5806_v5 = vld [vmem:[%s10762_s13 + $0x358] sm:$0xff] }
 0xec7   :  { %5739 = vmatmul.msk.f32.gmra.mxu1 %vm74_vm0, %v2196_v10  ;;  %v2350_v13 = vpop.xlane.xlu0 %2349  ;;  %v2353_v19 = vmul.f32 %v6689_v16, %v6677_v51  ;;  %v5797_v10 = vld [vmem:[%s10762_s13 + $0x310] sm:$0xff] }
 0xec8   :  { %6690 = vrcp.f32 %v2350_v13  ;;  %v5779_v13 = vld [vmem:[%s10762_s13 + $0x280] sm:$0xff]  ;;  %v5781_v16 = vld [vmem:[%s10762_s13 + $0x290] sm:$0xff] }
 0xece   :  { %v6691_v21 = vpop.eup %6690 }
 0xecf   :  { %v2354_v22 = vmul.f32 %v6691_v21, %v6679_v33  ;;  %v5765_v21 = vld [vmem:[%s10762_s13 + $0x210] sm:$0xff] }
 0xed2   :  { %6571 = vrot.lane.b32.xlu2 %v8239_v36, %s10807_s4 }
 0xed7   :  { %v6567_v15 = vpop.permute.xlu1 %6566 }
 0xed8   :  { %v6568_v17 = vunpack.i.l.bf16 %v6567_v15  ;;  %v6569_v31 = vunpack.i.h.bf16 %v6567_v15  ;;  %v5780_v15 = vld [vmem:[%s10762_s13 + $0x288] sm:$0xff] }
 0xed9   :  { %2764 = vmatpush.msrb.mxu0 %v5780_v15  ;;  %v5790_v15 = vld [vmem:[%s10762_s13 + $0x2d8] sm:$0xff] }
 0xeda   :  { %2381 = vmatpush.msrb.mxu1 %v6568_v17  ;;  %v5782_v17 = vld [vmem:[%s10762_s13 + $0x298] sm:$0xff] }
 0xedc   :  { %2382 = vmatpush.msrb.mxu1 %v6569_v31  ;;  %v5763_v31 = vld [vmem:[%s10762_s13 + $0x200] sm:$0xff] }
 0xedd   :  { %5748 = vmatmul.msk.f32.vlgmr.msrb.gmra.mxu1 %vm74_vm0, %v2353_v19  ;;  %v5764_v19 = vld [vmem:[%s10762_s13 + $0x208] sm:$0xff] }
 0xede   :  { %2542 = vmatpush.msra.mxu1 %v5727_v42  ;;  %2765 = vmatpush.msrb.mxu0 %v5764_v19  ;;  %v5785_v42 = vld [vmem:[%s10762_s13 + $0x2b0] sm:$0xff] }
 0xedf   :  { %v5773_v19 = vld [vmem:[%s10762_s13 + $0x250] sm:$0xff] }
 0xee5   :  { %5749 = vmatmul.msk.f32.gmra.mxu1 %vm74_vm0, %v2354_v22  ;;  %v5766_v22 = vld [vmem:[%s10762_s13 + $0x218] sm:$0xff] }
 0xf2d   :  { %v2478_v36 = vpop.xlane.xlu2 %2477 }
 0xf2e   :  { %6692 = vrcp.f32 %v2478_v36 }
 0xf34   :  { %v6693_v29 = vpop.eup %6692 }
 0xf35   :  { %v2481_v24 = vpop.xlane.xlu1 %2480  ;;  %v6572_v28 = vpop.permute.xlu2 %6571  ;;  %v2484_v35 = vmul.f32 %v6693_v29, %v6683_v1  ;;  %v5816_v29 = vld [vmem:[%s10762_s13 + $0x3a8] sm:$0xff] }
 0xf36   :  { %v6573_v30 = vunpack.i.l.bf16 %v6572_v28  ;;  %v2226_v32 = vpop.f32.mrf.mxu1  ;;  %6694 = vrcp.f32 %v2481_v24  ;;  %v6574_v34 = vunpack.i.h.bf16 %v6572_v28  ;;  %v5815_v28 = vld [vmem:[%s10762_s13 + $0x3a0] sm:$0xff]  ;;  %2854 = vmatpush.msra.mxu0 %v5816_v29  ;;  %v5808_v29 = vld [vmem:[%s10762_s13 + $0x368] sm:$0xff] }
 0xf37   :  { %5740 = vmatmul.msk.f32.vlgmr.msra.gmra.mxu2 %vm217_vm9, %v2226_v32  ;;  %v5818_v32 = vld [vmem:[%s10762_s13 + $0x3b8] sm:$0xff] }
 0xf38   :  { %2512 = vmatpush.msra.mxu3 %v6573_v30  ;;  %2739 = vmatpush.msra.mxu2 %v5811_v61  ;;  %v5817_v30 = vld [vmem:[%s10762_s13 + $0x3b0] sm:$0xff] }
 0xf3a   :  { %2513 = vmatpush.msra.mxu3 %v6574_v34  ;;  %2740 = vmatpush.msra.mxu2 %v5795_v59  ;;  %v5799_v34 = vld [vmem:[%s10762_s13 + $0x320] sm:$0xff]  ;;  %v5805_v59 = vld [vmem:[%s10762_s13 + $0x350] sm:$0xff] }
 0xf3b   :  { %5756 = vmatmul.msk.f32.vlgmr.msra.gmra.mxu3 %vm74_vm0, %v2484_v35  ;;  %v5800_v35 = vld [vmem:[%s10762_s13 + $0x328] sm:$0xff] }
 0xf3c   :  { %v6695_v38 = vpop.eup %6694  ;;  %2785 = vmatpush.msrb.mxu3 %v5813_v3  ;;  %2741 = vmatpush.msra.mxu2 %v5779_v13  ;;  %v5804_v3 = vld [vmem:[%s10762_s13 + $0x348] sm:$0xff]  ;;  %v5789_v13 = vld [vmem:[%s10762_s13 + $0x2d0] sm:$0xff] }
 0xf3d   :  { %v2485_v39 = vmul.f32 %v6695_v38, %v6685_v4  ;;  %v5814_v4 = vld [vmem:[%s10762_s13 + $0x398] sm:$0xff]  ;;  %v5801_v38 = vld [vmem:[%s10762_s13 + $0x330] sm:$0xff]  ;;  %2855 = vmatpush.msra.mxu0 %v5800_v35  ;;  %v5792_v35 = vld [vmem:[%s10762_s13 + $0x2e8] sm:$0xff] }
 0xf3e   :  { %2808 = vmatpush.msrb.mxu1 %v5814_v4  ;;  %2786 = vmatpush.msrb.mxu3 %v5797_v10  ;;  %v5787_v10 = vld [vmem:[%s10762_s13 + $0x2c0] sm:$0xff] }
 0xf3f   :  { %2742 = vmatpush.msra.mxu2 %v5763_v31  ;;  %v5772_v31 = vld [vmem:[%s10762_s13 + $0x248] sm:$0xff] }
 0xf40   :  { %2809 = vmatpush.msrb.mxu1 %v5798_v11  ;;  %2787 = vmatpush.msrb.mxu3 %v5781_v16 }
 0xf42   :  { %2810 = vmatpush.msrb.mxu1 %v5782_v17  ;;  %2788 = vmatpush.msrb.mxu3 %v5765_v21  ;;  %v5771_v17 = vld [vmem:[%s10762_s13 + $0x240] sm:$0xff]  ;;  %v5774_v21 = vld [vmem:[%s10762_s13 + $0x258] sm:$0xff] }
 0xf43   :  { %5757 = vmatmul.msk.f32.gmra.mxu3 %vm74_vm0, %v2485_v39  ;;  %v5802_v39 = vld [vmem:[%s10762_s13 + $0x338] sm:$0xff] }
 0xf44   :  { %v2229_v40 = vpop.f32.mrf.mxu1  ;;  %2811 = vmatpush.msrb.mxu1 %v5766_v22  ;;  %2877 = vmatpush.msra.mxu3 %v5817_v30  ;;  %v5823_v22 = vld [vmem:[%s10762_s13 + $0x3e0] sm:$0xff]  ;;  %v5809_v30 = vld [vmem:[%s10762_s13 + $0x370] sm:$0xff] }
 0xf45   :  { %5741 = vmatmul.msk.f32.gmra.mxu2 %vm217_vm9, %v2229_v40  ;;  %v5783_v40 = vld [vmem:[%s10762_s13 + $0x2a0] sm:$0xff] }
 0xf46   :  { %2878 = vmatpush.msra.mxu3 %v5801_v38  ;;  %v5794_v38 = vld [vmem:[%s10762_s13 + $0x2f8] sm:$0xff] }
 0xf48   :  { %2879 = vmatpush.msra.mxu3 %v5785_v42  ;;  %v5892_v42 = vld [vmem:[%s10764_s15 + $0x8f8] sm:$0xff] }
 0xf5a   :  { %v2384_v6 = vpop.f32.mrf.mxu1 }
 0xf5b   :  { %5750 = vmatmul.msk.f32.vlgmr.msrb.gmra.mxu2 %vm217_vm9, %v2384_v6 }
 0xf5c   :  { %2831 = vmatpush.msrb.mxu2 %v5815_v28  ;;  %v5807_v28 = vld [vmem:[%s10762_s13 + $0x360] sm:$0xff] }
 0xf5e   :  { %2832 = vmatpush.msrb.mxu2 %v5799_v34  ;;  %v5791_v34 = vld [vmem:[%s10762_s13 + $0x2e0] sm:$0xff] }
 0xf60   :  { %2833 = vmatpush.msrb.mxu2 %v5783_v40  ;;  %v5776_v40 = vld [vmem:[%s10762_s13 + $0x268] sm:$0xff] }
 0xf62   :  { %v2387_v41 = vpop.f32.mrf.mxu1 }
 0xf63   :  { %5751 = vmatmul.msk.f32.gmra.mxu2 %vm217_vm9, %v2387_v41  ;;  %v5784_v41 = vld [vmem:[%s10762_s13 + $0x2a8] sm:$0xff] }
 0xf64   :  { %2856 = vmatpush.msra.mxu0 %v5784_v41  ;;  %v5778_v41 = vld [vmem:[%s10762_s13 + $0x278] sm:$0xff] }
 0xfba   :  { %v2255_v8 = vpop.f32.mrf.mxu2 }
 0xfbb   :  { %v2285_v48 = vadd.f32 %v8286_v25, %v2255_v8  ;;  %v5768_v8 = vld [vmem:[%s10762_s13 + $0x228] sm:$0xff] }
 0xfbc   :  { %2857 = vmatpush.msra.mxu0 %v5768_v8  ;;  %v5908_v8 = vld [vmem:[%s10764_s15 + $0x978] sm:$0xff] }
 0xfbe   :  { %v2515_v44 = vpop.f32.mrf.mxu3 }
 0xfbf   :  { %5758 = vmatmul.msk.f32.vlgmr.msra.gmra.mxu1 %vm217_vm9, %v2515_v44  ;;  %v5786_v44 = vld [vmem:[%s10762_s13 + $0x2b8] sm:$0xff] }
 0xfc0   :  { %2900 = vmatpush.msra.mxu1 %v5818_v32  ;;  %v5810_v32 = vld [vmem:[%s10762_s13 + $0x378] sm:$0xff] }
 0xfc2   :  { %2901 = vmatpush.msra.mxu1 %v5802_v39  ;;  %v5775_v39 = vld [vmem:[%s10762_s13 + $0x260] sm:$0xff] }
 0xfc4   :  { %2902 = vmatpush.msra.mxu1 %v5786_v44  ;;  %v5924_v44 = vld [vmem:[%s10764_s15 + $0x9f8] sm:$0xff] }
 0xfc6   :  { %v2518_v43 = vpop.f32.mrf.mxu3 }
 0xfc7   :  { %5759 = vmatmul.msk.f32.gmra.mxu1 %vm217_vm9, %v2518_v43  ;;  %v5767_v43 = vld [vmem:[%s10762_s13 + $0x220] sm:$0xff] }
 0xfc8   :  { %v2258_v9 = vpop.f32.mrf.mxu2  ;;  %2834 = vmatpush.msrb.mxu2 %v5767_v43  ;;  %v5876_v43 = vld [vmem:[%s10764_s15 + $0x878] sm:$0xff] }
 0xfc9   :  { %v2288_v53 = vadd.f32 %v8288_v26, %v2258_v9 }
 0xfde   :  { %v2413_v46 = vpop.f32.mrf.mxu2 }
 0xfdf   :  { %v2419_v27 = vadd.f32 %v2413_v46, %v2285_v48  ;;  %v5769_v48 = vld [vmem:[%s10762_s13 + $0x230] sm:$0xff] }
 0xfe0   :  { %2880 = vmatpush.msra.mxu3 %v5769_v48  ;;  %v5875_v48 = vld [vmem:[%s10764_s15 + $0x870] sm:$0xff] }
 0xfe6   :  { %v2416_v52 = vpop.f32.mrf.mxu2 }
 0xfe7   :  { %v2420_v54 = vadd.f32 %v2416_v52, %v2288_v53 }
0x103c   :  { %v2544_v12 = vpop.f32.mrf.mxu1 }
0x103d   :  { %v2550_v50 = vadd.f32 %v2544_v12, %v2419_v27  ;;  %v5770_v27 = vld [vmem:[%s10762_s13 + $0x238] sm:$0xff] }
0x103e   :  { %2903 = vmatpush.msra.mxu1 %v5770_v27  ;;  %v5907_v27 = vld [vmem:[%s10764_s15 + $0x970] sm:$0xff] }
0x103f   :  { %v2552_v51 = vadd.f32 %v2550_v50, %v8179_v7 }
0x1041   :  { %v8331_v33 = vadd.f32 %v6606_v45, %v2552_v51 }
0x1043   :  { %v2565_v55 = vsel %vm108_vm1, %v8331_v33, 0.0 }
0x1044   :  { %v2547_v47 = vpop.f32.mrf.mxu1  ;;  %2566 = vadd.xlane.f32.xlu2 %v2565_v55  ;;  %v6607_v55 = vld [vmem:[%s10760_s11 + $0x1] ss:$0 sm:$0xff] }
0x1045   :  { %v2551_v25 = vadd.f32 %v2547_v47, %v2420_v54 }
0x1047   :  { %v2553_v56 = vadd.f32 %v2551_v25, %v8184_v37 }
0x1049   :  { %v8336_v57 = vadd.f32 %v6606_v45, %v2553_v56  ;;  %v6608_v56 = vld [vmem:[%s10761_s12 + $0x1] ss:$0 sm:$0xff] }
0x104b   :  { %v2568_v18 = vsel %vm108_vm1, %v8336_v57, 0.0 }
0x104c   :  { %2569 = vadd.xlane.f32.xlu0 %v2568_v18 }
0x10b7   :  { %v2567_v7 = vpop.xlane.xlu2 %2566 }
0x10b8   :  { %v2571_v26 = vmul.f32 %v2567_v7, %v6911_v20 }
0x10ba   :  { %v8342_v49 = vsub.f32 %v8331_v33, %v2571_v26 }
0x10bc   :  { %v2575_v58 = vmul.f32 %v8342_v49, %v8342_v49 }
0x10be   :  { %v2577_v60 = vsel %vm108_vm1, %v2575_v58, 0.0 }
0x10bf   :  { %v2570_v62 = vpop.xlane.xlu0 %2569  ;;  %2578 = vadd.xlane.f32.xlu0 %v2577_v60 }
0x10c0   :  { %v2572_v37 = vmul.f32 %v2570_v62, %v6911_v20 }
0x10c2   :  { %v8349_v63 = vsub.f32 %v8336_v57, %v2572_v37  ;;  %v5819_v37 = vld [vmem:[%s10762_s13 + $0x3c0] sm:$0xff] }
0x10c4   :  { %v2576_v0 = vmul.f32 %v8349_v63, %v8349_v63 }
0x10c6   :  { %v2580_v1 = vsel %vm108_vm1, %v2576_v0, 0.0  ;;  %v5820_v0 = vld [vmem:[%s10762_s13 + $0x3c8] sm:$0xff] }
0x10c7   :  { %2581 = vadd.xlane.f32.xlu0 %v2580_v1  ;;  %v5822_v1 = vld [vmem:[%s10762_s13 + $0x3d8] sm:$0xff] }
0x1132   :  { %v2579_v23 = vpop.xlane.xlu0 %2578 }
0x1133   :  { %v2583_v36 = vmul.f32 %v2579_v23, %v6911_v20  ;;  %v5824_v23 = vld [vmem:[%s10762_s13 + $0x3e8] sm:$0xff] }
0x1135   :  { %v2585_v24 = vadd.f32 1e-05, %v2583_v36  ;;  %v5825_v36 = vld [vmem:[%s10762_s13 + $0x3f0] sm:$0xff] }
0x1137   :  { %6696 = vrsqrt.f32 %v2585_v24  ;;  %vm2593_vm10 = vweird.f32 %v2585_v24 }
0x113a   :  { %v2582_v14 = vpop.xlane.xlu0 %2581 }
0x113b   :  { %v2584_v6 = vmul.f32 %v2582_v14, %v6911_v20  ;;  %v5793_v14 = vld [vmem:[%s10762_s13 + $0x2f0] sm:$0xff] }
0x113d   :  { %v6697_v9 = vpop.eup %6696  ;;  %v2586_v46 = vadd.f32 1e-05, %v2584_v6  ;;  %v5777_v6 = vld [vmem:[%s10762_s13 + $0x270] sm:$0xff] }
0x113e   :  { %v2588_v12 = vmul.f32 %v6697_v9, %v2585_v24  ;;  %vm2594_vm8 = vweird.f32 %v6697_v9  ;;  %v5826_v24 = vld [vmem:[%s10762_s13 + $0x3f8] sm:$0xff] }
0x113f   :  { %6698 = vrsqrt.f32 %v2586_v46  ;;  %vm2595_vm11 = vmor %vm2593_vm10, %vm2594_vm8  ;;  %vm2603_vm13 = vweird.f32 %v2586_v46 }
0x1140   :  { %v2589_v50 = vmul.f32 %v6697_v9, %v2588_v12  ;;  %v5890_v12 = vld [vmem:[%s10764_s15 + $0x8e8] sm:$0xff] }
0x1142   :  { %v2590_v45 = vmul.f32 0.5, %v2589_v50  ;;  %v5922_v50 = vld [vmem:[%s10764_s15 + $0x9e8] sm:$0xff] }
0x1144   :  { %v2591_v51 = vsub.f32 1.5, %v2590_v45  ;;  %v5874_v45 = vld [vmem:[%s10764_s15 + $0x868] sm:$0xff] }
0x1145   :  { %v6699_v52 = vpop.eup %6698 }
0x1146   :  { %v2592_v53 = vmul.f32 %v6697_v9, %v2591_v51  ;;  %v2598_v54 = vmul.f32 %v6699_v52, %v2586_v46  ;;  %vm2604_vm12 = vweird.f32 %v6699_v52  ;;  %v5923_v46 = vld [vmem:[%s10764_s15 + $0x9f0] sm:$0xff]  ;;  %v5906_v51 = vld [vmem:[%s10764_s15 + $0x968] sm:$0xff] }
0x1147   :  { %vm2605_vm14 = vmor %vm2603_vm13, %vm2604_vm12  ;;  %vm5596_vm12 = vcmask 1040384   ;;  %vm5629_vm13 = vcmask 25600  }
0x1148   :  { %v2596_v47 = vsel %vm2595_vm11, %v6697_v9, %v2592_v53  ;;  %v2599_v25 = vmul.f32 %v6699_v52, %v2598_v54  ;;  %v5891_v9 = vld [vmem:[%s10764_s15 + $0x8f0] sm:$0xff]  ;;  %v5921_v53 = vld [vmem:[%s10764_s15 + $0x9e0] sm:$0xff] }
0x1149   :  { %v2607_v18 = vmul.f32 %v2596_v47, %v8342_v49  ;;  %v5821_v49 = vld [vmem:[%s10762_s13 + $0x3d0] sm:$0xff]  ;;  %v5873_v54 = vld [vmem:[%s10764_s15 + $0x860] sm:$0xff]  ;;  %v5888_v47 = vld [vmem:[%s10764_s15 + $0x8d8] sm:$0xff] }
0x114a   :  { %v2600_v7 = vmul.f32 0.5, %v2599_v25  ;;  %v5920_v25 = vld [vmem:[%s10764_s15 + $0x9d8] sm:$0xff] }
0x114b   :  { %v2612_v26 = vmul.f32 %v6607_v55, %v2607_v18  ;;  %v5904_v18 = vld [vmem:[%s10764_s15 + $0x958] sm:$0xff] }
0x114c   :  { %v2601_v58 = vsub.f32 1.5, %v2600_v7  ;;  %v5887_v7 = vld [vmem:[%s10764_s15 + $0x8d0] sm:$0xff] }
0x114d   :  { %v8459_v60 = vadd.f32 %v6608_v56, %v2612_v26  ;;  %v5919_v26 = vld [vmem:[%s10764_s15 + $0x9d0] sm:$0xff] }
0x114e   :  { %v2602_v62 = vmul.f32 %v6699_v52, %v2601_v58  ;;  %v5871_v58 = vld [vmem:[%s10764_s15 + $0x850] sm:$0xff] }
0x114f   :  { %5829 = vmatmul.msk.f32.vlgmr.msra.gmra.mxu2 %vm108_vm1, %v8459_v60  ;;  %5831 = vmatmul.msk.f32.vlgmr.msrb.gmra.mxu0 %vm108_vm1, %v8459_v60 }
0x1150   :  { %v2606_v61 = vsel %vm2605_vm14, %v6699_v52, %v2602_v62  ;;  %5833 = vmatmul.msk.f32.vlgmr.msrb.gmra.mxu3 %vm108_vm1, %v8459_v60  ;;  %5835 = vmatmul.msk.f32.vlgmr.msrb.gmra.mxu1 %vm108_vm1, %v8459_v60  ;;  %v5889_v52 = vld [vmem:[%s10764_s15 + $0x8e0] sm:$0xff]  ;;  %v5903_v62 = vld [vmem:[%s10764_s15 + $0x950] sm:$0xff] }
0x1151   :  { %v2608_v4 = vmul.f32 %v2606_v61, %v8349_v63  ;;  %2923 = vmatpush.msra.mxu2 %v5819_v37  ;;  %2946 = vmatpush.msrb.mxu0 %v5820_v0  ;;  %v5788_v63 = vld [vmem:[%s10762_s13 + $0x2c8] sm:$0xff]  ;;  %v5885_v61 = vld [vmem:[%s10764_s15 + $0x8c0] sm:$0xff] }
0x1152   :  { %2969 = vmatpush.msrb.mxu3 %v5821_v49  ;;  %2992 = vmatpush.msrb.mxu1 %v5822_v1  ;;  %v5886_v37 = vld [vmem:[%s10764_s15 + $0x8c8] sm:$0xff] }
0x1153   :  { %v2613_v11 = vmul.f32 %v6607_v55, %v2608_v4  ;;  %2924 = vmatpush.msra.mxu2 %v5803_v2  ;;  %2947 = vmatpush.msrb.mxu0 %v5804_v3  ;;  %v5905_v55 = vld [vmem:[%s10764_s15 + $0x960] sm:$0xff]  ;;  %v5918_v0 = vld [vmem:[%s10764_s15 + $0x9c8] sm:$0xff] }
0x1154   :  { %2970 = vmatpush.msrb.mxu3 %v5805_v59  ;;  %2993 = vmatpush.msrb.mxu1 %v5806_v5  ;;  %v5870_v49 = vld [vmem:[%s10764_s15 + $0x848] sm:$0xff]  ;;  %v5917_v2 = vld [vmem:[%s10764_s15 + $0x9c0] sm:$0xff]  ;;  %v5916_v59 = vld [vmem:[%s10764_s15 + $0x9b8] sm:$0xff] }
0x1155   :  { %v8506_v16 = vadd.f32 %v6608_v56, %v2613_v11  ;;  %2925 = vmatpush.msra.mxu2 %v5787_v10  ;;  %2948 = vmatpush.msrb.mxu0 %v5788_v63  ;;  %v5872_v56 = vld [vmem:[%s10764_s15 + $0x858] sm:$0xff]  ;;  %v5902_v1 = vld [vmem:[%s10764_s15 + $0x948] sm:$0xff]  ;;  %v5869_v3 = vld [vmem:[%s10764_s15 + $0x840] sm:$0xff] }
0x1156   :  { %2971 = vmatpush.msrb.mxu3 %v5789_v13  ;;  %2994 = vmatpush.msrb.mxu1 %v5790_v15  ;;  %v5901_v4 = vld [vmem:[%s10764_s15 + $0x940] sm:$0xff]  ;;  %v5868_v5 = vld [vmem:[%s10764_s15 + $0x838] sm:$0xff]  ;;  %v5883_v63 = vld [vmem:[%s10764_s15 + $0x8b0] sm:$0xff] }
0x1157   :  { %5830 = vmatmul.msk.f32.gmra.mxu2 %vm108_vm1, %v8506_v16  ;;  %5832 = vmatmul.msk.f32.gmra.mxu0 %vm108_vm1, %v8506_v16  ;;  %v5900_v10 = vld [vmem:[%s10764_s15 + $0x938] sm:$0xff]  ;;  %v5915_v11 = vld [vmem:[%s10764_s15 + $0x9b0] sm:$0xff] }
0x1158   :  { %5834 = vmatmul.msk.f32.gmra.mxu3 %vm108_vm1, %v8506_v16  ;;  %5836 = vmatmul.msk.f32.gmra.mxu1 %vm108_vm1, %v8506_v16  ;;  %v5867_v13 = vld [vmem:[%s10764_s15 + $0x830] sm:$0xff] }
0x1159   :  { %2926 = vmatpush.msra.mxu2 %v5771_v17  ;;  %2949 = vmatpush.msrb.mxu0 %v5772_v31  ;;  %v5899_v15 = vld [vmem:[%s10764_s15 + $0x930] sm:$0xff]  ;;  %v5882_v17 = vld [vmem:[%s10764_s15 + $0x8a8] sm:$0xff] }
0x115a   :  { %2972 = vmatpush.msrb.mxu3 %v5773_v19  ;;  %2995 = vmatpush.msrb.mxu1 %v5774_v21  ;;  %v5914_v31 = vld [vmem:[%s10764_s15 + $0x9a8] sm:$0xff] }
0x115b   :  { %v5866_v19 = vld [vmem:[%s10764_s15 + $0x828] sm:$0xff] }
0x115c   :  { %v5898_v21 = vld [vmem:[%s10764_s15 + $0x928] sm:$0xff] }
0x115f   :  { %5837 = vmatmul.msk.f32.vlgmr.msrb.gmra.mxu2 %vm108_vm1, %v8459_v60  ;;  %5839 = vmatmul.msk.f32.vlgmr.msra.gmra.mxu0 %vm108_vm1, %v8459_v60 }
0x1160   :  { %5841 = vmatmul.msk.f32.vlgmr.msra.gmra.mxu3 %vm108_vm1, %v8459_v60  ;;  %5843 = vmatmul.msk.f32.vlgmr.msra.gmra.mxu1 %vm108_vm1, %v8459_v60 }
0x1161   :  { %3015 = vmatpush.msrb.mxu2 %v5823_v22  ;;  %3038 = vmatpush.msra.mxu0 %v5824_v23  ;;  %v5913_v22 = vld [vmem:[%s10764_s15 + $0x9a0] sm:$0xff] }
0x1162   :  { %3061 = vmatpush.msra.mxu3 %v5825_v36  ;;  %3084 = vmatpush.msra.mxu1 %v5826_v24  ;;  %v5865_v23 = vld [vmem:[%s10764_s15 + $0x820] sm:$0xff]  ;;  %v5880_v24 = vld [vmem:[%s10764_s15 + $0x898] sm:$0xff] }
0x1163   :  { %3016 = vmatpush.msrb.mxu2 %v5807_v28  ;;  %3039 = vmatpush.msra.mxu0 %v5808_v29  ;;  %v5897_v36 = vld [vmem:[%s10764_s15 + $0x920] sm:$0xff]  ;;  %v5912_v28 = vld [vmem:[%s10764_s15 + $0x998] sm:$0xff] }
0x1164   :  { %3062 = vmatpush.msra.mxu3 %v5809_v30  ;;  %3085 = vmatpush.msra.mxu1 %v5810_v32  ;;  %v5864_v29 = vld [vmem:[%s10764_s15 + $0x818] sm:$0xff]  ;;  %v5879_v32 = vld [vmem:[%s10764_s15 + $0x890] sm:$0xff] }
0x1165   :  { %3017 = vmatpush.msrb.mxu2 %v5791_v34  ;;  %3040 = vmatpush.msra.mxu0 %v5792_v35  ;;  %v5896_v30 = vld [vmem:[%s10764_s15 + $0x918] sm:$0xff]  ;;  %v5911_v34 = vld [vmem:[%s10764_s15 + $0x990] sm:$0xff] }
0x1166   :  { %3063 = vmatpush.msra.mxu3 %v5793_v14  ;;  %3086 = vmatpush.msra.mxu1 %v5794_v38  ;;  %v5863_v35 = vld [vmem:[%s10764_s15 + $0x810] sm:$0xff]  ;;  %v5878_v38 = vld [vmem:[%s10764_s15 + $0x888] sm:$0xff] }
0x1167   :  { %5838 = vmatmul.msk.f32.gmra.mxu2 %vm108_vm1, %v8506_v16  ;;  %5840 = vmatmul.msk.f32.gmra.mxu0 %vm108_vm1, %v8506_v16  ;;  %v5895_v14 = vld [vmem:[%s10764_s15 + $0x910] sm:$0xff] }
0x1168   :  { %5842 = vmatmul.msk.f32.gmra.mxu3 %vm108_vm1, %v8506_v16  ;;  %5844 = vmatmul.msk.f32.gmra.mxu1 %vm108_vm1, %v8506_v16 }
0x1169   :  { %3018 = vmatpush.msrb.mxu2 %v5775_v39  ;;  %3041 = vmatpush.msra.mxu0 %v5776_v40  ;;  %v5910_v39 = vld [vmem:[%s10764_s15 + $0x988] sm:$0xff] }
0x116a   :  { %3064 = vmatpush.msra.mxu3 %v5777_v6  ;;  %3087 = vmatpush.msra.mxu1 %v5778_v41  ;;  %v5862_v40 = vld [vmem:[%s10764_s15 + $0x808] sm:$0xff]  ;;  %v5877_v41 = vld [vmem:[%s10764_s15 + $0x880] sm:$0xff] }
0x116b   :  { %v5894_v6 = vld [vmem:[%s10764_s15 + $0x908] sm:$0xff] }
0x116f   :  { %5845 = vmatmul.msk.f32.vlgmr.msra.gmra.mxu2 %vm108_vm1, %v8459_v60  ;;  %5847 = vmatmul.msk.f32.vlgmr.msrb.gmra.mxu0 %vm108_vm1, %v8459_v60 }
0x1170   :  { %5849 = vmatmul.msk.f32.vlgmr.msrb.gmra.mxu3 %vm108_vm1, %v8459_v60  ;;  %5851 = vmatmul.msk.f32.vlgmr.msrb.gmra.mxu1 %vm108_vm1, %v8459_v60 }
0x1171   :  { %3407 = vmatpush.msrb.mxu0 %v5892_v42  ;;  %3453 = vmatpush.msrb.mxu1 %v5924_v44  ;;  %v5909_v42 = vld [vmem:[%s10764_s15 + $0x980] sm:$0xff]  ;;  %v5956_v44 = vld [vmem:[%s10764_s15 + $0xaf8] sm:$0xff] }
0x1172   :  { %3384 = vmatpush.msra.mxu2 %v5876_v43  ;;  %3430 = vmatpush.msrb.mxu3 %v5908_v8  ;;  %v5988_v43 = vld [vmem:[%s10764_s15 + $0xbf8] sm:$0xff]  ;;  %v5861_v8 = vld [vmem:[%s10764_s15 + $0x800] sm:$0xff] }
0x1173   :  { %3408 = vmatpush.msrb.mxu0 %v5891_v9  ;;  %3454 = vmatpush.msrb.mxu1 %v5923_v46  ;;  %v5893_v9 = vld [vmem:[%s10764_s15 + $0x900] sm:$0xff]  ;;  %v5955_v46 = vld [vmem:[%s10764_s15 + $0xaf0] sm:$0xff] }
0x1174   :  { %3385 = vmatpush.msra.mxu2 %v5875_v48  ;;  %3431 = vmatpush.msrb.mxu3 %v5907_v27  ;;  %v5987_v48 = vld [vmem:[%s10764_s15 + $0xbf0] sm:$0xff]  ;;  %v5940_v27 = vld [vmem:[%s10764_s15 + $0xa78] sm:$0xff] }
0x1175   :  { %3409 = vmatpush.msrb.mxu0 %v5890_v12  ;;  %3455 = vmatpush.msrb.mxu1 %v5922_v50  ;;  %v5972_v12 = vld [vmem:[%s10764_s15 + $0xb78] sm:$0xff]  ;;  %v5954_v50 = vld [vmem:[%s10764_s15 + $0xae8] sm:$0xff] }
0x1176   :  { %3386 = vmatpush.msra.mxu2 %v5874_v45  ;;  %3432 = vmatpush.msrb.mxu3 %v5906_v51  ;;  %v5986_v45 = vld [vmem:[%s10764_s15 + $0xbe8] sm:$0xff]  ;;  %v5939_v51 = vld [vmem:[%s10764_s15 + $0xa70] sm:$0xff] }
0x1177   :  { %5846 = vmatmul.msk.f32.gmra.mxu2 %vm108_vm1, %v8506_v16  ;;  %5848 = vmatmul.msk.f32.gmra.mxu0 %vm108_vm1, %v8506_v16 }
0x1178   :  { %5850 = vmatmul.msk.f32.gmra.mxu3 %vm108_vm1, %v8506_v16  ;;  %5852 = vmatmul.msk.f32.gmra.mxu1 %vm108_vm1, %v8506_v16 }
0x1179   :  { %3410 = vmatpush.msrb.mxu0 %v5889_v52  ;;  %3456 = vmatpush.msrb.mxu1 %v5921_v53  ;;  %v5971_v52 = vld [vmem:[%s10764_s15 + $0xb70] sm:$0xff]  ;;  %v5953_v53 = vld [vmem:[%s10764_s15 + $0xae0] sm:$0xff] }
0x117a   :  { %3387 = vmatpush.msra.mxu2 %v5873_v54  ;;  %3433 = vmatpush.msrb.mxu3 %v5905_v55  ;;  %v5985_v54 = vld [vmem:[%s10764_s15 + $0xbe0] sm:$0xff]  ;;  %v5938_v55 = vld [vmem:[%s10764_s15 + $0xa68] sm:$0xff] }
0x117b   :  { %3411 = vmatpush.msrb.mxu0 %v5888_v47  ;;  %3457 = vmatpush.msrb.mxu1 %v5920_v25  ;;  %v5970_v47 = vld [vmem:[%s10764_s15 + $0xb68] sm:$0xff]  ;;  %v5952_v25 = vld [vmem:[%s10764_s15 + $0xad8] sm:$0xff] }
0x117c   :  { %3388 = vmatpush.msra.mxu2 %v5872_v56  ;;  %3434 = vmatpush.msrb.mxu3 %v5904_v18  ;;  %v5984_v56 = vld [vmem:[%s10764_s15 + $0xbd8] sm:$0xff]  ;;  %v5937_v18 = vld [vmem:[%s10764_s15 + $0xa60] sm:$0xff] }
0x117d   :  { %3412 = vmatpush.msrb.mxu0 %v5887_v7  ;;  %3458 = vmatpush.msrb.mxu1 %v5919_v26  ;;  %v5969_v7 = vld [vmem:[%s10764_s15 + $0xb60] sm:$0xff]  ;;  %v5951_v26 = vld [vmem:[%s10764_s15 + $0xad0] sm:$0xff] }
0x117e   :  { %3389 = vmatpush.msra.mxu2 %v5871_v58  ;;  %3435 = vmatpush.msrb.mxu3 %v5903_v62  ;;  %v5983_v58 = vld [vmem:[%s10764_s15 + $0xbd0] sm:$0xff]  ;;  %v5936_v62 = vld [vmem:[%s10764_s15 + $0xa58] sm:$0xff] }
0x117f   :  { %5853 = vmatmul.msk.f32.vlgmr.msrb.gmra.mxu2 %vm108_vm1, %v8459_v60  ;;  %5855 = vmatmul.msk.f32.vlgmr.msra.gmra.mxu0 %vm108_vm1, %v8459_v60 }
0x1180   :  { %5857 = vmatmul.msk.f32.vlgmr.msra.gmra.mxu3 %vm108_vm1, %v8459_v60  ;;  %5859 = vmatmul.msk.f32.vlgmr.msra.gmra.mxu1 %vm108_vm1, %v8459_v60  ;;  %v5884_v60 = vld [vmem:[%s10764_s15 + $0x8b8] sm:$0xff] }
0x1181   :  { %3413 = vmatpush.msrb.mxu0 %v5886_v37  ;;  %3459 = vmatpush.msrb.mxu1 %v5918_v0  ;;  %v5968_v37 = vld [vmem:[%s10764_s15 + $0xb58] sm:$0xff]  ;;  %v5950_v0 = vld [vmem:[%s10764_s15 + $0xac8] sm:$0xff] }
0x1182   :  { %3390 = vmatpush.msra.mxu2 %v5870_v49  ;;  %3436 = vmatpush.msrb.mxu3 %v5902_v1  ;;  %v5982_v49 = vld [vmem:[%s10764_s15 + $0xbc8] sm:$0xff]  ;;  %v5935_v1 = vld [vmem:[%s10764_s15 + $0xa50] sm:$0xff] }
0x1183   :  { %3414 = vmatpush.msrb.mxu0 %v5885_v61  ;;  %3460 = vmatpush.msrb.mxu1 %v5917_v2  ;;  %v5967_v61 = vld [vmem:[%s10764_s15 + $0xb50] sm:$0xff]  ;;  %v5949_v2 = vld [vmem:[%s10764_s15 + $0xac0] sm:$0xff] }
0x1184   :  { %3391 = vmatpush.msra.mxu2 %v5869_v3  ;;  %3437 = vmatpush.msrb.mxu3 %v5901_v4  ;;  %v5981_v3 = vld [vmem:[%s10764_s15 + $0xbc0] sm:$0xff]  ;;  %v5934_v4 = vld [vmem:[%s10764_s15 + $0xa48] sm:$0xff] }
0x1185   :  { %3415 = vmatpush.msrb.mxu0 %v5884_v60  ;;  %3461 = vmatpush.msrb.mxu1 %v5916_v59  ;;  %v5966_v60 = vld [vmem:[%s10764_s15 + $0xb48] sm:$0xff]  ;;  %v5948_v59 = vld [vmem:[%s10764_s15 + $0xab8] sm:$0xff] }
0x1186   :  { %3392 = vmatpush.msra.mxu2 %v5868_v5  ;;  %3438 = vmatpush.msrb.mxu3 %v5900_v10  ;;  %v5980_v5 = vld [vmem:[%s10764_s15 + $0xbb8] sm:$0xff]  ;;  %v5933_v10 = vld [vmem:[%s10764_s15 + $0xa40] sm:$0xff] }
0x1187   :  { %5854 = vmatmul.msk.f32.gmra.mxu2 %vm108_vm1, %v8506_v16  ;;  %5856 = vmatmul.msk.f32.gmra.mxu0 %vm108_vm1, %v8506_v16 }
0x1188   :  { %5858 = vmatmul.msk.f32.gmra.mxu3 %vm108_vm1, %v8506_v16  ;;  %5860 = vmatmul.msk.f32.gmra.mxu1 %vm108_vm1, %v8506_v16  ;;  %v5881_v16 = vld [vmem:[%s10764_s15 + $0x8a0] sm:$0xff] }
0x1189   :  { %3416 = vmatpush.msrb.mxu0 %v5883_v63  ;;  %3462 = vmatpush.msrb.mxu1 %v5915_v11  ;;  %v5965_v63 = vld [vmem:[%s10764_s15 + $0xb40] sm:$0xff]  ;;  %v5947_v11 = vld [vmem:[%s10764_s15 + $0xab0] sm:$0xff] }
0x118a   :  { %3393 = vmatpush.msra.mxu2 %v5867_v13  ;;  %3439 = vmatpush.msrb.mxu3 %v5899_v15  ;;  %v5979_v13 = vld [vmem:[%s10764_s15 + $0xbb0] sm:$0xff]  ;;  %v5932_v15 = vld [vmem:[%s10764_s15 + $0xa38] sm:$0xff] }
0x118b   :  { %3417 = vmatpush.msrb.mxu0 %v5882_v17  ;;  %3463 = vmatpush.msrb.mxu1 %v5914_v31  ;;  %v5964_v17 = vld [vmem:[%s10764_s15 + $0xb38] sm:$0xff]  ;;  %v5946_v31 = vld [vmem:[%s10764_s15 + $0xaa8] sm:$0xff] }
0x118c   :  { %3394 = vmatpush.msra.mxu2 %v5866_v19  ;;  %3440 = vmatpush.msrb.mxu3 %v5898_v21  ;;  %v5978_v19 = vld [vmem:[%s10764_s15 + $0xba8] sm:$0xff]  ;;  %v5931_v21 = vld [vmem:[%s10764_s15 + $0xa30] sm:$0xff] }
0x118d   :  { %3418 = vmatpush.msrb.mxu0 %v5881_v16  ;;  %3464 = vmatpush.msrb.mxu1 %v5913_v22  ;;  %v5963_v16 = vld [vmem:[%s10764_s15 + $0xb30] sm:$0xff]  ;;  %v5945_v22 = vld [vmem:[%s10764_s15 + $0xaa0] sm:$0xff] }
0x118e   :  { %3395 = vmatpush.msra.mxu2 %v5865_v23  ;;  %3441 = vmatpush.msrb.mxu3 %v5897_v36  ;;  %v5977_v23 = vld [vmem:[%s10764_s15 + $0xba0] sm:$0xff]  ;;  %v5944_v36 = vld [vmem:[%s10764_s15 + $0xa98] sm:$0xff] }
0x118f   :  { %3419 = vmatpush.msrb.mxu0 %v5880_v24  ;;  %3465 = vmatpush.msrb.mxu1 %v5912_v28  ;;  %v5976_v24 = vld [vmem:[%s10764_s15 + $0xb98] sm:$0xff]  ;;  %v5930_v28 = vld [vmem:[%s10764_s15 + $0xa28] sm:$0xff] }
0x1190   :  { %3396 = vmatpush.msra.mxu2 %v5864_v29  ;;  %3442 = vmatpush.msrb.mxu3 %v5896_v30  ;;  %v5962_v29 = vld [vmem:[%s10764_s15 + $0xb28] sm:$0xff]  ;;  %v5943_v30 = vld [vmem:[%s10764_s15 + $0xa90] sm:$0xff] }
0x1191   :  { %3420 = vmatpush.msrb.mxu0 %v5879_v32  ;;  %3466 = vmatpush.msrb.mxu1 %v5911_v34  ;;  %v5975_v32 = vld [vmem:[%s10764_s15 + $0xb90] sm:$0xff]  ;;  %v5929_v34 = vld [vmem:[%s10764_s15 + $0xa20] sm:$0xff] }
0x1192   :  { %3397 = vmatpush.msra.mxu2 %v5863_v35  ;;  %3443 = vmatpush.msrb.mxu3 %v5895_v14  ;;  %v5961_v35 = vld [vmem:[%s10764_s15 + $0xb20] sm:$0xff]  ;;  %v5942_v14 = vld [vmem:[%s10764_s15 + $0xa88] sm:$0xff] }
0x1193   :  { %3421 = vmatpush.msrb.mxu0 %v5878_v38  ;;  %3467 = vmatpush.msrb.mxu1 %v5910_v39  ;;  %v5974_v38 = vld [vmem:[%s10764_s15 + $0xb88] sm:$0xff]  ;;  %v5928_v39 = vld [vmem:[%s10764_s15 + $0xa18] sm:$0xff] }
0x1194   :  { %3398 = vmatpush.msra.mxu2 %v5862_v40  ;;  %3444 = vmatpush.msrb.mxu3 %v5894_v6  ;;  %v5960_v40 = vld [vmem:[%s10764_s15 + $0xb18] sm:$0xff]  ;;  %v5941_v6 = vld [vmem:[%s10764_s15 + $0xa80] sm:$0xff] }
0x1195   :  { %3422 = vmatpush.msrb.mxu0 %v5877_v41  ;;  %3468 = vmatpush.msrb.mxu1 %v5909_v42  ;;  %v5973_v41 = vld [vmem:[%s10764_s15 + $0xb80] sm:$0xff]  ;;  %v5927_v42 = vld [vmem:[%s10764_s15 + $0xa10] sm:$0xff] }
0x1196   :  { %3399 = vmatpush.msra.mxu2 %v5861_v8  ;;  %3445 = vmatpush.msrb.mxu3 %v5893_v9  ;;  %v5958_v8 = vld [vmem:[%s10764_s15 + $0xb08] sm:$0xff]  ;;  %v5925_v9 = vld [vmem:[%s10764_s15 + $0xa00] sm:$0xff] }
0x1197   :  { %3499 = vmatpush.msra.mxu0 %v5956_v44  ;;  %3545 = vmatpush.msra.mxu1 %v5988_v43  ;;  %v5959_v44 = vld [vmem:[%s10764_s15 + $0xb10] sm:$0xff]  ;;  %v5926_v43 = vld [vmem:[%s10764_s15 + $0xa08] sm:$0xff] }
0x1198   :  { %3476 = vmatpush.msrb.mxu2 %v5940_v27  ;;  %3522 = vmatpush.msra.mxu3 %v5972_v12 }
0x1199   :  { %3500 = vmatpush.msra.mxu0 %v5955_v46  ;;  %3546 = vmatpush.msra.mxu1 %v5987_v48  ;;  %v5957_v46 = vld [vmem:[%s10764_s15 + $0xb00] sm:$0xff]  ;;  %v9011_v48 = vld [vmem:[%s10763_s14 + $0x10] sm:$0xff] }
0x119a   :  { %3477 = vmatpush.msrb.mxu2 %v5939_v51  ;;  %3523 = vmatpush.msra.mxu3 %v5971_v52  ;;  %v2690_v27 = vperm.slane %v9011_v48, 1  ;;  %v2692_v12 = vperm.slane %v9011_v48, 3 }
0x119b   :  { %3501 = vmatpush.msra.mxu0 %v5954_v50  ;;  %3547 = vmatpush.msra.mxu1 %v5986_v45 }
0x119c   :  { %3478 = vmatpush.msrb.mxu2 %v5938_v55  ;;  %3524 = vmatpush.msra.mxu3 %v5970_v47  ;;  %v2689_v55 = vperm.slane %v9011_v48, 0 }
0x119d   :  { %3502 = vmatpush.msra.mxu0 %v5953_v53  ;;  %3548 = vmatpush.msra.mxu1 %v5985_v54  ;;  %v6020_v54 = vld [vmem:[%s10764_s15 + $0xcf8] sm:$0xff] }
0x119e   :  { %3479 = vmatpush.msrb.mxu2 %v5937_v18  ;;  %3525 = vmatpush.msra.mxu3 %v5969_v7  ;;  %v6019_v18 = vld [vmem:[%s10764_s15 + $0xcf0] sm:$0xff] }
0x119f   :  { %3503 = vmatpush.msra.mxu0 %v5952_v25  ;;  %3549 = vmatpush.msra.mxu1 %v5984_v56  ;;  %v6052_v25 = vld [vmem:[%s10764_s15 + $0xdf8] sm:$0xff]  ;;  %v2691_v56 = vperm.slane %v9011_v48, 2 }
0x11a0   :  { %3480 = vmatpush.msrb.mxu2 %v5936_v62  ;;  %3526 = vmatpush.msra.mxu3 %v5968_v37  ;;  %v6018_v37 = vld [vmem:[%s10764_s15 + $0xce8] sm:$0xff] }
0x11a1   :  { %3504 = vmatpush.msra.mxu0 %v5951_v26  ;;  %3550 = vmatpush.msra.mxu1 %v5983_v58  ;;  %v6051_v26 = vld [vmem:[%s10764_s15 + $0xdf0] sm:$0xff] }
0x11a2   :  { %3481 = vmatpush.msrb.mxu2 %v5935_v1  ;;  %3527 = vmatpush.msra.mxu3 %v5967_v61  ;;  %v6050_v1 = vld [vmem:[%s10764_s15 + $0xde8] sm:$0xff] }
0x11a3   :  { %3505 = vmatpush.msra.mxu0 %v5950_v0  ;;  %3551 = vmatpush.msra.mxu1 %v5982_v49 }
0x11a4   :  { %3482 = vmatpush.msrb.mxu2 %v5934_v4  ;;  %3528 = vmatpush.msra.mxu3 %v5966_v60  ;;  %v6004_v4 = vld [vmem:[%s10764_s15 + $0xc78] sm:$0xff] }
0x11a5   :  { %3506 = vmatpush.msra.mxu0 %v5949_v2  ;;  %3552 = vmatpush.msra.mxu1 %v5981_v3 }
0x11a6   :  { %3483 = vmatpush.msrb.mxu2 %v5933_v10  ;;  %3529 = vmatpush.msra.mxu3 %v5965_v63  ;;  %v6036_v10 = vld [vmem:[%s10764_s15 + $0xd78] sm:$0xff] }
0x11a7   :  { %3507 = vmatpush.msra.mxu0 %v5948_v59  ;;  %3553 = vmatpush.msra.mxu1 %v5980_v5  ;;  %v6017_v5 = vld [vmem:[%s10764_s15 + $0xce0] sm:$0xff] }
0x11a8   :  { %3484 = vmatpush.msrb.mxu2 %v5932_v15  ;;  %3530 = vmatpush.msra.mxu3 %v5964_v17  ;;  %v6003_v15 = vld [vmem:[%s10764_s15 + $0xc70] sm:$0xff]  ;;  %v6016_v17 = vld [vmem:[%s10764_s15 + $0xcd8] sm:$0xff] }
0x11a9   :  { %3508 = vmatpush.msra.mxu0 %v5947_v11  ;;  %3554 = vmatpush.msra.mxu1 %v5979_v13  ;;  %v6049_v11 = vld [vmem:[%s10764_s15 + $0xde0] sm:$0xff] }
0x11aa   :  { %3485 = vmatpush.msrb.mxu2 %v5931_v21  ;;  %3531 = vmatpush.msra.mxu3 %v5963_v16  ;;  %v6048_v21 = vld [vmem:[%s10764_s15 + $0xdd8] sm:$0xff] }
0x11ab   :  { %3509 = vmatpush.msra.mxu0 %v5946_v31  ;;  %3555 = vmatpush.msra.mxu1 %v5978_v19  ;;  %v6035_v31 = vld [vmem:[%s10764_s15 + $0xd70] sm:$0xff]  ;;  %v2694_v19 = vperm.slane %v9011_v48, 5 }
0x11ac   :  { %3486 = vmatpush.msrb.mxu2 %v5930_v28  ;;  %3532 = vmatpush.msra.mxu3 %v5962_v29  ;;  %v6015_v28 = vld [vmem:[%s10764_s15 + $0xcd0] sm:$0xff]  ;;  %v6034_v29 = vld [vmem:[%s10764_s15 + $0xd68] sm:$0xff] }
0x11ad   :  { %3510 = vmatpush.msra.mxu0 %v5945_v22  ;;  %3556 = vmatpush.msra.mxu1 %v5977_v23  ;;  %v6002_v22 = vld [vmem:[%s10764_s15 + $0xc68] sm:$0xff]  ;;  %v2696_v23 = vperm.slane %v9011_v48, 7 }
0x11ae   :  { %3487 = vmatpush.msrb.mxu2 %v5929_v34  ;;  %3533 = vmatpush.msra.mxu3 %v5961_v35  ;;  %v6001_v35 = vld [vmem:[%s10764_s15 + $0xc60] sm:$0xff] }
0x11af   :  { %3511 = vmatpush.msra.mxu0 %v5944_v36  ;;  %3557 = vmatpush.msra.mxu1 %v5976_v24 }
0x11b0   :  { %3488 = vmatpush.msrb.mxu2 %v5928_v39  ;;  %3534 = vmatpush.msra.mxu3 %v5960_v40  ;;  %v6014_v40 = vld [vmem:[%s10764_s15 + $0xcc8] sm:$0xff] }
0x11b1   :  { %3512 = vmatpush.msra.mxu0 %v5943_v30  ;;  %3558 = vmatpush.msra.mxu1 %v5975_v32  ;;  %v6047_v32 = vld [vmem:[%s10764_s15 + $0xdd0] sm:$0xff] }
0x11b2   :  { %3489 = vmatpush.msrb.mxu2 %v5927_v42  ;;  %3535 = vmatpush.msra.mxu3 %v5959_v44  ;;  %v6046_v44 = vld [vmem:[%s10764_s15 + $0xdc8] sm:$0xff] }
0x11b3   :  { %3513 = vmatpush.msra.mxu0 %v5942_v14  ;;  %3559 = vmatpush.msra.mxu1 %v5974_v38 }
0x11b4   :  { %3490 = vmatpush.msrb.mxu2 %v5926_v43  ;;  %3536 = vmatpush.msra.mxu3 %v5958_v8  ;;  %v6000_v43 = vld [vmem:[%s10764_s15 + $0xc58] sm:$0xff]  ;;  %v2693_v8 = vperm.slane %v9011_v48, 4 }
0x11b5   :  { %3514 = vmatpush.msra.mxu0 %v5941_v6  ;;  %3560 = vmatpush.msra.mxu1 %v5973_v41  ;;  %v6033_v6 = vld [vmem:[%s10764_s15 + $0xd60] sm:$0xff] }
0x11b6   :  { %3491 = vmatpush.msrb.mxu2 %v5925_v9  ;;  %3537 = vmatpush.msra.mxu3 %v5957_v46  ;;  %v6013_v46 = vld [vmem:[%s10764_s15 + $0xcc0] sm:$0xff] }
0x11cc   :  { %v2767_v50 = vpop.f32.mrf.mxu0 }
0x11cd   :  { %v2768_v45 = vadd.f32 %v2767_v50, %v2690_v27  ;;  %v2813_v51 = vpop.f32.mrf.mxu1 }
0x11ce   :  { %v2814_v52 = vadd.f32 %v2813_v51, %v2692_v12  ;;  %v5999_v51 = vld [vmem:[%s10764_s15 + $0xc50] sm:$0xff] }
0x11cf   :  { %v3096_v53 = vmax.f32 %v2768_v45, 0.0  ;;  %v6045_v45 = vld [vmem:[%s10764_s15 + $0xdc0] sm:$0xff] }
0x11d0   :  { %v3098_v47 = vmax.f32 %v2814_v52, 0.0 }
0x11d1   :  { %3423 = vmatmul.f32.vlgmr.msrb.gmra.mxu0 %v3096_v53  ;;  %v6012_v53 = vld [vmem:[%s10764_s15 + $0xcb8] sm:$0xff] }
0x11d2   :  { %3469 = vmatmul.f32.vlgmr.msrb.gmra.mxu1 %v3098_v47  ;;  %3591 = vmatpush.msrb.mxu0 %v6020_v54  ;;  %v2744_v7 = vpop.f32.mrf.mxu2  ;;  %v6031_v54 = vld [vmem:[%s10764_s15 + $0xd50] sm:$0xff] }
0x11d3   :  { %3637 = vmatpush.msrb.mxu1 %v6052_v25  ;;  %v2745_v58 = vadd.f32 %v2744_v7, %v2689_v55  ;;  %v2790_v62 = vpop.f32.mrf.mxu3  ;;  %v6044_v25 = vld [vmem:[%s10764_s15 + $0xdb8] sm:$0xff] }
0x11d4   :  { %v2791_v0 = vadd.f32 %v2790_v62, %v2691_v56  ;;  %3592 = vmatpush.msrb.mxu0 %v6019_v18  ;;  %v2770_v49 = vpop.f32.mrf.mxu0  ;;  %v5998_v18 = vld [vmem:[%s10764_s15 + $0xc48] sm:$0xff] }
0x11d5   :  { %v3095_v61 = vmax.f32 %v2745_v58, 0.0  ;;  %3638 = vmatpush.msrb.mxu1 %v6051_v26  ;;  %v2771_v2 = vadd.f32 %v2770_v49, %v2690_v27  ;;  %v2816_v3 = vpop.f32.mrf.mxu1  ;;  %v6032_v27 = vld [vmem:[%s10764_s15 + $0xd58] sm:$0xff]  ;;  %v6011_v26 = vld [vmem:[%s10764_s15 + $0xcb0] sm:$0xff]  ;;  %v6030_v58 = vld [vmem:[%s10764_s15 + $0xd48] sm:$0xff] }
0x11d6   :  { %v3097_v60 = vmax.f32 %v2791_v0, 0.0  ;;  %v2817_v59 = vadd.f32 %v2816_v3, %v2692_v12  ;;  %3593 = vmatpush.msrb.mxu0 %v6018_v37  ;;  %v2695_v12 = vperm.slane %v9011_v48, 6  ;;  %v6043_v37 = vld [vmem:[%s10764_s15 + $0xdb0] sm:$0xff]  ;;  %v5997_v49 = vld [vmem:[%s10764_s15 + $0xc40] sm:$0xff] }
0x11d7   :  { %v3112_v63 = vmax.f32 %v2771_v2, 0.0  ;;  %3639 = vmatpush.msrb.mxu1 %v6050_v1  ;;  %3400 = vmatmul.f32.vlgmr.msra.gmra.mxu2 %v3095_v61  ;;  %v6010_v2 = vld [vmem:[%s10764_s15 + $0xca8] sm:$0xff]  ;;  %v6029_v3 = vld [vmem:[%s10764_s15 + $0xd40] sm:$0xff] }
0x11d8   :  { %v3114_v13 = vmax.f32 %v2817_v59, 0.0  ;;  %3446 = vmatmul.f32.vlgmr.msrb.gmra.mxu3 %v3097_v60  ;;  %3568 = vmatpush.msra.mxu2 %v6004_v4  ;;  %v6042_v60 = vld [vmem:[%s10764_s15 + $0xda8] sm:$0xff]  ;;  %v5996_v59 = vld [vmem:[%s10764_s15 + $0xc38] sm:$0xff] }
0x11d9   :  { %3594 = vmatpush.msrb.mxu0 %v6017_v5  ;;  %3614 = vmatpush.msrb.mxu3 %v6036_v10  ;;  %v6009_v10 = vld [vmem:[%s10764_s15 + $0xca0] sm:$0xff] }
0x11da   :  { %3640 = vmatpush.msrb.mxu1 %v6049_v11  ;;  %3426 = vmatmul.f32.gmra.mxu0 %v3112_v63  ;;  %v2747_v16 = vpop.f32.mrf.mxu2  ;;  %v6028_v63 = vld [vmem:[%s10764_s15 + $0xd38] sm:$0xff] }
0x11db   :  { %3472 = vmatmul.f32.gmra.mxu1 %v3114_v13  ;;  %3569 = vmatpush.msra.mxu2 %v6003_v15  ;;  %v2748_v36 = vadd.f32 %v2747_v16, %v2689_v55  ;;  %v2793_v24 = vpop.f32.mrf.mxu3  ;;  %v6041_v15 = vld [vmem:[%s10764_s15 + $0xda0] sm:$0xff]  ;;  %v6027_v16 = vld [vmem:[%s10764_s15 + $0xd30] sm:$0xff] }
0x11dc   :  { %3595 = vmatpush.msrb.mxu0 %v6016_v17  ;;  %3615 = vmatpush.msrb.mxu3 %v6035_v31  ;;  %v2794_v30 = vadd.f32 %v2793_v24, %v2691_v56  ;;  %v2859_v34 = vpop.f32.mrf.mxu0  ;;  %v9162_v31 = vld [vmem:[%s10763_s14 + $0x18] sm:$0xff]  ;;  %v5994_v24 = vld [vmem:[%s10764_s15 + $0xc28] sm:$0xff] }
0x11dd   :  { %3641 = vmatpush.msrb.mxu1 %v6048_v21  ;;  %v3111_v14 = vmax.f32 %v2748_v36, 0.0  ;;  %3570 = vmatpush.msra.mxu2 %v6002_v22  ;;  %v2860_v38 = vadd.f32 %v2859_v34, %v2694_v19  ;;  %v2905_v39 = vpop.f32.mrf.mxu1  ;;  %v6008_v21 = vld [vmem:[%s10764_s15 + $0xc98] sm:$0xff]  ;;  %v2700_v48 = vperm.slane %v9162_v31, 3  ;;  %v6039_v34 = vld [vmem:[%s10764_s15 + $0xd90] sm:$0xff] }
0x11de   :  { %v3113_v41 = vmax.f32 %v2794_v30, 0.0  ;;  %3596 = vmatpush.msrb.mxu0 %v6015_v28  ;;  %3616 = vmatpush.msrb.mxu3 %v6034_v29  ;;  %v2906_v42 = vadd.f32 %v2905_v39, %v2696_v23  ;;  %v2698_v28 = vperm.slane %v9162_v31, 1  ;;  %v6007_v29 = vld [vmem:[%s10764_s15 + $0xc90] sm:$0xff]  ;;  %v6026_v30 = vld [vmem:[%s10764_s15 + $0xd28] sm:$0xff] }
0x11df   :  { %3642 = vmatpush.msrb.mxu1 %v6047_v32  ;;  %3571 = vmatpush.msra.mxu2 %v6001_v35  ;;  %v3100_v9 = vmax.f32 %v2860_v38, 0.0  ;;  %v6006_v39 = vld [vmem:[%s10764_s15 + $0xc88] sm:$0xff] }
0x11e0   :  { %3597 = vmatpush.msrb.mxu0 %v6014_v40  ;;  %3617 = vmatpush.msrb.mxu3 %v6033_v6  ;;  %v3102_v50 = vmax.f32 %v2906_v42, 0.0  ;;  %v6025_v40 = vld [vmem:[%s10764_s15 + $0xd20] sm:$0xff]  ;;  %v6038_v42 = vld [vmem:[%s10764_s15 + $0xd88] sm:$0xff] }
0x11e1   :  { %3643 = vmatpush.msrb.mxu1 %v6046_v44  ;;  %3403 = vmatmul.f32.gmra.mxu2 %v3111_v14  ;;  %v5993_v14 = vld [vmem:[%s10764_s15 + $0xc20] sm:$0xff] }
0x11e2   :  { %3449 = vmatmul.f32.gmra.mxu3 %v3113_v41  ;;  %3572 = vmatpush.msra.mxu2 %v6000_v43  ;;  %v2836_v52 = vpop.f32.mrf.mxu2  ;;  %v5992_v43 = vld [vmem:[%s10764_s15 + $0xc18] sm:$0xff] }
0x11e3   :  { %3598 = vmatpush.msrb.mxu0 %v6013_v46  ;;  %3618 = vmatpush.msrb.mxu3 %v6032_v27  ;;  %v2837_v55 = vadd.f32 %v2836_v52, %v2693_v8  ;;  %v2882_v47 = vpop.f32.mrf.mxu3  ;;  %v6037_v46 = vld [vmem:[%s10764_s15 + $0xd80] sm:$0xff]  ;;  %v6084_v27 = vld [vmem:[%s10764_s15 + $0xef8] sm:$0xff] }
0x11e4   :  { %3644 = vmatpush.msrb.mxu1 %v6045_v45  ;;  %3515 = vmatmul.f32.vlgmr.msra.gmra.mxu0 %v3100_v9  ;;  %v2883_v56 = vadd.f32 %v2882_v47, %v2695_v12  ;;  %v2862_v7 = vpop.f32.mrf.mxu0  ;;  %v6024_v9 = vld [vmem:[%s10764_s15 + $0xd18] sm:$0xff] }
0x11e5   :  { %3561 = vmatmul.f32.vlgmr.msra.gmra.mxu1 %v3102_v50  ;;  %3573 = vmatpush.msra.mxu2 %v5999_v51  ;;  %v2908_v62 = vpop.f32.mrf.mxu1  ;;  %v2863_v0 = vadd.f32 %v2862_v7, %v2694_v19  ;;  %v3099_v1 = vmax.f32 %v2837_v55, 0.0  ;;  %v5995_v19 = vld [vmem:[%s10764_s15 + $0xc30] sm:$0xff]  ;;  %v6116_v45 = vld [vmem:[%s10764_s15 + $0xff8] sm:$0xff]  ;;  %v5990_v7 = vld [vmem:[%s10764_s15 + $0xc08] sm:$0xff] }
0x11e6   :  { %3599 = vmatpush.msrb.mxu0 %v6012_v53  ;;  %3619 = vmatpush.msrb.mxu3 %v6031_v54  ;;  %v2909_v61 = vadd.f32 %v2908_v62, %v2696_v23  ;;  %v3101_v4 = vmax.f32 %v2883_v56, 0.0  ;;  %v6040_v23 = vld [vmem:[%s10764_s15 + $0xd98] sm:$0xff]  ;;  %v5991_v51 = vld [vmem:[%s10764_s15 + $0xc10] sm:$0xff]  ;;  %v2699_v53 = vperm.slane %v9162_v31, 2  ;;  %v6022_v62 = vld [vmem:[%s10764_s15 + $0xd08] sm:$0xff] }
0x11e7   :  { %3645 = vmatpush.msrb.mxu1 %v6044_v25  ;;  %3574 = vmatpush.msra.mxu2 %v5998_v18  ;;  %v3116_v5 = vmax.f32 %v2863_v0, 0.0  ;;  %v6023_v55 = vld [vmem:[%s10764_s15 + $0xd10] sm:$0xff]  ;;  %v6082_v0 = vld [vmem:[%s10764_s15 + $0xee8] sm:$0xff] }
0x11e8   :  { %3600 = vmatpush.msrb.mxu0 %v6011_v26  ;;  %3620 = vmatpush.msrb.mxu3 %v6030_v58  ;;  %v3118_v13 = vmax.f32 %v2909_v61, 0.0  ;;  %v6083_v25 = vld [vmem:[%s10764_s15 + $0xef0] sm:$0xff] }
0x11e9   :  { %3646 = vmatpush.msrb.mxu1 %v6043_v37  ;;  %3575 = vmatpush.msra.mxu2 %v5997_v49  ;;  %v6115_v18 = vld [vmem:[%s10764_s15 + $0xff0] sm:$0xff]  ;;  %v6114_v49 = vld [vmem:[%s10764_s15 + $0xfe8] sm:$0xff] }
0x11ea   :  { %3601 = vmatpush.msrb.mxu0 %v6010_v2  ;;  %3621 = vmatpush.msrb.mxu3 %v6029_v3  ;;  %v2839_v11 = vpop.f32.mrf.mxu2  ;;  %v6021_v2 = vld [vmem:[%s10764_s15 + $0xd00] sm:$0xff]  ;;  %v6068_v3 = vld [vmem:[%s10764_s15 + $0xe78] sm:$0xff] }
0x11eb   :  { %3647 = vmatpush.msrb.mxu1 %v6042_v60  ;;  %3492 = vmatmul.f32.vlgmr.msrb.gmra.mxu2 %v3099_v1  ;;  %v2885_v17 = vpop.f32.mrf.mxu3  ;;  %v2840_v22 = vadd.f32 %v2839_v11, %v2693_v8  ;;  %v6005_v8 = vld [vmem:[%s10764_s15 + $0xc80] sm:$0xff]  ;;  %v6067_v11 = vld [vmem:[%s10764_s15 + $0xe70] sm:$0xff] }
0x11ec   :  { %3538 = vmatmul.f32.vlgmr.msra.gmra.mxu3 %v3101_v4  ;;  %3576 = vmatpush.msra.mxu2 %v5996_v59  ;;  %v2886_v36 = vadd.f32 %v2885_v17, %v2695_v12  ;;  %v2951_v32 = vpop.f32.mrf.mxu0  ;;  %v2697_v12 = vperm.slane %v9162_v31, 0  ;;  %v5989_v1 = vld [vmem:[%s10764_s15 + $0xc00] sm:$0xff]  ;;  %v6099_v17 = vld [vmem:[%s10764_s15 + $0xf70] sm:$0xff] }
0x11ed   :  { %3602 = vmatpush.msrb.mxu0 %v6009_v10  ;;  %3622 = vmatpush.msrb.mxu3 %v6028_v63  ;;  %v2997_v35 = vpop.f32.mrf.mxu1  ;;  %v3115_v38 = vmax.f32 %v2840_v22, 0.0  ;;  %v2952_v41 = vadd.f32 %v2951_v32, %v2698_v28  ;;  %v6081_v59 = vld [vmem:[%s10764_s15 + $0xee0] sm:$0xff] }
0x11ee   :  { %3648 = vmatpush.msrb.mxu1 %v6041_v15  ;;  %3518 = vmatmul.f32.gmra.mxu0 %v3116_v5  ;;  %v3117_v6 = vmax.f32 %v2886_v36, 0.0  ;;  %v2998_v44 = vadd.f32 %v2997_v35, %v2700_v48  ;;  %v6100_v5 = vld [vmem:[%s10764_s15 + $0xf78] sm:$0xff]  ;;  %v6113_v63 = vld [vmem:[%s10764_s15 + $0xfe0] sm:$0xff]  ;;  %v6110_v35 = vld [vmem:[%s10764_s15 + $0xfc8] sm:$0xff] }
0x11ef   :  { %3564 = vmatmul.f32.gmra.mxu1 %v3118_v13  ;;  %3577 = vmatpush.msra.mxu2 %v5995_v19  ;;  %v3104_v50 = vmax.f32 %v2952_v41, 0.0  ;;  %v6080_v15 = vld [vmem:[%s10764_s15 + $0xed8] sm:$0xff]  ;;  %v6065_v32 = vld [vmem:[%s10764_s15 + $0xe60] sm:$0xff] }
0x11f0   :  { %3603 = vmatpush.msrb.mxu0 %v6008_v21  ;;  %3623 = vmatpush.msrb.mxu3 %v6027_v16  ;;  %v3106_v54 = vmax.f32 %v2998_v44, 0.0  ;;  %v6112_v16 = vld [vmem:[%s10764_s15 + $0xfd8] sm:$0xff]  ;;  %v6109_v41 = vld [vmem:[%s10764_s15 + $0xfc0] sm:$0xff] }
0x11f1   :  { %3649 = vmatpush.msrb.mxu1 %v6040_v23  ;;  %3578 = vmatpush.msra.mxu2 %v5994_v24  ;;  %v6066_v23 = vld [vmem:[%s10764_s15 + $0xe68] sm:$0xff]  ;;  %v6079_v24 = vld [vmem:[%s10764_s15 + $0xed0] sm:$0xff]  ;;  %v6076_v44 = vld [vmem:[%s10764_s15 + $0xeb8] sm:$0xff] }
0x11f2   :  { %3604 = vmatpush.msrb.mxu0 %v6007_v29  ;;  %3624 = vmatpush.msrb.mxu3 %v6026_v30  ;;  %v2928_v52 = vpop.f32.mrf.mxu2  ;;  %v6111_v30 = vld [vmem:[%s10764_s15 + $0xfd0] sm:$0xff] }
0x11f3   :  { %3650 = vmatpush.msrb.mxu1 %v6039_v34  ;;  %3579 = vmatpush.msra.mxu2 %v5993_v14  ;;  %v2974_v47 = vpop.f32.mrf.mxu3  ;;  %v2929_v56 = vadd.f32 %v2928_v52, %v2697_v12  ;;  %v6097_v34 = vld [vmem:[%s10764_s15 + $0xf60] sm:$0xff]  ;;  %v6064_v14 = vld [vmem:[%s10764_s15 + $0xe58] sm:$0xff]  ;;  %v6106_v52 = vld [vmem:[%s10764_s15 + $0xfa8] sm:$0xff] }
0x11f4   :  { %3605 = vmatpush.msrb.mxu0 %v6006_v39  ;;  %3625 = vmatpush.msrb.mxu3 %v6025_v40  ;;  %v2954_v26 = vpop.f32.mrf.mxu0  ;;  %v2975_v58 = vadd.f32 %v2974_v47, %v2699_v53  ;;  %v6077_v39 = vld [vmem:[%s10764_s15 + $0xec0] sm:$0xff]  ;;  %v6096_v40 = vld [vmem:[%s10764_s15 + $0xf58] sm:$0xff] }
0x11f5   :  { %3651 = vmatpush.msrb.mxu1 %v6038_v42  ;;  %3495 = vmatmul.f32.gmra.mxu2 %v3115_v38  ;;  %v3000_v37 = vpop.f32.mrf.mxu1  ;;  %v2955_v61 = vadd.f32 %v2954_v26, %v2698_v28  ;;  %v3103_v4 = vmax.f32 %v2929_v56, 0.0  ;;  %v6098_v28 = vld [vmem:[%s10764_s15 + $0xf68] sm:$0xff]  ;;  %v6063_v42 = vld [vmem:[%s10764_s15 + $0xe50] sm:$0xff]  ;;  %v6072_v26 = vld [vmem:[%s10764_s15 + $0xe98] sm:$0xff] }
0x11f6   :  { %3541 = vmatmul.f32.gmra.mxu3 %v3117_v6  ;;  %3580 = vmatpush.msra.mxu2 %v5992_v43  ;;  %v3001_v60 = vadd.f32 %v3000_v37, %v2700_v48  ;;  %v3105_v10 = vmax.f32 %v2975_v58, 0.0  ;;  %v6078_v48 = vld [vmem:[%s10764_s15 + $0xec8] sm:$0xff]  ;;  %v6095_v43 = vld [vmem:[%s10764_s15 + $0xf50] sm:$0xff]  ;;  %v6104_v37 = vld [vmem:[%s10764_s15 + $0xf98] sm:$0xff] }
0x11f7   :  { %3606 = vmatpush.msrb.mxu0 %v6005_v8  ;;  %3626 = vmatpush.msrb.mxu3 %v6024_v9  ;;  %v3120_v13 = vmax.f32 %v2955_v61, 0.0  ;;  %v6108_v8 = vld [vmem:[%s10764_s15 + $0xfb8] sm:$0xff]  ;;  %v6062_v9 = vld [vmem:[%s10764_s15 + $0xe48] sm:$0xff]  ;;  %v6059_v56 = vld [vmem:[%s10764_s15 + $0xe30] sm:$0xff] }
0x11f8   :  { %3652 = vmatpush.msrb.mxu1 %v6037_v46  ;;  %3581 = vmatpush.msra.mxu2 %v5991_v51  ;;  %v3122_v21 = vmax.f32 %v3001_v60, 0.0  ;;  %v6075_v46 = vld [vmem:[%s10764_s15 + $0xeb0] sm:$0xff]  ;;  %v6093_v51 = vld [vmem:[%s10764_s15 + $0xf40] sm:$0xff] }
0x11f9   :  { %3683 = vmatpush.msra.mxu0 %v6084_v27  ;;  %3627 = vmatpush.msrb.mxu3 %v6023_v55  ;;  %v6094_v27 = vld [vmem:[%s10764_s15 + $0xf48] sm:$0xff]  ;;  %v6092_v55 = vld [vmem:[%s10764_s15 + $0xf38] sm:$0xff]  ;;  %v6091_v58 = vld [vmem:[%s10764_s15 + $0xf30] sm:$0xff] }
0x11fa   :  { %3729 = vmatpush.msra.mxu1 %v6116_v45  ;;  %3607 = vmatmul.f32.vlgmr.msrb.gmra.mxu0 %v3104_v50  ;;  %v2931_v19 = vpop.f32.mrf.mxu2  ;;  %v6061_v50 = vld [vmem:[%s10764_s15 + $0xe40] sm:$0xff]  ;;  %v6074_v45 = vld [vmem:[%s10764_s15 + $0xea8] sm:$0xff]  ;;  %v6103_v61 = vld [vmem:[%s10764_s15 + $0xf90] sm:$0xff] }
0x11fb   :  { %3653 = vmatmul.f32.vlgmr.msrb.gmra.mxu1 %v3106_v54  ;;  %3684 = vmatpush.msra.mxu0 %v6083_v25  ;;  %v2977_v22 = vpop.f32.mrf.mxu3  ;;  %v2932_v36 = vadd.f32 %v2931_v19, %v2697_v12  ;;  %v6107_v12 = vld [vmem:[%s10764_s15 + $0xfb0] sm:$0xff]  ;;  %v6073_v54 = vld [vmem:[%s10764_s15 + $0xea0] sm:$0xff]  ;;  %v2703_v19 = vperm.slane %v9162_v31, 6 }
0x11fc   :  { %3730 = vmatpush.msra.mxu1 %v6115_v18  ;;  %3582 = vmatpush.msra.mxu2 %v5990_v7  ;;  %v2978_v29 = vadd.f32 %v2977_v22, %v2699_v53  ;;  %v6060_v53 = vld [vmem:[%s10764_s15 + $0xe38] sm:$0xff]  ;;  %v3043_v47 = vpop.f32.mrf.mxu0  ;;  %v6105_v25 = vld [vmem:[%s10764_s15 + $0xfa0] sm:$0xff]  ;;  %v2702_v18 = vperm.slane %v9162_v31, 5  ;;  %v6055_v22 = vld [vmem:[%s10764_s15 + $0xe10] sm:$0xff] }
0x11fd   :  { %3628 = vmatpush.msrb.mxu3 %v6022_v62  ;;  %3685 = vmatpush.msra.mxu0 %v6082_v0  ;;  %v3119_v38 = vmax.f32 %v2932_v36, 0.0  ;;  %v3089_v7 = vpop.f32.mrf.mxu1  ;;  %v2704_v62 = vperm.slane %v9162_v31, 7  ;;  %v6058_v0 = vld [vmem:[%s10764_s15 + $0xe28] sm:$0xff]  ;;  %v6089_v60 = vld [vmem:[%s10764_s15 + $0xf20] sm:$0xff] }
0x11fe   :  { %3731 = vmatpush.msra.mxu1 %v6114_v49  ;;  %3583 = vmatpush.msra.mxu2 %v5989_v1  ;;  %v3121_v6 = vmax.f32 %v2978_v29, 0.0  ;;  %v6071_v49 = vld [vmem:[%s10764_s15 + $0xe90] sm:$0xff]  ;;  %v6090_v1 = vld [vmem:[%s10764_s15 + $0xf28] sm:$0xff] }
0x11ff   :  { %3629 = vmatpush.msrb.mxu3 %v6021_v2  ;;  %3686 = vmatpush.msra.mxu0 %v6081_v59  ;;  %v6057_v2 = vld [vmem:[%s10764_s15 + $0xe20] sm:$0xff]  ;;  %v3090_v59 = vadd.f32 %v3089_v7, %v2704_v62  ;;  %v6054_v29 = vld [vmem:[%s10764_s15 + $0xe08] sm:$0xff] }
0x1200   :  { %3660 = vmatpush.msrb.mxu2 %v6068_v3  ;;  %3732 = vmatpush.msra.mxu1 %v6113_v63  ;;  %v3044_v3 = vadd.f32 %v3043_v47, %v2702_v18  ;;  %v6056_v63 = vld [vmem:[%s10764_s15 + $0xe18] sm:$0xff] }
0x1201   :  { %3706 = vmatpush.msra.mxu3 %v6100_v5  ;;  %3584 = vmatmul.f32.vlgmr.msra.gmra.mxu2 %v3103_v4  ;;  %v6070_v4 = vld [vmem:[%s10764_s15 + $0xe88] sm:$0xff] }
0x1202   :  { %3630 = vmatmul.f32.vlgmr.msrb.gmra.mxu3 %v3105_v10  ;;  %3661 = vmatpush.msrb.mxu2 %v6067_v11  ;;  %v3020_v5 = vpop.f32.mrf.mxu2  ;;  %v6102_v10 = vld [vmem:[%s10764_s15 + $0xf88] sm:$0xff]  ;;  %v2701_v11 = vperm.slane %v9162_v31, 4  ;;  %v6087_v31 = vld [vmem:[%s10764_s15 + $0xf10] sm:$0xff] }
0x1203   :  { %3687 = vmatpush.msra.mxu0 %v6080_v15  ;;  %3707 = vmatpush.msra.mxu3 %v6099_v17  ;;  %v6069_v15 = vld [vmem:[%s10764_s15 + $0xe80] sm:$0xff]  ;;  %v6088_v17 = vld [vmem:[%s10764_s15 + $0xf18] sm:$0xff] }
0x1204   :  { %3733 = vmatpush.msra.mxu1 %v6112_v16  ;;  %3610 = vmatmul.f32.gmra.mxu0 %v3120_v13  ;;  %v3066_v13 = vpop.f32.mrf.mxu3  ;;  %v3108_v16 = vmax.f32 %v3044_v3, 0.0  ;;  %v3046_v36 = vpop.f32.mrf.mxu0 }
0x1205   :  { %3656 = vmatmul.f32.gmra.mxu1 %v3122_v21  ;;  %3662 = vmatpush.msrb.mxu2 %v6066_v23  ;;  %v6101_v21 = vld [vmem:[%s10764_s15 + $0xf80] sm:$0xff]  ;;  %v3110_v23 = vmax.f32 %v3090_v59, 0.0 }
0x1206   :  { %3688 = vmatpush.msra.mxu0 %v6079_v24  ;;  %3708 = vmatpush.msra.mxu3 %v6098_v28  ;;  %v3021_v24 = vadd.f32 %v3020_v5, %v2701_v11  ;;  %v3092_v28 = vpop.f32.mrf.mxu1 }
0x1207   :  { %3734 = vmatpush.msra.mxu1 %v6111_v30  ;;  %3663 = vmatpush.msrb.mxu2 %v6065_v32  ;;  %v3067_v30 = vadd.f32 %v3066_v13, %v2703_v19  ;;  %v6086_v32 = vld [vmem:[%s10764_s15 + $0xf08] sm:$0xff] }
0x1208   :  { %3689 = vmatpush.msra.mxu0 %v6078_v48  ;;  %3709 = vmatpush.msra.mxu3 %v6097_v34  ;;  %v3047_v48 = vadd.f32 %v3046_v36, %v2702_v18  ;;  %v6053_v34 = vld [vmem:[%s10764_s15 + $0xe00] sm:$0xff] }
0x1209   :  { %3735 = vmatpush.msra.mxu1 %v6110_v35  ;;  %3664 = vmatpush.msrb.mxu2 %v6064_v14  ;;  %v3093_v35 = vadd.f32 %v3092_v28, %v2704_v62  ;;  %v6085_v14 = vld [vmem:[%s10764_s15 + $0xf00] sm:$0xff] }
0x120a   :  { %3690 = vmatpush.msra.mxu0 %v6077_v39  ;;  %3710 = vmatpush.msra.mxu3 %v6096_v40  ;;  %v3109_v39 = vmax.f32 %v3067_v30, 0.0  ;;  %v3023_v40 = vpop.f32.mrf.mxu2 }
0x120b   :  { %3736 = vmatpush.msra.mxu1 %v6109_v41  ;;  %3587 = vmatmul.f32.gmra.mxu2 %v3119_v38  ;;  %v3107_v38 = vmax.f32 %v3021_v24, 0.0 }
0x120c   :  { %3633 = vmatmul.f32.gmra.mxu3 %v3121_v6  ;;  %3665 = vmatpush.msrb.mxu2 %v6063_v42  ;;  %v3124_v6 = vmax.f32 %v3047_v48, 0.0  ;;  %v3069_v41 = vpop.f32.mrf.mxu3  ;;  %v3126_v42 = vmax.f32 %v3093_v35, 0.0 }
0x120d   :  { %3691 = vmatpush.msra.mxu0 %v6076_v44  ;;  %3711 = vmatpush.msra.mxu3 %v6095_v43  ;;  %v3024_v44 = vadd.f32 %v3023_v40, %v2701_v11  ;;  %v3070_v43 = vadd.f32 %v3069_v41, %v2703_v19 }
0x120e   :  { %3737 = vmatpush.msra.mxu1 %v6108_v8  ;;  %3666 = vmatpush.msrb.mxu2 %v6062_v9 }
0x120f   :  { %3692 = vmatpush.msra.mxu0 %v6075_v46  ;;  %3712 = vmatpush.msra.mxu3 %v6094_v27  ;;  %v3123_v8 = vmax.f32 %v3024_v44, 0.0  ;;  %v3125_v9 = vmax.f32 %v3070_v43, 0.0 }
0x1210   :  { %3738 = vmatpush.msra.mxu1 %v6107_v12  ;;  %3667 = vmatpush.msrb.mxu2 %v6061_v50 }
0x1211   :  { %3693 = vmatpush.msra.mxu0 %v6074_v45  ;;  %3713 = vmatpush.msra.mxu3 %v6093_v51 }
0x1212   :  { %3739 = vmatpush.msra.mxu1 %v6106_v52  ;;  %3668 = vmatpush.msrb.mxu2 %v6060_v53 }
0x1213   :  { %3694 = vmatpush.msra.mxu0 %v6073_v54  ;;  %3714 = vmatpush.msra.mxu3 %v6092_v55 }
0x1214   :  { %3740 = vmatpush.msra.mxu1 %v6105_v25  ;;  %3669 = vmatpush.msrb.mxu2 %v6059_v56 }
0x1215   :  { %3695 = vmatpush.msra.mxu0 %v6072_v26  ;;  %3715 = vmatpush.msra.mxu3 %v6091_v58 }
0x1216   :  { %3741 = vmatpush.msra.mxu1 %v6104_v37  ;;  %3670 = vmatpush.msrb.mxu2 %v6058_v0 }
0x1217   :  { %3696 = vmatpush.msra.mxu0 %v6071_v49  ;;  %3716 = vmatpush.msra.mxu3 %v6090_v1 }
0x1218   :  { %3742 = vmatpush.msra.mxu1 %v6103_v61  ;;  %3671 = vmatpush.msrb.mxu2 %v6057_v2 }
0x1219   :  { %3697 = vmatpush.msra.mxu0 %v6070_v4  ;;  %3717 = vmatpush.msra.mxu3 %v6089_v60 }
0x121a   :  { %3743 = vmatpush.msra.mxu1 %v6102_v10  ;;  %3672 = vmatpush.msrb.mxu2 %v6056_v63 }
0x121b   :  { %3698 = vmatpush.msra.mxu0 %v6069_v15  ;;  %3718 = vmatpush.msra.mxu3 %v6088_v17 }
0x121c   :  { %3744 = vmatpush.msra.mxu1 %v6101_v21  ;;  %3699 = vmatmul.f32.vlgmr.msra.gmra.mxu0 %v3108_v16 }
0x121d   :  { %3745 = vmatmul.f32.vlgmr.msra.gmra.mxu1 %v3110_v23  ;;  %3673 = vmatpush.msrb.mxu2 %v6055_v22 }
0x121e   :  { %3719 = vmatpush.msra.mxu3 %v6087_v31 }
0x121f   :  { %3674 = vmatpush.msrb.mxu2 %v6054_v29 }
0x1220   :  { %3720 = vmatpush.msra.mxu3 %v6086_v32 }
0x1221   :  { %3675 = vmatpush.msrb.mxu2 %v6053_v34 }
0x1222   :  { %3721 = vmatpush.msra.mxu3 %v6085_v14  ;;  %3676 = vmatmul.f32.vlgmr.msrb.gmra.mxu2 %v3107_v38 }
0x1223   :  { %3722 = vmatmul.f32.vlgmr.msra.gmra.mxu3 %v3109_v39 }
0x1224   :  { %3702 = vmatmul.f32.gmra.mxu0 %v3124_v6  ;;  %v6609_v6 = vld [vmem:[%s10765_s16 + $0x1] ss:$0 sm:$0xff] }
0x1225   :  { %3748 = vmatmul.f32.gmra.mxu1 %v3126_v42 }
0x122a   :  { %3679 = vmatmul.f32.gmra.mxu2 %v3123_v8 }
0x122b   :  { %3725 = vmatmul.f32.gmra.mxu3 %v3125_v9 }
0x124e   :  { %v3424_v46 = vpop.f32.mrf.mxu0 }
0x124f   :  { %v3470_v50 = vpop.f32.mrf.mxu1 }
0x1257   :  { %v3427_v45 = vpop.f32.mrf.mxu0 }
0x1258   :  { %v3473_v53 = vpop.f32.mrf.mxu1 }
0x125a   :  { %v3401_v27 = vpop.f32.mrf.mxu2 }
0x125b   :  { %v3447_v12 = vpop.f32.mrf.mxu3  ;;  %v3425_v47 = vadd.f32 %v3424_v46, %v3401_v27 }
0x125d   :  { %v3448_v18 = vadd.f32 %v3447_v12, %v3425_v47 }
0x125f   :  { %v3471_v26 = vadd.f32 %v3470_v50, %v3448_v18 }
0x1261   :  { %v3516_v54 = vpop.f32.mrf.mxu0 }
0x1262   :  { %v3562_v56 = vpop.f32.mrf.mxu1 }
0x1264   :  { %v3404_v51 = vpop.f32.mrf.mxu2 }
0x1265   :  { %v3450_v52 = vpop.f32.mrf.mxu3  ;;  %v3428_v7 = vadd.f32 %v3427_v45, %v3404_v51 }
0x1267   :  { %v3451_v49 = vadd.f32 %v3450_v52, %v3428_v7 }
0x1269   :  { %v3474_v2 = vadd.f32 %v3473_v53, %v3451_v49 }
0x126b   :  { %v3519_v58 = vpop.f32.mrf.mxu0 }
0x126c   :  { %v3565_v1 = vpop.f32.mrf.mxu1 }
0x126e   :  { %v3493_v55 = vpop.f32.mrf.mxu2 }
0x126f   :  { %v3539_v25 = vpop.f32.mrf.mxu3  ;;  %v3494_v37 = vadd.f32 %v3493_v55, %v3471_v26 }
0x1271   :  { %v3517_v61 = vadd.f32 %v3516_v54, %v3494_v37  ;;  %v6121_v37 = vld [vmem:[%s10756_s7 + $0x48] sm:$0xff] }
0x1273   :  { %v3540_v3 = vadd.f32 %v3539_v25, %v3517_v61 }
0x1275   :  { %v3563_v63 = vadd.f32 %v3562_v56, %v3540_v3 }
0x1277   :  { %v3608_v60 = vpop.f32.mrf.mxu0 }
0x1278   :  { %v3496_v62 = vpop.f32.mrf.mxu2  ;;  %v3654_v11 = vpop.f32.mrf.mxu1 }
0x1279   :  { %v3542_v0 = vpop.f32.mrf.mxu3  ;;  %v3497_v4 = vadd.f32 %v3496_v62, %v3474_v2  ;;  %v6122_v62 = vld [vmem:[%s10756_s7 + $0x50] sm:$0xff] }
0x127b   :  { %v3520_v10 = vadd.f32 %v3519_v58, %v3497_v4  ;;  %v6123_v58 = vld [vmem:[%s10756_s7 + $0x58] sm:$0xff] }
0x127c   :  { %3847 = vmatpush.msra.mxu2 %v6123_v58 }
0x127d   :  { %v3543_v15 = vadd.f32 %v3542_v0, %v3520_v10  ;;  %v6120_v0 = vld [vmem:[%s10756_s7 + $0x40] sm:$0xff] }
0x127e   :  { %3848 = vmatpush.msra.mxu2 %v6122_v62 }
0x127f   :  { %v3566_v16 = vadd.f32 %v3565_v1, %v3543_v15 }
0x1280   :  { %3849 = vmatpush.msra.mxu2 %v6121_v37 }
0x1281   :  { %v3611_v19 = vpop.f32.mrf.mxu0 }
0x1282   :  { %v3657_v31 = vpop.f32.mrf.mxu1  ;;  %3850 = vmatpush.msra.mxu2 %v6120_v0  ;;  %v6127_v0 = vld [vmem:[%s10758_s9 + $0x40] sm:$0xff] }
0x1284   :  { %v3585_v59 = vpop.f32.mrf.mxu2 }
0x1285   :  { %v3631_v5 = vpop.f32.mrf.mxu3  ;;  %v3586_v13 = vadd.f32 %v3585_v59, %v3563_v63 }
0x1287   :  { %v3609_v17 = vadd.f32 %v3608_v60, %v3586_v13 }
0x1289   :  { %v3632_v23 = vadd.f32 %v3631_v5, %v3609_v17  ;;  %v6610_v17 = vld [vmem:[%s10754_s5 + $0x2] ss:$0 sm:$0xff] }
0x128b   :  { %v3655_v28 = vadd.f32 %v3654_v11, %v3632_v23 }
0x128e   :  { %v3588_v21 = vpop.f32.mrf.mxu2 }
0x128f   :  { %v3634_v22 = vpop.f32.mrf.mxu3  ;;  %v3589_v36 = vadd.f32 %v3588_v21, %v3566_v16  ;;  %v6611_v16 = vld [vmem:[%s10755_s6 + $0x2] ss:$0 sm:$0xff]  ;;  %s10808_s6 = smov 96  }
0x1291   :  { %v3612_v24 = vadd.f32 %v3611_v19, %v3589_v36 }
0x1293   :  { %v3635_v34 = vadd.f32 %v3634_v22, %v3612_v24 }
0x1295   :  { %v3658_v40 = vadd.f32 %v3657_v31, %v3635_v34  ;;  %v6612_v34 = vld [vmem:[%s10757_s8 + $0x2] ss:$0 sm:$0xff] }
0x1299   :  { %v3700_v29 = vpop.f32.mrf.mxu0 }
0x129a   :  { %v3746_v14 = vpop.f32.mrf.mxu1 }
0x12a1   :  { %v3703_v43 = vpop.f32.mrf.mxu0 }
0x12a2   :  { %v3749_v50 = vpop.f32.mrf.mxu1 }
0x12a5   :  { %v3677_v30 = vpop.f32.mrf.mxu2 }
0x12a6   :  { %v3678_v32 = vadd.f32 %v3677_v30, %v3655_v28  ;;  %v3723_v48 = vpop.f32.mrf.mxu3 }
0x12a8   :  { %v3701_v35 = vadd.f32 %v3700_v29, %v3678_v32 }
0x12aa   :  { %v3724_v38 = vadd.f32 %v3723_v48, %v3701_v35 }
0x12ac   :  { %v3747_v39 = vadd.f32 %v3746_v14, %v3724_v38 }
0x12ad   :  { %v3680_v41 = vpop.f32.mrf.mxu2 }
0x12ae   :  { %v3752_v42 = vadd.f32 %v3747_v39, %v8331_v33  ;;  %v3681_v44 = vadd.f32 %v3680_v41, %v3658_v40  ;;  %v3726_v46 = vpop.f32.mrf.mxu3 }
0x12b0   :  { %v3704_v8 = vadd.f32 %v3703_v43, %v3681_v44  ;;  %v9454_v9 = vadd.f32 %v6609_v6, %v3752_v42 }
0x12b2   :  { %v3727_v27 = vadd.f32 %v3726_v46, %v3704_v8  ;;  %v3765_v12 = vsel %vm108_vm1, %v9454_v9, 0.0 }
0x12b3   :  { %3766 = vadd.xlane.f32.xlu1 %v3765_v12 }
0x12b4   :  { %v3750_v45 = vadd.f32 %v3749_v50, %v3727_v27  ;;  %v9514_v27 = vld [vmem:[%s10801_s0] sm:$0xff] }
0x12b6   :  { %v3753_v51 = vadd.f32 %v3750_v45, %v8336_v57 }
0x12b8   :  { %v9459_v52 = vadd.f32 %v6609_v6, %v3753_v51 }
0x12ba   :  { %v3768_v33 = vsel %vm108_vm1, %v9459_v52, 0.0 }
0x12bb   :  { %3769 = vadd.xlane.f32.xlu0 %v3768_v33  ;;  %v9521_v33 = vld [vmem:[%s10801_s0 + $0x8] sm:$0xff]  ;;  %s10812_s0 = smov 80  }
0x1326   :  { %v3767_v53 = vpop.xlane.xlu1 %3766 }
0x1327   :  { %v3771_v54 = vmul.f32 %v3767_v53, %v6911_v20 }
0x1329   :  { %v3773_v55 = vsub.f32 %v9454_v9, %v3771_v54 }
0x132b   :  { %v3775_v47 = vmul.f32 %v3773_v55, %v3773_v55 }
0x132d   :  { %v3777_v25 = vsel %vm108_vm1, %v3775_v47, 0.0 }
0x132e   :  { %3778 = vadd.xlane.f32.xlu2 %v3777_v25  ;;  %v3770_v56 = vpop.xlane.xlu0 %3769 }
0x132f   :  { %v3772_v18 = vmul.f32 %v3770_v56, %v6911_v20 }
0x1331   :  { %v3774_v57 = vsub.f32 %v9459_v52, %v3772_v18 }
0x1333   :  { %v3776_v7 = vmul.f32 %v3774_v57, %v3774_v57 }
0x1335   :  { %v3780_v26 = vsel %vm108_vm1, %v3776_v7, 0.0 }
0x1336   :  { %3781 = vadd.xlane.f32.xlu1 %v3780_v26 }
0x13a1   :  { %v3779_v49 = vpop.xlane.xlu2 %3778 }
0x13a2   :  { %v3783_v1 = vmul.f32 %v3779_v49, %v6911_v20 }
0x13a4   :  { %v3785_v61 = vadd.f32 1e-05, %v3783_v1 }
0x13a6   :  { %6700 = vrsqrt.f32 %v3785_v61  ;;  %vm3793_vm2 = vweird.f32 %v3785_v61 }
0x13a9   :  { %v3782_v2 = vpop.xlane.xlu1 %3781 }
0x13aa   :  { %v3784_v3 = vmul.f32 %v3782_v2, %v6911_v20 }
0x13ac   :  { %v6701_v4 = vpop.eup %6700  ;;  %v3786_v60 = vadd.f32 1e-05, %v3784_v3 }
0x13ad   :  { %v3788_v59 = vmul.f32 %v6701_v4, %v3785_v61  ;;  %vm3794_vm15 = vweird.f32 %v6701_v4 }
0x13ae   :  { %6702 = vrsqrt.f32 %v3786_v60  ;;  %vm3795_vm3 = vmor %vm3793_vm2, %vm3794_vm15  ;;  %vm3803_vm5 = vweird.f32 %v3786_v60 }
0x13af   :  { %v3789_v5 = vmul.f32 %v6701_v4, %v3788_v59 }
0x13b1   :  { %v3790_v10 = vmul.f32 0.5, %v3789_v5 }
0x13b3   :  { %v3791_v63 = vsub.f32 1.5, %v3790_v10 }
0x13b4   :  { %v6703_v11 = vpop.eup %6702 }
0x13b5   :  { %v3792_v13 = vmul.f32 %v6701_v4, %v3791_v63  ;;  %v3798_v15 = vmul.f32 %v6703_v11, %v3786_v60  ;;  %vm3804_vm4 = vweird.f32 %v6703_v11 }
0x13b6   :  { %vm3805_vm6 = vmor %vm3803_vm5, %vm3804_vm4 }
0x13b7   :  { %v3796_v19 = vsel %vm3795_vm3, %v6701_v4, %v3792_v13  ;;  %v3799_v21 = vmul.f32 %v6703_v11, %v3798_v15 }
0x13b8   :  { %v3807_v22 = vmul.f32 %v3796_v19, %v3773_v55 }
0x13b9   :  { %v3800_v23 = vmul.f32 0.5, %v3799_v21 }
0x13ba   :  { %v3812_v36 = vmul.f32 %v6610_v17, %v3807_v22 }
0x13bb   :  { %v3801_v31 = vsub.f32 1.5, %v3800_v23 }
0x13bc   :  { %v3817_v24 = vadd.f32 %v6611_v16, %v3812_v36 }
0x13bd   :  { %v3802_v28 = vmul.f32 %v6703_v11, %v3801_v31 }
0x13be   :  { %6125 = vmatmul.msk.f32.vlgmr.msra.gmra.mxu2 %vm108_vm1, %v3817_v24 }
0x13bf   :  { %v3806_v29 = vsel %vm3805_vm6, %v6703_v11, %v3802_v28 }
0x13c0   :  { %v3808_v30 = vmul.f32 %v3806_v29, %v3774_v57 }
0x13c2   :  { %v3813_v32 = vmul.f32 %v6610_v17, %v3808_v30 }
0x13c4   :  { %v3818_v48 = vadd.f32 %v6611_v16, %v3813_v32 }
0x13c6   :  { %6126 = vmatmul.msk.f32.gmra.mxu2 %vm108_vm1, %v3818_v48 }
0x1441   :  { %v3852_v35 = vpop.f32.mrf.mxu2 }
0x1442   :  { %v3853_v14 = vadd.f32 %v6612_v34, %v3852_v35 }
0x1444   :  { %3865 = vrot.lane.b32.xlu2 %v3853_v14, %s10808_s6 }
0x1449   :  { %v3855_v38 = vpop.f32.mrf.mxu2 }
0x144a   :  { %v3856_v39 = vadd.f32 %v6612_v34, %v3855_v38 }
0x144c   :  { %3867 = vrot.lane.b32.xlu0 %v3856_v39, %s10808_s6  ;;  %v9496_v40 = vpack.i.bf16 %v3853_v14, %v3856_v39 }
0x1454   :  { %6576 = vrot.lane.b32.xlu0 %v9496_v40, %s10809_s20 }
0x145c   :  { %3965 = vrot.lane.b32.xlu0 %v3853_v14, %s10810_s3 }
0x1464   :  { %3961 = vrot.lane.b32.xlu0 %v3853_v14, %s10811_s22 }
0x146c   :  { %4256 = vrot.lane.b32.xlu0 %v3856_v39, %s10803_s25 }
0x1474   :  { %3963 = vrot.lane.b32.xlu0 %v3856_v39, %s10811_s22 }
0x147c   :  { %4254 = vrot.lane.b32.xlu0 %v3853_v14, %s10803_s25 }
0x1484   :  { %4119 = vrot.lane.b32.xlu0 %v3853_v14, %s10802_s24 }
0x148c   :  { %4121 = vrot.lane.b32.xlu0 %v3856_v39, %s10802_s24  ;;  %s6782_s24 = smov [#allocation2]  }
0x148d   :  { %s5636_s2 = sshll.u32 %s6782_s24, 4  ;;  %s5637_s2 = int_to_ptr.vmem [resolvable:$true] %s5636_s2 }
0x149e   :  { %v3866_v41 = vpop.permute.xlu2 %3865 }
0x14be   :  { %v3868_v6 = vpop.permute.xlu0 %3867 }
0x14bf   :  { %6131 = vmatpush.xpose.msk.msrb.mxu0 %vm217_vm9, %v3868_v6 }
0x14c3   :  { %6132 = vmatpush.xpose.msk.msrb.mxu0 %vm217_vm9, %v3866_v41 }
0x14c6   :  { %6133 = vmatmul.msk.f32.vlgmr.msrb.gmra.mxu0 %vm217_vm9, %v3853_v14  ;;  %v6577_v42 = vpop.permute.xlu0 %6576 }
0x14c7   :  { %v6578_v44 = vunpack.i.l.bf16 %v6577_v42  ;;  %v6579_v43 = vunpack.i.h.bf16 %v6577_v42 }
0x14c9   :  { %3952 = vmatpush.msrb.mxu3 %v6578_v44 }
0x14cb   :  { %3953 = vmatpush.msrb.mxu3 %v6579_v43 }
0x14cd   :  { %4111 = vmatpush.msra.mxu3 %v6127_v0 }
0x14ce   :  { %6134 = vmatmul.msk.f32.gmra.mxu0 %vm217_vm9, %v3856_v39  ;;  %v3966_v37 = vpop.permute.xlu0 %3965 }
0x14d6   :  { %v3962_v49 = vpop.permute.xlu0 %3961 }
0x14de   :  { %v4257_v1 = vpop.permute.xlu0 %4256 }
0x14e6   :  { %v3964_v2 = vpop.permute.xlu0 %3963 }
0x14ee   :  { %v4255_v59 = vpop.permute.xlu0 %4254 }
0x14f6   :  { %v4120_v15 = vpop.permute.xlu0 %4119 }
0x14fe   :  { %v4122_v17 = vpop.permute.xlu0 %4121 }
0x1543   :  { %v3894_v8 = vpop.f32.mrf.mxu0 }
0x1544   :  { %v3900_v46 = vmul.f32 0.35355338, %v3894_v8 }
0x1546   :  { %v3902_v12 = vadd.f32 %v9514_v27, %v3900_v46 }
0x1548   :  { %v3904_v50 = vsel %vm74_vm0, %v3902_v12, -inf }
0x1549   :  { %3905 = vmax.xlane.f32.xlu1 %v3904_v50 }
0x154b   :  { %v3897_v45 = vpop.f32.mrf.mxu0 }
0x154c   :  { %v3901_v51 = vmul.f32 0.35355338, %v3897_v45 }
0x154e   :  { %v3903_v53 = vadd.f32 %v9521_v33, %v3901_v51 }
0x1550   :  { %v3907_v54 = vsel %vm74_vm0, %v3903_v53, -inf }
0x1551   :  { %3908 = vmax.xlane.f32.xlu1 %v3907_v54 }
0x15bc   :  { %v3906_v55 = vpop.xlane.xlu1 %3905 }
0x15bd   :  { %v3910_v47 = vsub.f32 %v3902_v12, %v3906_v55 }
0x15bf   :  { %v3912_v25 = vmul.f32 1.442695, %v3910_v47 }
0x15c1   :  { %6704 = vpow2.f32 %v3912_v25 }
0x15c4   :  { %v3909_v56 = vpop.xlane.xlu1 %3908 }
0x15c5   :  { %v3911_v18 = vsub.f32 %v3903_v53, %v3909_v56 }
0x15c7   :  { %v6705_v57 = vpop.eup %6704  ;;  %v3914_v7 = vmul.f32 1.442695, %v3911_v18 }
0x15c8   :  { %v3916_v26 = vsel %vm74_vm0, %v6705_v57, 0.0 }
0x15c9   :  { %6706 = vpow2.f32 %v3914_v7  ;;  %3917 = vadd.xlane.f32.xlu1 %v3916_v26 }
0x15cf   :  { %v6707_v58 = vpop.eup %6706 }
0x15d0   :  { %v3919_v62 = vsel %vm74_vm0, %v6707_v58, 0.0 }
0x15d1   :  { %3920 = vadd.xlane.f32.xlu2 %v3919_v62 }
0x15e2   :  { %3967 = vrot.lane.b32.xlu1 %v3856_v39, %s10810_s3 }
0x15e9   :  { %4123 = vrot.lane.b32.xlu2 %v3853_v14, %s10812_s0 }
0x15ea   :  { %4125 = vrot.lane.b32.xlu1 %v3856_v39, %s10812_s0 }
0x15f2   :  { %4250 = vrot.lane.b32.xlu1 %v3853_v14, %s10804_s30 }
0x15fa   :  { %4252 = vrot.lane.b32.xlu1 %v3856_v39, %s10804_s30 }
0x163c   :  { %v3918_v61 = vpop.xlane.xlu1 %3917 }
0x163d   :  { %6708 = vrcp.f32 %v3918_v61 }
0x1643   :  { %v6709_v3 = vpop.eup %6708 }
0x1644   :  { %v3924_v4 = vmul.f32 %v6709_v3, %v6705_v57  ;;  %v3921_v60 = vpop.xlane.xlu2 %3920 }
0x1645   :  { %6710 = vrcp.f32 %v3921_v60 }
0x1646   :  { %6135 = vmatmul.msk.f32.vlgmr.msrb.gmra.mxu3 %vm74_vm0, %v3924_v4 }
0x1647   :  { %6155 = vmatpush.xpose.msk.msrb.mxu3 %vm217_vm9, %v4257_v1 }
0x164b   :  { %v6711_v5 = vpop.eup %6710  ;;  %6156 = vmatpush.xpose.msk.msrb.mxu3 %vm217_vm9, %v4255_v59 }
0x164c   :  { %v3925_v10 = vmul.f32 %v6711_v5, %v6707_v58  ;;  %v4124_v13 = vpop.permute.xlu2 %4123 }
0x164e   :  { %6136 = vmatmul.msk.f32.gmra.mxu3 %vm74_vm0, %v3925_v10 }
0x1654   :  { %v3968_v63 = vpop.permute.xlu1 %3967 }
0x1655   :  { %6137 = vmatpush.xpose.msk.msrb.mxu1 %vm217_vm9, %v3968_v63 }
0x1659   :  { %6138 = vmatpush.xpose.msk.msrb.mxu1 %vm217_vm9, %v3966_v37 }
0x165c   :  { %v4126_v11 = vpop.permute.xlu1 %4125  ;;  %6139 = vmatmul.msk.f32.vlgmr.msrb.gmra.mxu1 %vm217_vm9, %v3962_v49 }
0x165d   :  { %6147 = vmatpush.xpose.msk.msra.mxu1 %vm217_vm9, %v4126_v11 }
0x1661   :  { %6148 = vmatpush.xpose.msk.msra.mxu1 %vm217_vm9, %v4124_v13 }
0x1664   :  { %6140 = vmatmul.msk.f32.gmra.mxu1 %vm217_vm9, %v3964_v2  ;;  %v4251_v16 = vpop.permute.xlu1 %4250 }
0x166c   :  { %6149 = vmatmul.msk.f32.vlgmr.msra.gmra.mxu1 %vm217_vm9, %v4120_v15  ;;  %v4253_v24 = vpop.permute.xlu1 %4252 }
0x1674   :  { %6150 = vmatmul.msk.f32.gmra.mxu1 %vm217_vm9, %v4122_v17 }
0x16c9   :  { %v3955_v19 = vpop.f32.mrf.mxu3 }
0x16ca   :  { %6145 = vmatmul.msk.f32.vlgmr.msra.gmra.mxu3 %vm217_vm9, %v3955_v19 }
0x16d1   :  { %v3958_v21 = vpop.f32.mrf.mxu3 }
0x16d2   :  { %6146 = vmatmul.msk.f32.gmra.mxu3 %vm217_vm9, %v3958_v21 }
0x16d9   :  { %v3994_v22 = vpop.f32.mrf.mxu1 }
0x16da   :  { %v4000_v23 = vmul.f32 0.35355338, %v3994_v22  ;;  %6157 = vmatmul.msk.f32.vlgmr.msrb.gmra.mxu3 %vm217_vm9, %v4251_v16 }
0x16dc   :  { %v4002_v36 = vadd.f32 %v9514_v27, %v4000_v23 }
0x16de   :  { %v4004_v31 = vsel %vm74_vm0, %v4002_v36, -inf }
0x16df   :  { %4005 = vmax.xlane.f32.xlu1 %v4004_v31 }
0x16e1   :  { %v3997_v28 = vpop.f32.mrf.mxu1 }
0x16e2   :  { %v4001_v29 = vmul.f32 0.35355338, %v3997_v28  ;;  %6158 = vmatmul.msk.f32.gmra.mxu3 %vm217_vm9, %v4253_v24 }
0x16e4   :  { %v4003_v30 = vadd.f32 %v9521_v33, %v4001_v29 }
0x16e6   :  { %v4007_v32 = vsel %vm74_vm0, %v4003_v30, -inf }
0x16e7   :  { %4008 = vmax.xlane.f32.xlu0 %v4007_v32 }
0x16e9   :  { %v4152_v48 = vpop.f32.mrf.mxu1 }
0x16ea   :  { %v4158_v34 = vmul.f32 0.35355338, %v4152_v48 }
0x16ec   :  { %v4160_v35 = vadd.f32 %v9514_v27, %v4158_v34 }
0x16ee   :  { %v4162_v14 = vsel %vm74_vm0, %v4160_v35, -inf }
0x16ef   :  { %4163 = vmax.xlane.f32.xlu2 %v4162_v14 }
0x16f1   :  { %v4155_v38 = vpop.f32.mrf.mxu1 }
0x16f2   :  { %v4159_v39 = vmul.f32 0.35355338, %v4155_v38 }
0x16f4   :  { %v4161_v6 = vadd.f32 %v9521_v33, %v4159_v39 }
0x16f6   :  { %v4165_v41 = vsel %vm74_vm0, %v4161_v6, -inf }
0x16f7   :  { %4166 = vmax.xlane.f32.xlu0 %v4165_v41 }
0x170b   :  { %6581 = vrot.lane.b32.xlu0 %v9496_v40, %s10805_s26 }
0x1713   :  { %6591 = vrot.lane.b32.xlu0 %v9496_v40, %s10807_s4 }
0x174d   :  { %v9563_v42 = vpop.f32.mrf.mxu3 }
0x1752   :  { %v4006_v44 = vpop.xlane.xlu1 %4005 }
0x1753   :  { %v4010_v43 = vsub.f32 %v4002_v36, %v4006_v44  ;;  %v6128_v44 = vld [vmem:[%s10758_s9 + $0x48] sm:$0xff] }
0x1754   :  { %4082 = vmatpush.msra.mxu0 %v6128_v44  ;;  %v6218_v44 = vld [vmem:[%s10762_s13 + $0x5a0] sm:$0xff] }
0x1755   :  { %v4012_v8 = vmul.f32 1.442695, %v4010_v43  ;;  %v9565_v46 = vpop.f32.mrf.mxu3 }
0x1757   :  { %6712 = vpow2.f32 %v4012_v8  ;;  %v6129_v8 = vld [vmem:[%s10758_s9 + $0x50] sm:$0xff] }
0x1758   :  { %4240 = vmatpush.msrb.mxu0 %v6129_v8  ;;  %v6220_v8 = vld [vmem:[%s10762_s13 + $0x5b0] sm:$0xff] }
0x175a   :  { %v4009_v45 = vpop.xlane.xlu0 %4008 }
0x175b   :  { %v4011_v55 = vsub.f32 %v4003_v30, %v4009_v45 }
0x175d   :  { %v6713_v12 = vpop.eup %6712  ;;  %v4283_v50 = vpop.f32.mrf.mxu3  ;;  %v4014_v18 = vmul.f32 1.442695, %v4011_v55 }
0x175e   :  { %v4289_v51 = vmul.f32 0.35355338, %v4283_v50  ;;  %v4016_v53 = vsel %vm74_vm0, %v6713_v12, 0.0 }
0x175f   :  { %4017 = vadd.xlane.f32.xlu2 %v4016_v53  ;;  %v6130_v53 = vld [vmem:[%s10758_s9 + $0x58] sm:$0xff] }
0x1760   :  { %v4291_v54 = vadd.f32 %v9514_v27, %v4289_v51 }
0x1762   :  { %v4164_v47 = vpop.xlane.xlu2 %4163  ;;  %v4293_v25 = vsel %vm74_vm0, %v4291_v54, -inf }
0x1763   :  { %v4168_v56 = vsub.f32 %v4160_v35, %v4164_v47  ;;  %4294 = vmax.xlane.f32.xlu1 %v4293_v25 }
0x1765   :  { %v4170_v57 = vmul.f32 1.442695, %v4168_v56  ;;  %v4286_v7 = vpop.f32.mrf.mxu3 }
0x1766   :  { %v4290_v26 = vmul.f32 0.35355338, %v4286_v7 }
0x1767   :  { %6714 = vpow2.f32 %v4170_v57 }
0x1768   :  { %v4292_v58 = vadd.f32 %v9521_v33, %v4290_v26  ;;  %6716 = vpow2.f32 %v4014_v18 }
0x176a   :  { %v4167_v62 = vpop.xlane.xlu0 %4166  ;;  %v4296_v37 = vsel %vm74_vm0, %v4292_v58, -inf }
0x176b   :  { %v4169_v0 = vsub.f32 %v4161_v6, %v4167_v62  ;;  %4297 = vmax.xlane.f32.xlu1 %v4296_v37 }
0x176d   :  { %v6715_v27 = vpop.eup %6714  ;;  %v4172_v49 = vmul.f32 1.442695, %v4169_v0 }
0x176e   :  { %v4174_v1 = vsel %vm74_vm0, %v6715_v27, 0.0  ;;  %v6717_v61 = vpop.eup %6716 }
0x176f   :  { %4175 = vadd.xlane.f32.xlu2 %v4174_v1  ;;  %6718 = vpow2.f32 %v4172_v49  ;;  %v4019_v2 = vsel %vm74_vm0, %v6717_v61, 0.0  ;;  %v6613_v49 = vld [vmem:[%s10759_s10 + $0x2] ss:$0 sm:$0xff] }
0x1773   :  { %4020 = vadd.xlane.f32.xlu1 %v4019_v2 }
0x1775   :  { %v6719_v3 = vpop.eup %6718 }
0x1776   :  { %v4177_v4 = vsel %vm74_vm0, %v6719_v3, 0.0 }
0x177b   :  { %4178 = vadd.xlane.f32.xlu1 %v4177_v4 }
0x177d   :  { %v6582_v33 = vpop.permute.xlu0 %6581 }
0x177e   :  { %v6583_v60 = vunpack.i.l.bf16 %v6582_v33  ;;  %v6584_v59 = vunpack.i.h.bf16 %v6582_v33 }
0x1780   :  { %4052 = vmatpush.msrb.mxu2 %v6583_v60 }
0x1782   :  { %4053 = vmatpush.msrb.mxu2 %v6584_v59 }
0x1785   :  { %v6592_v5 = vpop.permute.xlu0 %6591 }
0x1786   :  { %v6593_v10 = vunpack.i.l.bf16 %v6592_v5  ;;  %v6594_v63 = vunpack.i.h.bf16 %v6592_v5 }
0x1787   :  { %6586 = vrot.lane.b32.xlu2 %v9496_v40, %s10806_s29 }
0x1788   :  { %4341 = vmatpush.msrb.mxu1 %v6593_v10 }
0x178a   :  { %4342 = vmatpush.msrb.mxu1 %v6594_v63 }
0x17d2   :  { %v4018_v11 = vpop.xlane.xlu2 %4017 }
0x17d3   :  { %6720 = vrcp.f32 %v4018_v11 }
0x17d6   :  { %v4295_v13 = vpop.xlane.xlu1 %4294 }
0x17d7   :  { %v4299_v15 = vsub.f32 %v4291_v54, %v4295_v13 }
0x17d9   :  { %v6721_v17 = vpop.eup %6720  ;;  %v4301_v19 = vmul.f32 1.442695, %v4299_v15 }
0x17da   :  { %v4024_v21 = vmul.f32 %v6721_v17, %v6713_v12 }
0x17db   :  { %6722 = vpow2.f32 %v4301_v19 }
0x17dc   :  { %6141 = vmatmul.msk.f32.vlgmr.msrb.gmra.mxu2 %vm74_vm0, %v4024_v21 }
0x17de   :  { %v4298_v16 = vpop.xlane.xlu1 %4297 }
0x17df   :  { %v4300_v22 = vsub.f32 %v4292_v58, %v4298_v16  ;;  %v6214_v16 = vld [vmem:[%s10762_s13 + $0x580] sm:$0xff] }
0x17e1   :  { %v6723_v23 = vpop.eup %6722  ;;  %v4303_v36 = vmul.f32 1.442695, %v4300_v22  ;;  %v6215_v22 = vld [vmem:[%s10762_s13 + $0x588] sm:$0xff] }
0x17e2   :  { %v4176_v31 = vpop.xlane.xlu2 %4175  ;;  %v4305_v40 = vsel %vm74_vm0, %v6723_v23, 0.0  ;;  %4591 = vmatpush.msra.mxu3 %v6215_v22  ;;  %v6207_v22 = vld [vmem:[%s10762_s13 + $0x548] sm:$0xff] }
0x17e3   :  { %6724 = vpow2.f32 %v4303_v36  ;;  %4306 = vadd.xlane.f32.xlu1 %v4305_v40  ;;  %v6217_v36 = vld [vmem:[%s10762_s13 + $0x598] sm:$0xff]  ;;  %v6199_v40 = vld [vmem:[%s10762_s13 + $0x508] sm:$0xff] }
0x17e4   :  { %4592 = vmatpush.msra.mxu3 %v6199_v40  ;;  %v6190_v40 = vld [vmem:[%s10762_s13 + $0x4c0] sm:$0xff] }
0x17e6   :  { %v4021_v24 = vpop.xlane.xlu1 %4020 }
0x17e7   :  { %6726 = vrcp.f32 %v4021_v24  ;;  %v6200_v24 = vld [vmem:[%s10762_s13 + $0x510] sm:$0xff] }
0x17e8   :  { %6728 = vrcp.f32 %v4176_v31  ;;  %v6198_v31 = vld [vmem:[%s10762_s13 + $0x500] sm:$0xff] }
0x17e9   :  { %v6725_v28 = vpop.eup %6724 }
0x17ea   :  { %v6587_v29 = vpop.permute.xlu2 %6586  ;;  %v4308_v30 = vsel %vm74_vm0, %v6725_v28, 0.0 }
0x17eb   :  { %v6588_v32 = vunpack.i.l.bf16 %v6587_v29  ;;  %4309 = vadd.xlane.f32.xlu1 %v4308_v30  ;;  %v6589_v34 = vunpack.i.h.bf16 %v6587_v29  ;;  %v6182_v29 = vld [vmem:[%s10762_s13 + $0x480] sm:$0xff]  ;;  %v6183_v30 = vld [vmem:[%s10762_s13 + $0x488] sm:$0xff] }
0x17ec   :  { %4593 = vmatpush.msra.mxu3 %v6183_v30 }
0x17ed   :  { %v6727_v48 = vpop.eup %6726  ;;  %4210 = vmatpush.msra.mxu2 %v6588_v32  ;;  %v6184_v32 = vld [vmem:[%s10762_s13 + $0x490] sm:$0xff] }
0x17ee   :  { %v4025_v35 = vmul.f32 %v6727_v48, %v6717_v61  ;;  %v4179_v14 = vpop.xlane.xlu1 %4178  ;;  %v6729_v38 = vpop.eup %6728  ;;  %v6185_v48 = vld [vmem:[%s10762_s13 + $0x498] sm:$0xff] }
0x17ef   :  { %4211 = vmatpush.msra.mxu2 %v6589_v34  ;;  %6730 = vrcp.f32 %v4179_v14  ;;  %v4182_v39 = vmul.f32 %v6729_v38, %v6715_v27  ;;  %v6166_v34 = vld [vmem:[%s10762_s13 + $0x400] sm:$0xff]  ;;  %v6168_v14 = vld [vmem:[%s10762_s13 + $0x410] sm:$0xff]  ;;  %v6169_v38 = vld [vmem:[%s10762_s13 + $0x418] sm:$0xff] }
0x17f0   :  { %6142 = vmatmul.msk.f32.gmra.mxu2 %vm74_vm0, %v4025_v35  ;;  %v6167_v35 = vld [vmem:[%s10762_s13 + $0x408] sm:$0xff] }
0x17f1   :  { %4371 = vmatpush.msrb.mxu2 %v6130_v53  ;;  %4594 = vmatpush.msra.mxu3 %v6167_v35  ;;  %v6204_v53 = vld [vmem:[%s10762_s13 + $0x530] sm:$0xff]  ;;  %v6177_v35 = vld [vmem:[%s10762_s13 + $0x458] sm:$0xff] }
0x17f5   :  { %v6731_v6 = vpop.eup %6730 }
0x17f6   :  { %v4183_v41 = vmul.f32 %v6731_v6, %v6719_v3 }
0x17f8   :  { %6151 = vmatmul.msk.f32.vlgmr.msra.gmra.mxu2 %vm74_vm0, %v4182_v39 }
0x17f9   :  { %4637 = vmatpush.msra.mxu2 %v6217_v36  ;;  %v6208_v36 = vld [vmem:[%s10762_s13 + $0x550] sm:$0xff] }
0x1800   :  { %6152 = vmatmul.msk.f32.gmra.mxu2 %vm74_vm0, %v4183_v41 }
0x1856   :  { %v4307_v43 = vpop.xlane.xlu1 %4306 }
0x1857   :  { %6732 = vrcp.f32 %v4307_v43  ;;  %v6219_v43 = vld [vmem:[%s10762_s13 + $0x5a8] sm:$0xff] }
0x1858   :  { %4683 = vmatpush.msrb.mxu3 %v6219_v43  ;;  %v6212_v43 = vld [vmem:[%s10762_s13 + $0x570] sm:$0xff] }
0x185d   :  { %v6733_v12 = vpop.eup %6732 }
0x185e   :  { %v4313_v50 = vmul.f32 %v6733_v12, %v6723_v23  ;;  %v4310_v45 = vpop.xlane.xlu1 %4309  ;;  %v6216_v23 = vld [vmem:[%s10762_s13 + $0x590] sm:$0xff]  ;;  %v6221_v12 = vld [vmem:[%s10762_s13 + $0x5b8] sm:$0xff] }
0x185f   :  { %6734 = vrcp.f32 %v4310_v45  ;;  %v4055_v51 = vpop.f32.mrf.mxu2  ;;  %4614 = vmatpush.msra.mxu1 %v6216_v23  ;;  %v6203_v45 = vld [vmem:[%s10762_s13 + $0x528] sm:$0xff] }
0x1860   :  { %6143 = vmatmul.msk.f32.vlgmr.msra.gmra.mxu0 %vm217_vm9, %v4055_v51  ;;  %6159 = vmatmul.msk.f32.vlgmr.msrb.gmra.mxu1 %vm74_vm0, %v4313_v50  ;;  %v6202_v50 = vld [vmem:[%s10762_s13 + $0x520] sm:$0xff] }
0x1861   :  { %4568 = vmatpush.msra.mxu0 %v6214_v16  ;;  %4615 = vmatpush.msra.mxu1 %v6200_v24  ;;  %v6206_v16 = vld [vmem:[%s10762_s13 + $0x540] sm:$0xff] }
0x1862   :  { %4684 = vmatpush.msrb.mxu3 %v6203_v45  ;;  %v6196_v45 = vld [vmem:[%s10762_s13 + $0x4f0] sm:$0xff] }
0x1863   :  { %4569 = vmatpush.msra.mxu0 %v6198_v31  ;;  %4616 = vmatpush.msra.mxu1 %v6184_v32  ;;  %v6209_v31 = vld [vmem:[%s10762_s13 + $0x558] sm:$0xff]  ;;  %v6174_v32 = vld [vmem:[%s10762_s13 + $0x440] sm:$0xff] }
0x1865   :  { %v6735_v54 = vpop.eup %6734  ;;  %4570 = vmatpush.msra.mxu0 %v6182_v29  ;;  %4617 = vmatpush.msra.mxu1 %v6168_v14  ;;  %v6193_v29 = vld [vmem:[%s10762_s13 + $0x4d8] sm:$0xff]  ;;  %v6226_v14 = vld [vmem:[%s10762_s13 + $0x5e0] sm:$0xff] }
0x1866   :  { %v4314_v55 = vmul.f32 %v6735_v54, %v6725_v28  ;;  %v6201_v28 = vld [vmem:[%s10762_s13 + $0x518] sm:$0xff] }
0x1867   :  { %4638 = vmatpush.msra.mxu2 %v6201_v28  ;;  %4571 = vmatpush.msra.mxu0 %v6166_v34  ;;  %v6205_v54 = vld [vmem:[%s10762_s13 + $0x538] sm:$0xff]  ;;  %v6192_v28 = vld [vmem:[%s10762_s13 + $0x4d0] sm:$0xff] }
0x1868   :  { %6160 = vmatmul.msk.f32.gmra.mxu1 %vm74_vm0, %v4314_v55  ;;  %v6186_v55 = vld [vmem:[%s10762_s13 + $0x4a0] sm:$0xff]  ;;  %v6176_v34 = vld [vmem:[%s10762_s13 + $0x450] sm:$0xff] }
0x1869   :  { %4639 = vmatpush.msra.mxu2 %v6185_v48  ;;  %4706 = vmatpush.msrb.mxu1 %v6220_v8  ;;  %v6175_v48 = vld [vmem:[%s10762_s13 + $0x448] sm:$0xff]  ;;  %v6213_v8 = vld [vmem:[%s10762_s13 + $0x578] sm:$0xff] }
0x186b   :  { %4640 = vmatpush.msra.mxu2 %v6169_v38  ;;  %4707 = vmatpush.msrb.mxu1 %v6204_v53  ;;  %v6227_v38 = vld [vmem:[%s10762_s13 + $0x5e8] sm:$0xff]  ;;  %v6178_v53 = vld [vmem:[%s10762_s13 + $0x460] sm:$0xff] }
0x1873   :  { %v4058_v47 = vpop.f32.mrf.mxu2 }
0x1874   :  { %6144 = vmatmul.msk.f32.gmra.mxu0 %vm217_vm9, %v4058_v47 }
0x187b   :  { %v4213_v25 = vpop.f32.mrf.mxu2 }
0x187c   :  { %6153 = vmatmul.msk.f32.vlgmr.msrb.gmra.mxu0 %vm217_vm9, %v4213_v25  ;;  %v6187_v25 = vld [vmem:[%s10762_s13 + $0x4a8] sm:$0xff] }
0x187d   :  { %4660 = vmatpush.msrb.mxu0 %v6218_v44  ;;  %4685 = vmatpush.msrb.mxu3 %v6187_v25  ;;  %v6211_v44 = vld [vmem:[%s10762_s13 + $0x568] sm:$0xff]  ;;  %v6279_v25 = vld [vmem:[%s10764_s15 + $0x1078] sm:$0xff] }
0x187f   :  { %4661 = vmatpush.msrb.mxu0 %v6202_v50  ;;  %v6195_v50 = vld [vmem:[%s10762_s13 + $0x4e8] sm:$0xff] }
0x1881   :  { %4662 = vmatpush.msrb.mxu0 %v6186_v55  ;;  %v6180_v55 = vld [vmem:[%s10762_s13 + $0x470] sm:$0xff] }
0x1883   :  { %v4216_v56 = vpop.f32.mrf.mxu2 }
0x1884   :  { %6154 = vmatmul.msk.f32.gmra.mxu0 %vm217_vm9, %v4216_v56  ;;  %v6188_v56 = vld [vmem:[%s10762_s13 + $0x4b0] sm:$0xff] }
0x1885   :  { %4708 = vmatpush.msrb.mxu1 %v6188_v56  ;;  %v6311_v56 = vld [vmem:[%s10764_s15 + $0x1178] sm:$0xff] }
0x18dd   :  { %v4344_v18 = vpop.f32.mrf.mxu1  ;;  %v4084_v7 = vpop.f32.mrf.mxu0 }
0x18de   :  { %6161 = vmatmul.msk.f32.vlgmr.msrb.gmra.mxu2 %vm217_vm9, %v4344_v18  ;;  %v4114_v62 = vadd.f32 %v9563_v42, %v4084_v7  ;;  %v6189_v18 = vld [vmem:[%s10762_s13 + $0x4b8] sm:$0xff] }
0x18df   :  { %4729 = vmatpush.msrb.mxu2 %v6221_v12  ;;  %v6194_v12 = vld [vmem:[%s10762_s13 + $0x4e0] sm:$0xff] }
0x18e1   :  { %4730 = vmatpush.msrb.mxu2 %v6205_v54  ;;  %v6179_v54 = vld [vmem:[%s10762_s13 + $0x468] sm:$0xff] }
0x18e3   :  { %4731 = vmatpush.msrb.mxu2 %v6189_v18  ;;  %v6295_v18 = vld [vmem:[%s10764_s15 + $0x10f8] sm:$0xff] }
0x18e5   :  { %v4347_v57 = vpop.f32.mrf.mxu1 }
0x18e6   :  { %6162 = vmatmul.msk.f32.gmra.mxu2 %vm217_vm9, %v4347_v57  ;;  %v6171_v57 = vld [vmem:[%s10762_s13 + $0x428] sm:$0xff] }
0x18e7   :  { %4686 = vmatpush.msrb.mxu3 %v6171_v57  ;;  %v6278_v57 = vld [vmem:[%s10764_s15 + $0x1070] sm:$0xff] }
0x18f1   :  { %v4087_v26 = vpop.f32.mrf.mxu0 }
0x18f2   :  { %v4117_v2 = vadd.f32 %v9565_v46, %v4087_v26 }
0x18f9   :  { %v4242_v58 = vpop.f32.mrf.mxu0 }
0x18fa   :  { %v4248_v37 = vadd.f32 %v4242_v58, %v4114_v62  ;;  %v6172_v58 = vld [vmem:[%s10762_s13 + $0x430] sm:$0xff]  ;;  %v6173_v62 = vld [vmem:[%s10762_s13 + $0x438] sm:$0xff] }
0x18fb   :  { %4709 = vmatpush.msrb.mxu1 %v6172_v58  ;;  %4732 = vmatpush.msrb.mxu2 %v6173_v62  ;;  %v6326_v58 = vld [vmem:[%s10764_s15 + $0x11f0] sm:$0xff]  ;;  %v6277_v62 = vld [vmem:[%s10764_s15 + $0x1068] sm:$0xff] }
0x1901   :  { %v4245_v61 = vpop.f32.mrf.mxu0 }
0x1902   :  { %v4249_v4 = vadd.f32 %v4245_v61, %v4117_v2 }
0x1961   :  { %v4373_v0 = vpop.f32.mrf.mxu2 }
0x1962   :  { %v4379_v27 = vadd.f32 %v4373_v0, %v4248_v37 }
0x1964   :  { %v4381_v1 = vadd.f32 %v4379_v27, %v9454_v9 }
0x1966   :  { %v9606_v3 = vadd.f32 %v6613_v49, %v4381_v1 }
0x1968   :  { %v4394_v33 = vsel %vm108_vm1, %v9606_v3, 0.0 }
0x1969   :  { %v4376_v60 = vpop.f32.mrf.mxu2  ;;  %4395 = vadd.xlane.f32.xlu0 %v4394_v33 }
0x196a   :  { %v4380_v42 = vadd.f32 %v4376_v60, %v4249_v4  ;;  %v6614_v4 = vld [vmem:[%s10760_s11 + $0x2] ss:$0 sm:$0xff] }
0x196c   :  { %v4382_v59 = vadd.f32 %v4380_v42, %v9459_v52  ;;  %v6615_v42 = vld [vmem:[%s10761_s12 + $0x2] ss:$0 sm:$0xff] }
0x196e   :  { %v9611_v5 = vadd.f32 %v6613_v49, %v4382_v59 }
0x1970   :  { %v4397_v10 = vsel %vm108_vm1, %v9611_v5, 0.0 }
0x1971   :  { %4398 = vadd.xlane.f32.xlu1 %v4397_v10 }
0x19dc   :  { %v4396_v9 = vpop.xlane.xlu0 %4395 }
0x19dd   :  { %v4400_v46 = vmul.f32 %v4396_v9, %v6911_v20 }
0x19df   :  { %v9617_v63 = vsub.f32 %v9606_v3, %v4400_v46 }
0x19e1   :  { %v4404_v11 = vmul.f32 %v9617_v63, %v9617_v63 }
0x19e3   :  { %v4406_v13 = vsel %vm108_vm1, %v4404_v11, 0.0 }
0x19e4   :  { %v4399_v15 = vpop.xlane.xlu1 %4398  ;;  %4407 = vadd.xlane.f32.xlu2 %v4406_v13 }
0x19e5   :  { %v4401_v52 = vmul.f32 %v4399_v15, %v6911_v20  ;;  %v6222_v15 = vld [vmem:[%s10762_s13 + $0x5c0] sm:$0xff] }
0x19e7   :  { %v9624_v17 = vsub.f32 %v9611_v5, %v4401_v52  ;;  %v6223_v52 = vld [vmem:[%s10762_s13 + $0x5c8] sm:$0xff] }
0x19e9   :  { %v4405_v19 = vmul.f32 %v9624_v17, %v9624_v17 }
0x19eb   :  { %v4409_v21 = vsel %vm108_vm1, %v4405_v19, 0.0  ;;  %v6225_v19 = vld [vmem:[%s10762_s13 + $0x5d8] sm:$0xff] }
0x19ec   :  { %4410 = vadd.xlane.f32.xlu1 %v4409_v21 }
0x1a57   :  { %v4408_v39 = vpop.xlane.xlu2 %4407 }
0x1a58   :  { %v4412_v6 = vmul.f32 %v4408_v39, %v6911_v20  ;;  %v6228_v39 = vld [vmem:[%s10762_s13 + $0x5f0] sm:$0xff] }
0x1a5a   :  { %v4414_v41 = vadd.f32 1e-05, %v4412_v6  ;;  %v6229_v6 = vld [vmem:[%s10762_s13 + $0x5f8] sm:$0xff] }
0x1a5c   :  { %6736 = vrsqrt.f32 %v4414_v41  ;;  %vm4422_vm9 = vweird.f32 %v4414_v41 }
0x1a5f   :  { %v4411_v51 = vpop.xlane.xlu1 %4410 }
0x1a60   :  { %v4413_v47 = vmul.f32 %v4411_v51, %v6911_v20  ;;  %v6170_v20 = vld [vmem:[%s10762_s13 + $0x420] sm:$0xff]  ;;  %v6197_v51 = vld [vmem:[%s10762_s13 + $0x4f8] sm:$0xff] }
0x1a61   :  { %4663 = vmatpush.msrb.mxu0 %v6170_v20  ;;  %v6327_v20 = vld [vmem:[%s10764_s15 + $0x11f8] sm:$0xff] }
0x1a62   :  { %v6737_v7 = vpop.eup %6736  ;;  %v4415_v26 = vadd.f32 1e-05, %v4413_v47  ;;  %v6181_v47 = vld [vmem:[%s10762_s13 + $0x478] sm:$0xff] }
0x1a63   :  { %v4417_v37 = vmul.f32 %v6737_v7, %v4414_v41  ;;  %vm4423_vm0 = vweird.f32 %v6737_v7  ;;  %v6210_v41 = vld [vmem:[%s10762_s13 + $0x560] sm:$0xff] }
0x1a64   :  { %6738 = vrsqrt.f32 %v4415_v26  ;;  %vm4424_vm7 = vmor %vm4422_vm9, %vm4423_vm0  ;;  %vm4432_vm10 = vweird.f32 %v4415_v26 }
0x1a65   :  { %v4418_v0 = vmul.f32 %v6737_v7, %v4417_v37  ;;  %v6309_v37 = vld [vmem:[%s10764_s15 + $0x1168] sm:$0xff] }
0x1a67   :  { %v4419_v27 = vmul.f32 0.5, %v4418_v0  ;;  %v6293_v0 = vld [vmem:[%s10764_s15 + $0x10e8] sm:$0xff] }
0x1a69   :  { %v4420_v49 = vsub.f32 1.5, %v4419_v27  ;;  %v6325_v27 = vld [vmem:[%s10764_s15 + $0x11e8] sm:$0xff] }
0x1a6a   :  { %v6739_v1 = vpop.eup %6738 }
0x1a6b   :  { %v4421_v61 = vmul.f32 %v6737_v7, %v4420_v49  ;;  %v4427_v2 = vmul.f32 %v6739_v1, %v4415_v26  ;;  %vm4433_vm8 = vweird.f32 %v6739_v1  ;;  %v6294_v26 = vld [vmem:[%s10764_s15 + $0x10f0] sm:$0xff]  ;;  %v6276_v49 = vld [vmem:[%s10764_s15 + $0x1060] sm:$0xff] }
0x1a6c   :  { %vm4434_vm11 = vmor %vm4432_vm10, %vm4433_vm8 }
0x1a6d   :  { %v4425_v33 = vsel %vm4424_vm7, %v6737_v7, %v4421_v61  ;;  %v4428_v60 = vmul.f32 %v6739_v1, %v4427_v2  ;;  %v6310_v7 = vld [vmem:[%s10764_s15 + $0x1170] sm:$0xff]  ;;  %v6292_v61 = vld [vmem:[%s10764_s15 + $0x10e0] sm:$0xff] }
0x1a6e   :  { %v4436_v59 = vmul.f32 %v4425_v33, %v9617_v63  ;;  %v6224_v63 = vld [vmem:[%s10762_s13 + $0x5d0] sm:$0xff]  ;;  %v6324_v2 = vld [vmem:[%s10764_s15 + $0x11e0] sm:$0xff]  ;;  %v6307_v33 = vld [vmem:[%s10764_s15 + $0x1158] sm:$0xff] }
0x1a6f   :  { %v4429_v10 = vmul.f32 0.5, %v4428_v60  ;;  %v6291_v60 = vld [vmem:[%s10764_s15 + $0x10d8] sm:$0xff] }
0x1a70   :  { %v4441_v9 = vmul.f32 %v6614_v4, %v4436_v59  ;;  %v6274_v59 = vld [vmem:[%s10764_s15 + $0x1050] sm:$0xff] }
0x1a71   :  { %v4430_v46 = vsub.f32 1.5, %v4429_v10  ;;  %v6306_v10 = vld [vmem:[%s10764_s15 + $0x1150] sm:$0xff] }
0x1a72   :  { %v9734_v11 = vadd.f32 %v6615_v42, %v4441_v9  ;;  %v6290_v9 = vld [vmem:[%s10764_s15 + $0x10d0] sm:$0xff] }
0x1a73   :  { %v4431_v13 = vmul.f32 %v6739_v1, %v4430_v46  ;;  %v6322_v46 = vld [vmem:[%s10764_s15 + $0x11d0] sm:$0xff] }
0x1a74   :  { %6232 = vmatmul.msk.f32.vlgmr.msra.gmra.mxu0 %vm108_vm1, %v9734_v11  ;;  %6234 = vmatmul.msk.f32.vlgmr.msra.gmra.mxu3 %vm108_vm1, %v9734_v11 }
0x1a75   :  { %v4435_v21 = vsel %vm4434_vm11, %v6739_v1, %v4431_v13  ;;  %6236 = vmatmul.msk.f32.vlgmr.msra.gmra.mxu1 %vm108_vm1, %v9734_v11  ;;  %6238 = vmatmul.msk.f32.vlgmr.msra.gmra.mxu2 %vm108_vm1, %v9734_v11  ;;  %v6308_v1 = vld [vmem:[%s10764_s15 + $0x1160] sm:$0xff]  ;;  %v6273_v13 = vld [vmem:[%s10764_s15 + $0x1048] sm:$0xff] }
0x1a76   :  { %v4437_v23 = vmul.f32 %v4435_v21, %v9624_v17  ;;  %4752 = vmatpush.msra.mxu0 %v6222_v15  ;;  %4775 = vmatpush.msra.mxu3 %v6223_v52  ;;  %v6191_v17 = vld [vmem:[%s10762_s13 + $0x4c8] sm:$0xff]  ;;  %v6304_v21 = vld [vmem:[%s10764_s15 + $0x1140] sm:$0xff] }
0x1a77   :  { %4798 = vmatpush.msra.mxu1 %v6224_v63  ;;  %4821 = vmatpush.msra.mxu2 %v6225_v19  ;;  %v6305_v15 = vld [vmem:[%s10764_s15 + $0x1148] sm:$0xff]  ;;  %v6272_v19 = vld [vmem:[%s10764_s15 + $0x1040] sm:$0xff] }
0x1a78   :  { %v4442_v24 = vmul.f32 %v6614_v4, %v4437_v23  ;;  %4753 = vmatpush.msra.mxu0 %v6206_v16  ;;  %4776 = vmatpush.msra.mxu3 %v6207_v22  ;;  %v6275_v4 = vld [vmem:[%s10764_s15 + $0x1058] sm:$0xff]  ;;  %v6289_v52 = vld [vmem:[%s10764_s15 + $0x10c8] sm:$0xff]  ;;  %v6288_v16 = vld [vmem:[%s10764_s15 + $0x10c0] sm:$0xff] }
0x1a79   :  { %4799 = vmatpush.msra.mxu1 %v6208_v36  ;;  %4822 = vmatpush.msra.mxu2 %v6209_v31  ;;  %v6321_v63 = vld [vmem:[%s10764_s15 + $0x11c8] sm:$0xff]  ;;  %v6320_v22 = vld [vmem:[%s10764_s15 + $0x11c0] sm:$0xff]  ;;  %v6303_v23 = vld [vmem:[%s10764_s15 + $0x1138] sm:$0xff] }
0x1a7a   :  { %v9781_v30 = vadd.f32 %v6615_v42, %v4442_v24  ;;  %4754 = vmatpush.msra.mxu0 %v6190_v40  ;;  %4777 = vmatpush.msra.mxu3 %v6191_v17  ;;  %v6323_v42 = vld [vmem:[%s10764_s15 + $0x11d8] sm:$0xff]  ;;  %v6270_v40 = vld [vmem:[%s10764_s15 + $0x1030] sm:$0xff] }
0x1a7b   :  { %4800 = vmatpush.msra.mxu1 %v6192_v28  ;;  %4823 = vmatpush.msra.mxu2 %v6193_v29  ;;  %v6287_v36 = vld [vmem:[%s10764_s15 + $0x10b8] sm:$0xff]  ;;  %v6302_v17 = vld [vmem:[%s10764_s15 + $0x1130] sm:$0xff]  ;;  %v6269_v29 = vld [vmem:[%s10764_s15 + $0x1028] sm:$0xff] }
0x1a7c   :  { %6233 = vmatmul.msk.f32.gmra.mxu0 %vm108_vm1, %v9781_v30  ;;  %6235 = vmatmul.msk.f32.gmra.mxu3 %vm108_vm1, %v9781_v30  ;;  %v6319_v31 = vld [vmem:[%s10764_s15 + $0x11b8] sm:$0xff]  ;;  %v6286_v24 = vld [vmem:[%s10764_s15 + $0x10b0] sm:$0xff] }
0x1a7d   :  { %6237 = vmatmul.msk.f32.gmra.mxu1 %vm108_vm1, %v9781_v30  ;;  %6239 = vmatmul.msk.f32.gmra.mxu2 %vm108_vm1, %v9781_v30  ;;  %v6318_v28 = vld [vmem:[%s10764_s15 + $0x11b0] sm:$0xff] }
0x1a7e   :  { %4755 = vmatpush.msra.mxu0 %v6174_v32  ;;  %4778 = vmatpush.msra.mxu3 %v6175_v48  ;;  %v6301_v32 = vld [vmem:[%s10764_s15 + $0x1128] sm:$0xff] }
0x1a7f   :  { %4801 = vmatpush.msra.mxu1 %v6176_v34  ;;  %4824 = vmatpush.msra.mxu2 %v6177_v35  ;;  %v6285_v48 = vld [vmem:[%s10764_s15 + $0x10a8] sm:$0xff]  ;;  %v6300_v35 = vld [vmem:[%s10764_s15 + $0x1120] sm:$0xff] }
0x1a80   :  { %v6317_v34 = vld [vmem:[%s10764_s15 + $0x11a8] sm:$0xff] }
0x1a84   :  { %6240 = vmatmul.msk.f32.vlgmr.msrb.gmra.mxu0 %vm108_vm1, %v9734_v11  ;;  %6242 = vmatmul.msk.f32.vlgmr.msrb.gmra.mxu3 %vm108_vm1, %v9734_v11 }
0x1a85   :  { %6244 = vmatmul.msk.f32.vlgmr.msrb.gmra.mxu1 %vm108_vm1, %v9734_v11  ;;  %6246 = vmatmul.msk.f32.vlgmr.msrb.gmra.mxu2 %vm108_vm1, %v9734_v11 }
0x1a86   :  { %4844 = vmatpush.msrb.mxu0 %v6226_v14  ;;  %4867 = vmatpush.msrb.mxu3 %v6227_v38  ;;  %v6284_v14 = vld [vmem:[%s10764_s15 + $0x10a0] sm:$0xff] }
0x1a87   :  { %4890 = vmatpush.msrb.mxu1 %v6228_v39  ;;  %4913 = vmatpush.msrb.mxu2 %v6229_v6  ;;  %v6316_v38 = vld [vmem:[%s10764_s15 + $0x11a0] sm:$0xff]  ;;  %v6267_v39 = vld [vmem:[%s10764_s15 + $0x1018] sm:$0xff] }
0x1a88   :  { %4845 = vmatpush.msrb.mxu0 %v6210_v41  ;;  %4868 = vmatpush.msrb.mxu3 %v6211_v44  ;;  %v6299_v6 = vld [vmem:[%s10764_s15 + $0x1118] sm:$0xff] }
0x1a89   :  { %4891 = vmatpush.msrb.mxu1 %v6212_v43  ;;  %4914 = vmatpush.msrb.mxu2 %v6213_v8  ;;  %v6283_v41 = vld [vmem:[%s10764_s15 + $0x1098] sm:$0xff]  ;;  %v6266_v43 = vld [vmem:[%s10764_s15 + $0x1010] sm:$0xff] }
0x1a8a   :  { %4846 = vmatpush.msrb.mxu0 %v6194_v12  ;;  %4869 = vmatpush.msrb.mxu3 %v6195_v50  ;;  %v6315_v44 = vld [vmem:[%s10764_s15 + $0x1198] sm:$0xff]  ;;  %v6298_v8 = vld [vmem:[%s10764_s15 + $0x1110] sm:$0xff] }
0x1a8b   :  { %4892 = vmatpush.msrb.mxu1 %v6196_v45  ;;  %4915 = vmatpush.msrb.mxu2 %v6197_v51  ;;  %v6282_v12 = vld [vmem:[%s10764_s15 + $0x1090] sm:$0xff]  ;;  %v6265_v45 = vld [vmem:[%s10764_s15 + $0x1008] sm:$0xff] }
0x1a8c   :  { %6241 = vmatmul.msk.f32.gmra.mxu0 %vm108_vm1, %v9781_v30  ;;  %6243 = vmatmul.msk.f32.gmra.mxu3 %vm108_vm1, %v9781_v30  ;;  %v6314_v50 = vld [vmem:[%s10764_s15 + $0x1190] sm:$0xff]  ;;  %v6297_v51 = vld [vmem:[%s10764_s15 + $0x1108] sm:$0xff] }
0x1a8d   :  { %6245 = vmatmul.msk.f32.gmra.mxu1 %vm108_vm1, %v9781_v30  ;;  %6247 = vmatmul.msk.f32.gmra.mxu2 %vm108_vm1, %v9781_v30 }
0x1a8e   :  { %4847 = vmatpush.msrb.mxu0 %v6178_v53  ;;  %4870 = vmatpush.msrb.mxu3 %v6179_v54  ;;  %v6281_v53 = vld [vmem:[%s10764_s15 + $0x1088] sm:$0xff] }
0x1a8f   :  { %4893 = vmatpush.msrb.mxu1 %v6180_v55  ;;  %4916 = vmatpush.msrb.mxu2 %v6181_v47  ;;  %v6313_v54 = vld [vmem:[%s10764_s15 + $0x1188] sm:$0xff]  ;;  %v6264_v55 = vld [vmem:[%s10764_s15 + $0x1000] sm:$0xff] }
0x1a90   :  { %v6296_v47 = vld [vmem:[%s10764_s15 + $0x1100] sm:$0xff] }
0x1a94   :  { %6248 = vmatmul.msk.f32.vlgmr.msra.gmra.mxu0 %vm108_vm1, %v9734_v11  ;;  %6250 = vmatmul.msk.f32.vlgmr.msra.gmra.mxu3 %vm108_vm1, %v9734_v11 }
0x1a95   :  { %6252 = vmatmul.msk.f32.vlgmr.msra.gmra.mxu1 %vm108_vm1, %v9734_v11  ;;  %6254 = vmatmul.msk.f32.vlgmr.msra.gmra.mxu2 %vm108_vm1, %v9734_v11 }
0x1a96   :  { %5213 = vmatpush.msra.mxu0 %v6279_v25  ;;  %5259 = vmatpush.msra.mxu1 %v6311_v56  ;;  %v6343_v25 = vld [vmem:[%s10764_s15 + $0x1278] sm:$0xff] }
0x1a97   :  { %5236 = vmatpush.msra.mxu3 %v6295_v18  ;;  %5282 = vmatpush.msra.mxu2 %v6327_v20  ;;  %v6375_v56 = vld [vmem:[%s10764_s15 + $0x1378] sm:$0xff]  ;;  %v6280_v18 = vld [vmem:[%s10764_s15 + $0x1080] sm:$0xff] }
0x1a98   :  { %5214 = vmatpush.msra.mxu0 %v6278_v57  ;;  %5260 = vmatpush.msra.mxu1 %v6310_v7  ;;  %v6312_v20 = vld [vmem:[%s10764_s15 + $0x1180] sm:$0xff]  ;;  %v6342_v57 = vld [vmem:[%s10764_s15 + $0x1270] sm:$0xff] }
0x1a99   :  { %5237 = vmatpush.msra.mxu3 %v6294_v26  ;;  %5283 = vmatpush.msra.mxu2 %v6326_v58  ;;  %v6374_v7 = vld [vmem:[%s10764_s15 + $0x1370] sm:$0xff]  ;;  %v6359_v26 = vld [vmem:[%s10764_s15 + $0x12f8] sm:$0xff] }
0x1a9a   :  { %5215 = vmatpush.msra.mxu0 %v6277_v62  ;;  %5261 = vmatpush.msra.mxu1 %v6309_v37  ;;  %v6391_v58 = vld [vmem:[%s10764_s15 + $0x13f8] sm:$0xff]  ;;  %v6341_v62 = vld [vmem:[%s10764_s15 + $0x1268] sm:$0xff] }
0x1a9b   :  { %5238 = vmatpush.msra.mxu3 %v6293_v0  ;;  %5284 = vmatpush.msra.mxu2 %v6325_v27  ;;  %v6373_v37 = vld [vmem:[%s10764_s15 + $0x1368] sm:$0xff]  ;;  %v6358_v0 = vld [vmem:[%s10764_s15 + $0x12f0] sm:$0xff] }
0x1a9c   :  { %6249 = vmatmul.msk.f32.gmra.mxu0 %vm108_vm1, %v9781_v30  ;;  %6251 = vmatmul.msk.f32.gmra.mxu3 %vm108_vm1, %v9781_v30  ;;  %v6390_v27 = vld [vmem:[%s10764_s15 + $0x13f0] sm:$0xff] }
0x1a9d   :  { %6253 = vmatmul.msk.f32.gmra.mxu1 %vm108_vm1, %v9781_v30  ;;  %6255 = vmatmul.msk.f32.gmra.mxu2 %vm108_vm1, %v9781_v30 }
0x1a9e   :  { %5216 = vmatpush.msra.mxu0 %v6276_v49  ;;  %5262 = vmatpush.msra.mxu1 %v6308_v1  ;;  %v6340_v49 = vld [vmem:[%s10764_s15 + $0x1260] sm:$0xff] }
0x1a9f   :  { %5239 = vmatpush.msra.mxu3 %v6292_v61  ;;  %5285 = vmatpush.msra.mxu2 %v6324_v2  ;;  %v6372_v1 = vld [vmem:[%s10764_s15 + $0x1360] sm:$0xff]  ;;  %v6357_v61 = vld [vmem:[%s10764_s15 + $0x12e8] sm:$0xff] }
0x1aa0   :  { %5217 = vmatpush.msra.mxu0 %v6275_v4  ;;  %5263 = vmatpush.msra.mxu1 %v6307_v33  ;;  %v6389_v2 = vld [vmem:[%s10764_s15 + $0x13e8] sm:$0xff]  ;;  %v6339_v4 = vld [vmem:[%s10764_s15 + $0x1258] sm:$0xff] }
0x1aa1   :  { %5240 = vmatpush.msra.mxu3 %v6291_v60  ;;  %5286 = vmatpush.msra.mxu2 %v6323_v42  ;;  %v6371_v33 = vld [vmem:[%s10764_s15 + $0x1358] sm:$0xff]  ;;  %v6356_v60 = vld [vmem:[%s10764_s15 + $0x12e0] sm:$0xff] }
0x1aa2   :  { %5218 = vmatpush.msra.mxu0 %v6274_v59  ;;  %5264 = vmatpush.msra.mxu1 %v6306_v10  ;;  %v6388_v42 = vld [vmem:[%s10764_s15 + $0x13e0] sm:$0xff]  ;;  %v6338_v59 = vld [vmem:[%s10764_s15 + $0x1250] sm:$0xff] }
0x1aa3   :  { %5241 = vmatpush.msra.mxu3 %v6290_v9  ;;  %5287 = vmatpush.msra.mxu2 %v6322_v46  ;;  %v6370_v10 = vld [vmem:[%s10764_s15 + $0x1350] sm:$0xff]  ;;  %v6355_v9 = vld [vmem:[%s10764_s15 + $0x12d8] sm:$0xff] }
0x1aa4   :  { %6256 = vmatmul.msk.f32.vlgmr.msrb.gmra.mxu0 %vm108_vm1, %v9734_v11  ;;  %6258 = vmatmul.msk.f32.vlgmr.msrb.gmra.mxu3 %vm108_vm1, %v9734_v11  ;;  %v6387_v46 = vld [vmem:[%s10764_s15 + $0x13d8] sm:$0xff] }
0x1aa5   :  { %6260 = vmatmul.msk.f32.vlgmr.msrb.gmra.mxu1 %vm108_vm1, %v9734_v11  ;;  %6262 = vmatmul.msk.f32.vlgmr.msrb.gmra.mxu2 %vm108_vm1, %v9734_v11  ;;  %v6271_v11 = vld [vmem:[%s10764_s15 + $0x1038] sm:$0xff] }
0x1aa6   :  { %5219 = vmatpush.msra.mxu0 %v6273_v13  ;;  %5265 = vmatpush.msra.mxu1 %v6305_v15  ;;  %v6337_v13 = vld [vmem:[%s10764_s15 + $0x1248] sm:$0xff] }
0x1aa7   :  { %5242 = vmatpush.msra.mxu3 %v6289_v52  ;;  %5288 = vmatpush.msra.mxu2 %v6321_v63  ;;  %v6369_v15 = vld [vmem:[%s10764_s15 + $0x1348] sm:$0xff]  ;;  %v6354_v52 = vld [vmem:[%s10764_s15 + $0x12d0] sm:$0xff] }
0x1aa8   :  { %5220 = vmatpush.msra.mxu0 %v6272_v19  ;;  %5266 = vmatpush.msra.mxu1 %v6304_v21  ;;  %v6386_v63 = vld [vmem:[%s10764_s15 + $0x13d0] sm:$0xff]  ;;  %v6336_v19 = vld [vmem:[%s10764_s15 + $0x1240] sm:$0xff] }
0x1aa9   :  { %5243 = vmatpush.msra.mxu3 %v6288_v16  ;;  %5289 = vmatpush.msra.mxu2 %v6320_v22  ;;  %v6368_v21 = vld [vmem:[%s10764_s15 + $0x1340] sm:$0xff]  ;;  %v6353_v16 = vld [vmem:[%s10764_s15 + $0x12c8] sm:$0xff] }
0x1aaa   :  { %5221 = vmatpush.msra.mxu0 %v6271_v11  ;;  %5267 = vmatpush.msra.mxu1 %v6303_v23  ;;  %v6385_v22 = vld [vmem:[%s10764_s15 + $0x13c8] sm:$0xff]  ;;  %v6335_v11 = vld [vmem:[%s10764_s15 + $0x1238] sm:$0xff] }
0x1aab   :  { %5244 = vmatpush.msra.mxu3 %v6287_v36  ;;  %5290 = vmatpush.msra.mxu2 %v6319_v31  ;;  %v6367_v23 = vld [vmem:[%s10764_s15 + $0x1338] sm:$0xff]  ;;  %v6352_v36 = vld [vmem:[%s10764_s15 + $0x12c0] sm:$0xff] }
0x1aac   :  { %6257 = vmatmul.msk.f32.gmra.mxu0 %vm108_vm1, %v9781_v30  ;;  %6259 = vmatmul.msk.f32.gmra.mxu3 %vm108_vm1, %v9781_v30  ;;  %v6384_v31 = vld [vmem:[%s10764_s15 + $0x13c0] sm:$0xff] }
0x1aad   :  { %6261 = vmatmul.msk.f32.gmra.mxu1 %vm108_vm1, %v9781_v30  ;;  %6263 = vmatmul.msk.f32.gmra.mxu2 %vm108_vm1, %v9781_v30  ;;  %v6268_v30 = vld [vmem:[%s10764_s15 + $0x1020] sm:$0xff] }
0x1aae   :  { %5222 = vmatpush.msra.mxu0 %v6270_v40  ;;  %5268 = vmatpush.msra.mxu1 %v6302_v17  ;;  %v6334_v40 = vld [vmem:[%s10764_s15 + $0x1230] sm:$0xff] }
0x1aaf   :  { %5245 = vmatpush.msra.mxu3 %v6286_v24  ;;  %5291 = vmatpush.msra.mxu2 %v6318_v28  ;;  %v6366_v17 = vld [vmem:[%s10764_s15 + $0x1330] sm:$0xff]  ;;  %v6351_v24 = vld [vmem:[%s10764_s15 + $0x12b8] sm:$0xff] }
0x1ab0   :  { %5223 = vmatpush.msra.mxu0 %v6269_v29  ;;  %5269 = vmatpush.msra.mxu1 %v6301_v32  ;;  %v6383_v28 = vld [vmem:[%s10764_s15 + $0x13b8] sm:$0xff]  ;;  %v6333_v29 = vld [vmem:[%s10764_s15 + $0x1228] sm:$0xff] }
0x1ab1   :  { %5246 = vmatpush.msra.mxu3 %v6285_v48  ;;  %5292 = vmatpush.msra.mxu2 %v6317_v34  ;;  %v6365_v32 = vld [vmem:[%s10764_s15 + $0x1328] sm:$0xff]  ;;  %v6350_v48 = vld [vmem:[%s10764_s15 + $0x12b0] sm:$0xff] }
0x1ab2   :  { %5224 = vmatpush.msra.mxu0 %v6268_v30  ;;  %5270 = vmatpush.msra.mxu1 %v6300_v35  ;;  %v6382_v34 = vld [vmem:[%s10764_s15 + $0x13b0] sm:$0xff]  ;;  %v6332_v30 = vld [vmem:[%s10764_s15 + $0x1220] sm:$0xff] }
0x1ab3   :  { %5247 = vmatpush.msra.mxu3 %v6284_v14  ;;  %5293 = vmatpush.msra.mxu2 %v6316_v38  ;;  %v6364_v35 = vld [vmem:[%s10764_s15 + $0x1320] sm:$0xff]  ;;  %v6331_v14 = vld [vmem:[%s10764_s15 + $0x1218] sm:$0xff] }
0x1ab4   :  { %5225 = vmatpush.msra.mxu0 %v6267_v39  ;;  %5271 = vmatpush.msra.mxu1 %v6299_v6  ;;  %v6363_v38 = vld [vmem:[%s10764_s15 + $0x1318] sm:$0xff]  ;;  %v6349_v39 = vld [vmem:[%s10764_s15 + $0x12a8] sm:$0xff]  ;;  %v6330_v6 = vld [vmem:[%s10764_s15 + $0x1210] sm:$0xff] }
0x1ab5   :  { %5248 = vmatpush.msra.mxu3 %v6283_v41  ;;  %5294 = vmatpush.msra.mxu2 %v6315_v44  ;;  %v6362_v41 = vld [vmem:[%s10764_s15 + $0x1310] sm:$0xff]  ;;  %v6381_v44 = vld [vmem:[%s10764_s15 + $0x13a8] sm:$0xff] }
0x1ab6   :  { %5226 = vmatpush.msra.mxu0 %v6266_v43  ;;  %5272 = vmatpush.msra.mxu1 %v6298_v8  ;;  %v6348_v43 = vld [vmem:[%s10764_s15 + $0x12a0] sm:$0xff]  ;;  %v6329_v8 = vld [vmem:[%s10764_s15 + $0x1208] sm:$0xff] }
0x1ab7   :  { %5249 = vmatpush.msra.mxu3 %v6282_v12  ;;  %5295 = vmatpush.msra.mxu2 %v6314_v50  ;;  %v6361_v12 = vld [vmem:[%s10764_s15 + $0x1308] sm:$0xff]  ;;  %v6380_v50 = vld [vmem:[%s10764_s15 + $0x13a0] sm:$0xff] }
0x1ab8   :  { %5227 = vmatpush.msra.mxu0 %v6265_v45  ;;  %5273 = vmatpush.msra.mxu1 %v6297_v51  ;;  %v6347_v45 = vld [vmem:[%s10764_s15 + $0x1298] sm:$0xff]  ;;  %v6328_v51 = vld [vmem:[%s10764_s15 + $0x1200] sm:$0xff] }
0x1ab9   :  { %5250 = vmatpush.msra.mxu3 %v6281_v53  ;;  %5296 = vmatpush.msra.mxu2 %v6313_v54  ;;  %v6360_v53 = vld [vmem:[%s10764_s15 + $0x1300] sm:$0xff]  ;;  %v6379_v54 = vld [vmem:[%s10764_s15 + $0x1398] sm:$0xff] }
0x1aba   :  { %5228 = vmatpush.msra.mxu0 %v6264_v55  ;;  %5274 = vmatpush.msra.mxu1 %v6296_v47  ;;  %v6346_v55 = vld [vmem:[%s10764_s15 + $0x1290] sm:$0xff] }
0x1abb   :  { %5251 = vmatpush.msra.mxu3 %v6280_v18  ;;  %5297 = vmatpush.msra.mxu2 %v6312_v20  ;;  %v6378_v47 = vld [vmem:[%s10764_s15 + $0x1390] sm:$0xff]  ;;  %v6344_v18 = vld [vmem:[%s10764_s15 + $0x1280] sm:$0xff] }
0x1abc   :  { %5305 = vmatpush.msrb.mxu0 %v6343_v25  ;;  %5351 = vmatpush.msrb.mxu1 %v6375_v56  ;;  %v6345_v25 = vld [vmem:[%s10764_s15 + $0x1288] sm:$0xff]  ;;  %v6376_v20 = vld [vmem:[%s10764_s15 + $0x1380] sm:$0xff] }
0x1abd   :  { %5328 = vmatpush.msrb.mxu3 %v6359_v26  ;;  %5374 = vmatpush.msrb.mxu2 %v6391_v58  ;;  %v6377_v56 = vld [vmem:[%s10764_s15 + $0x1388] sm:$0xff] }
0x1abe   :  { %5306 = vmatpush.msrb.mxu0 %v6342_v57  ;;  %5352 = vmatpush.msrb.mxu1 %v6374_v7  ;;  %v10286_v57 = vld [vmem:[%s10763_s14 + $0x20] sm:$0xff] }
0x1abf   :  { %5329 = vmatpush.msrb.mxu3 %v6358_v0  ;;  %5375 = vmatpush.msrb.mxu2 %v6390_v27  ;;  %v4518_v7 = vperm.slane %v10286_v57, 0  ;;  %v4520_v26 = vperm.slane %v10286_v57, 2 }
0x1ac0   :  { %5307 = vmatpush.msrb.mxu0 %v6341_v62  ;;  %5353 = vmatpush.msrb.mxu1 %v6373_v37 }
0x1ac1   :  { %5330 = vmatpush.msrb.mxu3 %v6357_v61  ;;  %5376 = vmatpush.msrb.mxu2 %v6389_v2  ;;  %v6439_v2 = vld [vmem:[%s10764_s15 + $0x1578] sm:$0xff] }
0x1ac2   :  { %5308 = vmatpush.msrb.mxu0 %v6340_v49  ;;  %5354 = vmatpush.msrb.mxu1 %v6372_v1  ;;  %v6407_v49 = vld [vmem:[%s10764_s15 + $0x1478] sm:$0xff]  ;;  %v4519_v1 = vperm.slane %v10286_v57, 1 }
0x1ac3   :  { %5331 = vmatpush.msrb.mxu3 %v6356_v60  ;;  %5377 = vmatpush.msrb.mxu2 %v6388_v42  ;;  %v6438_v42 = vld [vmem:[%s10764_s15 + $0x1570] sm:$0xff] }
0x1ac4   :  { %5309 = vmatpush.msrb.mxu0 %v6339_v4  ;;  %5355 = vmatpush.msrb.mxu1 %v6371_v33  ;;  %v4521_v4 = vperm.slane %v10286_v57, 3  ;;  %v6406_v33 = vld [vmem:[%s10764_s15 + $0x1470] sm:$0xff] }
0x1ac5   :  { %5332 = vmatpush.msrb.mxu3 %v6355_v9  ;;  %5378 = vmatpush.msrb.mxu2 %v6387_v46  ;;  %v6405_v9 = vld [vmem:[%s10764_s15 + $0x1468] sm:$0xff] }
0x1ac6   :  { %5310 = vmatpush.msrb.mxu0 %v6338_v59  ;;  %5356 = vmatpush.msrb.mxu1 %v6370_v10 }
0x1ac7   :  { %5333 = vmatpush.msrb.mxu3 %v6354_v52  ;;  %5379 = vmatpush.msrb.mxu2 %v6386_v63 }
0x1ac8   :  { %5311 = vmatpush.msrb.mxu0 %v6337_v13  ;;  %5357 = vmatpush.msrb.mxu1 %v6369_v15  ;;  %v6437_v15 = vld [vmem:[%s10764_s15 + $0x1568] sm:$0xff] }
0x1ac9   :  { %5334 = vmatpush.msrb.mxu3 %v6353_v16  ;;  %5380 = vmatpush.msrb.mxu2 %v6385_v22 }
0x1aca   :  { %5312 = vmatpush.msrb.mxu0 %v6336_v19  ;;  %5358 = vmatpush.msrb.mxu1 %v6368_v21  ;;  %v6404_v21 = vld [vmem:[%s10764_s15 + $0x1460] sm:$0xff] }
0x1acb   :  { %5335 = vmatpush.msrb.mxu3 %v6352_v36  ;;  %5381 = vmatpush.msrb.mxu2 %v6384_v31  ;;  %v6455_v31 = vld [vmem:[%s10764_s15 + $0x15f8] sm:$0xff] }
0x1acc   :  { %5313 = vmatpush.msrb.mxu0 %v6335_v11  ;;  %5359 = vmatpush.msrb.mxu1 %v6367_v23  ;;  %v6423_v11 = vld [vmem:[%s10764_s15 + $0x14f8] sm:$0xff]  ;;  %v6436_v23 = vld [vmem:[%s10764_s15 + $0x1560] sm:$0xff] }
0x1acd   :  { %5336 = vmatpush.msrb.mxu3 %v6351_v24  ;;  %5382 = vmatpush.msrb.mxu2 %v6383_v28  ;;  %v6422_v24 = vld [vmem:[%s10764_s15 + $0x14f0] sm:$0xff]  ;;  %v6435_v28 = vld [vmem:[%s10764_s15 + $0x1558] sm:$0xff] }
0x1ace   :  { %5314 = vmatpush.msrb.mxu0 %v6334_v40  ;;  %5360 = vmatpush.msrb.mxu1 %v6366_v17  ;;  %v6403_v17 = vld [vmem:[%s10764_s15 + $0x1458] sm:$0xff] }
0x1acf   :  { %5337 = vmatpush.msrb.mxu3 %v6350_v48  ;;  %5383 = vmatpush.msrb.mxu2 %v6382_v34  ;;  %v6402_v34 = vld [vmem:[%s10764_s15 + $0x1450] sm:$0xff] }
0x1ad0   :  { %5315 = vmatpush.msrb.mxu0 %v6333_v29  ;;  %5361 = vmatpush.msrb.mxu1 %v6365_v32  ;;  %v4522_v29 = vperm.slane %v10286_v57, 4  ;;  %v6454_v32 = vld [vmem:[%s10764_s15 + $0x15f0] sm:$0xff] }
0x1ad1   :  { %5338 = vmatpush.msrb.mxu3 %v6349_v39  ;;  %5384 = vmatpush.msrb.mxu2 %v6381_v44  ;;  %v6434_v39 = vld [vmem:[%s10764_s15 + $0x1550] sm:$0xff] }
0x1ad2   :  { %5316 = vmatpush.msrb.mxu0 %v6332_v30  ;;  %5362 = vmatpush.msrb.mxu1 %v6364_v35  ;;  %v4524_v30 = vperm.slane %v10286_v57, 6 }
0x1ad3   :  { %5339 = vmatpush.msrb.mxu3 %v6348_v43  ;;  %5385 = vmatpush.msrb.mxu2 %v6380_v50  ;;  %v6401_v43 = vld [vmem:[%s10764_s15 + $0x1448] sm:$0xff] }
0x1ad4   :  { %5317 = vmatpush.msrb.mxu0 %v6331_v14  ;;  %5363 = vmatpush.msrb.mxu1 %v6363_v38  ;;  %v6421_v38 = vld [vmem:[%s10764_s15 + $0x14e8] sm:$0xff] }
0x1ad5   :  { %5340 = vmatpush.msrb.mxu3 %v6347_v45  ;;  %5386 = vmatpush.msrb.mxu2 %v6379_v54  ;;  %v6420_v45 = vld [vmem:[%s10764_s15 + $0x14e0] sm:$0xff] }
0x1ad6   :  { %5318 = vmatpush.msrb.mxu0 %v6330_v6  ;;  %5364 = vmatpush.msrb.mxu1 %v6362_v41  ;;  %v6453_v41 = vld [vmem:[%s10764_s15 + $0x15e8] sm:$0xff] }
0x1ad7   :  { %5341 = vmatpush.msrb.mxu3 %v6346_v55  ;;  %5387 = vmatpush.msrb.mxu2 %v6378_v47  ;;  %v6452_v55 = vld [vmem:[%s10764_s15 + $0x15e0] sm:$0xff] }
0x1ad8   :  { %5319 = vmatpush.msrb.mxu0 %v6329_v8  ;;  %5365 = vmatpush.msrb.mxu1 %v6361_v12  ;;  %v6400_v47 = vld [vmem:[%s10764_s15 + $0x1440] sm:$0xff] }
0x1ad9   :  { %5342 = vmatpush.msrb.mxu3 %v6345_v25  ;;  %5388 = vmatpush.msrb.mxu2 %v6377_v56  ;;  %v4523_v25 = vperm.slane %v10286_v57, 5 }
0x1ada   :  { %5320 = vmatpush.msrb.mxu0 %v6328_v51  ;;  %5366 = vmatpush.msrb.mxu1 %v6360_v53  ;;  %v6433_v51 = vld [vmem:[%s10764_s15 + $0x1548] sm:$0xff] }
0x1adb   :  { %5343 = vmatpush.msrb.mxu3 %v6344_v18  ;;  %5389 = vmatpush.msrb.mxu2 %v6376_v20  ;;  %v6419_v18 = vld [vmem:[%s10764_s15 + $0x14d8] sm:$0xff]  ;;  %v6432_v20 = vld [vmem:[%s10764_s15 + $0x1540] sm:$0xff] }
0x1af1   :  { %v4573_v58 = vpop.f32.mrf.mxu0 }
0x1af2   :  { %v4574_v62 = vadd.f32 %v4573_v58, %v4518_v7  ;;  %v4619_v37 = vpop.f32.mrf.mxu1  ;;  %v6451_v58 = vld [vmem:[%s10764_s15 + $0x15d8] sm:$0xff] }
0x1af3   :  { %v4620_v0 = vadd.f32 %v4619_v37, %v4520_v26 }
0x1af4   :  { %v4924_v27 = vmax.f32 %v4574_v62, 0.0  ;;  %v6399_v62 = vld [vmem:[%s10764_s15 + $0x1438] sm:$0xff] }
0x1af5   :  { %v4926_v61 = vmax.f32 %v4620_v0, 0.0  ;;  %v6418_v0 = vld [vmem:[%s10764_s15 + $0x14d0] sm:$0xff] }
0x1af6   :  { %5229 = vmatmul.f32.vlgmr.msra.gmra.mxu0 %v4924_v27  ;;  %v6431_v27 = vld [vmem:[%s10764_s15 + $0x1538] sm:$0xff] }
0x1af7   :  { %5275 = vmatmul.f32.vlgmr.msra.gmra.mxu1 %v4926_v61  ;;  %5397 = vmatpush.msra.mxu0 %v6407_v49  ;;  %v4596_v60 = vpop.f32.mrf.mxu3  ;;  %v6450_v61 = vld [vmem:[%s10764_s15 + $0x15d0] sm:$0xff] }
0x1af8   :  { %5443 = vmatpush.msra.mxu1 %v6439_v2  ;;  %v4597_v59 = vadd.f32 %v4596_v60, %v4519_v1  ;;  %v4642_v10 = vpop.f32.mrf.mxu2  ;;  %v6417_v60 = vld [vmem:[%s10764_s15 + $0x14c8] sm:$0xff] }
0x1af9   :  { %v4643_v46 = vadd.f32 %v4642_v10, %v4521_v4  ;;  %5398 = vmatpush.msra.mxu0 %v6406_v33  ;;  %v4576_v13 = vpop.f32.mrf.mxu0  ;;  %v6449_v10 = vld [vmem:[%s10764_s15 + $0x15c8] sm:$0xff] }
0x1afa   :  { %v4925_v52 = vmax.f32 %v4597_v59, 0.0  ;;  %5444 = vmatpush.msra.mxu1 %v6438_v42  ;;  %v4577_v63 = vadd.f32 %v4576_v13, %v4518_v7  ;;  %v4622_v19 = vpop.f32.mrf.mxu1  ;;  %v4525_v7 = vperm.slane %v10286_v57, 7  ;;  %v6430_v42 = vld [vmem:[%s10764_s15 + $0x1530] sm:$0xff]  ;;  %v6445_v57 = vld [vmem:[%s10764_s15 + $0x15a8] sm:$0xff] }
0x1afb   :  { %v4927_v16 = vmax.f32 %v4643_v46, 0.0  ;;  %v4623_v22 = vadd.f32 %v4622_v19, %v4520_v26  ;;  %5399 = vmatpush.msra.mxu0 %v6405_v9  ;;  %v6397_v46 = vld [vmem:[%s10764_s15 + $0x1428] sm:$0xff] }
0x1afc   :  { %v4940_v36 = vmax.f32 %v4577_v63, 0.0  ;;  %5445 = vmatpush.msra.mxu1 %v6437_v15  ;;  %5252 = vmatmul.f32.vlgmr.msra.gmra.mxu3 %v4925_v52  ;;  %v6416_v52 = vld [vmem:[%s10764_s15 + $0x14c0] sm:$0xff]  ;;  %v6429_v63 = vld [vmem:[%s10764_s15 + $0x1528] sm:$0xff] }
0x1afd   :  { %v4942_v40 = vmax.f32 %v4623_v22, 0.0  ;;  %5298 = vmatmul.f32.vlgmr.msra.gmra.mxu2 %v4927_v16  ;;  %5400 = vmatpush.msra.mxu0 %v6404_v21  ;;  %v6448_v21 = vld [vmem:[%s10764_s15 + $0x15c0] sm:$0xff] }
0x1afe   :  { %5420 = vmatpush.msra.mxu3 %v6423_v11  ;;  %5446 = vmatpush.msra.mxu1 %v6436_v23  ;;  %v6396_v16 = vld [vmem:[%s10764_s15 + $0x1420] sm:$0xff]  ;;  %v6415_v11 = vld [vmem:[%s10764_s15 + $0x14b8] sm:$0xff] }
0x1aff   :  { %5466 = vmatpush.msra.mxu2 %v6455_v31  ;;  %5232 = vmatmul.f32.gmra.mxu0 %v4940_v36  ;;  %v4599_v48 = vpop.f32.mrf.mxu3  ;;  %v6428_v23 = vld [vmem:[%s10764_s15 + $0x1520] sm:$0xff]  ;;  %v10434_v31 = vld [vmem:[%s10763_s14 + $0x28] sm:$0xff] }
0x1b00   :  { %5278 = vmatmul.f32.gmra.mxu1 %v4942_v40  ;;  %5401 = vmatpush.msra.mxu0 %v6403_v17  ;;  %v4600_v35 = vadd.f32 %v4599_v48, %v4519_v1  ;;  %v4645_v14 = vpop.f32.mrf.mxu2  ;;  %v6447_v17 = vld [vmem:[%s10764_s15 + $0x15b8] sm:$0xff] }
0x1b01   :  { %5421 = vmatpush.msra.mxu3 %v6422_v24  ;;  %5447 = vmatpush.msra.mxu1 %v6435_v28  ;;  %v4646_v6 = vadd.f32 %v4645_v14, %v4521_v4  ;;  %v4665_v44 = vpop.f32.mrf.mxu0  ;;  %v6398_v4 = vld [vmem:[%s10764_s15 + $0x1430] sm:$0xff]  ;;  %v6395_v28 = vld [vmem:[%s10764_s15 + $0x1418] sm:$0xff] }
0x1b02   :  { %5467 = vmatpush.msra.mxu2 %v6454_v32  ;;  %v4941_v8 = vmax.f32 %v4600_v35, 0.0  ;;  %5402 = vmatpush.msra.mxu0 %v6402_v34  ;;  %v4666_v12 = vadd.f32 %v4665_v44, %v4522_v29  ;;  %v4711_v50 = vpop.f32.mrf.mxu1  ;;  %v6427_v32 = vld [vmem:[%s10764_s15 + $0x1518] sm:$0xff]  ;;  %v4526_v34 = vperm.slane %v10434_v31, 0  ;;  %v6394_v14 = vld [vmem:[%s10764_s15 + $0x1410] sm:$0xff] }
0x1b03   :  { %v4943_v53 = vmax.f32 %v4646_v6, 0.0  ;;  %5422 = vmatpush.msra.mxu3 %v6421_v38  ;;  %5448 = vmatpush.msra.mxu1 %v6434_v39  ;;  %v4712_v54 = vadd.f32 %v4711_v50, %v4524_v30  ;;  %v4528_v39 = vperm.slane %v10434_v31, 2  ;;  %v6413_v6 = vld [vmem:[%s10764_s15 + $0x14a8] sm:$0xff]  ;;  %v6412_v50 = vld [vmem:[%s10764_s15 + $0x14a0] sm:$0xff] }
0x1b04   :  { %5468 = vmatpush.msra.mxu2 %v6453_v41  ;;  %5403 = vmatpush.msra.mxu0 %v6401_v43  ;;  %v4928_v56 = vmax.f32 %v4666_v12, 0.0  ;;  %v6426_v41 = vld [vmem:[%s10764_s15 + $0x1510] sm:$0xff]  ;;  %v6393_v43 = vld [vmem:[%s10764_s15 + $0x1408] sm:$0xff] }
0x1b05   :  { %5423 = vmatpush.msra.mxu3 %v6420_v45  ;;  %5449 = vmatpush.msra.mxu1 %v6433_v51  ;;  %v4930_v26 = vmax.f32 %v4712_v54, 0.0  ;;  %v6425_v45 = vld [vmem:[%s10764_s15 + $0x1508] sm:$0xff]  ;;  %v6444_v54 = vld [vmem:[%s10764_s15 + $0x15a0] sm:$0xff] }
0x1b06   :  { %5469 = vmatpush.msra.mxu2 %v6452_v55  ;;  %5255 = vmatmul.f32.gmra.mxu3 %v4941_v8  ;;  %v6392_v55 = vld [vmem:[%s10764_s15 + $0x1400] sm:$0xff] }
0x1b07   :  { %5301 = vmatmul.f32.gmra.mxu2 %v4943_v53  ;;  %5404 = vmatpush.msra.mxu0 %v6400_v47  ;;  %v4688_v37 = vpop.f32.mrf.mxu3  ;;  %v6411_v47 = vld [vmem:[%s10764_s15 + $0x1498] sm:$0xff] }
0x1b08   :  { %5424 = vmatpush.msra.mxu3 %v6419_v18  ;;  %5450 = vmatpush.msra.mxu1 %v6432_v20  ;;  %v4689_v49 = vadd.f32 %v4688_v37, %v4523_v25  ;;  %v4734_v1 = vpop.f32.mrf.mxu2  ;;  %v6443_v18 = vld [vmem:[%s10764_s15 + $0x1598] sm:$0xff]  ;;  %v4529_v37 = vperm.slane %v10434_v31, 3 }
0x1b09   :  { %5470 = vmatpush.msra.mxu2 %v6451_v58  ;;  %5321 = vmatmul.f32.vlgmr.msrb.gmra.mxu0 %v4928_v56  ;;  %v4735_v2 = vadd.f32 %v4734_v1, %v4525_v7  ;;  %v4668_v33 = vpop.f32.mrf.mxu0  ;;  %v6471_v20 = vld [vmem:[%s10764_s15 + $0x1678] sm:$0xff]  ;;  %v6470_v1 = vld [vmem:[%s10764_s15 + $0x1670] sm:$0xff] }
0x1b0a   :  { %5367 = vmatmul.f32.vlgmr.msrb.gmra.mxu1 %v4930_v26  ;;  %5405 = vmatpush.msra.mxu0 %v6399_v62  ;;  %v4714_v59 = vpop.f32.mrf.mxu1  ;;  %v4669_v9 = vadd.f32 %v4668_v33, %v4522_v29  ;;  %v4929_v13 = vmax.f32 %v4689_v49, 0.0  ;;  %v6414_v29 = vld [vmem:[%s10764_s15 + $0x14b0] sm:$0xff]  ;;  %v6503_v58 = vld [vmem:[%s10764_s15 + $0x1778] sm:$0xff] }
0x1b0b   :  { %5425 = vmatpush.msra.mxu3 %v6418_v0  ;;  %5451 = vmatpush.msra.mxu1 %v6431_v27  ;;  %v4715_v15 = vadd.f32 %v4714_v59, %v4524_v30  ;;  %v4931_v19 = vmax.f32 %v4735_v2, 0.0  ;;  %v6446_v30 = vld [vmem:[%s10764_s15 + $0x15b0] sm:$0xff] }
0x1b0c   :  { %5471 = vmatpush.msra.mxu2 %v6450_v61  ;;  %5406 = vmatpush.msra.mxu0 %v6398_v4  ;;  %v4944_v22 = vmax.f32 %v4669_v9, 0.0  ;;  %v6410_v0 = vld [vmem:[%s10764_s15 + $0x1490] sm:$0xff]  ;;  %v6409_v4 = vld [vmem:[%s10764_s15 + $0x1488] sm:$0xff] }
0x1b0d   :  { %5426 = vmatpush.msra.mxu3 %v6417_v60  ;;  %5452 = vmatpush.msra.mxu1 %v6430_v42  ;;  %v4946_v40 = vmax.f32 %v4715_v15, 0.0  ;;  %v6442_v49 = vld [vmem:[%s10764_s15 + $0x1590] sm:$0xff]  ;;  %v6441_v42 = vld [vmem:[%s10764_s15 + $0x1588] sm:$0xff]  ;;  %v6440_v15 = vld [vmem:[%s10764_s15 + $0x1580] sm:$0xff] }
0x1b0e   :  { %5472 = vmatpush.msra.mxu2 %v6449_v10  ;;  %5407 = vmatpush.msra.mxu0 %v6397_v46  ;;  %v6502_v2 = vld [vmem:[%s10764_s15 + $0x1770] sm:$0xff]  ;;  %v6469_v10 = vld [vmem:[%s10764_s15 + $0x1668] sm:$0xff]  ;;  %v6408_v46 = vld [vmem:[%s10764_s15 + $0x1480] sm:$0xff] }
0x1b0f   :  { %5427 = vmatpush.msra.mxu3 %v6416_v52  ;;  %5453 = vmatpush.msra.mxu1 %v6429_v63  ;;  %v4691_v36 = vpop.f32.mrf.mxu3  ;;  %v6501_v9 = vld [vmem:[%s10764_s15 + $0x1768] sm:$0xff]  ;;  %v6468_v52 = vld [vmem:[%s10764_s15 + $0x1660] sm:$0xff] }
0x1b10   :  { %5473 = vmatpush.msra.mxu2 %v6448_v21  ;;  %5344 = vmatmul.f32.vlgmr.msrb.gmra.mxu3 %v4929_v13  ;;  %v4737_v24 = vpop.f32.mrf.mxu2  ;;  %v4692_v48 = vadd.f32 %v4691_v36, %v4523_v25  ;;  %v6424_v25 = vld [vmem:[%s10764_s15 + $0x1500] sm:$0xff]  ;;  %v6487_v21 = vld [vmem:[%s10764_s15 + $0x16f8] sm:$0xff] }
0x1b11   :  { %5390 = vmatmul.f32.vlgmr.msrb.gmra.mxu2 %v4931_v19  ;;  %5408 = vmatpush.msra.mxu0 %v6396_v16  ;;  %v4738_v35 = vadd.f32 %v4737_v24, %v4525_v7  ;;  %v4757_v38 = vpop.f32.mrf.mxu0  ;;  %v4527_v7 = vperm.slane %v10434_v31, 1  ;;  %v6500_v16 = vld [vmem:[%s10764_s15 + $0x1760] sm:$0xff] }
0x1b12   :  { %5428 = vmatpush.msra.mxu3 %v6415_v11  ;;  %5454 = vmatpush.msra.mxu1 %v6428_v23  ;;  %v4803_v44 = vpop.f32.mrf.mxu1  ;;  %v4945_v8 = vmax.f32 %v4692_v48, 0.0  ;;  %v4758_v12 = vadd.f32 %v4757_v38, %v4526_v34  ;;  %v6519_v11 = vld [vmem:[%s10764_s15 + $0x17f8] sm:$0xff]  ;;  %v6466_v48 = vld [vmem:[%s10764_s15 + $0x1650] sm:$0xff]  ;;  %v6517_v38 = vld [vmem:[%s10764_s15 + $0x17e8] sm:$0xff] }
0x1b13   :  { %5474 = vmatpush.msra.mxu2 %v6447_v17  ;;  %5324 = vmatmul.f32.gmra.mxu0 %v4944_v22  ;;  %v4947_v51 = vmax.f32 %v4738_v35, 0.0  ;;  %v4804_v53 = vadd.f32 %v4803_v44, %v4528_v39  ;;  %v6467_v23 = vld [vmem:[%s10764_s15 + $0x1658] sm:$0xff]  ;;  %v6498_v35 = vld [vmem:[%s10764_s15 + $0x1750] sm:$0xff]  ;;  %v6516_v44 = vld [vmem:[%s10764_s15 + $0x17e0] sm:$0xff] }
0x1b14   :  { %5370 = vmatmul.f32.gmra.mxu1 %v4946_v40  ;;  %5409 = vmatpush.msra.mxu0 %v6395_v28  ;;  %v4932_v56 = vmax.f32 %v4758_v12, 0.0  ;;  %v6486_v40 = vld [vmem:[%s10764_s15 + $0x16f0] sm:$0xff]  ;;  %v6499_v17 = vld [vmem:[%s10764_s15 + $0x1758] sm:$0xff]  ;;  %v6496_v12 = vld [vmem:[%s10764_s15 + $0x1740] sm:$0xff] }
0x1b15   :  { %5429 = vmatpush.msra.mxu3 %v6414_v29  ;;  %5455 = vmatpush.msra.mxu1 %v6427_v32  ;;  %v4934_v26 = vmax.f32 %v4804_v53, 0.0  ;;  %v6518_v29 = vld [vmem:[%s10764_s15 + $0x17f0] sm:$0xff] }
0x1b16   :  { %5475 = vmatpush.msra.mxu2 %v6446_v30  ;;  %5410 = vmatpush.msra.mxu0 %v6394_v14  ;;  %v6485_v30 = vld [vmem:[%s10764_s15 + $0x16e8] sm:$0xff]  ;;  %v6482_v53 = vld [vmem:[%s10764_s15 + $0x16d0] sm:$0xff] }
0x1b17   :  { %5430 = vmatpush.msra.mxu3 %v6413_v6  ;;  %5456 = vmatpush.msra.mxu1 %v6426_v41  ;;  %v4780_v62 = vpop.f32.mrf.mxu3  ;;  %v6484_v6 = vld [vmem:[%s10764_s15 + $0x16e0] sm:$0xff]  ;;  %v6497_v41 = vld [vmem:[%s10764_s15 + $0x1748] sm:$0xff] }
0x1b18   :  { %5476 = vmatpush.msra.mxu2 %v6445_v57  ;;  %5411 = vmatpush.msra.mxu0 %v6393_v43  ;;  %v4826_v27 = vpop.f32.mrf.mxu2  ;;  %v4781_v61 = vadd.f32 %v4780_v62, %v4527_v7  ;;  %v6464_v57 = vld [vmem:[%s10764_s15 + $0x1640] sm:$0xff] }
0x1b19   :  { %5431 = vmatpush.msra.mxu3 %v6412_v50  ;;  %5457 = vmatpush.msra.mxu1 %v6425_v45  ;;  %v4760_v33 = vpop.f32.mrf.mxu0  ;;  %v4827_v60 = vadd.f32 %v4826_v27, %v4529_v37  ;;  %v6515_v45 = vld [vmem:[%s10764_s15 + $0x17d8] sm:$0xff]  ;;  %v6460_v62 = vld [vmem:[%s10764_s15 + $0x1620] sm:$0xff] }
0x1b1a   :  { %5477 = vmatpush.msra.mxu2 %v6444_v54  ;;  %5347 = vmatmul.f32.gmra.mxu3 %v4945_v8  ;;  %v4806_v59 = vpop.f32.mrf.mxu1  ;;  %v4761_v13 = vadd.f32 %v4760_v33, %v4526_v34  ;;  %v4933_v63 = vmax.f32 %v4781_v61, 0.0  ;;  %v6483_v8 = vld [vmem:[%s10764_s15 + $0x16d8] sm:$0xff]  ;;  %v4530_v61 = vperm.slane %v10434_v31, 4 }
0x1b1b   :  { %5393 = vmatmul.f32.gmra.mxu2 %v4947_v51  ;;  %5412 = vmatpush.msra.mxu0 %v6392_v55  ;;  %v4807_v19 = vadd.f32 %v4806_v59, %v4528_v39  ;;  %v4935_v22 = vmax.f32 %v4827_v60, 0.0  ;;  %v6465_v39 = vld [vmem:[%s10764_s15 + $0x1648] sm:$0xff]  ;;  %v6463_v51 = vld [vmem:[%s10764_s15 + $0x1638] sm:$0xff]  ;;  %v6514_v55 = vld [vmem:[%s10764_s15 + $0x17d0] sm:$0xff]  ;;  %v4532_v60 = vperm.slane %v10434_v31, 6 }
0x1b1c   :  { %5432 = vmatpush.msra.mxu3 %v6411_v47  ;;  %5458 = vmatpush.msra.mxu1 %v6424_v25  ;;  %v4948_v36 = vmax.f32 %v4761_v13, 0.0  ;;  %v6495_v54 = vld [vmem:[%s10764_s15 + $0x1738] sm:$0xff]  ;;  %v6462_v47 = vld [vmem:[%s10764_s15 + $0x1630] sm:$0xff]  ;;  %v6481_v25 = vld [vmem:[%s10764_s15 + $0x16c8] sm:$0xff] }
0x1b1d   :  { %5478 = vmatpush.msra.mxu2 %v6443_v18  ;;  %5489 = vmatpush.msrb.mxu0 %v6471_v20  ;;  %v4950_v28 = vmax.f32 %v4807_v19, 0.0  ;;  %v6513_v18 = vld [vmem:[%s10764_s15 + $0x17c8] sm:$0xff]  ;;  %v6491_v33 = vld [vmem:[%s10764_s15 + $0x1718] sm:$0xff]  ;;  %v6458_v59 = vld [vmem:[%s10764_s15 + $0x1610] sm:$0xff] }
0x1b1e   :  { %5535 = vmatpush.msrb.mxu1 %v6503_v58  ;;  %5413 = vmatmul.f32.vlgmr.msra.gmra.mxu0 %v4932_v56  ;;  %v6494_v56 = vld [vmem:[%s10764_s15 + $0x1730] sm:$0xff]  ;;  %v6461_v20 = vld [vmem:[%s10764_s15 + $0x1628] sm:$0xff]  ;;  %v6512_v58 = vld [vmem:[%s10764_s15 + $0x17c0] sm:$0xff] }
0x1b1f   :  { %5433 = vmatpush.msra.mxu3 %v6410_v0  ;;  %5459 = vmatmul.f32.vlgmr.msra.gmra.mxu1 %v4934_v26  ;;  %v4783_v24 = vpop.f32.mrf.mxu3  ;;  %v6493_v26 = vld [vmem:[%s10764_s15 + $0x1728] sm:$0xff]  ;;  %v6492_v0 = vld [vmem:[%s10764_s15 + $0x1720] sm:$0xff] }
0x1b20   :  { %5479 = vmatpush.msra.mxu2 %v6442_v49  ;;  %5490 = vmatpush.msrb.mxu0 %v6470_v1  ;;  %v4829_v32 = vpop.f32.mrf.mxu2  ;;  %v4784_v34 = vadd.f32 %v4783_v24, %v4527_v7  ;;  %v6480_v7 = vld [vmem:[%s10764_s15 + $0x16c0] sm:$0xff]  ;;  %v6511_v49 = vld [vmem:[%s10764_s15 + $0x17b8] sm:$0xff]  ;;  %v6457_v13 = vld [vmem:[%s10764_s15 + $0x1608] sm:$0xff] }
0x1b21   :  { %5536 = vmatpush.msrb.mxu1 %v6502_v2  ;;  %5434 = vmatpush.msra.mxu3 %v6409_v4  ;;  %v4830_v14 = vadd.f32 %v4829_v32, %v4529_v37  ;;  %v6479_v37 = vld [vmem:[%s10764_s15 + $0x16b8] sm:$0xff]  ;;  %v4849_v27 = vpop.f32.mrf.mxu0  ;;  %v6478_v4 = vld [vmem:[%s10764_s15 + $0x16b0] sm:$0xff] }
0x1b22   :  { %5480 = vmatpush.msra.mxu2 %v6441_v42  ;;  %5491 = vmatpush.msrb.mxu0 %v6469_v10  ;;  %v4949_v43 = vmax.f32 %v4784_v34, 0.0  ;;  %v6459_v1 = vld [vmem:[%s10764_s15 + $0x1618] sm:$0xff]  ;;  %v4895_v2 = vpop.f32.mrf.mxu1  ;;  %v6510_v42 = vld [vmem:[%s10764_s15 + $0x17b0] sm:$0xff]  ;;  %v6477_v10 = vld [vmem:[%s10764_s15 + $0x16a8] sm:$0xff] }
0x1b23   :  { %5537 = vmatpush.msrb.mxu1 %v6501_v9  ;;  %5435 = vmatpush.msra.mxu3 %v6408_v46  ;;  %v4951_v50 = vmax.f32 %v4830_v14, 0.0  ;;  %v6490_v9 = vld [vmem:[%s10764_s15 + $0x1710] sm:$0xff]  ;;  %v6509_v46 = vld [vmem:[%s10764_s15 + $0x17a8] sm:$0xff]  ;;  %v4896_v19 = vadd.f32 %v4895_v2, %v4532_v60  ;;  %v6507_v24 = vld [vmem:[%s10764_s15 + $0x1798] sm:$0xff] }
0x1b24   :  { %5481 = vmatpush.msra.mxu2 %v6440_v15  ;;  %5492 = vmatpush.msrb.mxu0 %v6468_v52  ;;  %v4850_v15 = vadd.f32 %v4849_v27, %v4530_v61  ;;  %v6476_v52 = vld [vmem:[%s10764_s15 + $0x16a0] sm:$0xff] }
0x1b25   :  { %5512 = vmatpush.msrb.mxu3 %v6487_v21  ;;  %5538 = vmatpush.msrb.mxu1 %v6500_v16  ;;  %v6508_v16 = vld [vmem:[%s10764_s15 + $0x17a0] sm:$0xff]  ;;  %v4938_v32 = vmax.f32 %v4896_v19, 0.0 }
0x1b26   :  { %5558 = vmatpush.msrb.mxu2 %v6519_v11  ;;  %5436 = vmatmul.f32.vlgmr.msra.gmra.mxu3 %v4933_v63  ;;  %v6489_v63 = vld [vmem:[%s10764_s15 + $0x1708] sm:$0xff]  ;;  %v4531_v11 = vperm.slane %v10434_v31, 5 }
0x1b27   :  { %5482 = vmatmul.f32.vlgmr.msra.gmra.mxu2 %v4935_v22  ;;  %5493 = vmatpush.msrb.mxu0 %v6467_v23  ;;  %v4872_v21 = vpop.f32.mrf.mxu3  ;;  %v6456_v22 = vld [vmem:[%s10764_s15 + $0x1600] sm:$0xff] }
0x1b28   :  { %5513 = vmatpush.msrb.mxu3 %v6486_v40  ;;  %5539 = vmatpush.msrb.mxu1 %v6499_v17  ;;  %v4918_v23 = vpop.f32.mrf.mxu2  ;;  %v6488_v40 = vld [vmem:[%s10764_s15 + $0x1700] sm:$0xff]  ;;  %v4533_v17 = vperm.slane %v10434_v31, 7  ;;  %v6506_v31 = vld [vmem:[%s10764_s15 + $0x1790] sm:$0xff]  ;;  %v4873_v34 = vadd.f32 %v4872_v21, %v4531_v11 }
0x1b29   :  { %5559 = vmatpush.msrb.mxu2 %v6518_v29  ;;  %5416 = vmatmul.f32.gmra.mxu0 %v4948_v36  ;;  %v6475_v36 = vld [vmem:[%s10764_s15 + $0x1698] sm:$0xff]  ;;  %v6474_v29 = vld [vmem:[%s10764_s15 + $0x1690] sm:$0xff] }
0x1b2a   :  { %5462 = vmatmul.f32.gmra.mxu1 %v4950_v28  ;;  %5494 = vmatpush.msrb.mxu0 %v6466_v48  ;;  %v4936_v28 = vmax.f32 %v4850_v15, 0.0  ;;  %v4852_v48 = vpop.f32.mrf.mxu0  ;;  %v4919_v14 = vadd.f32 %v4918_v23, %v4533_v17  ;;  %v5600_v23 = vld [vmem:[%s10766_s17 + $0x10] sm:$0xff] }
0x1b2b   :  { %5514 = vmatpush.msrb.mxu3 %v6485_v30  ;;  %5540 = vmatpush.msrb.mxu1 %v6498_v35  ;;  %v4898_v30 = vpop.f32.mrf.mxu1  ;;  %v6473_v35 = vld [vmem:[%s10764_s15 + $0x1688] sm:$0xff] }
0x1b2c   :  { %5560 = vmatpush.msrb.mxu2 %v6517_v38  ;;  %5495 = vmatpush.msrb.mxu0 %v6465_v39  ;;  %v6505_v38 = vld [vmem:[%s10764_s15 + $0x1788] sm:$0xff]  ;;  %v4853_v39 = vadd.f32 %v4852_v48, %v4530_v61 }
0x1b2d   :  { %5515 = vmatpush.msrb.mxu3 %v6484_v6  ;;  %5541 = vmatpush.msrb.mxu1 %v6497_v41  ;;  %v6472_v6 = vld [vmem:[%s10764_s15 + $0x1680] sm:$0xff]  ;;  %v4899_v41 = vadd.f32 %v4898_v30, %v4532_v60 }
0x1b2e   :  { %5561 = vmatpush.msrb.mxu2 %v6516_v44  ;;  %5496 = vmatpush.msrb.mxu0 %v6464_v57  ;;  %v6504_v44 = vld [vmem:[%s10764_s15 + $0x1780] sm:$0xff]  ;;  %v4937_v57 = vmax.f32 %v4873_v34, 0.0 }
0x1b2f   :  { %5516 = vmatpush.msrb.mxu3 %v6483_v8  ;;  %5542 = vmatpush.msrb.mxu1 %v6496_v12  ;;  %v4875_v8 = vpop.f32.mrf.mxu3  ;;  %v4952_v12 = vmax.f32 %v4853_v39, 0.0 }
0x1b30   :  { %5562 = vmatpush.msrb.mxu2 %v6515_v45  ;;  %5439 = vmatmul.f32.gmra.mxu3 %v4949_v43  ;;  %v4939_v43 = vmax.f32 %v4919_v14, 0.0  ;;  %v4954_v45 = vmax.f32 %v4899_v41, 0.0 }
0x1b31   :  { %5485 = vmatmul.f32.gmra.mxu2 %v4951_v50  ;;  %5497 = vmatpush.msrb.mxu0 %v6463_v51  ;;  %v4921_v50 = vpop.f32.mrf.mxu2  ;;  %v4876_v51 = vadd.f32 %v4875_v8, %v4531_v11 }
0x1b32   :  { %5517 = vmatpush.msrb.mxu3 %v6482_v53  ;;  %5543 = vmatpush.msrb.mxu1 %v6495_v54  ;;  %v4922_v53 = vadd.f32 %v4921_v50, %v4533_v17 }
0x1b33   :  { %5563 = vmatpush.msrb.mxu2 %v6514_v55  ;;  %5498 = vmatpush.msrb.mxu0 %v6462_v47  ;;  %v4953_v54 = vmax.f32 %v4876_v51, 0.0 }
0x1b34   :  { %5518 = vmatpush.msrb.mxu3 %v6481_v25  ;;  %5544 = vmatpush.msrb.mxu1 %v6494_v56  ;;  %v4955_v55 = vmax.f32 %v4922_v53, 0.0 }
0x1b35   :  { %5564 = vmatpush.msrb.mxu2 %v6513_v18  ;;  %5499 = vmatpush.msrb.mxu0 %v6461_v20 }
0x1b36   :  { %5519 = vmatpush.msrb.mxu3 %v6480_v7  ;;  %5545 = vmatpush.msrb.mxu1 %v6493_v26 }
0x1b37   :  { %5565 = vmatpush.msrb.mxu2 %v6512_v58  ;;  %5500 = vmatpush.msrb.mxu0 %v6460_v62 }
0x1b38   :  { %5520 = vmatpush.msrb.mxu3 %v6479_v37  ;;  %5546 = vmatpush.msrb.mxu1 %v6492_v0 }
0x1b39   :  { %5566 = vmatpush.msrb.mxu2 %v6511_v49  ;;  %5501 = vmatpush.msrb.mxu0 %v6459_v1 }
0x1b3a   :  { %5521 = vmatpush.msrb.mxu3 %v6478_v4  ;;  %5547 = vmatpush.msrb.mxu1 %v6491_v33 }
0x1b3b   :  { %5567 = vmatpush.msrb.mxu2 %v6510_v42  ;;  %5502 = vmatpush.msrb.mxu0 %v6458_v59 }
0x1b3c   :  { %5522 = vmatpush.msrb.mxu3 %v6477_v10  ;;  %5548 = vmatpush.msrb.mxu1 %v6490_v9 }
0x1b3d   :  { %5568 = vmatpush.msrb.mxu2 %v6509_v46  ;;  %5503 = vmatpush.msrb.mxu0 %v6457_v13 }
0x1b3e   :  { %5523 = vmatpush.msrb.mxu3 %v6476_v52  ;;  %5549 = vmatpush.msrb.mxu1 %v6489_v63  ;;  %v5601_v52 = vld [vmem:[%s10766_s17 + $0x18] sm:$0xff] }
0x1b3f   :  { %5569 = vmatpush.msrb.mxu2 %v6508_v16  ;;  %5504 = vmatpush.msrb.mxu0 %v6456_v22 }
0x1b40   :  { %5524 = vmatpush.msrb.mxu3 %v6475_v36  ;;  %5550 = vmatpush.msrb.mxu1 %v6488_v40 }
0x1b41   :  { %5570 = vmatpush.msrb.mxu2 %v6507_v24  ;;  %5505 = vmatmul.f32.vlgmr.msrb.gmra.mxu0 %v4936_v28  ;;  %v5599_v24 = vld [vmem:[%s10766_s17 + $0x8] sm:$0xff]  ;;  %v5598_v28 = vld [vmem:[%s10766_s17] sm:$0xff] }
0x1b42   :  { %5551 = vmatmul.f32.vlgmr.msrb.gmra.mxu1 %v4938_v32  ;;  %5525 = vmatpush.msrb.mxu3 %v6474_v29 }
0x1b43   :  { %5571 = vmatpush.msrb.mxu2 %v6506_v31  ;;  %5621 = vmatpush.msra.mxu0 %v5601_v52 }
0x1b44   :  { %5526 = vmatpush.msrb.mxu3 %v6473_v35 }
0x1b45   :  { %5572 = vmatpush.msrb.mxu2 %v6505_v38  ;;  %5622 = vmatpush.msra.mxu0 %v5600_v23 }
0x1b46   :  { %5527 = vmatpush.msrb.mxu3 %v6472_v6 }
0x1b47   :  { %5573 = vmatpush.msrb.mxu2 %v6504_v44  ;;  %5528 = vmatmul.f32.vlgmr.msrb.gmra.mxu3 %v4937_v57 }
0x1b48   :  { %5574 = vmatmul.f32.vlgmr.msrb.gmra.mxu2 %v4939_v43  ;;  %5623 = vmatpush.msra.mxu0 %v5599_v24 }
0x1b49   :  { %5508 = vmatmul.f32.gmra.mxu0 %v4952_v12 }
0x1b4a   :  { %5554 = vmatmul.f32.gmra.mxu1 %v4954_v45  ;;  %5624 = vmatpush.msra.mxu0 %v5598_v28 }
0x1b4f   :  { %5531 = vmatmul.f32.gmra.mxu3 %v4953_v54 }
0x1b50   :  { %5577 = vmatmul.f32.gmra.mxu2 %v4955_v55 }
0x1b73   :  { %v5230_v47 = vpop.f32.mrf.mxu0 }
0x1b74   :  { %v5276_v25 = vpop.f32.mrf.mxu1 }
0x1b7c   :  { %v5233_v20 = vpop.f32.mrf.mxu0 }
0x1b7d   :  { %v5279_v7 = vpop.f32.mrf.mxu1 }
0x1b7f   :  { %v5253_v56 = vpop.f32.mrf.mxu3 }
0x1b80   :  { %v5299_v18 = vpop.f32.mrf.mxu2  ;;  %v5254_v37 = vadd.f32 %v5253_v56, %v5230_v47  ;;  %v6616_v56 = vld [vmem:[%s10765_s16 + $0x2] ss:$0 sm:$0xff] }
0x1b82   :  { %v5277_v1 = vadd.f32 %v5276_v25, %v5254_v37 }
0x1b84   :  { %v5300_v2 = vadd.f32 %v5299_v18, %v5277_v1 }
0x1b86   :  { %v5322_v62 = vpop.f32.mrf.mxu0 }
0x1b87   :  { %v5368_v0 = vpop.f32.mrf.mxu1  ;;  %v5323_v42 = vadd.f32 %v5322_v62, %v5300_v2 }
0x1b89   :  { %v5256_v26 = vpop.f32.mrf.mxu3 }
0x1b8a   :  { %v5302_v58 = vpop.f32.mrf.mxu2  ;;  %v5257_v4 = vadd.f32 %v5256_v26, %v5233_v20 }
0x1b8c   :  { %v5280_v59 = vadd.f32 %v5279_v7, %v5257_v4 }
0x1b8e   :  { %v5303_v13 = vadd.f32 %v5302_v58, %v5280_v59 }
0x1b90   :  { %v5325_v61 = vpop.f32.mrf.mxu0 }
0x1b91   :  { %v5371_v33 = vpop.f32.mrf.mxu1  ;;  %v5326_v63 = vadd.f32 %v5325_v61, %v5303_v13 }
0x1b93   :  { %v5345_v27 = vpop.f32.mrf.mxu3 }
0x1b94   :  { %v5391_v49 = vpop.f32.mrf.mxu2  ;;  %v5346_v9 = vadd.f32 %v5345_v27, %v5323_v42 }
0x1b96   :  { %v5369_v15 = vadd.f32 %v5368_v0, %v5346_v9 }
0x1b98   :  { %v5392_v16 = vadd.f32 %v5391_v49, %v5369_v15 }
0x1b9b   :  { %v5414_v46 = vpop.f32.mrf.mxu0 }
0x1b9c   :  { %v5460_v19 = vpop.f32.mrf.mxu1  ;;  %v5415_v40 = vadd.f32 %v5414_v46, %v5392_v16 }
0x1b9d   :  { %v5348_v60 = vpop.f32.mrf.mxu3 }
0x1b9e   :  { %v5394_v10 = vpop.f32.mrf.mxu2  ;;  %v5349_v22 = vadd.f32 %v5348_v60, %v5326_v63 }
0x1ba0   :  { %v5372_v17 = vadd.f32 %v5371_v33, %v5349_v22 }
0x1ba2   :  { %v5395_v32 = vadd.f32 %v5394_v10, %v5372_v17 }
0x1ba6   :  { %v5417_v36 = vpop.f32.mrf.mxu0 }
0x1ba7   :  { %v5463_v48 = vpop.f32.mrf.mxu1  ;;  %v5418_v14 = vadd.f32 %v5417_v36, %v5395_v32 }
0x1ba9   :  { %v5437_v21 = vpop.f32.mrf.mxu3 }
0x1baa   :  { %v5483_v11 = vpop.f32.mrf.mxu2  ;;  %v5438_v29 = vadd.f32 %v5437_v21, %v5415_v40 }
0x1bac   :  { %v5461_v34 = vadd.f32 %v5460_v19, %v5438_v29 }
0x1bae   :  { %v5484_v38 = vadd.f32 %v5483_v11, %v5461_v34 }
0x1bb3   :  { %v5440_v31 = vpop.f32.mrf.mxu3 }
0x1bb4   :  { %v5486_v30 = vpop.f32.mrf.mxu2  ;;  %v5441_v39 = vadd.f32 %v5440_v31, %v5418_v14 }
0x1bb6   :  { %v5464_v57 = vadd.f32 %v5463_v48, %v5441_v39 }
0x1bb8   :  { %v5487_v45 = vadd.f32 %v5486_v30, %v5464_v57 }
0x1bbe   :  { %v5506_v35 = vpop.f32.mrf.mxu0 }
0x1bbf   :  { %v5507_v6 = vadd.f32 %v5506_v35, %v5484_v38  ;;  %v5552_v41 = vpop.f32.mrf.mxu1 }
0x1bc6   :  { %v5509_v50 = vpop.f32.mrf.mxu0 }
0x1bc7   :  { %v5510_v51 = vadd.f32 %v5509_v50, %v5487_v45  ;;  %v5555_v47 = vpop.f32.mrf.mxu1 }
0x1bca   :  { %v5529_v44 = vpop.f32.mrf.mxu3 }
0x1bcb   :  { %v5530_v43 = vadd.f32 %v5529_v44, %v5507_v6  ;;  %v5575_v8 = vpop.f32.mrf.mxu2 }
0x1bcd   :  { %v5553_v12 = vadd.f32 %v5552_v41, %v5530_v43 }
0x1bcf   :  { %v5576_v53 = vadd.f32 %v5575_v8, %v5553_v12 }
0x1bd1   :  { %v5581_v25 = vadd.f32 %v5576_v53, %v9606_v3  ;;  %v6617_v3 = vld [vmem:[%s10767_s18] ss:$0 sm:$0xff] }
0x1bd2   :  { %v5532_v54 = vpop.f32.mrf.mxu3 }
0x1bd3   :  { %v5533_v55 = vadd.f32 %v5532_v54, %v5510_v51  ;;  %v5578_v20 = vpop.f32.mrf.mxu2  ;;  %v5588_v26 = vadd.f32 %v6616_v56, %v5581_v25 }
0x1bd5   :  { %v5556_v18 = vadd.f32 %v5555_v47, %v5533_v55  ;;  %v5591_v37 = vrot.slane %v5588_v26, 7 }
0x1bd7   :  { %v5579_v7 = vadd.f32 %v5578_v20, %v5556_v18 }
0x1bd9   :  { %v5582_v58 = vadd.f32 %v5579_v7, %v9611_v5 }
0x1bdb   :  { %v5589_v62 = vadd.f32 %v6616_v56, %v5582_v58 }
0x1bdd   :  { %v5594_v0 = vrot.slane %v5589_v62, 6 }
0x1bdf   :  { %v5597_v27 = vsel %vm5596_vm12, %v5591_v37, %v5594_v0 }
0x1be0   :  { %6521 = vmatmul.msk.f32.vlgmr.msra.gmra.mxu0 %vm108_vm1, %v5597_v27 }
0x1c5d   :  { %v5626_v49 = vpop.f32.mrf.mxu0 }
0x1c5e   :  { %v5627_v5 = vadd.f32 %v6617_v3, %v5626_v49 }
0x1c60   :  { %5630 = vst.msk [vmem:[#allocation2] sm:$0x3] %vm5629_vm13, %v5627_v5 }
0x1c61   :  { %5641 = dma.vmem_to_hbm [thread:$0]  %s5637_s2, 32, %s5639_s1, [#allocation3]  }
0x1c62   :  { %6768 = dma.done.wait [#allocation3], 32  }
0x1c63   :  { %6769 = vsyncadd [#allocation3], 4294967264 }
0x1c64   :  { %5646 = vsyncpa [#allocation3], 1 }

</bundles_post_ra>
